<compile_context>
chip_gen: v7x
topology: tpu7x:2x2x1
jax: 0.10.0
libtpu: 0.0.40
codegen_flags: <defaults>
</compile_context>

<pallas_src>
import functools
import numpy as np
import jax
import jax.numpy as jnp
from jax.experimental import pallas as pl
from jax.experimental.pallas import tpu as pltpu


def _round_up(v, m):
    return ((v + m - 1) // m) * m


def _elu(x):
    # ELU(alpha=1): x if x > 0 else exp(x) - 1  (exp arg clamped for safety; select picks x)
    return jnp.where(x > 0.0, x, jnp.exp(jnp.minimum(x, 0.0)) - 1.0)


# ---------------------- per-image standardization (row-tiled) ----------------------
def _standardize_kernel(x_ref, o_ref, *, dim):
    x = x_ref[...]
    mean = jnp.mean(x, axis=1, keepdims=True)
    d = x - mean
    var = jnp.sum(d * d, axis=1, keepdims=True) * (1.0 / (dim - 1))   # torch.std is unbiased
    adj = jnp.maximum(jnp.sqrt(var), 1.0 / float(np.sqrt(dim)))
    o_ref[...] = d / adj


def per_image_standardization(x_nhwc):
    n = x_nhwc.shape[0]
    dim = int(np.prod(x_nhwc.shape[1:]))            # C*H*W (layout-invariant statistics)
    flat = x_nhwc.reshape(n, dim)
    br = min(128, _round_up(n, 8))                  # row tile; ragged last block is masked
    out = pl.pallas_call(
        functools.partial(_standardize_kernel, dim=dim),
        out_shape=jax.ShapeDtypeStruct((n, dim), jnp.float32),
        grid=(pl.cdiv(n, br),),
        in_specs=[pl.BlockSpec((br, dim), lambda i: (i, 0))],
        out_specs=pl.BlockSpec((br, dim), lambda i: (i, 0)),
        compiler_params=pltpu.CompilerParams(dimension_semantics=("parallel",)),
    )(flat)
    return out.reshape(x_nhwc.shape)


# ------------- fused conv (im2col matmul) + bias + ELU (+ 2x2 max-pool) -------------
def _conv_mm_kernel(a_ref, b_ref, bias_ref, o_ref):
    # grid = (m_tiles, G); g is the pool-window position (G=1 for un-pooled convs).
    g = pl.program_id(1)
    y = jnp.dot(a_ref[0], b_ref[...], preferred_element_type=jnp.float32)
    y = _elu(y + bias_ref[...])

    @pl.when(g == 0)
    def _init():
        o_ref[...] = y

    @pl.when(g > 0)
    def _accum():
        o_ref[...] = jnp.maximum(o_ref[...], y)     # fused ELU-then-maxpool


def conv3x3_elu(x_nhwc, w_mat, bias, *, pool, mxu_dtype=jnp.float32):
    """3x3 / stride 1 / valid conv + ELU, optionally fused with 2x2/s2 max-pool.

    x_nhwc: (N, H, W, Cin).  w_mat: (9*Cin, Cout) with k = (i*3 + j)*Cin + ci.
    Returns NHWC output (pooled if pool=True).
    """
    n, h, w, cin = x_nhwc.shape
    k_dim, cout = w_mat.shape
    kh = kw = 3
    ho, wo = h - kh + 1, w - kw + 1

    if pool:
        hp, wp = ho // 2, wo // 2
        groups = []
        for wy in range(2):
            for wx in range(2):
                pats = [x_nhwc[:, wy + i: wy + i + 2 * hp: 2, wx + j: wx + j + 2 * wp: 2, :]
                        for i in range(kh) for j in range(kw)]
                groups.append(jnp.stack(pats, axis=3).reshape(n * hp * wp, kh * kw * cin))
        a = jnp.stack(groups, axis=0)               # (4, N*hp*wp, K)
        oh, ow = hp, wp
    else:
        pats = [x_nhwc[:, i: i + ho, j: j + wo, :] for i in range(kh) for j in range(kw)]
        a = jnp.stack(pats, axis=3).reshape(1, n * ho * wo, kh * kw * cin)   # (1, M, K)
        oh, ow = ho, wo

    G, M, K = a.shape
    assert K == k_dim
    tm = min(128, _round_up(M, 8))                  # no explicit jnp.pad: ragged grid masks

    out = pl.pallas_call(
        _conv_mm_kernel,
        out_shape=jax.ShapeDtypeStruct((M, cout), jnp.float32),
        grid=(pl.cdiv(M, tm), G),
        in_specs=[
            pl.BlockSpec((1, tm, K), lambda i, g: (g, i, 0)),
            pl.BlockSpec((K, cout), lambda i, g: (0, 0)),     # weights resident in VMEM
            pl.BlockSpec((1, cout), lambda i, g: (0, 0)),
        ],
        out_specs=pl.BlockSpec((tm, cout), lambda i, g: (i, 0)),
        compiler_params=pltpu.CompilerParams(
            dimension_semantics=("parallel", "arbitrary")),
    )(a.astype(mxu_dtype), w_mat.astype(mxu_dtype),
      bias.reshape(1, cout).astype(jnp.float32))
    return out.reshape(n, oh, ow, cout)


# ----------------------------- fused fc1(ELU) -> fc2 -----------------------------
def _fc_fused_kernel(x_ref, w1_ref, b1_ref, w2_ref, b2_ref, o_ref):
    h = jnp.dot(x_ref[...], w1_ref[...], preferred_element_type=jnp.float32)
    h = _elu(h + b1_ref[...])
    h = h.astype(w2_ref.dtype)
    o_ref[...] = jnp.dot(h, w2_ref[...], preferred_element_type=jnp.float32) + b2_ref[...]


def fc1_fc2_fused(x, w1, b1, w2, b2, *, mxu_dtype=jnp.float32):
    m, k1 = x.shape
    _, n1 = w1.shape
    _, n2 = w2.shape
    bm = min(128, _round_up(m, 8))                  # pad M only to sublane multiple
    return pl.pallas_call(
        _fc_fused_kernel,
        out_shape=jax.ShapeDtypeStruct((m, n2), jnp.float32),
        grid=(pl.cdiv(m, bm),),
        in_specs=[
            pl.BlockSpec((bm, k1), lambda i: (i, 0)),
            pl.BlockSpec((k1, n1), lambda i: (0, 0)),         # w1 resident (~3.1 MiB f32)
            pl.BlockSpec((1, n1), lambda i: (0, 0)),
            pl.BlockSpec((n1, n2), lambda i: (0, 0)),         # w2 resident
            pl.BlockSpec((1, n2), lambda i: (0, 0)),
        ],
        out_specs=pl.BlockSpec((bm, n2), lambda i: (i, 0)),
        compiler_params=pltpu.CompilerParams(dimension_semantics=("parallel",)),
    )(x.astype(mxu_dtype), w1.astype(mxu_dtype), b1.reshape(1, n1).astype(jnp.float32),
      w2.astype(mxu_dtype), b2.reshape(1, n2).astype(jnp.float32))


# ------------------------------------ forward ------------------------------------
def c20_forward(x_nchw, kp, *, mxu_dtype=jnp.float32):
    x = jnp.transpose(x_nchw, (0, 2, 3, 1)).astype(jnp.float32)       # NCHW -> NHWC
    x = per_image_standardization(x)
    x = conv3x3_elu(x, kp["c1_w"], kp["c1_b"], pool=False, mxu_dtype=mxu_dtype)  # (N,30,30,32)
    x = conv3x3_elu(x, kp["c2_w"], kp["c2_b"], pool=True,  mxu_dtype=mxu_dtype)  # (N,14,14,32)
    x = conv3x3_elu(x, kp["c3_w"], kp["c3_b"], pool=False, mxu_dtype=mxu_dtype)  # (N,12,12,64)
    x = conv3x3_elu(x, kp["c4_w"], kp["c4_b"], pool=True,  mxu_dtype=mxu_dtype)  # (N,5,5,64)
    n = x.shape[0]
    # torch x.view(-1, 64*5*5) flattens NCHW order -> transpose back before flatten.
    x = jnp.transpose(x, (0, 3, 1, 2)).reshape(n, 64 * 5 * 5)
    return fc1_fc2_fused(x, kp["fc1_w"], kp["fc1_b"], kp["fc2_w"], kp["fc2_b"],
                         mxu_dtype=mxu_dtype)


# -------------------------------- parameter setup --------------------------------
def init_params(key):
    """Parameters in PyTorch-native layouts (Conv2d OIHW, Linear (out,in))."""
    ks = jax.random.split(key, 12)

    def u(k, shape, fan_in):
        bound = 1.0 / np.sqrt(fan_in)
        return jax.random.uniform(k, shape, jnp.float32, -bound, bound)

    return {
        "conv1_w": u(ks[0], (32, 3, 3, 3), 27),    "conv1_b": u(ks[1], (32,), 27),
        "conv2_w": u(ks[2], (32, 32, 3, 3), 288),  "conv2_b": u(ks[3], (32,), 288),
        "conv3_w": u(ks[4], (64, 32, 3, 3), 288),  "conv3_b": u(ks[5], (64,), 288),
        "conv4_w": u(ks[6], (64, 64, 3, 3), 576),  "conv4_b": u(ks[7], (64,), 576),
        "fc1_w": u(ks[8], (512, 1600), 1600),      "fc1_b": u(ks[9], (512,), 1600),
        "fc2_w": u(ks[10], (10, 512), 512),        "fc2_b": u(ks[11], (10,), 512),
    }


def prepare_params(p):
    """One-time (hoisted) conversion: torch layouts -> matmul layouts used by the kernels."""
    def conv_w(w):  # (cout, cin, kh, kw) -> (kh*kw*cin, cout) with k = (i*kw + j)*cin + ci
        cout, cin, kh, kw = w.shape
        return jnp.transpose(w, (2, 3, 1, 0)).reshape(kh * kw * cin, cout)

    return {
        "c1_w": conv_w(p["conv1_w"]), "c1_b": p["conv1_b"],
        "c2_w": conv_w(p["conv2_w"]), "c2_b": p["conv2_b"],
        "c3_w": conv_w(p["conv3_w"]), "c3_b": p["conv3_b"],
        "c4_w": conv_w(p["conv4_w"]), "c4_b": p["conv4_b"],
        "fc1_w": p["fc1_w"].T, "fc1_b": p["fc1_b"],   # (1600, 512): col idx = c*25 + h*5 + w
        "fc2_w": p["fc2_w"].T, "fc2_b": p["fc2_b"],   # (512, 10)
    }


if __name__ == "__main__":
    key = jax.random.PRNGKey(0)
    pkey, xkey = jax.random.split(key)
    params = prepare_params(init_params(pkey))
    x = jax.random.normal(xkey, (2, 3, 32, 32), dtype=jnp.float32)   # CIFAR-like input
    fwd = jax.jit(c20_forward)
    out = jax.block_until_ready(fwd(x, params))
    assert out.shape == (2, 10) and out.dtype == jnp.float32
    assert bool(jnp.all(jnp.isfinite(out)))
    print("KERNEL_OK")
</pallas_src>

<mosaic_0001>
module attributes {stable_mosaic.version = 11 : i64} {
  func.func @_standardize_kernel(%arg0: i32, %arg1: memref<8x3072xf32, #tpu.memory_space<vmem>>, %arg2: memref<8x3072xf32, #tpu.memory_space<vmem>>) attributes {dimension_semantics = [#tpu.dimension_semantics<parallel>], iteration_bounds = array<i64: 1>, scalar_prefetch = 0 : i64, scratch_operands = 0 : i64, tpu.core_type = #tpu.core_type<tc>, window_params = [{transform_indices = @transform_0, window_bounds = array<i64: 8, 3072>}, {transform_indices = @transform_1, window_bounds = array<i64: 8, 3072>}]} {
    %c0 = arith.constant 0 : index
    %c0_0 = arith.constant 0 : index
    %0 = vector.load %arg1[%c0, %c0_0] : memref<8x3072xf32, #tpu.memory_space<vmem>>, vector<8x3072xf32>
    %cst = arith.constant dense<0.000000e+00> : vector<8xf32>
    %1 = vector.multi_reduction <add>, %0, %cst [1] : vector<8x3072xf32> to vector<8xf32>
    %2 = vector.shape_cast %1 : vector<8xf32> to vector<8x1xf32>
    %cst_1 = arith.constant 3.072000e+03 : f32
    %3 = vector.broadcast %cst_1 : f32 to vector<8x1xf32>
    %4 = arith.divf %2, %3 : vector<8x1xf32>
    %5 = vector.broadcast %4 : vector<8x1xf32> to vector<8x3072xf32>
    %6 = arith.subf %0, %5 : vector<8x3072xf32>
    %7 = arith.mulf %6, %6 : vector<8x3072xf32>
    %cst_2 = arith.constant dense<0.000000e+00> : vector<8xf32>
    %8 = vector.multi_reduction <add>, %7, %cst_2 [1] : vector<8x3072xf32> to vector<8xf32>
    %9 = vector.shape_cast %8 : vector<8xf32> to vector<8x1xf32>
    %cst_3 = arith.constant 3.25626839E-4 : f32
    %10 = vector.broadcast %cst_3 : f32 to vector<8x1xf32>
    %11 = arith.mulf %9, %10 : vector<8x1xf32>
    %12 = math.sqrt %11 : vector<8x1xf32>
    %cst_4 = arith.constant 0.0180421956 : f32
    %13 = vector.broadcast %cst_4 : f32 to vector<8x1xf32>
    %14 = arith.maximumf %12, %13 : vector<8x1xf32>
    %15 = vector.broadcast %14 : vector<8x1xf32> to vector<8x3072xf32>
    %16 = arith.divf %6, %15 : vector<8x3072xf32>
    %c0_5 = arith.constant 0 : index
    %c0_6 = arith.constant 0 : index
    %17 = vector.load %arg2[%c0_5, %c0_6] : memref<8x3072xf32, #tpu.memory_space<vmem>>, vector<8x3072xf32>
    tpu.vector_store %arg2[%c0_5, %c0_6], %16 {strides = array<i32>} : memref<8x3072xf32, #tpu.memory_space<vmem>>, vector<8x3072xf32>,
    return
  }
  func.func @transform_0(%arg0: i32) -> (i32, i32) {
    %c0_i32 = arith.constant 0 : i32
    %c0_i32_0 = arith.constant 0 : i32
    return %arg0, %c0_i32 : i32, i32
  }
  func.func @transform_1(%arg0: i32) -> (i32, i32) {
    %c0_i32 = arith.constant 0 : i32
    %c0_i32_0 = arith.constant 0 : i32
    return %arg0, %c0_i32 : i32, i32
  }
}

module attributes {stable_mosaic.version = 11 : i64} {
  func.func @_conv_mm_kernel(%arg0: i32, %arg1: i32, %arg2: memref<1x128x27xf32, #tpu.memory_space<vmem>>, %arg3: memref<27x32xf32, #tpu.memory_space<vmem>>, %arg4: memref<1x32xf32, #tpu.memory_space<vmem>>, %arg5: memref<128x32xf32, #tpu.memory_space<vmem>>) attributes {dimension_semantics = [#tpu.dimension_semantics<parallel>, #tpu.dimension_semantics<arbitrary>], iteration_bounds = array<i64: 15, 1>, scalar_prefetch = 0 : i64, scratch_operands = 0 : i64, tpu.core_type = #tpu.core_type<tc>, window_params = [{transform_indices = @transform_0, window_bounds = array<i64: 1, 128, 27>}, {pipeline_mode = #tpu.pipeline_mode<synchronous>, transform_indices = @transform_1, window_bounds = array<i64: 27, 32>}, {pipeline_mode = #tpu.pipeline_mode<synchronous>, transform_indices = @transform_2, window_bounds = array<i64: 1, 32>}, {transform_indices = @transform_3, window_bounds = array<i64: 128, 32>}]} {
    %c0 = arith.constant 0 : index
    %c0_0 = arith.constant 0 : index
    %c0_1 = arith.constant 0 : index
    %0 = vector.load %arg2[%c0, %c0_0, %c0_1] : memref<1x128x27xf32, #tpu.memory_space<vmem>>, vector<1x128x27xf32>
    %1 = vector.shape_cast %0 : vector<1x128x27xf32> to vector<128x27xf32>
    %c0_2 = arith.constant 0 : index
    %c0_3 = arith.constant 0 : index
    %2 = vector.load %arg3[%c0_2, %c0_3] : memref<27x32xf32, #tpu.memory_space<vmem>>, vector<27x32xf32>
    %cst = arith.constant dense<0.000000e+00> : vector<128x32xf32>
    %3 = tpu.matmul %1, %2, %cst {dimension_numbers = #tpu.dot_dimension_numbers<[1], [0], [0], [1], [0, 0, 1, 1], [], []>} : vector<128x27xf32>, vector<27x32xf32>, vector<128x32xf32> -> vector<128x32xf32>
    %c0_4 = arith.constant 0 : index
    %c0_5 = arith.constant 0 : index
    %4 = vector.load %arg4[%c0_4, %c0_5] : memref<1x32xf32, #tpu.memory_space<vmem>>, vector<1x32xf32>
    %5 = vector.broadcast %4 : vector<1x32xf32> to vector<128x32xf32>
    %6 = arith.addf %3, %5 : vector<128x32xf32>
    %cst_6 = arith.constant 0.000000e+00 : f32
    %7 = vector.broadcast %cst_6 : f32 to vector<128x32xf32>
    %8 = arith.cmpf ogt, %6, %7 : vector<128x32xf32>
    %cst_7 = arith.constant 0.000000e+00 : f32
    %9 = vector.broadcast %cst_7 : f32 to vector<128x32xf32>
    %10 = arith.minimumf %6, %9 : vector<128x32xf32>
    %11 = math.exp %10 : vector<128x32xf32>
    %cst_8 = arith.constant 1.000000e+00 : f32
    %12 = vector.broadcast %cst_8 : f32 to vector<128x32xf32>
    %13 = arith.subf %11, %12 : vector<128x32xf32>
    %14 = arith.select %8, %6, %13 : vector<128x32xi1>, vector<128x32xf32>
    %c0_i32 = arith.constant 0 : i32
    %15 = arith.cmpi eq, %arg1, %c0_i32 : i32
    %16 = arith.extui %15 : i1 to i32
    %c0_i32_9 = arith.constant 0 : i32
    %17 = arith.cmpi ne, %16, %c0_i32_9 : i32
    scf.if %17 {
      %c0_12 = arith.constant 0 : index
      %c0_13 = arith.constant 0 : index
      %21 = vector.load %arg5[%c0_12, %c0_13] : memref<128x32xf32, #tpu.memory_space<vmem>>, vector<128x32xf32>
      tpu.vector_store %arg5[%c0_12, %c0_13], %14 {strides = array<i32>} : memref<128x32xf32, #tpu.memory_space<vmem>>, vector<128x32xf32>,
    } else {
    }
    %c0_i32_10 = arith.constant 0 : i32
    %18 = arith.cmpi sgt, %arg1, %c0_i32_10 : i32
    %19 = arith.extui %18 : i1 to i32
    %c0_i32_11 = arith.constant 0 : i32
    %20 = arith.cmpi ne, %19, %c0_i32_11 : i32
    scf.if %20 {
      %c0_12 = arith.constant 0 : index
      %c0_13 = arith.constant 0 : index
      %21 = vector.load %arg5[%c0_12, %c0_13] : memref<128x32xf32, #tpu.memory_space<vmem>>, vector<128x32xf32>
      %22 = arith.maximumf %21, %14 : vector<128x32xf32>
      %c0_14 = arith.constant 0 : index
      %c0_15 = arith.constant 0 : index
      %23 = vector.load %arg5[%c0_14, %c0_15] : memref<128x32xf32, #tpu.memory_space<vmem>>, vector<128x32xf32>
      tpu.vector_store %arg5[%c0_14, %c0_15], %22 {strides = array<i32>} : memref<128x32xf32, #tpu.memory_space<vmem>>, vector<128x32xf32>,
    } else {
    }
    return
  }
  func.func @transform_0(%arg0: i32, %arg1: i32) -> (i32, i32, i32) {
    %c0_i32 = arith.constant 0 : i32
    %c0_i32_0 = arith.constant 0 : i32
    return %arg1, %arg0, %c0_i32 : i32, i32, i32
  }
  func.func @transform_1(%arg0: i32, %arg1: i32) -> (i32, i32) {
    %c0_i32 = arith.constant 0 : i32
    %c0_i32_0 = arith.constant 0 : i32
    %c0_i32_1 = arith.constant 0 : i32
    return %c0_i32, %c0_i32_0 : i32, i32
  }
  func.func @transform_2(%arg0: i32, %arg1: i32) -> (i32, i32) {
    %c0_i32 = arith.constant 0 : i32
    %c0_i32_0 = arith.constant 0 : i32
    %c0_i32_1 = arith.constant 0 : i32
    return %c0_i32, %c0_i32_0 : i32, i32
  }
  func.func @transform_3(%arg0: i32, %arg1: i32) -> (i32, i32) {
    %c0_i32 = arith.constant 0 : i32
    %c0_i32_0 = arith.constant 0 : i32
    return %arg0, %c0_i32 : i32, i32
  }
}

module attributes {stable_mosaic.version = 11 : i64} {
  func.func @_conv_mm_kernel(%arg0: i32, %arg1: i32, %arg2: memref<1x128x288xf32, #tpu.memory_space<vmem>>, %arg3: memref<288x32xf32, #tpu.memory_space<vmem>>, %arg4: memref<1x32xf32, #tpu.memory_space<vmem>>, %arg5: memref<128x32xf32, #tpu.memory_space<vmem>>) attributes {dimension_semantics = [#tpu.dimension_semantics<parallel>, #tpu.dimension_semantics<arbitrary>], iteration_bounds = array<i64: 4, 4>, scalar_prefetch = 0 : i64, scratch_operands = 0 : i64, tpu.core_type = #tpu.core_type<tc>, window_params = [{transform_indices = @transform_0, window_bounds = array<i64: 1, 128, 288>}, {pipeline_mode = #tpu.pipeline_mode<synchronous>, transform_indices = @transform_1, window_bounds = array<i64: 288, 32>}, {pipeline_mode = #tpu.pipeline_mode<synchronous>, transform_indices = @transform_2, window_bounds = array<i64: 1, 32>}, {transform_indices = @transform_3, window_bounds = array<i64: 128, 32>}]} {
    %c0 = arith.constant 0 : index
    %c0_0 = arith.constant 0 : index
    %c0_1 = arith.constant 0 : index
    %0 = vector.load %arg2[%c0, %c0_0, %c0_1] : memref<1x128x288xf32, #tpu.memory_space<vmem>>, vector<1x128x288xf32>
    %1 = vector.shape_cast %0 : vector<1x128x288xf32> to vector<128x288xf32>
    %c0_2 = arith.constant 0 : index
    %c0_3 = arith.constant 0 : index
    %2 = vector.load %arg3[%c0_2, %c0_3] : memref<288x32xf32, #tpu.memory_space<vmem>>, vector<288x32xf32>
    %cst = arith.constant dense<0.000000e+00> : vector<128x32xf32>
    %3 = tpu.matmul %1, %2, %cst {dimension_numbers = #tpu.dot_dimension_numbers<[1], [0], [0], [1], [0, 0, 1, 1], [], []>} : vector<128x288xf32>, vector<288x32xf32>, vector<128x32xf32> -> vector<128x32xf32>
    %c0_4 = arith.constant 0 : index
    %c0_5 = arith.constant 0 : index
    %4 = vector.load %arg4[%c0_4, %c0_5] : memref<1x32xf32, #tpu.memory_space<vmem>>, vector<1x32xf32>
    %5 = vector.broadcast %4 : vector<1x32xf32> to vector<128x32xf32>
    %6 = arith.addf %3, %5 : vector<128x32xf32>
    %cst_6 = arith.constant 0.000000e+00 : f32
    %7 = vector.broadcast %cst_6 : f32 to vector<128x32xf32>
    %8 = arith.cmpf ogt, %6, %7 : vector<128x32xf32>
    %cst_7 = arith.constant 0.000000e+00 : f32
    %9 = vector.broadcast %cst_7 : f32 to vector<128x32xf32>
    %10 = arith.minimumf %6, %9 : vector<128x32xf32>
    %11 = math.exp %10 : vector<128x32xf32>
    %cst_8 = arith.constant 1.000000e+00 : f32
    %12 = vector.broadcast %cst_8 : f32 to vector<128x32xf32>
    %13 = arith.subf %11, %12 : vector<128x32xf32>
    %14 = arith.select %8, %6, %13 : vector<128x32xi1>, vector<128x32xf32>
    %c0_i32 = arith.constant 0 : i32
    %15 = arith.cmpi eq, %arg1, %c0_i32 : i32
    %16 = arith.extui %15 : i1 to i32
    %c0_i32_9 = arith.constant 0 : i32
    %17 = arith.cmpi ne, %16, %c0_i32_9 : i32
    scf.if %17 {
      %c0_12 = arith.constant 0 : index
      %c0_13 = arith.constant 0 : index
      %21 = vector.load %arg5[%c0_12, %c0_13] : memref<128x32xf32, #tpu.memory_space<vmem>>, vector<128x32xf32>
      tpu.vector_store %arg5[%c0_12, %c0_13], %14 {strides = array<i32>} : memref<128x32xf32, #tpu.memory_space<vmem>>, vector<128x32xf32>,
    } else {
    }
    %c0_i32_10 = arith.constant 0 : i32
    %18 = arith.cmpi sgt, %arg1, %c0_i32_10 : i32
    %19 = arith.extui %18 : i1 to i32
    %c0_i32_11 = arith.constant 0 : i32
    %20 = arith.cmpi ne, %19, %c0_i32_11 : i32
    scf.if %20 {
      %c0_12 = arith.constant 0 : index
      %c0_13 = arith.constant 0 : index
      %21 = vector.load %arg5[%c0_12, %c0_13] : memref<128x32xf32, #tpu.memory_space<vmem>>, vector<128x32xf32>
      %22 = arith.maximumf %21, %14 : vector<128x32xf32>
      %c0_14 = arith.constant 0 : index
      %c0_15 = arith.constant 0 : index
      %23 = vector.load %arg5[%c0_14, %c0_15] : memref<128x32xf32, #tpu.memory_space<vmem>>, vector<128x32xf32>
      tpu.vector_store %arg5[%c0_14, %c0_15], %22 {strides = array<i32>} : memref<128x32xf32, #tpu.memory_space<vmem>>, vector<128x32xf32>,
    } else {
    }
    return
  }
  func.func @transform_0(%arg0: i32, %arg1: i32) -> (i32, i32, i32) {
    %c0_i32 = arith.constant 0 : i32
    %c0_i32_0 = arith.constant 0 : i32
    return %arg1, %arg0, %c0_i32 : i32, i32, i32
  }
  func.func @transform_1(%arg0: i32, %arg1: i32) -> (i32, i32) {
    %c0_i32 = arith.constant 0 : i32
    %c0_i32_0 = arith.constant 0 : i32
    %c0_i32_1 = arith.constant 0 : i32
    return %c0_i32, %c0_i32_0 : i32, i32
  }
  func.func @transform_2(%arg0: i32, %arg1: i32) -> (i32, i32) {
    %c0_i32 = arith.constant 0 : i32
    %c0_i32_0 = arith.constant 0 : i32
    %c0_i32_1 = arith.constant 0 : i32
    return %c0_i32, %c0_i32_0 : i32, i32
  }
  func.func @transform_3(%arg0: i32, %arg1: i32) -> (i32, i32) {
    %c0_i32 = arith.constant 0 : i32
    %c0_i32_0 = arith.constant 0 : i32
    return %arg0, %c0_i32 : i32, i32
  }
}

module attributes {stable_mosaic.version = 11 : i64} {
  func.func @_conv_mm_kernel(%arg0: i32, %arg1: i32, %arg2: memref<1x128x288xf32, #tpu.memory_space<vmem>>, %arg3: memref<288x64xf32, #tpu.memory_space<vmem>>, %arg4: memref<1x64xf32, #tpu.memory_space<vmem>>, %arg5: memref<128x64xf32, #tpu.memory_space<vmem>>) attributes {dimension_semantics = [#tpu.dimension_semantics<parallel>, #tpu.dimension_semantics<arbitrary>], iteration_bounds = array<i64: 3, 1>, scalar_prefetch = 0 : i64, scratch_operands = 0 : i64, tpu.core_type = #tpu.core_type<tc>, window_params = [{transform_indices = @transform_0, window_bounds = array<i64: 1, 128, 288>}, {pipeline_mode = #tpu.pipeline_mode<synchronous>, transform_indices = @transform_1, window_bounds = array<i64: 288, 64>}, {pipeline_mode = #tpu.pipeline_mode<synchronous>, transform_indices = @transform_2, window_bounds = array<i64: 1, 64>}, {transform_indices = @transform_3, window_bounds = array<i64: 128, 64>}]} {
    %c0 = arith.constant 0 : index
    %c0_0 = arith.constant 0 : index
    %c0_1 = arith.constant 0 : index
    %0 = vector.load %arg2[%c0, %c0_0, %c0_1] : memref<1x128x288xf32, #tpu.memory_space<vmem>>, vector<1x128x288xf32>
    %1 = vector.shape_cast %0 : vector<1x128x288xf32> to vector<128x288xf32>
    %c0_2 = arith.constant 0 : index
    %c0_3 = arith.constant 0 : index
    %2 = vector.load %arg3[%c0_2, %c0_3] : memref<288x64xf32, #tpu.memory_space<vmem>>, vector<288x64xf32>
    %cst = arith.constant dense<0.000000e+00> : vector<128x64xf32>
    %3 = tpu.matmul %1, %2, %cst {dimension_numbers = #tpu.dot_dimension_numbers<[1], [0], [0], [1], [0, 0, 1, 1], [], []>} : vector<128x288xf32>, vector<288x64xf32>, vector<128x64xf32> -> vector<128x64xf32>
    %c0_4 = arith.constant 0 : index
    %c0_5 = arith.constant 0 : index
    %4 = vector.load %arg4[%c0_4, %c0_5] : memref<1x64xf32, #tpu.memory_space<vmem>>, vector<1x64xf32>
    %5 = vector.broadcast %4 : vector<1x64xf32> to vector<128x64xf32>
    %6 = arith.addf %3, %5 : vector<128x64xf32>
    %cst_6 = arith.constant 0.000000e+00 : f32
    %7 = vector.broadcast %cst_6 : f32 to vector<128x64xf32>
    %8 = arith.cmpf ogt, %6, %7 : vector<128x64xf32>
    %cst_7 = arith.constant 0.000000e+00 : f32
    %9 = vector.broadcast %cst_7 : f32 to vector<128x64xf32>
    %10 = arith.minimumf %6, %9 : vector<128x64xf32>
    %11 = math.exp %10 : vector<128x64xf32>
    %cst_8 = arith.constant 1.000000e+00 : f32
    %12 = vector.broadcast %cst_8 : f32 to vector<128x64xf32>
    %13 = arith.subf %11, %12 : vector<128x64xf32>
    %14 = arith.select %8, %6, %13 : vector<128x64xi1>, vector<128x64xf32>
    %c0_i32 = arith.constant 0 : i32
    %15 = arith.cmpi eq, %arg1, %c0_i32 : i32
    %16 = arith.extui %15 : i1 to i32
    %c0_i32_9 = arith.constant 0 : i32
    %17 = arith.cmpi ne, %16, %c0_i32_9 : i32
    scf.if %17 {
      %c0_12 = arith.constant 0 : index
      %c0_13 = arith.constant 0 : index
      %21 = vector.load %arg5[%c0_12, %c0_13] : memref<128x64xf32, #tpu.memory_space<vmem>>, vector<128x64xf32>
      tpu.vector_store %arg5[%c0_12, %c0_13], %14 {strides = array<i32>} : memref<128x64xf32, #tpu.memory_space<vmem>>, vector<128x64xf32>,
    } else {
    }
    %c0_i32_10 = arith.constant 0 : i32
    %18 = arith.cmpi sgt, %arg1, %c0_i32_10 : i32
    %19 = arith.extui %18 : i1 to i32
    %c0_i32_11 = arith.constant 0 : i32
    %20 = arith.cmpi ne, %19, %c0_i32_11 : i32
    scf.if %20 {
      %c0_12 = arith.constant 0 : index
      %c0_13 = arith.constant 0 : index
      %21 = vector.load %arg5[%c0_12, %c0_13] : memref<128x64xf32, #tpu.memory_space<vmem>>, vector<128x64xf32>
      %22 = arith.maximumf %21, %14 : vector<128x64xf32>
      %c0_14 = arith.constant 0 : index
      %c0_15 = arith.constant 0 : index
      %23 = vector.load %arg5[%c0_14, %c0_15] : memref<128x64xf32, #tpu.memory_space<vmem>>, vector<128x64xf32>
      tpu.vector_store %arg5[%c0_14, %c0_15], %22 {strides = array<i32>} : memref<128x64xf32, #tpu.memory_space<vmem>>, vector<128x64xf32>,
    } else {
    }
    return
  }
  func.func @transform_0(%arg0: i32, %arg1: i32) -> (i32, i32, i32) {
    %c0_i32 = arith.constant 0 : i32
    %c0_i32_0 = arith.constant 0 : i32
    return %arg1, %arg0, %c0_i32 : i32, i32, i32
  }
  func.func @transform_1(%arg0: i32, %arg1: i32) -> (i32, i32) {
    %c0_i32 = arith.constant 0 : i32
    %c0_i32_0 = arith.constant 0 : i32
    %c0_i32_1 = arith.constant 0 : i32
    return %c0_i32, %c0_i32_0 : i32, i32
  }
  func.func @transform_2(%arg0: i32, %arg1: i32) -> (i32, i32) {
    %c0_i32 = arith.constant 0 : i32
    %c0_i32_0 = arith.constant 0 : i32
    %c0_i32_1 = arith.constant 0 : i32
    return %c0_i32, %c0_i32_0 : i32, i32
  }
  func.func @transform_3(%arg0: i32, %arg1: i32) -> (i32, i32) {
    %c0_i32 = arith.constant 0 : i32
    %c0_i32_0 = arith.constant 0 : i32
    return %arg0, %c0_i32 : i32, i32
  }
}

module attributes {stable_mosaic.version = 11 : i64} {
  func.func @_conv_mm_kernel(%arg0: i32, %arg1: i32, %arg2: memref<1x56x576xf32, #tpu.memory_space<vmem>>, %arg3: memref<576x64xf32, #tpu.memory_space<vmem>>, %arg4: memref<1x64xf32, #tpu.memory_space<vmem>>, %arg5: memref<56x64xf32, #tpu.memory_space<vmem>>) attributes {dimension_semantics = [#tpu.dimension_semantics<parallel>, #tpu.dimension_semantics<arbitrary>], iteration_bounds = array<i64: 1, 4>, scalar_prefetch = 0 : i64, scratch_operands = 0 : i64, tpu.core_type = #tpu.core_type<tc>, window_params = [{transform_indices = @transform_0, window_bounds = array<i64: 1, 56, 576>}, {pipeline_mode = #tpu.pipeline_mode<synchronous>, transform_indices = @transform_1, window_bounds = array<i64: 576, 64>}, {pipeline_mode = #tpu.pipeline_mode<synchronous>, transform_indices = @transform_2, window_bounds = array<i64: 1, 64>}, {transform_indices = @transform_3, window_bounds = array<i64: 56, 64>}]} {
    %c0 = arith.constant 0 : index
    %c0_0 = arith.constant 0 : index
    %c0_1 = arith.constant 0 : index
    %0 = vector.load %arg2[%c0, %c0_0, %c0_1] : memref<1x56x576xf32, #tpu.memory_space<vmem>>, vector<1x56x576xf32>
    %1 = vector.shape_cast %0 : vector<1x56x576xf32> to vector<56x576xf32>
    %c0_2 = arith.constant 0 : index
    %c0_3 = arith.constant 0 : index
    %2 = vector.load %arg3[%c0_2, %c0_3] : memref<576x64xf32, #tpu.memory_space<vmem>>, vector<576x64xf32>
    %cst = arith.constant dense<0.000000e+00> : vector<56x64xf32>
    %3 = tpu.matmul %1, %2, %cst {dimension_numbers = #tpu.dot_dimension_numbers<[1], [0], [0], [1], [0, 0, 1, 1], [], []>} : vector<56x576xf32>, vector<576x64xf32>, vector<56x64xf32> -> vector<56x64xf32>
    %c0_4 = arith.constant 0 : index
    %c0_5 = arith.constant 0 : index
    %4 = vector.load %arg4[%c0_4, %c0_5] : memref<1x64xf32, #tpu.memory_space<vmem>>, vector<1x64xf32>
    %5 = vector.broadcast %4 : vector<1x64xf32> to vector<56x64xf32>
    %6 = arith.addf %3, %5 : vector<56x64xf32>
    %cst_6 = arith.constant 0.000000e+00 : f32
    %7 = vector.broadcast %cst_6 : f32 to vector<56x64xf32>
    %8 = arith.cmpf ogt, %6, %7 : vector<56x64xf32>
    %cst_7 = arith.constant 0.000000e+00 : f32
    %9 = vector.broadcast %cst_7 : f32 to vector<56x64xf32>
    %10 = arith.minimumf %6, %9 : vector<56x64xf32>
    %11 = math.exp %10 : vector<56x64xf32>
    %cst_8 = arith.constant 1.000000e+00 : f32
    %12 = vector.broadcast %cst_8 : f32 to vector<56x64xf32>
    %13 = arith.subf %11, %12 : vector<56x64xf32>
    %14 = arith.select %8, %6, %13 : vector<56x64xi1>, vector<56x64xf32>
    %c0_i32 = arith.constant 0 : i32
    %15 = arith.cmpi eq, %arg1, %c0_i32 : i32
    %16 = arith.extui %15 : i1 to i32
    %c0_i32_9 = arith.constant 0 : i32
    %17 = arith.cmpi ne, %16, %c0_i32_9 : i32
    scf.if %17 {
      %c0_12 = arith.constant 0 : index
      %c0_13 = arith.constant 0 : index
      %21 = vector.load %arg5[%c0_12, %c0_13] : memref<56x64xf32, #tpu.memory_space<vmem>>, vector<56x64xf32>
      tpu.vector_store %arg5[%c0_12, %c0_13], %14 {strides = array<i32>} : memref<56x64xf32, #tpu.memory_space<vmem>>, vector<56x64xf32>,
    } else {
    }
    %c0_i32_10 = arith.constant 0 : i32
    %18 = arith.cmpi sgt, %arg1, %c0_i32_10 : i32
    %19 = arith.extui %18 : i1 to i32
    %c0_i32_11 = arith.constant 0 : i32
    %20 = arith.cmpi ne, %19, %c0_i32_11 : i32
    scf.if %20 {
      %c0_12 = arith.constant 0 : index
      %c0_13 = arith.constant 0 : index
      %21 = vector.load %arg5[%c0_12, %c0_13] : memref<56x64xf32, #tpu.memory_space<vmem>>, vector<56x64xf32>
      %22 = arith.maximumf %21, %14 : vector<56x64xf32>
      %c0_14 = arith.constant 0 : index
      %c0_15 = arith.constant 0 : index
      %23 = vector.load %arg5[%c0_14, %c0_15] : memref<56x64xf32, #tpu.memory_space<vmem>>, vector<56x64xf32>
      tpu.vector_store %arg5[%c0_14, %c0_15], %22 {strides = array<i32>} : memref<56x64xf32, #tpu.memory_space<vmem>>, vector<56x64xf32>,
    } else {
    }
    return
  }
  func.func @transform_0(%arg0: i32, %arg1: i32) -> (i32, i32, i32) {
    %c0_i32 = arith.constant 0 : i32
    %c0_i32_0 = arith.constant 0 : i32
    return %arg1, %arg0, %c0_i32 : i32, i32, i32
  }
  func.func @transform_1(%arg0: i32, %arg1: i32) -> (i32, i32) {
    %c0_i32 = arith.constant 0 : i32
    %c0_i32_0 = arith.constant 0 : i32
    %c0_i32_1 = arith.constant 0 : i32
    return %c0_i32, %c0_i32_0 : i32, i32
  }
  func.func @transform_2(%arg0: i32, %arg1: i32) -> (i32, i32) {
    %c0_i32 = arith.constant 0 : i32
    %c0_i32_0 = arith.constant 0 : i32
    %c0_i32_1 = arith.constant 0 : i32
    return %c0_i32, %c0_i32_0 : i32, i32
  }
  func.func @transform_3(%arg0: i32, %arg1: i32) -> (i32, i32) {
    %c0_i32 = arith.constant 0 : i32
    %c0_i32_0 = arith.constant 0 : i32
    return %arg0, %c0_i32 : i32, i32
  }
}

module attributes {stable_mosaic.version = 11 : i64} {
  func.func @_fc_fused_kernel(%arg0: i32, %arg1: memref<8x1600xf32, #tpu.memory_space<vmem>>, %arg2: memref<1600x512xf32, #tpu.memory_space<vmem>>, %arg3: memref<1x512xf32, #tpu.memory_space<vmem>>, %arg4: memref<512x10xf32, #tpu.memory_space<vmem>>, %arg5: memref<1x10xf32, #tpu.memory_space<vmem>>, %arg6: memref<8x10xf32, #tpu.memory_space<vmem>>) attributes {dimension_semantics = [#tpu.dimension_semantics<parallel>], iteration_bounds = array<i64: 1>, scalar_prefetch = 0 : i64, scratch_operands = 0 : i64, tpu.core_type = #tpu.core_type<tc>, window_params = [{transform_indices = @transform_0, window_bounds = array<i64: 8, 1600>}, {pipeline_mode = #tpu.pipeline_mode<synchronous>, transform_indices = @transform_1, window_bounds = array<i64: 1600, 512>}, {pipeline_mode = #tpu.pipeline_mode<synchronous>, transform_indices = @transform_2, window_bounds = array<i64: 1, 512>}, {pipeline_mode = #tpu.pipeline_mode<synchronous>, transform_indices = @transform_3, window_bounds = array<i64: 512, 10>}, {pipeline_mode = #tpu.pipeline_mode<synchronous>, transform_indices = @transform_4, window_bounds = array<i64: 1, 10>}, {transform_indices = @transform_5, window_bounds = array<i64: 8, 10>}]} {
    %c0 = arith.constant 0 : index
    %c0_0 = arith.constant 0 : index
    %0 = vector.load %arg1[%c0, %c0_0] : memref<8x1600xf32, #tpu.memory_space<vmem>>, vector<8x1600xf32>
    %c0_1 = arith.constant 0 : index
    %c0_2 = arith.constant 0 : index
    %1 = vector.load %arg2[%c0_1, %c0_2] : memref<1600x512xf32, #tpu.memory_space<vmem>>, vector<1600x512xf32>
    %cst = arith.constant dense<0.000000e+00> : vector<8x512xf32>
    %2 = tpu.matmul %0, %1, %cst {dimension_numbers = #tpu.dot_dimension_numbers<[1], [0], [0], [1], [0, 0, 1, 1], [], []>} : vector<8x1600xf32>, vector<1600x512xf32>, vector<8x512xf32> -> vector<8x512xf32>
    %c0_3 = arith.constant 0 : index
    %c0_4 = arith.constant 0 : index
    %3 = vector.load %arg3[%c0_3, %c0_4] : memref<1x512xf32, #tpu.memory_space<vmem>>, vector<1x512xf32>
    %4 = vector.broadcast %3 : vector<1x512xf32> to vector<8x512xf32>
    %5 = arith.addf %2, %4 : vector<8x512xf32>
    %cst_5 = arith.constant 0.000000e+00 : f32
    %6 = vector.broadcast %cst_5 : f32 to vector<8x512xf32>
    %7 = arith.cmpf ogt, %5, %6 : vector<8x512xf32>
    %cst_6 = arith.constant 0.000000e+00 : f32
    %8 = vector.broadcast %cst_6 : f32 to vector<8x512xf32>
    %9 = arith.minimumf %5, %8 : vector<8x512xf32>
    %10 = math.exp %9 : vector<8x512xf32>
    %cst_7 = arith.constant 1.000000e+00 : f32
    %11 = vector.broadcast %cst_7 : f32 to vector<8x512xf32>
    %12 = arith.subf %10, %11 : vector<8x512xf32>
    %13 = arith.select %7, %5, %12 : vector<8x512xi1>, vector<8x512xf32>
    %c0_8 = arith.constant 0 : index
    %c0_9 = arith.constant 0 : index
    %14 = vector.load %arg4[%c0_8, %c0_9] : memref<512x10xf32, #tpu.memory_space<vmem>>, vector<512x10xf32>
    %cst_10 = arith.constant dense<0.000000e+00> : vector<8x10xf32>
    %15 = tpu.matmul %13, %14, %cst_10 {dimension_numbers = #tpu.dot_dimension_numbers<[1], [0], [0], [1], [0, 0, 1, 1], [], []>} : vector<8x512xf32>, vector<512x10xf32>, vector<8x10xf32> -> vector<8x10xf32>
    %c0_11 = arith.constant 0 : index
    %c0_12 = arith.constant 0 : index
    %16 = vector.load %arg5[%c0_11, %c0_12] : memref<1x10xf32, #tpu.memory_space<vmem>>, vector<1x10xf32>
    %17 = vector.broadcast %16 : vector<1x10xf32> to vector<8x10xf32>
    %18 = arith.addf %15, %17 : vector<8x10xf32>
    %c0_13 = arith.constant 0 : index
    %c0_14 = arith.constant 0 : index
    %19 = vector.load %arg6[%c0_13, %c0_14] : memref<8x10xf32, #tpu.memory_space<vmem>>, vector<8x10xf32>
    tpu.vector_store %arg6[%c0_13, %c0_14], %18 {strides = array<i32>} : memref<8x10xf32, #tpu.memory_space<vmem>>, vector<8x10xf32>,
    return
  }
  func.func @transform_0(%arg0: i32) -> (i32, i32) {
    %c0_i32 = arith.constant 0 : i32
    %c0_i32_0 = arith.constant 0 : i32
    return %arg0, %c0_i32 : i32, i32
  }
  func.func @transform_1(%arg0: i32) -> (i32, i32) {
    %c0_i32 = arith.constant 0 : i32
    %c0_i32_0 = arith.constant 0 : i32
    %c0_i32_1 = arith.constant 0 : i32
    return %c0_i32, %c0_i32_0 : i32, i32
  }
  func.func @transform_2(%arg0: i32) -> (i32, i32) {
    %c0_i32 = arith.constant 0 : i32
    %c0_i32_0 = arith.constant 0 : i32
    %c0_i32_1 = arith.constant 0 : i32
    return %c0_i32, %c0_i32_0 : i32, i32
  }
  func.func @transform_3(%arg0: i32) -> (i32, i32) {
    %c0_i32 = arith.constant 0 : i32
    %c0_i32_0 = arith.constant 0 : i32
    %c0_i32_1 = arith.constant 0 : i32
    return %c0_i32, %c0_i32_0 : i32, i32
  }
  func.func @transform_4(%arg0: i32) -> (i32, i32) {
    %c0_i32 = arith.constant 0 : i32
    %c0_i32_0 = arith.constant 0 : i32
    %c0_i32_1 = arith.constant 0 : i32
    return %c0_i32, %c0_i32_0 : i32, i32
  }
  func.func @transform_5(%arg0: i32) -> (i32, i32) {
    %c0_i32 = arith.constant 0 : i32
    %c0_i32_0 = arith.constant 0 : i32
    return %arg0, %c0_i32 : i32, i32
  }
}

</mosaic_0001>

<bundles_post_ra>
// kernel: c20_forward.6
= control target key start
LH: loop header
LB: loop body
LE: loop exit
PB: predicated region body
PF: predicated region fallthrough
CT: control target
= control target key end

     0   :  { %v855_v0 = vmov 1983009808   ;;  %v63_v2 = vlaneseq  ;;  %s1203_s0 = inlined_call_operand.vmem [shape: f32[2,3072], index: 0, kind: input, shape index: {}]   ;;  %s1204_s1 = inlined_call_operand.vmem [shape: f32[2,3072], index: 1, kind: output, shape index: {}]  }
   0x1   :  { %v61_v1 = vunpack.c.l.s4 %v855_v0  ;;  %v873_v3 = vld [vmem:[%s1203_s0] sm:$0xff]  ;;  %v880_v6 = vld [vmem:[%s1203_s0 + $0x30] sm:$0xff]  ;;  %v902_v12 = vld [vmem:[%s1203_s0 + $0x8] sm:$0xff] }
   0x2   :  { %v875_v5 = vshrl.u32 %v63_v2, 7  ;;  %v885_v7 = vld [vmem:[%s1203_s0 + $0x60] sm:$0xff]  ;;  %v890_v8 = vld [vmem:[%s1203_s0 + $0x90] sm:$0xff]  ;;  %v56_v9 = vcombine.low %v873_v3, %v880_v6  ;;  %v57_v13 = vcombine.high %v873_v3, %v880_v6  ;;  %v911_v15 = vld [vmem:[%s1203_s0 + $0x38] sm:$0xff] }
   0x3   :  { %v62_v4 = vunpack.c.0.s8 %v61_v1  ;;  %v58_v10 = vcombine.low %v885_v7, %v890_v8  ;;  %v59_v14 = vcombine.high %v885_v7, %v890_v8  ;;  %v916_v16 = vld [vmem:[%s1203_s0 + $0x68] sm:$0xff]  ;;  %v921_v17 = vld [vmem:[%s1203_s0 + $0x98] sm:$0xff]  ;;  %v92_v22 = vcombine.low %v902_v12, %v911_v15  ;;  %v936_v27 = vld [vmem:[%s1203_s0 + $0x10] sm:$0xff] }
   0x4   :  { %v94_v23 = vcombine.low %v916_v16, %v921_v17  ;;  %v93_v26 = vcombine.high %v902_v12, %v911_v15  ;;  %v941_v28 = vld [vmem:[%s1203_s0 + $0x40] sm:$0xff]  ;;  %v95_v30 = vcombine.high %v916_v16, %v921_v17  ;;  %v950_v33 = vld [vmem:[%s1203_s0 + $0x70] sm:$0xff]  ;;  %v970_v47 = vld [vmem:[%s1203_s0 + $0x18] sm:$0xff] }
   0x5   :  { %v897_v11 = vsub.s32 %v62_v4, %v875_v5  ;;  %v955_v34 = vld [vmem:[%s1203_s0 + $0xa0] sm:$0xff]  ;;  %v128_v38 = vcombine.low %v936_v27, %v941_v28  ;;  %v129_v45 = vcombine.high %v936_v27, %v941_v28  ;;  %v975_v48 = vld [vmem:[%s1203_s0 + $0x48] sm:$0xff]  ;;  %v982_v53 = vld [vmem:[%s1203_s0 + $0x78] sm:$0xff] }
   0x6   :  { %v130_v41 = vcombine.low %v950_v33, %v955_v34  ;;  %v131_v46 = vcombine.high %v950_v33, %v955_v34  ;;  %v987_v54 = vld [vmem:[%s1203_s0 + $0xa8] sm:$0xff]  ;;  %v164_v58 = vcombine.low %v970_v47, %v975_v48  ;;  %v165_v1 = vcombine.high %v970_v47, %v975_v48  ;;  %v1002_v4 = vld [vmem:[%s1203_s0 + $0x20] sm:$0xff] }
   0x7   :  { %v66_v18 = vrot.slane %v56_v9, %v897_v11  ;;  %v80_v19 = vrot.slane %v58_v10, %v897_v11  ;;  %v73_v20 = vrot.slane %v57_v13, %v897_v11  ;;  %v87_v21 = vrot.slane %v59_v14, %v897_v11  ;;  %v1007_v9 = vld [vmem:[%s1203_s0 + $0x50] sm:$0xff] }
   0x8   :  { %v102_v31 = vrot.slane %v92_v22, %v897_v11  ;;  %v116_v32 = vrot.slane %v94_v23, %v897_v11  ;;  %v109_v37 = vrot.slane %v93_v26, %v897_v11  ;;  %v123_v39 = vrot.slane %v95_v30, %v897_v11 }
   0x9   :  { %v88_v24 = vcombine.low %v66_v18, %v80_v19  ;;  %v89_v25 = vcombine.high %v66_v18, %v80_v19  ;;  %v90_v29 = vcombine.low %v73_v20, %v87_v21  ;;  %v91_v35 = vcombine.high %v73_v20, %v87_v21  ;;  %v1014_v19 = vld [vmem:[%s1203_s0 + $0x80] sm:$0xff]  ;;  %v1019_v20 = vld [vmem:[%s1203_s0 + $0xb0] sm:$0xff] }
   0xa   :  { %v124_v40 = vcombine.low %v102_v31, %v116_v32  ;;  %v125_v43 = vcombine.high %v102_v31, %v116_v32  ;;  %v126_v49 = vcombine.low %v109_v37, %v123_v39  ;;  %v138_v50 = vrot.slane %v128_v38, %v897_v11  ;;  %v1039_v38 = vld [vmem:[%s1203_s0 + $0x58] sm:$0xff] }
   0xb   :  { %v296_v36 = vadd.f32 %v89_v25, %v88_v24  ;;  %v152_v51 = vrot.slane %v130_v41, %v897_v11  ;;  %v127_v55 = vcombine.high %v109_v37, %v123_v39  ;;  %v145_v57 = vrot.slane %v129_v45, %v897_v11  ;;  %v1034_v37 = vld [vmem:[%s1203_s0 + $0x28] sm:$0xff] }
   0xc   :  { %v159_v59 = vrot.slane %v131_v46, %v897_v11  ;;  %v166_v61 = vcombine.low %v982_v53, %v987_v54  ;;  %v167_v2 = vcombine.high %v982_v53, %v987_v54  ;;  %v174_v13 = vrot.slane %v164_v58, %v897_v11 }
   0xd   :  { %v297_v42 = vadd.f32 %v296_v36, %v90_v29  ;;  %v160_v60 = vcombine.low %v138_v50, %v152_v51  ;;  %v161_v63 = vcombine.high %v138_v50, %v152_v51  ;;  %v181_v23 = vrot.slane %v165_v1, %v897_v11 }
   0xe   :  { %v162_v10 = vcombine.low %v145_v57, %v159_v59  ;;  %v188_v14 = vrot.slane %v166_v61, %v897_v11  ;;  %v163_v21 = vcombine.high %v145_v57, %v159_v59  ;;  %v200_v24 = vcombine.low %v1002_v4, %v1007_v9 }
   0xf   :  { %v298_v44 = vadd.f32 %v297_v42, %v91_v35  ;;  %v195_v25 = vrot.slane %v167_v2, %v897_v11  ;;  %v202_v29 = vcombine.low %v1014_v19, %v1019_v20  ;;  %v201_v35 = vcombine.high %v1002_v4, %v1007_v9 }
  0x10   :  { %v196_v26 = vcombine.low %v174_v13, %v188_v14  ;;  %v197_v31 = vcombine.high %v174_v13, %v188_v14  ;;  %v203_v36 = vcombine.high %v1014_v19, %v1019_v20  ;;  %v236_v50 = vcombine.low %v1034_v37, %v1039_v38 }
  0x11   :  { %v299_v52 = vadd.f32 %v298_v44, %v124_v40  ;;  %v198_v39 = vcombine.low %v181_v23, %v195_v25  ;;  %v210_v40 = vrot.slane %v200_v24, %v897_v11  ;;  %v224_v41 = vrot.slane %v202_v29, %v897_v11  ;;  %v1051_v44 = vld [vmem:[%s1203_s0 + $0xb8] sm:$0xff] }
  0x12   :  { %v199_v45 = vcombine.high %v181_v23, %v195_v25  ;;  %v231_v51 = vrot.slane %v203_v36, %v897_v11  ;;  %v237_v59 = vcombine.high %v1034_v37, %v1039_v38 }
  0x13   :  { %v300_v56 = vadd.f32 %v299_v52, %v125_v43  ;;  %v1046_v43 = vld [vmem:[%s1203_s0 + $0x88] sm:$0xff]  ;;  %v232_v52 = vcombine.low %v210_v40, %v224_v41  ;;  %v233_v57 = vcombine.high %v210_v40, %v224_v41  ;;  %v859_v41 = vmov 1987475062  }
  0x15   :  { %v301_v62 = vadd.f32 %v300_v56, %v126_v49  ;;  %v217_v49 = vrot.slane %v201_v35, %v897_v11  ;;  %v857_v35 = vmov 842150450  }
  0x16   :  { %v332_v36 = vunpack.c.l.s4 %v857_v35 }
  0x17   :  { %v302_v0 = vadd.f32 %v301_v62, %v127_v55  ;;  %v238_v55 = vcombine.low %v1046_v43, %v1051_v44  ;;  %v234_v61 = vcombine.low %v217_v49, %v231_v51  ;;  %v246_v62 = vrot.slane %v236_v50, %v897_v11 }
  0x18   :  { %v235_v1 = vcombine.high %v217_v49, %v231_v51 }
  0x19   :  { %v303_v18 = vadd.f32 %v302_v0, %v160_v60  ;;  %v239_v60 = vcombine.high %v1046_v43, %v1051_v44 }
  0x1b   :  { %v304_v22 = vadd.f32 %v303_v18, %v161_v63  ;;  %v260_v63 = vrot.slane %v238_v55, %v897_v11  ;;  %v267_v13 = vrot.slane %v239_v60, %v897_v11 }
  0x1d   :  { %v305_v30 = vadd.f32 %v304_v22, %v162_v10  ;;  %v253_v10 = vrot.slane %v237_v59, %v897_v11  ;;  %v268_v14 = vcombine.low %v246_v62, %v260_v63 }
  0x1f   :  { %v306_v32 = vadd.f32 %v305_v30, %v163_v21  ;;  %v269_v21 = vcombine.high %v246_v62, %v260_v63  ;;  %v270_v23 = vcombine.low %v253_v10, %v267_v13  ;;  %v271_v25 = vcombine.high %v253_v10, %v267_v13 }
  0x21   :  { %v307_v42 = vadd.f32 %v306_v32, %v196_v26 }
  0x23   :  { %v308_v46 = vadd.f32 %v307_v42, %v197_v31  ;;  %v856_v31 = vmov 269488144   ;;  %v346_v42 = vunpack.c.l.s4 %v859_v41 }
  0x24   :  { %v325_v32 = vunpack.c.l.s4 %v856_v31 }
  0x25   :  { %v309_v56 = vadd.f32 %v308_v46, %v198_v39  ;;  %v858_v39 = vmov 1414812756   ;;  %v333_v46 = vunpack.c.0.s8 %v332_v36  ;;  %v347_v50 = vunpack.c.0.s8 %v346_v42 }
  0x26   :  { %v339_v40 = vunpack.c.l.s4 %v858_v39 }
  0x27   :  { %v310_v58 = vadd.f32 %v309_v56, %v199_v45  ;;  %v326_v45 = vunpack.c.0.s8 %v325_v32  ;;  %v336_v56 = vsub.s32 %v333_v46, %v875_v5 }
  0x28   :  { %v340_v49 = vunpack.c.0.s8 %v339_v40 }
  0x29   :  { %v311_v0 = vadd.f32 %v310_v58, %v232_v52  ;;  %v1068_v52 = vsub.s32 %v326_v45, %v875_v5  ;;  %v350_v58 = vsub.s32 %v347_v50, %v875_v5 }
  0x2b   :  { %v312_v2 = vadd.f32 %v311_v0, %v233_v57  ;;  %v343_v57 = vsub.s32 %v340_v49, %v875_v5 }
  0x2d   :  { %v313_v18 = vadd.f32 %v312_v2, %v234_v61 }
  0x2f   :  { %v314_v22 = vadd.f32 %v313_v18, %v235_v1 }
  0x31   :  { %v315_v24 = vadd.f32 %v314_v22, %v268_v14 }
  0x33   :  { %v316_v26 = vadd.f32 %v315_v24, %v269_v21 }
  0x35   :  { %v317_v29 = vadd.f32 %v316_v26, %v270_v23 }
  0x37   :  { %v318_v30 = vadd.f32 %v317_v29, %v271_v25 }
  0x39   :  { %319 = vadd.xlane.f32.xlu0 %v318_v30 }
  0xc6   :  { %v320_v51 = vpop.xlane.xlu0 %319 }
  0xc7   :  { %v322_v55 = vmul.f32 0.00032552084, %v320_v51 }
  0xc9   :  { %v1074_v59 = vrot.slane %v322_v55, %v1068_v52  ;;  %v1076_v60 = vrot.slane %v322_v55, %v336_v56  ;;  %v1078_v61 = vrot.slane %v322_v55, %v343_v57  ;;  %v1080_v62 = vrot.slane %v322_v55, %v350_v58 }
  0xcb   :  { %v1084_v63 = vsub.f32 %v873_v3, %v1074_v59  ;;  %v362_v0 = vsub.f32 %v880_v6, %v1076_v60  ;;  %v368_v1 = vsub.f32 %v885_v7, %v1078_v61  ;;  %v374_v5 = vsub.f32 %v890_v8, %v1080_v62 }
  0xcc   :  { %v1096_v18 = vsub.f32 %v902_v12, %v1074_v59  ;;  %v363_v3 = vsub.f32 %v911_v15, %v1076_v60  ;;  %v369_v6 = vsub.f32 %v916_v16, %v1078_v61  ;;  %v375_v7 = vsub.f32 %v921_v17, %v1080_v62 }
  0xcd   :  { %v380_v2 = vmul.f32 %v1084_v63, %v1084_v63  ;;  %v386_v10 = vmul.f32 %v362_v0, %v362_v0  ;;  %v392_v13 = vmul.f32 %v368_v1, %v368_v1  ;;  %v398_v14 = vmul.f32 %v374_v5, %v374_v5 }
  0xce   :  { %v381_v22 = vmul.f32 %v1096_v18, %v1096_v18  ;;  %v387_v23 = vmul.f32 %v363_v3, %v363_v3  ;;  %v393_v24 = vmul.f32 %v369_v6, %v369_v6  ;;  %v399_v25 = vmul.f32 %v375_v7, %v375_v7 }
  0xcf   :  { %v428_v8 = vcombine.low %v380_v2, %v386_v10  ;;  %v430_v21 = vcombine.low %v392_v13, %v398_v14  ;;  %v429_v26 = vcombine.high %v380_v2, %v386_v10  ;;  %v431_v12 = vcombine.high %v392_v13, %v398_v14 }
  0xd0   :  { %v1110_v16 = vsub.f32 %v936_v27, %v1074_v59  ;;  %v364_v17 = vsub.f32 %v941_v28, %v1076_v60  ;;  %v370_v30 = vsub.f32 %v950_v33, %v1078_v61  ;;  %v376_v31 = vsub.f32 %v955_v34, %v1080_v62 }
  0xd1   :  { %v438_v29 = vrot.slane %v428_v8, %v897_v11  ;;  %v452_v15 = vrot.slane %v430_v21, %v897_v11  ;;  %v464_v32 = vcombine.low %v381_v22, %v387_v23  ;;  %v466_v35 = vcombine.low %v393_v24, %v399_v25 }
  0xd2   :  { %v445_v36 = vrot.slane %v429_v26, %v897_v11  ;;  %v459_v39 = vrot.slane %v431_v12, %v897_v11  ;;  %v382_v27 = vmul.f32 %v1110_v16, %v1110_v16  ;;  %v388_v42 = vmul.f32 %v364_v17, %v364_v17 }
  0xd3   :  { %v460_v40 = vcombine.low %v438_v29, %v452_v15  ;;  %v461_v41 = vcombine.high %v438_v29, %v452_v15  ;;  %v394_v45 = vmul.f32 %v370_v30, %v370_v30  ;;  %v400_v28 = vmul.f32 %v376_v31, %v376_v31 }
  0xd4   :  { %v465_v46 = vcombine.high %v381_v22, %v387_v23  ;;  %v467_v49 = vcombine.high %v393_v24, %v399_v25  ;;  %v462_v33 = vcombine.low %v445_v36, %v459_v39  ;;  %v474_v50 = vrot.slane %v464_v32, %v897_v11 }
  0xd5   :  { %v488_v34 = vrot.slane %v466_v35, %v897_v11  ;;  %v668_v51 = vadd.f32 %v461_v41, %v460_v40  ;;  %v1126_v55 = vsub.f32 %v970_v47, %v1074_v59  ;;  %v365_v56 = vsub.f32 %v975_v48, %v1076_v60 }
  0xd6   :  { %v463_v57 = vcombine.high %v445_v36, %v459_v39  ;;  %v371_v0 = vsub.f32 %v982_v53, %v1078_v61  ;;  %v377_v1 = vsub.f32 %v987_v54, %v1080_v62  ;;  %v481_v5 = vrot.slane %v465_v46, %v897_v11 }
  0xd7   :  { %v669_v58 = vadd.f32 %v668_v51, %v462_v33  ;;  %v495_v2 = vrot.slane %v467_v49, %v897_v11  ;;  %v496_v10 = vcombine.low %v474_v50, %v488_v34  ;;  %v500_v13 = vcombine.low %v382_v27, %v388_v42 }
  0xd8   :  { %v502_v14 = vcombine.low %v394_v45, %v400_v28  ;;  %v383_v3 = vmul.f32 %v1126_v55, %v1126_v55  ;;  %v389_v48 = vmul.f32 %v365_v56, %v365_v56  ;;  %v497_v6 = vcombine.high %v474_v50, %v488_v34 }
  0xd9   :  { %v670_v47 = vadd.f32 %v669_v58, %v463_v57  ;;  %v395_v8 = vmul.f32 %v371_v0, %v371_v0  ;;  %v401_v21 = vmul.f32 %v377_v1, %v377_v1  ;;  %v498_v53 = vcombine.low %v481_v5, %v495_v2 }
  0xda   :  { %v501_v22 = vcombine.high %v382_v27, %v388_v42  ;;  %v503_v23 = vcombine.high %v394_v45, %v400_v28  ;;  %v510_v54 = vrot.slane %v500_v13, %v897_v11  ;;  %v524_v24 = vrot.slane %v502_v14, %v897_v11 }
  0xdb   :  { %v671_v7 = vadd.f32 %v670_v47, %v496_v10  ;;  %v1142_v26 = vsub.f32 %v1002_v4, %v1074_v59  ;;  %v366_v12 = vsub.f32 %v1007_v9, %v1076_v60  ;;  %v499_v29 = vcombine.high %v481_v5, %v495_v2 }
  0xdc   :  { %v372_v17 = vsub.f32 %v1014_v19, %v1078_v61  ;;  %v378_v30 = vsub.f32 %v1019_v20, %v1080_v62  ;;  %v536_v31 = vcombine.low %v383_v3, %v389_v48  ;;  %v538_v32 = vcombine.low %v395_v8, %v401_v21 }
  0xdd   :  { %v672_v25 = vadd.f32 %v671_v7, %v497_v6  ;;  %v517_v35 = vrot.slane %v501_v22, %v897_v11  ;;  %v531_v36 = vrot.slane %v503_v23, %v897_v11  ;;  %v532_v39 = vcombine.low %v510_v54, %v524_v24 }
  0xde   :  { %v384_v40 = vmul.f32 %v1142_v26, %v1142_v26  ;;  %v390_v9 = vmul.f32 %v366_v12, %v366_v12  ;;  %v533_v41 = vcombine.high %v510_v54, %v524_v24  ;;  %v396_v42 = vmul.f32 %v372_v17, %v372_v17 }
  0xdf   :  { %v673_v15 = vadd.f32 %v672_v25, %v498_v53  ;;  %v402_v45 = vmul.f32 %v378_v30, %v378_v30  ;;  %v537_v19 = vcombine.high %v383_v3, %v389_v48  ;;  %v539_v28 = vcombine.high %v395_v8, %v401_v21 }
  0xe0   :  { %v534_v46 = vcombine.low %v517_v35, %v531_v36  ;;  %v546_v20 = vrot.slane %v536_v31, %v897_v11  ;;  %v560_v49 = vrot.slane %v538_v32, %v897_v11  ;;  %v1158_v50 = vsub.f32 %v1034_v37, %v1074_v59 }
  0xe1   :  { %v674_v4 = vadd.f32 %v673_v15, %v499_v29  ;;  %v367_v34 = vsub.f32 %v1039_v38, %v1076_v60  ;;  %v535_v51 = vcombine.high %v517_v35, %v531_v36  ;;  %v373_v57 = vsub.f32 %v1046_v43, %v1078_v61 }
  0xe2   :  { %v379_v58 = vsub.f32 %v1051_v44, %v1080_v62  ;;  %v553_v0 = vrot.slane %v537_v19, %v897_v11  ;;  %v567_v1 = vrot.slane %v539_v28, %v897_v11  ;;  %v568_v5 = vcombine.low %v546_v20, %v560_v49 }
  0xe3   :  { %v675_v27 = vadd.f32 %v674_v4, %v532_v39  ;;  %v572_v2 = vcombine.low %v384_v40, %v390_v9  ;;  %v574_v10 = vcombine.low %v396_v42, %v402_v45  ;;  %v385_v59 = vmul.f32 %v1158_v50, %v1158_v50 }
  0xe4   :  { %v391_v38 = vmul.f32 %v367_v34, %v367_v34  ;;  %v569_v60 = vcombine.high %v546_v20, %v560_v49  ;;  %v397_v14 = vmul.f32 %v373_v57, %v373_v57  ;;  %v403_v47 = vmul.f32 %v379_v58, %v379_v58 }
  0xe5   :  { %v676_v33 = vadd.f32 %v675_v27, %v533_v41  ;;  %v570_v43 = vcombine.low %v553_v0, %v567_v1  ;;  %v573_v61 = vcombine.high %v384_v40, %v390_v9  ;;  %v575_v3 = vcombine.high %v396_v42, %v402_v45 }
  0xe6   :  { %v582_v44 = vrot.slane %v572_v2, %v897_v11  ;;  %v596_v62 = vrot.slane %v574_v10, %v897_v11  ;;  %v571_v6 = vcombine.high %v553_v0, %v567_v1  ;;  %v608_v8 = vcombine.low %v385_v59, %v391_v38 }
  0xe7   :  { %v677_v56 = vadd.f32 %v676_v33, %v534_v46  ;;  %v610_v21 = vcombine.low %v397_v14, %v403_v47  ;;  %v589_v53 = vrot.slane %v573_v61, %v897_v11  ;;  %v603_v22 = vrot.slane %v575_v3, %v897_v11 }
  0xe8   :  { %v604_v23 = vcombine.low %v582_v44, %v596_v62  ;;  %v605_v24 = vcombine.high %v582_v44, %v596_v62  ;;  %v609_v12 = vcombine.high %v385_v59, %v391_v38  ;;  %v611_v29 = vcombine.high %v397_v14, %v403_v47 }
  0xe9   :  { %v678_v37 = vadd.f32 %v677_v56, %v535_v51  ;;  %v606_v15 = vcombine.low %v589_v53, %v603_v22  ;;  %v618_v17 = vrot.slane %v608_v8, %v897_v11  ;;  %v632_v30 = vrot.slane %v610_v21, %v897_v11 }
  0xea   :  { %v607_v32 = vcombine.high %v589_v53, %v603_v22  ;;  %v625_v36 = vrot.slane %v609_v12, %v897_v11  ;;  %v639_v39 = vrot.slane %v611_v29, %v897_v11 }
  0xeb   :  { %v679_v13 = vadd.f32 %v678_v37, %v568_v5  ;;  %v640_v4 = vcombine.low %v618_v17, %v632_v30  ;;  %v641_v9 = vcombine.high %v618_v17, %v632_v30 }
  0xec   :  { %v642_v27 = vcombine.low %v625_v36, %v639_v39  ;;  %v643_v45 = vcombine.high %v625_v36, %v639_v39 }
  0xed   :  { %v680_v48 = vadd.f32 %v679_v13, %v569_v60 }
  0xef   :  { %v681_v7 = vadd.f32 %v680_v48, %v570_v43 }
  0xf1   :  { %v682_v54 = vadd.f32 %v681_v7, %v571_v6 }
  0xf3   :  { %v683_v25 = vadd.f32 %v682_v54, %v604_v23 }
  0xf5   :  { %v684_v31 = vadd.f32 %v683_v25, %v605_v24 }
  0xf7   :  { %v685_v35 = vadd.f32 %v684_v31, %v606_v15 }
  0xf9   :  { %v686_v40 = vadd.f32 %v685_v35, %v607_v32 }
  0xfb   :  { %v687_v41 = vadd.f32 %v686_v40, %v640_v4 }
  0xfd   :  { %v688_v42 = vadd.f32 %v687_v41, %v641_v9 }
  0xff   :  { %v689_v19 = vadd.f32 %v688_v42, %v642_v27 }
 0x101   :  { %v690_v28 = vadd.f32 %v689_v19, %v643_v45 }
 0x103   :  { %691 = vadd.xlane.f32.xlu0 %v690_v28 }
 0x190   :  { %v692_v46 = vpop.xlane.xlu0 %691 }
 0x191   :  { %v693_v20 = vmul.f32 0.00032562684, %v692_v46 }
 0x193   :  { %851 = vrsqrt.f32 %v693_v20  ;;  %vm696_vm0 = vcmp.eq.f32.partialorder %v693_v20, inf  ;;  %v699_v34 = vand.u32 2147483648, %v693_v20  ;;  %vm698_vm1 = vcmp.eq.f32.partialorder %v693_v20, 0.0 }
 0x19d   :  { %v852_v49 = vpop.eup %851 }
 0x19e   :  { %v695_v33 = vmul.f32 %v852_v49, %v693_v20 }
 0x1a0   :  { %v697_v51 = vsel %vm696_vm0, %v693_v20, %v695_v33 }
 0x1a1   :  { %v700_v11 = vsel %vm698_vm1, %v699_v34, %v697_v51 }
 0x1a2   :  { %v701_v56 = vmax.f32 %v700_v11, 0.018042196 }
 0x1a4   :  { %v709_v57 = vrot.slane %v701_v56, %v1068_v52 }
 0x1a6   :  { %853 = vrcp.f32 %v709_v57 }
 0x1b0   :  { %v854_v58 = vpop.eup %853 }
 0x1b1   :  { %v736_v0 = vmul.f32 %v854_v58, %v1084_v63  ;;  %v737_v1 = vmul.f32 %v854_v58, %v1096_v18  ;;  %v738_v5 = vmul.f32 %v854_v58, %v1110_v16  ;;  %v739_v2 = vmul.f32 %v854_v58, %v1126_v55 }
 0x1b2   :  { %v740_v10 = vmul.f32 %v854_v58, %v1142_v26  ;;  %v741_v37 = vmul.f32 %v854_v58, %v1158_v50 }
 0x1b3   :  { %802 = vst [vmem:[%s1204_s1] sm:$0xff] %v736_v0  ;;  %804 = vst [vmem:[%s1204_s1 + $0x8] sm:$0xff] %v737_v1 }
 0x1b4   :  { %806 = vst [vmem:[%s1204_s1 + $0x10] sm:$0xff] %v738_v5  ;;  %808 = vst [vmem:[%s1204_s1 + $0x18] sm:$0xff] %v739_v2 }
 0x1b5   :  { %810 = vst [vmem:[%s1204_s1 + $0x20] sm:$0xff] %v740_v10  ;;  %812 = vst [vmem:[%s1204_s1 + $0x28] sm:$0xff] %v741_v37 }

// kernel: c20_forward.7
= control target key start
LH: loop header
LB: loop body
LE: loop exit
PB: predicated region body
PF: predicated region fallthrough
CT: control target
= control target key end

     0   :  { %s1292_s12 = smov 0   ;;  %s1294_s13 = smov 0   ;;  %s1636_s0 = inlined_call_operand.vmem [shape: f32[1,1800,27], index: 0, kind: input, shape index: {}]   ;;  %s1637_s1 = inlined_call_operand.vmem [shape: f32[27,32], index: 1, kind: input, shape index: {}]   ;;  %s1638_s2 = inlined_call_operand.vmem [shape: f32[1,32], index: 2, kind: input, shape index: {}]   ;;  %s1639_s3 = inlined_call_operand.vmem [shape: f32[1800,32], index: 3, kind: output, shape index: {}]  }
   0x1   :  { %s1296_s14 = smov 0   ;;  %s1298_s15 = smov 0  }
   0x2   :  { %s1300_s16 = smov 0  }
   0x3 LB: > { %s902_s17 = sadd.s32 4294967295, %s1237_s16   ;;  %s25_s18 = sadd.s32 1, %s1233_s15  ;;  %s1237_s16 = sphi %s1300_s16, %s13_s16   ;;  %s1233_s15 = sphi %s1298_s15, %s1647_s15   ;;  %s1229_s14 = sphi %s1296_s14, %s1646_s14   ;;  %s1225_s13 = sphi %s1294_s13, %s1645_s13   ;;  %s1221_s12 = sphi %s1292_s12, %s1644_s12  }
   0x4   : > { %p27_p0 = scmp.ge.s32.totalorder %s25_s18, 15  ;;  %s102_s19 = sadd.s32 1, %s1225_s13 }
   0x5   : > { %p112_p1 = scmp.ne.s32.totalorder %s1225_s13, %s1221_s12  ;;  %p113_p2 = scmp.eq.s32.totalorder %s902_s17, 14 }
   0x6   : > { %s1649_s18 = smov (%p27_p0, %s25_s18), 0  ;;  %p906_p4 = scmp.ge.s32.totalorder %s1237_s16, 1 }
   0x7   : > { %p1324_p3 = por %p113_p2, %p112_p1  ;;  %s99_s21 = ssub.s32 %s1233_s15, %s1649_s18 }
   0x8   : > { %p164_p5 = scmp.lt.s32.totalorder %s1237_s16, 16  ;;  %p100_p6 = scmp.eq.s32.totalorder %s99_s21, 0 }
   0xa   : > { %p165_p7 = pnand %p906_p4, %p164_p5 }
   0xb   : > { %s1333_s22 = scalar_select %p100_p6, %s1225_s13, %s102_s19  }
   0xc   : > { %168 = sbr.rel (%p165_p7) target bundleno = 322 (0x142), region = 32  ;;  %v234_v0 = vld [vmem:[%s1637_s1] sm:$0xff] (!%p165_p7)  ;;  %v235_v1 = vld [vmem:[%s1637_s1 + $0x8] sm:$0xff] (!%p165_p7)  ;;  %v236_v2 = vld [vmem:[%s1637_s1 + $0x10] sm:$0xff] (!%p165_p7)  ;;  %vm294_vm0 = vcmask (!%p165_p7), 1042432   ;;  %s1345_s29 = sshll.u32 (!%p165_p7), %s1229_s14, 4 }
   0xd   : > { %v1016_v3 = vpack.c.bf16 (!%p165_p7), %v235_v1, %v234_v0  ;;  %v237_v4 = vld [vmem:[%s1637_s1 + $0x18] sm:$0x7] (!%p165_p7)  ;;  %p202_p8 = scmp.lt.s32.totalorder (!%p165_p7), %s1345_s29, 224  ;;  %vm1271_vm1 = vmmov (!%p165_p7), 1   ;;  %vm245_vm3 = vcmask (!%p165_p7), 220160   ;;  %s192_s17 = sand.u32 (!%p165_p7), 1, %s1221_s12  }
   0xe   : > { %v1020_v5 = vpack.c.bf16 (!%p165_p7), %v237_v4, %v236_v2  ;;  %vm1021_vm2 = vmpackc.low (!%p165_p7), %vm294_vm0, %vm1271_vm1  ;;  %v1392_v22 = vld [vmem:[%s1638_s2] ss:$0 sm:$0xff] (!%p165_p7)  ;;  %vm543_vm4 = vcmask (!%p165_p7), 261120   ;;  %s907_s19 = sshll.u32 (!%p165_p7), %s192_s17, 7 }
   0xf   : > { %1017 = vmatprep.subr.bf16.mxu0 (!%p165_p7), %v1016_v3  ;;  %1026 = vmatprep.subr.bf16.mxu1 (!%p165_p7), %v1016_v3  ;;  %s1464_s12 = scalar_lea.vmem (!%p165_p7), [#allocation2], %s907_s19  }
  0x10   : > { %1019 = vmatpush3.bf16.msra.mxu0 (!%p165_p7), %v1016_v3  ;;  %1028 = vmatpush3.bf16.msra.mxu1 (!%p165_p7), %v1016_v3 }
  0x11   : > { %1022 = vmatprep.subr.msk.bf16.mxu0 (!%p165_p7), %vm1021_vm2, %v1020_v5  ;;  %1027 = vmatprep.subr.msk.bf16.mxu1 (!%p165_p7), %vm1021_vm2, %v1020_v5 }
  0x13   : > { %s203_s5 = scalar_select %p202_p8, %s1345_s29, 224 }
  0x14   : > { %1025 = vmatpush3.bf16.msk.msra.mxu0 %vm1021_vm2, %v1020_v5  ;;  %1029 = vmatpush3.bf16.msk.msra.mxu1 %vm1021_vm2, %v1020_v5  ;;  %s621_s21 = ssub.s32 (%p1324_p3), 225, %s1345_s29  ;;  %s961_s23 = sshll.u32 (%p1324_p3), %s1229_s14, 7 }
  0x15   : > { %s909_s6 = sshll.u32 %s203_s5, 3  ;;  %p622_p9 = scmp.lt.s32.totalorder (%p1324_p3), %s621_s21, 16 }
  0x16   : > { %s1355_s9 = scalar_lea.vmem %s1636_s0, %s909_s6  ;;  %s1538_s26 = scalar_lea.vmem (%p1324_p3), %s1639_s3, %s961_s23  }
  0x17   : > { %v218_v6 = vld [vmem:[%s1355_s9] sm:$0xff]  ;;  %v219_v8 = vld [vmem:[%s1355_s9 + $0x8] sm:$0xff]  ;;  %v220_v10 = vld [vmem:[%s1355_s9 + $0x10] sm:$0xff] }
  0x18   : > { %v226_v7 = vld [vmem:[%s1355_s9 + $0x40] sm:$0xff]  ;;  %v227_v9 = vld [vmem:[%s1355_s9 + $0x48] sm:$0xff]  ;;  %992 = vmatprep.mubr.msk.f32.mxu0 %vm245_vm3, %v218_v6  ;;  %v228_v11 = vld [vmem:[%s1355_s9 + $0x50] sm:$0xff] }
  0x19   : > { %1004 = vmatprep.mubr.msk.f32.mxu1 %vm245_vm3, %v226_v7  ;;  %993 = vmatmul.mubr.msk.f32.vlgmr.msra.gmra.mrb[0].mxu0 %vm245_vm3, %v219_v8  ;;  %v221_v12 = vld [vmem:[%s1355_s9 + $0x18] sm:$0xff]  ;;  %v222_v14 = vld [vmem:[%s1355_s9 + $0x20] sm:$0xff]  ;;  %v223_v16 = vld [vmem:[%s1355_s9 + $0x28] sm:$0xff] }
  0x1a   : > { %1005 = vmatmul.mubr.msk.f32.vlgmr.msra.gmra.mrb[0].mxu1 %vm245_vm3, %v227_v9  ;;  %995 = vmatprep.mubr.msk.f32.mxu0 %vm245_vm3, %v220_v10  ;;  %v229_v13 = vld [vmem:[%s1355_s9 + $0x58] sm:$0xff]  ;;  %v230_v15 = vld [vmem:[%s1355_s9 + $0x60] sm:$0xff]  ;;  %v231_v17 = vld [vmem:[%s1355_s9 + $0x68] sm:$0xff] }
  0x1b   : > { %1007 = vmatprep.mubr.msk.f32.mxu1 %vm245_vm3, %v228_v11  ;;  %v224_v18 = vld [vmem:[%s1355_s9 + $0x30] sm:$0xff]  ;;  %v225_v20 = vld [vmem:[%s1355_s9 + $0x38] sm:$0xff] }
  0x1c   : > { %v232_v19 = vld [vmem:[%s1355_s9 + $0x70] sm:$0xff]  ;;  %v233_v21 = vld [vmem:[%s1355_s9 + $0x78] sm:$0xff] }
  0x1d   : > { %996 = vmatmul.mubr.msk.f32.gmra.mrb[2].mxu0 %vm245_vm3, %v221_v12 }
  0x1e   : > { %1008 = vmatmul.mubr.msk.f32.gmra.mrb[2].mxu1 %vm245_vm3, %v229_v13  ;;  %998 = vmatprep.mubr.msk.f32.mxu0 %vm245_vm3, %v222_v14 }
  0x1f   : > { %1010 = vmatprep.mubr.msk.f32.mxu1 %vm245_vm3, %v230_v15 }
  0x21   : > { %999 = vmatmul.mubr.msk.f32.gmra.mrb[4].mxu0 %vm245_vm3, %v223_v16 }
  0x22   : > { %1011 = vmatmul.mubr.msk.f32.gmra.mrb[4].mxu1 %vm245_vm3, %v231_v17  ;;  %1001 = vmatprep.mubr.msk.f32.mxu0 %vm245_vm3, %v224_v18 }
  0x23   : > { %1013 = vmatprep.mubr.msk.f32.mxu1 %vm245_vm3, %v232_v19 }
  0x25   : > { %1002 = vmatmul.mubr.msk.f32.gmra.mrb[6].mxu0 %vm245_vm3, %v225_v20 }
  0x26   : > { %1014 = vmatmul.mubr.msk.f32.gmra.mrb[6].mxu1 %vm245_vm3, %v233_v21 }
  0xec   : > { %v994_v23 = vpop.f32.mrb[0].mxu0 }
  0xed   : > { %v1006_v24 = vpop.f32.mrb[0].mxu1  ;;  %v1395_v25 = vadd.f32 %v994_v23, %v1392_v22  ;;  %v364_v27 = vpop.f32.mrb[1].mxu0 }
  0xee   : > { %v1398_v26 = vadd.f32 %v1006_v24, %v1392_v22  ;;  %v404_v28 = vpop.f32.mrb[1].mxu1  ;;  %v1401_v29 = vadd.f32 %v1392_v22, %v364_v27 }
  0xef   : > { %v1404_v30 = vadd.f32 %v1392_v22, %v404_v28  ;;  %v460_v31 = vmin.f32 %v1395_v25, 0.0  ;;  %vm444_vm5 = vcmp.gt.f32.partialorder %v1395_v25, 0.0 }
  0xf0   : > { %v468_v32 = vmin.f32 %v1398_v26, 0.0  ;;  %v459_v33 = vmin.f32 %v1401_v29, 0.0  ;;  %v997_v35 = vpop.f32.mrb[2].mxu0  ;;  %vm452_vm6 = vcmp.gt.f32.partialorder %v1398_v26, 0.0  ;;  %vm443_vm7 = vcmp.gt.f32.partialorder %v1401_v29, 0.0 }
  0xf1   : > { %v467_v34 = vmin.f32 %v1404_v30, 0.0  ;;  %v1009_v36 = vpop.f32.mrb[2].mxu1  ;;  %v477_v37 = vmul.f32 1.442695, %v460_v31  ;;  %v1411_v39 = vadd.f32 %v997_v35, %v1392_v22  ;;  %v374_v41 = vpop.f32.mrb[3].mxu0  ;;  %vm451_vm8 = vcmp.gt.f32.partialorder %v1404_v30, 0.0 }
  0xf2   : > { %v493_v38 = vmul.f32 1.442695, %v468_v32  ;;  %v1414_v40 = vadd.f32 %v1009_v36, %v1392_v22  ;;  %v414_v42 = vpop.f32.mrb[3].mxu1  ;;  %v475_v43 = vmul.f32 1.442695, %v459_v33  ;;  %v1417_v45 = vadd.f32 %v1392_v22, %v374_v41 }
  0xf3   : > { %v491_v44 = vmul.f32 1.442695, %v467_v34  ;;  %v1420_v46 = vadd.f32 %v1392_v22, %v414_v42  ;;  %1135 = vpow2.f32 %v477_v37  ;;  %v462_v47 = vmin.f32 %v1411_v39, 0.0 }
  0xf4   : > { %1137 = vpow2.f32 %v493_v38  ;;  %v470_v48 = vmin.f32 %v1414_v40, 0.0  ;;  %v461_v49 = vmin.f32 %v1417_v45, 0.0  ;;  %v1000_v50 = vpop.f32.mrb[4].mxu0  ;;  %vm446_vm9 = vcmp.gt.f32.partialorder %v1411_v39, 0.0 }
  0xf5   : > { %v1012_v51 = vpop.f32.mrb[4].mxu1  ;;  %1139 = vpow2.f32 %v475_v43  ;;  %v481_v52 = vmul.f32 1.442695, %v462_v47  ;;  %v469_v53 = vmin.f32 %v1420_v46, 0.0  ;;  %v384_v54 = vpop.f32.mrb[5].mxu0  ;;  %v1427_v58 = vadd.f32 %v1000_v50, %v1392_v22 }
  0xf6   : > { %v424_v55 = vpop.f32.mrb[5].mxu1  ;;  %1141 = vpow2.f32 %v491_v44  ;;  %v497_v56 = vmul.f32 1.442695, %v470_v48  ;;  %v479_v57 = vmul.f32 1.442695, %v461_v49  ;;  %v1430_v60 = vadd.f32 %v1012_v51, %v1392_v22 }
  0xf7   : > { %1143 = vpow2.f32 %v481_v52  ;;  %v495_v59 = vmul.f32 1.442695, %v469_v53  ;;  %v1433_v61 = vadd.f32 %v1392_v22, %v384_v54  ;;  %v464_v62 = vmin.f32 %v1427_v58, 0.0 }
  0xf8   : > { %1145 = vpow2.f32 %v497_v56  ;;  %v1438_v63 = vadd.f32 %v1392_v22, %v424_v55  ;;  %v1003_v0 = vpop.f32.mrb[6].mxu0  ;;  %v472_v2 = vmin.f32 %v1430_v60, 0.0  ;;  %vm454_vm10 = vcmp.gt.f32.partialorder %v1414_v40, 0.0 }
  0xf9   : > { %v1015_v1 = vpop.f32.mrb[6].mxu1  ;;  %1147 = vpow2.f32 %v479_v57  ;;  %v394_v3 = vpop.f32.mrb[7].mxu0  ;;  %v485_v5 = vmul.f32 1.442695, %v464_v62  ;;  %v463_v6 = vmin.f32 %v1433_v61, 0.0  ;;  %v1444_v9 = vadd.f32 %v1003_v0, %v1392_v22 }
  0xfa   : > { %v434_v4 = vpop.f32.mrb[7].mxu1  ;;  %1149 = vpow2.f32 %v495_v59  ;;  %v501_v7 = vmul.f32 1.442695, %v472_v2  ;;  %v471_v8 = vmin.f32 %v1438_v63, 0.0  ;;  %v1447_v10 = vadd.f32 %v1015_v1, %v1392_v22 }
  0xfb   : > { %1151 = vpow2.f32 %v485_v5  ;;  %v483_v11 = vmul.f32 1.442695, %v463_v6  ;;  %v1451_v12 = vadd.f32 %v1392_v22, %v394_v3  ;;  %v466_v15 = vmin.f32 %v1444_v9, 0.0 }
  0xfc   : > { %1153 = vpow2.f32 %v501_v7  ;;  %v499_v14 = vmul.f32 1.442695, %v471_v8  ;;  %v474_v18 = vmin.f32 %v1447_v10, 0.0  ;;  %v1458_v23 = vadd.f32 %v1392_v22, %v434_v4 }
  0xfd   : > { %v1136_v13 = vpop.eup %1135  ;;  %1155 = vpow2.f32 %v483_v11  ;;  %v489_v21 = vmul.f32 1.442695, %v466_v15  ;;  %v465_v32 = vmin.f32 %v1451_v12, 0.0  ;;  %vm445_vm11 = vcmp.gt.f32.partialorder %v1417_v45, 0.0 }
  0xfe   : > { %v1138_v16 = vpop.eup %1137  ;;  %v929_v17 = vadd.f32 -1.0, %v1136_v13  ;;  %1157 = vpow2.f32 %v499_v14  ;;  %v505_v31 = vmul.f32 1.442695, %v474_v18  ;;  %v473_v42 = vmin.f32 %v1458_v23, 0.0 }
  0xff   : > { %v1140_v19 = vpop.eup %1139  ;;  %v937_v20 = vadd.f32 -1.0, %v1138_v16  ;;  %1159 = vpow2.f32 %v489_v21  ;;  %v487_v37 = vmul.f32 1.442695, %v465_v32  ;;  %vm453_vm12 = vcmp.gt.f32.partialorder %v1420_v46, 0.0 }
 0x100   : > { %v1142_v24 = vpop.eup %1141  ;;  %v524_v27 = vsel %vm444_vm5, %v1395_v25, %v929_v17  ;;  %v928_v28 = vadd.f32 -1.0, %v1140_v19  ;;  %1161 = vpow2.f32 %v505_v31  ;;  %v503_v48 = vmul.f32 1.442695, %v473_v42 }
 0x101   : > { %v1144_v33 = vpop.eup %1143  ;;  %545 = vst.msk [vmem:[%s1464_s12 + $0x8] sm:$0xff] %vm543_vm4, %v524_v27  ;;  %v532_v22 = vsel %vm452_vm6, %v1398_v26, %v937_v20  ;;  %v936_v25 = vadd.f32 -1.0, %v1142_v24  ;;  %1163 = vpow2.f32 %v487_v37  ;;  %vm448_vm13 = vcmp.gt.f32.partialorder %v1427_v58, 0.0 }
 0x102   : > { %v1146_v34 = vpop.eup %1145  ;;  %553 = vst.msk [vmem:[%s1464_s12 + $0x48] sm:$0xff] %vm543_vm4, %v532_v22  ;;  %v523_v35 = vsel %vm443_vm7, %v1401_v29, %v928_v28  ;;  %v931_v36 = vadd.f32 -1.0, %v1144_v33  ;;  %1165 = vpow2.f32 %v503_v48  ;;  %vm456_vm14 = vcmp.gt.f32.partialorder %v1430_v60, 0.0 }
 0x103   : > { %v1148_v38 = vpop.eup %1147  ;;  %544 = vst.msk [vmem:[%s1464_s12] sm:$0xff] %vm543_vm4, %v523_v35  ;;  %v531_v26 = vsel %vm451_vm8, %v1404_v30, %v936_v25  ;;  %v939_v41 = vadd.f32 -1.0, %v1146_v34  ;;  %vm447_vm15 = vcmp.gt.f32.partialorder %v1433_v61, 0.0  ;;  %vm455_vm0 = vcmp.gt.f32.partialorder %v1438_v63, 0.0 }
 0x104   : > { %v1150_v43 = vpop.eup %1149  ;;  %552 = vst.msk [vmem:[%s1464_s12 + $0x40] sm:$0xff] %vm543_vm4, %v531_v26  ;;  %v526_v29 = vsel %vm446_vm9, %v1411_v39, %v931_v36  ;;  %v930_v44 = vadd.f32 -1.0, %v1148_v38  ;;  %vm450_vm1 = vcmp.gt.f32.partialorder %v1444_v9, 0.0  ;;  %vm458_vm2 = vcmp.gt.f32.partialorder %v1447_v10, 0.0 }
 0x105   : > { %547 = vst.msk [vmem:[%s1464_s12 + $0x18] sm:$0xff] %vm543_vm4, %v526_v29  ;;  %v534_v30 = vsel %vm454_vm10, %v1414_v40, %v939_v41  ;;  %v938_v47 = vadd.f32 -1.0, %v1150_v43  ;;  %v1152_v49 = vpop.eup %1151  ;;  %vm449_vm3 = vcmp.gt.f32.partialorder %v1451_v12, 0.0  ;;  %vm457_vm5 = vcmp.gt.f32.partialorder %v1458_v23, 0.0 }
 0x106   : > { %555 = vst.msk [vmem:[%s1464_s12 + $0x58] sm:$0xff] %vm543_vm4, %v534_v30  ;;  %v525_v50 = vsel %vm445_vm11, %v1417_v45, %v930_v44  ;;  %v1154_v39 = vpop.eup %1153  ;;  %v933_v52 = vadd.f32 -1.0, %v1152_v49 }
 0x107   : > { %546 = vst.msk [vmem:[%s1464_s12 + $0x10] sm:$0xff] %vm543_vm4, %v525_v50  ;;  %v533_v51 = vsel %vm453_vm12, %v1420_v46, %v938_v47  ;;  %v1156_v40 = vpop.eup %1155  ;;  %v941_v53 = vadd.f32 -1.0, %v1154_v39 }
 0x108   : > { %554 = vst.msk [vmem:[%s1464_s12 + $0x50] sm:$0xff] %vm543_vm4, %v533_v51  ;;  %v1158_v54 = vpop.eup %1157  ;;  %v528_v45 = vsel %vm448_vm13, %v1427_v58, %v933_v52  ;;  %v932_v55 = vadd.f32 -1.0, %v1156_v40 }
 0x109   : > { %549 = vst.msk [vmem:[%s1464_s12 + $0x28] sm:$0xff] %vm543_vm4, %v528_v45  ;;  %v536_v46 = vsel %vm456_vm14, %v1430_v60, %v941_v53  ;;  %v940_v56 = vadd.f32 -1.0, %v1158_v54  ;;  %v1160_v57 = vpop.eup %1159 }
 0x10a   : > { %557 = vst.msk [vmem:[%s1464_s12 + $0x68] sm:$0xff] %vm543_vm4, %v536_v46  ;;  %v527_v59 = vsel %vm447_vm15, %v1433_v61, %v932_v55  ;;  %v1162_v58 = vpop.eup %1161  ;;  %v935_v0 = vadd.f32 -1.0, %v1160_v57  ;;  %619 = sbr.rel (!%p1324_p3) target bundleno = 322 (0x142), region = 44 }
 0x10b   : > { %548 = vst.msk [vmem:[%s1464_s12 + $0x20] sm:$0xff] %vm543_vm4, %v527_v59  ;;  %v535_v62 = vsel %vm455_vm0, %v1438_v63, %v940_v56  ;;  %v943_v60 = vadd.f32 -1.0, %v1162_v58  ;;  %v1164_v1 = vpop.eup %1163 }
 0x10c   : > { %556 = vst.msk [vmem:[%s1464_s12 + $0x60] sm:$0xff] %vm543_vm4, %v535_v62  ;;  %v530_v2 = vsel %vm450_vm1, %v1444_v9, %v935_v0  ;;  %v934_v3 = vadd.f32 -1.0, %v1164_v1  ;;  %v1166_v63 = vpop.eup %1165 }
 0x10d   : > { %551 = vst.msk [vmem:[%s1464_s12 + $0x38] sm:$0xff] %vm543_vm4, %v530_v2  ;;  %v538_v61 = vsel %vm458_vm2, %v1447_v10, %v943_v60  ;;  %v942_v5 = vadd.f32 -1.0, %v1166_v63 }
 0x10e   : > { %559 = vst.msk [vmem:[%s1464_s12 + $0x78] sm:$0xff] %vm543_vm4, %v538_v61  ;;  %v529_v4 = vsel %vm449_vm3, %v1451_v12, %v934_v3 }
 0x10f   : > { %550 = vst.msk [vmem:[%s1464_s12 + $0x30] sm:$0xff] %vm543_vm4, %v529_v4  ;;  %v537_v6 = vsel %vm457_vm5, %v1458_v23, %v942_v5 }
 0x110   : > { %558 = vst.msk [vmem:[%s1464_s12 + $0x70] sm:$0xff] %vm543_vm4, %v537_v6 }
 0x111   : > { %s1651_s21 = smov (!%p622_p9, %s621_s21), 16 }
 0x112   : > { %s946_s27 = sshll.u32 %s1651_s21, 7 }
 0x113   : > { %p949_p10 = scmp.eq.s32.totalorder %s946_s27, 0 }
 0x114   : > { %s1544_s28 = sshrl.u32 (!%p949_p10), %s1651_s21, 4 }
 0x115   : > { %630 = sbr.rel (%p949_p10) target bundleno = 322 (0x142), region = 48  ;;  %p950_p11 = scmp.le.s32.totalorder (!%p949_p10), %s1544_s28, 0 }
 0x11c   : > { %850 = sbr.rel (%p950_p11) target bundleno = 301 (0x12d), region = 124  ;;  %s1641_s14 = smov (!%p950_p11), %s1538_s26 }
 0x11d   : > { %s1642_s20 = smov (!%p950_p11), %s1464_s12  ;;  %s1553_s29 = smov (!%p950_p11), 0  }
 0x11e   : > { %s1555_s30 = smov (!%p950_p11), 0  }
 0x123 LB: >> { %v722_v7 = vld [vmem:[%s1245_s20] sm:$0xff]  ;;  %v724_v8 = vld [vmem:[%s1245_s20 + $0x8] sm:$0xff]  ;;  %v726_v9 = vld [vmem:[%s1245_s20 + $0x10] sm:$0xff]  ;;  %s754_s4 = sadd.s32 1, %s1249_s29  ;;  %s716_s30 = sadd.s32 1, %s1253_s30   ;;  %s1253_s30 = sphi %s1555_s30, %s716_s30   ;;  %s1249_s29 = sphi %s1553_s29, %s1643_s29   ;;  %s1245_s20 = sphi %s1642_s20, %s759_s20   ;;  %s1241_s14 = sphi %s1641_s14, %s760_s14  }
 0x124   : >> { %723 = vst [vmem:[%s1241_s14] sm:$0xff] %v722_v7  ;;  %725 = vst [vmem:[%s1241_s14 + $0x8] sm:$0xff] %v724_v8  ;;  %v728_v10 = vld [vmem:[%s1245_s20 + $0x18] sm:$0xff]  ;;  %v730_v11 = vld [vmem:[%s1245_s20 + $0x20] sm:$0xff]  ;;  %p755_p12 = scmp.ge.s32.totalorder %s754_s4, %s1544_s28  ;;  %p715_p13 = scmp.ge.s32.totalorder %s716_s30, %s1544_s28 }
 0x125   : >> { %727 = vst [vmem:[%s1241_s14 + $0x10] sm:$0xff] %v726_v9  ;;  %v732_v12 = vld [vmem:[%s1245_s20 + $0x28] sm:$0xff]  ;;  %729 = vst [vmem:[%s1241_s14 + $0x18] sm:$0xff] %v728_v10  ;;  %v734_v13 = vld [vmem:[%s1245_s20 + $0x30] sm:$0xff] }
 0x126   : >> { %731 = vst [vmem:[%s1241_s14 + $0x20] sm:$0xff] %v730_v11  ;;  %733 = vst [vmem:[%s1241_s14 + $0x28] sm:$0xff] %v732_v12  ;;  %v736_v14 = vld [vmem:[%s1245_s20 + $0x38] sm:$0xff]  ;;  %v738_v15 = vld [vmem:[%s1245_s20 + $0x40] sm:$0xff]  ;;  %s1653_s4 = smov (%p755_p12, %s754_s4), 0  ;;  %718 = sbr.rel (!%p715_p13) target bundleno = 291 (0x123), region = 130 }
 0x127   : >> { %735 = vst [vmem:[%s1241_s14 + $0x30] sm:$0xff] %v734_v13  ;;  %737 = vst [vmem:[%s1241_s14 + $0x38] sm:$0xff] %v736_v14  ;;  %v740_v16 = vld [vmem:[%s1245_s20 + $0x48] sm:$0xff]  ;;  %v742_v17 = vld [vmem:[%s1245_s20 + $0x50] sm:$0xff]  ;;  %s951_s5 = sshll.u32 %s1653_s4, 7  ;;  %s1643_s29 = smov %s1653_s4 }
 0x128   : >> { %739 = vst [vmem:[%s1241_s14 + $0x40] sm:$0xff] %v738_v15  ;;  %v744_v18 = vld [vmem:[%s1245_s20 + $0x58] sm:$0xff]  ;;  %741 = vst [vmem:[%s1241_s14 + $0x48] sm:$0xff] %v740_v16  ;;  %v746_v19 = vld [vmem:[%s1245_s20 + $0x60] sm:$0xff] }
 0x129   : >> { %743 = vst [vmem:[%s1241_s14 + $0x50] sm:$0xff] %v742_v17  ;;  %745 = vst [vmem:[%s1241_s14 + $0x58] sm:$0xff] %v744_v18  ;;  %v748_v20 = vld [vmem:[%s1245_s20 + $0x68] sm:$0xff]  ;;  %v750_v21 = vld [vmem:[%s1245_s20 + $0x70] sm:$0xff] }
 0x12a   : >> { %747 = vst [vmem:[%s1241_s14 + $0x60] sm:$0xff] %v746_v19  ;;  %749 = vst [vmem:[%s1241_s14 + $0x68] sm:$0xff] %v748_v20  ;;  %v752_v23 = vld [vmem:[%s1245_s20 + $0x78] sm:$0xff]  ;;  %s759_s20 = scalar_lea.vmem %s1464_s12, %s951_s5 [#allocation2]  }
 0x12b   : >> { %751 = vst [vmem:[%s1241_s14 + $0x70] sm:$0xff] %v750_v21  ;;  %753 = vst [vmem:[%s1241_s14 + $0x78] sm:$0xff] %v752_v23  ;;  %s760_s14 = scalar_lea.vmem %s1538_s26, %s951_s5  }
 0x12d PF: > { %s1613_s6 = sand.u32 15, %s1651_s21   ;;  %s962_s7 = sshll.u32 %s1544_s28, 7 }
 0x12e   : > { %s765_s8 = scalar_lea.vmem %s1464_s12, %s962_s7 [#allocation2]   ;;  %s767_s9 = scalar_lea.vmem %s1538_s26, %s962_s7  }
 0x12f   : > { %p956_p0 = scmp.le.s32.totalorder %s1613_s6, 0 }
 0x130   : > { %s1255_s10 = smov (!%p956_p0), %s767_s9   ;;  %s1259_s11 = smov (!%p956_p0), %s765_s8  }
 0x131   : > { %864 = sbr.rel (%p956_p0) target bundleno = 322 (0x142), region = 135  ;;  %s1263_s17 = smov (!%p956_p0), 0  }
 0x132   : > { %s1267_s19 = smov (!%p956_p0), 0  }
 0x138 LB: >> { %v777_v24 = vld [vmem:[%s1261_s11] sm:$0xff]  ;;  %s779_s21 = sadd.s32 1, %s1265_s17  ;;  %s771_s19 = sadd.s32 1, %s1269_s19   ;;  %s1269_s19 = sphi %s1267_s19, %s771_s19   ;;  %s1265_s17 = sphi %s1263_s17, %s1264_s17   ;;  %s1261_s11 = sphi %s1259_s11, %s784_s11   ;;  %s1257_s10 = sphi %s1255_s10, %s785_s10  }
 0x139   : >> { %778 = vst [vmem:[%s1257_s10] sm:$0xff] %v777_v24  ;;  %p780_p1 = scmp.ge.s32.totalorder %s779_s21, %s1613_s6  ;;  %p770_p2 = scmp.ge.s32.totalorder %s771_s19, %s1613_s6 }
 0x13b   : >> { %s1655_s21 = smov (%p780_p1, %s779_s21), 0  ;;  %773 = sbr.rel (!%p770_p2) target bundleno = 312 (0x138), region = 141 }
 0x13c   : >> { %s957_s12 = sshll.u32 %s1655_s21, 3  ;;  %s1264_s17 = smov %s1655_s21  }
 0x13d   : >> { %s784_s11 = scalar_lea.vmem %s765_s8, %s957_s12 [#allocation2]   ;;  %s785_s10 = scalar_lea.vmem %s767_s9, %s957_s12  }
 0x142 PF: > { %s13_s16 = sadd.s32 1, %s1237_s16   ;;  %s1644_s12 = smov %s1225_s13 }
 0x143   : > { %p10_p3 = scmp.ge.s32.totalorder %s13_s16, 17   ;;  %s1645_s13 = smov %s1333_s22 }
 0x144   : > { %s1646_s14 = smov %s1233_s15  ;;  %s1647_s15 = smov %s1649_s18 }
 0x145   :  { %12 = sbr.rel (!%p10_p3) target bundleno = 3 (0x3), region = 152 }

// kernel: c20_forward.8
= control target key start
LH: loop header
LB: loop body
LE: loop exit
PB: predicated region body
PF: predicated region fallthrough
CT: control target
= control target key end

     0   :  { %s1664_s12 = smov 0   ;;  %s1666_s13 = smov 0   ;;  %s2264_s0 = inlined_call_operand.vmem [shape: f32[4,392,288], index: 0, kind: input, shape index: {}]   ;;  %s2265_s1 = inlined_call_operand.vmem [shape: f32[288,32], index: 1, kind: input, shape index: {}]   ;;  %s2266_s2 = inlined_call_operand.vmem [shape: f32[1,32], index: 2, kind: input, shape index: {}]   ;;  %s2267_s3 = inlined_call_operand.vmem [shape: f32[392,32], index: 3, kind: output, shape index: {}]  }
   0x1   :  { %s1668_s14 = smov 0   ;;  %s1670_s15 = smov 0  }
   0x2   :  { %s1672_s16 = smov 0   ;;  %s1674_s17 = smov 0  }
   0x3   :  { %s1676_s18 = smov 0  }
   0x4 LB: > { %s22_s19 = sadd.s32 1, %s1602_s16  ;;  %s25_s20 = sadd.s32 1, %s1606_s17  ;;  %s1610_s18 = sphi %s1676_s18, %s13_s18   ;;  %s1606_s17 = sphi %s1674_s17, %s2277_s17   ;;  %s1602_s16 = sphi %s1672_s16, %s2276_s16   ;;  %s1598_s15 = sphi %s1670_s15, %s2275_s15   ;;  %s1594_s14 = sphi %s1668_s14, %s2274_s14   ;;  %s1590_s13 = sphi %s1666_s13, %s2273_s13   ;;  %s1586_s12 = sphi %s1664_s12, %s2272_s12  }
   0x5   : > { %p23_p0 = scmp.ge.s32.totalorder %s22_s19, 4  ;;  %s1119_s21 = sadd.s32 4294967295, %s1610_s18  }
   0x6   : > { %p112_p1 = scmp.ne.s32.totalorder %s1590_s13, %s1586_s12  ;;  %p113_p2 = scmp.eq.s32.totalorder %s1119_s21, 15 }
   0x7   : > { %s2279_s19 = smov (%p23_p0, %s22_s19), 0  ;;  %s2281_s20 = smov (!%p23_p0, %s25_s20), %s1606_s17 }
   0x8   : > { %p1123_p3 = scmp.ge.s32.totalorder %s1610_s18, 1  ;;  %p27_p4 = scmp.ge.s32.totalorder %s2281_s20, 4 }
   0x9   : > { %p167_p5 = scmp.lt.s32.totalorder %s1610_s18, 17  ;;  %p1709_p6 = por %p113_p2, %p112_p1 }
   0xa   : > { %s2283_s20 = smov (%p27_p4, %s2281_s20), 0  ;;  %s102_s24 = sadd.s32 1, %s1590_s13 }
   0xb   : > { %p168_p7 = pnand %p1123_p3, %p167_p5  ;;  %s99_s23 = ssub.s32 %s1606_s17, %s2283_s20 }
   0xc   : > { %p100_p8 = scmp.eq.s32.totalorder %s99_s23, 0  ;;  %s197_s26 = sand.u32 (!%p168_p7), 1, %s1586_s12   ;;  %v290_v0 = vld [vmem:[%s2265_s1 + $0x80] sm:$0xff] (!%p168_p7)  ;;  %v291_v1 = vld [vmem:[%s2265_s1 + $0x88] sm:$0xff] (!%p168_p7)  ;;  %v292_v5 = vld [vmem:[%s2265_s1 + $0x90] sm:$0xff] (!%p168_p7)  ;;  %vm317_vm0 = vcmask (!%p168_p7), 261120  }
   0xd   : > { %171 = sbr.rel (%p168_p7) target bundleno = 399 (0x18f), region = 32  ;;  %v274_v2 = vld [vmem:[%s2265_s1] sm:$0xff] (!%p168_p7)  ;;  %s1732_s6 = sshll.u32 (!%p168_p7), %s1598_s15, 4  ;;  %v1314_v3 = vpack.c.bf16 (!%p168_p7), %v291_v1, %v290_v0  ;;  %v275_v4 = vld [vmem:[%s2265_s1 + $0x8] sm:$0xff] (!%p168_p7)  ;;  %v293_v6 = vld [vmem:[%s2265_s1 + $0x98] sm:$0xff] (!%p168_p7) }
   0xe   : > { %s1719_s25 = scalar_select %p100_p8, %s1590_s13, %s102_s24  }
   0xf   : > { %s1734_s7 = sshll.u32 (!%p168_p7), %s197_s26, 7  ;;  %p206_p9 = scmp.lt.s32.totalorder (!%p168_p7), %s1594_s14, 3  ;;  %v1316_v7 = vpack.c.bf16 (!%p168_p7), %v275_v4, %v274_v2  ;;  %v1318_v8 = vpack.c.bf16 (!%p168_p7), %v293_v6, %v292_v5  ;;  %v276_v9 = vld [vmem:[%s2265_s1 + $0x10] sm:$0xff] (!%p168_p7)  ;;  %v277_v10 = vld [vmem:[%s2265_s1 + $0x18] sm:$0xff] (!%p168_p7)  ;;  %v294_v11 = vld [vmem:[%s2265_s1 + $0xa0] sm:$0xff] (!%p168_p7)  ;;  %1315 = vmatprep.subr.bf16.mxu0 (!%p168_p7), %v1314_v3  ;;  %1354 = vmatprep.subr.bf16.mxu1 (!%p168_p7), %v1314_v3 }
  0x10   : > { %p208_p10 = scmp.lt.s32.totalorder (!%p168_p7), %s1732_s6, 48  ;;  %v295_v12 = vld [vmem:[%s2265_s1 + $0xa8] sm:$0xff] (!%p168_p7)  ;;  %v1320_v13 = vpack.c.bf16 (!%p168_p7), %v277_v10, %v276_v9  ;;  %v278_v15 = vld [vmem:[%s2265_s1 + $0x20] sm:$0xff] (!%p168_p7)  ;;  %v296_v17 = vld [vmem:[%s2265_s1 + $0xb0] sm:$0xff] (!%p168_p7)  ;;  %s2037_s12 = scalar_lea.vmem (!%p168_p7), [#allocation2], %s1734_s7  }
  0x11   : > { %1317 = vmatpush3.bf16.msra.mxu0 (!%p168_p7), %v1316_v7  ;;  %1362 = vmatpush3.bf16.msra.mxu1 (!%p168_p7), %v1316_v7  ;;  %v1322_v14 = vpack.c.bf16 (!%p168_p7), %v295_v12, %v294_v11  ;;  %v279_v16 = vld [vmem:[%s2265_s1 + $0x28] sm:$0xff] (!%p168_p7)  ;;  %v297_v18 = vld [vmem:[%s2265_s1 + $0xb8] sm:$0xff] (!%p168_p7)  ;;  %v280_v21 = vld [vmem:[%s2265_s1 + $0x30] sm:$0xff] (!%p168_p7)  ;;  %p1160_p11 = scmp.ne.s32.totalorder (!%p168_p7), %s1594_s14, 0 }
  0x12   : > { %1319 = vmatprep.subr.bf16.mxu0 (!%p168_p7), %v1318_v8  ;;  %1355 = vmatprep.subr.bf16.mxu1 (!%p168_p7), %v1318_v8  ;;  %v1324_v19 = vpack.c.bf16 (!%p168_p7), %v279_v16, %v278_v15  ;;  %v1326_v20 = vpack.c.bf16 (!%p168_p7), %v297_v18, %v296_v17  ;;  %v281_v22 = vld [vmem:[%s2265_s1 + $0x38] sm:$0xff] (!%p168_p7)  ;;  %v298_v23 = vld [vmem:[%s2265_s1 + $0xc0] sm:$0xff] (!%p168_p7)  ;;  %v299_v24 = vld [vmem:[%s2265_s1 + $0xc8] sm:$0xff] (!%p168_p7) }
  0x13   : > { %v1328_v27 = vpack.c.bf16 (!%p168_p7), %v281_v22, %v280_v21  ;;  %v1330_v28 = vpack.c.bf16 (!%p168_p7), %v299_v24, %v298_v23  ;;  %v282_v29 = vld [vmem:[%s2265_s1 + $0x40] sm:$0xff] (!%p168_p7)  ;;  %v283_v30 = vld [vmem:[%s2265_s1 + $0x48] sm:$0xff] (!%p168_p7)  ;;  %v300_v31 = vld [vmem:[%s2265_s1 + $0xd0] sm:$0xff] (!%p168_p7) }
  0x14   : > { %s207_s5 = scalar_select %p206_p9, %s1594_s14, 3  ;;  %v301_v32 = vld [vmem:[%s2265_s1 + $0xd8] sm:$0xff]  ;;  %v1332_v33 = vpack.c.bf16 %v283_v30, %v282_v29  ;;  %v284_v35 = vld [vmem:[%s2265_s1 + $0x50] sm:$0xff]  ;;  %v302_v37 = vld [vmem:[%s2265_s1 + $0xe0] sm:$0xff] }
  0x15   : > { %s209_s8 = scalar_select %p208_p10, %s1732_s6, 48  ;;  %1321 = vmatpush3.bf16.msra.mxu0 %v1320_v13  ;;  %1363 = vmatpush3.bf16.msra.mxu1 %v1320_v13  ;;  %v1334_v34 = vpack.c.bf16 %v301_v32, %v300_v31  ;;  %v285_v36 = vld [vmem:[%s2265_s1 + $0x58] sm:$0xff]  ;;  %v303_v38 = vld [vmem:[%s2265_s1 + $0xe8] sm:$0xff]  ;;  %v286_v41 = vld [vmem:[%s2265_s1 + $0x60] sm:$0xff] }
  0x16   : > { %s1371_s21 = smul.u32 147, %s207_s5  ;;  %1323 = vmatprep.subr.bf16.mxu0 %v1322_v14  ;;  %1356 = vmatprep.subr.bf16.mxu1 %v1322_v14  ;;  %v1336_v39 = vpack.c.bf16 %v285_v36, %v284_v35  ;;  %v1338_v40 = vpack.c.bf16 %v303_v38, %v302_v37  ;;  %v287_v42 = vld [vmem:[%s2265_s1 + $0x68] sm:$0xff]  ;;  %v304_v43 = vld [vmem:[%s2265_s1 + $0xf0] sm:$0xff]  ;;  %v305_v44 = vld [vmem:[%s2265_s1 + $0xf8] sm:$0xff] }
  0x17   : > { %s1370_s28 = smul.u32 3, %s209_s8  ;;  %v1340_v45 = vpack.c.bf16 %v287_v42, %v286_v41  ;;  %v1342_v46 = vpack.c.bf16 %v305_v44, %v304_v43  ;;  %v288_v47 = vld [vmem:[%s2265_s1 + $0x70] sm:$0xff]  ;;  %v289_v48 = vld [vmem:[%s2265_s1 + $0x78] sm:$0xff]  ;;  %v306_v49 = vld [vmem:[%s2265_s1 + $0x100] sm:$0xff] }
  0x18   : > { %v307_v50 = vld [vmem:[%s2265_s1 + $0x108] sm:$0xff]  ;;  %v1344_v51 = vpack.c.bf16 %v289_v48, %v288_v47  ;;  %v308_v53 = vld [vmem:[%s2265_s1 + $0x110] sm:$0xff]  ;;  %v309_v54 = vld [vmem:[%s2265_s1 + $0x118] sm:$0xff] }
  0x19   : > { %s212_s29 = sadd.s32 %s1371_s21, %s1370_s28  ;;  %1325 = vmatpush3.bf16.msra.mxu0 %v1324_v19  ;;  %1364 = vmatpush3.bf16.msra.mxu1 %v1324_v19  ;;  %v1346_v52 = vpack.c.bf16 %v307_v50, %v306_v49  ;;  %v1350_v59 = vpack.c.bf16 %v309_v54, %v308_v53 }
  0x1a   : > { %s1126_s10 = sshll.u32 %s212_s29, 3  ;;  %1327 = vmatprep.subr.bf16.mxu0 %v1326_v20  ;;  %1357 = vmatprep.subr.bf16.mxu1 %v1326_v20 }
  0x1b   : > { %s1788_s26 = scalar_lea.vmem %s2264_s0, %s1126_s10 }
  0x1c   : > { %v227_v25 = vld [vmem:[%s1788_s26 + $0x8] sm:$0xff]  ;;  %v226_v55 = vld [vmem:[%s1788_s26] sm:$0xff]  ;;  %v229_v60 = vld [vmem:[%s1788_s26 + $0x18] sm:$0xff] }
  0x1d   : > { %v263_v26 = vld [vmem:[%s1788_s26 + $0x128] sm:$0xff]  ;;  %430 = vmatprep.mubr.f32.mxu0 %v227_v25  ;;  %1329 = vmatpush3.bf16.msra.mxu0 %v1328_v27  ;;  %v262_v56 = vld [vmem:[%s1788_s26 + $0x120] sm:$0xff]  ;;  %v265_v61 = vld [vmem:[%s1788_s26 + $0x138] sm:$0xff] }
  0x1e   : > { %490 = vmatprep.mubr.f32.mxu1 %v263_v26  ;;  %1365 = vmatpush3.bf16.msra.mxu1 %v1328_v27  ;;  %v230_v57 = vld [vmem:[%s1788_s26 + $0x20] sm:$0xff]  ;;  %v233_v62 = vld [vmem:[%s1788_s26 + $0x38] sm:$0xff]  ;;  %v232_v0 = vld [vmem:[%s1788_s26 + $0x30] sm:$0xff] }
  0x1f   : > { %1331 = vmatprep.subr.bf16.mxu0 %v1330_v28  ;;  %1358 = vmatprep.subr.bf16.mxu1 %v1330_v28  ;;  %v266_v58 = vld [vmem:[%s1788_s26 + $0x140] sm:$0xff]  ;;  %v269_v63 = vld [vmem:[%s1788_s26 + $0x158] sm:$0xff]  ;;  %v268_v1 = vld [vmem:[%s1788_s26 + $0x150] sm:$0xff] }
  0x20   : > { %v236_v2 = vld [vmem:[%s1788_s26 + $0x50] sm:$0xff]  ;;  %v235_v4 = vld [vmem:[%s1788_s26 + $0x48] sm:$0xff]  ;;  %v238_v8 = vld [vmem:[%s1788_s26 + $0x60] sm:$0xff] }
  0x21   : > { %1333 = vmatpush3.bf16.msra.mxu0 %v1332_v33  ;;  %v272_v3 = vld [vmem:[%s1788_s26 + $0x170] sm:$0xff]  ;;  %v271_v5 = vld [vmem:[%s1788_s26 + $0x168] sm:$0xff]  ;;  %v242_v10 = vld [vmem:[%s1788_s26 + $0x80] sm:$0xff] }
  0x22   : > { %1366 = vmatpush3.bf16.msra.mxu1 %v1332_v33  ;;  %1335 = vmatprep.subr.bf16.mxu0 %v1334_v34  ;;  %v239_v6 = vld [vmem:[%s1788_s26 + $0x68] sm:$0xff]  ;;  %v228_v7 = vld [vmem:[%s1788_s26 + $0x10] sm:$0xff]  ;;  %v234_v11 = vld [vmem:[%s1788_s26 + $0x40] sm:$0xff] }
  0x23   : > { %1359 = vmatprep.subr.bf16.mxu1 %v1334_v34  ;;  %v231_v9 = vld [vmem:[%s1788_s26 + $0x28] sm:$0xff]  ;;  %v241_v12 = vld [vmem:[%s1788_s26 + $0x78] sm:$0xff]  ;;  %v240_v15 = vld [vmem:[%s1788_s26 + $0x70] sm:$0xff] }
  0x24   : > { %v237_v13 = vld [vmem:[%s1788_s26 + $0x58] sm:$0xff]  ;;  %v244_v16 = vld [vmem:[%s1788_s26 + $0x90] sm:$0xff]  ;;  %v243_v17 = vld [vmem:[%s1788_s26 + $0x88] sm:$0xff] }
  0x25   : > { %1337 = vmatpush3.bf16.msra.mxu0 %v1336_v39  ;;  %v245_v14 = vld [vmem:[%s1788_s26 + $0x98] sm:$0xff]  ;;  %v248_v18 = vld [vmem:[%s1788_s26 + $0xb0] sm:$0xff]  ;;  %v246_v19 = vld [vmem:[%s1788_s26 + $0xa0] sm:$0xff] }
  0x26   : > { %1367 = vmatpush3.bf16.msra.mxu1 %v1336_v39  ;;  %1339 = vmatprep.subr.bf16.mxu0 %v1338_v40  ;;  %v247_v20 = vld [vmem:[%s1788_s26 + $0xa8] sm:$0xff]  ;;  %v249_v21 = vld [vmem:[%s1788_s26 + $0xb8] sm:$0xff]  ;;  %v252_v23 = vld [vmem:[%s1788_s26 + $0xd0] sm:$0xff] }
  0x27   : > { %1360 = vmatprep.subr.bf16.mxu1 %v1338_v40  ;;  %v251_v22 = vld [vmem:[%s1788_s26 + $0xc8] sm:$0xff]  ;;  %v250_v24 = vld [vmem:[%s1788_s26 + $0xc0] sm:$0xff]  ;;  %v253_v28 = vld [vmem:[%s1788_s26 + $0xd8] sm:$0xff] }
  0x28   : > { %v255_v25 = vld [vmem:[%s1788_s26 + $0xe8] sm:$0xff]  ;;  %v254_v26 = vld [vmem:[%s1788_s26 + $0xe0] sm:$0xff]  ;;  %v261_v29 = vld [vmem:[%s1788_s26 + $0x118] sm:$0xff] }
  0x29   : > { %1341 = vmatpush3.bf16.msra.mxu0 %v1340_v45  ;;  %v258_v27 = vld [vmem:[%s1788_s26 + $0x100] sm:$0xff]  ;;  %v257_v30 = vld [vmem:[%s1788_s26 + $0xf8] sm:$0xff]  ;;  %v264_v31 = vld [vmem:[%s1788_s26 + $0x130] sm:$0xff] }
  0x2a   : > { %1368 = vmatpush3.bf16.msra.mxu1 %v1340_v45  ;;  %1343 = vmatprep.subr.bf16.mxu0 %v1342_v46  ;;  %v256_v32 = vld [vmem:[%s1788_s26 + $0xf0] sm:$0xff]  ;;  %v267_v33 = vld [vmem:[%s1788_s26 + $0x148] sm:$0xff]  ;;  %v270_v35 = vld [vmem:[%s1788_s26 + $0x160] sm:$0xff] }
  0x2b   : > { %1361 = vmatprep.subr.bf16.mxu1 %v1342_v46  ;;  %v260_v34 = vld [vmem:[%s1788_s26 + $0x110] sm:$0xff]  ;;  %v259_v36 = vld [vmem:[%s1788_s26 + $0x108] sm:$0xff]  ;;  %v273_v37 = vld [vmem:[%s1788_s26 + $0x178] sm:$0xff] }
  0x2d   : > { %1345 = vmatpush3.bf16.msra.mxu0 %v1344_v51 }
  0x2e   : > { %1369 = vmatpush3.bf16.msra.mxu1 %v1344_v51 }
  0x2f   : > { %1347 = vmatprep.subr.bf16.mxu1 %v1346_v52 }
  0x30   : > { %431 = vmatmul.mubr.f32.vlgmr.msra.gmra.mrb[0].mxu0 %v226_v55 }
  0x31   : > { %491 = vmatmul.mubr.f32.vlgmr.msra.gmra.mrb[0].mxu1 %v262_v56  ;;  %435 = vmatprep.mubr.f32.mxu0 %v230_v57 }
  0x32   : > { %495 = vmatprep.mubr.f32.mxu1 %v266_v58  ;;  %1349 = vmatpush3.bf16.msra.mxu1 %v1346_v52 }
  0x33   : > { %1351 = vmatprep.subr.bf16.mxu1 %v1350_v59 }
  0x34   : > { %436 = vmatmul.mubr.f32.gmra.mrb[2].mxu0 %v229_v60  ;;  %v1917_v60 = vld [vmem:[%s2266_s2] ss:$0 sm:$0xff] }
  0x35   : > { %496 = vmatmul.mubr.f32.gmra.mrb[2].mxu1 %v265_v61  ;;  %440 = vmatprep.mubr.f32.mxu0 %v233_v62 }
  0x36   : > { %500 = vmatprep.mubr.f32.mxu1 %v269_v63  ;;  %1353 = vmatpush3.bf16.msra.mxu1 %v1350_v59 }
  0x38   : > { %441 = vmatmul.mubr.f32.gmra.mrb[4].mxu0 %v232_v0 }
  0x39   : > { %501 = vmatmul.mubr.f32.gmra.mrb[4].mxu1 %v268_v1  ;;  %445 = vmatprep.mubr.f32.mxu0 %v236_v2 }
  0x3a   : > { %505 = vmatprep.mubr.f32.mxu1 %v272_v3 }
  0x3c   : > { %446 = vmatmul.mubr.f32.gmra.mrb[6].mxu0 %v235_v4 }
  0x3d   : > { %506 = vmatmul.mubr.f32.gmra.mrb[6].mxu1 %v271_v5  ;;  %450 = vmatprep.mubr.f32.mxu0 %v239_v6 }
  0x3e   : > { %1290 = vmatprep.mubr.msk.f32.mxu1 %vm317_vm0, %v228_v7 }
  0x40   : > { %451 = vmatmul.mubr.f32.gmra.mrb[8].mxu0 %v238_v8 }
  0x41   : > { %1291 = vmatmul.mubr.msk.f32.vlgmr.msra.gmra.mrb[8].mxu1 %vm317_vm0, %v231_v9  ;;  %455 = vmatprep.mubr.f32.mxu0 %v242_v10 }
  0x42   : > { %1293 = vmatprep.mubr.msk.f32.mxu1 %vm317_vm0, %v234_v11 }
  0x44   : > { %456 = vmatmul.mubr.f32.gmra.mrb[10].mxu0 %v241_v12 }
  0x45   : > { %1294 = vmatmul.mubr.msk.f32.gmra.mrb[10].mxu1 %vm317_vm0, %v237_v13  ;;  %460 = vmatprep.mubr.f32.mxu0 %v245_v14 }
  0x46   : > { %1296 = vmatprep.mubr.msk.f32.mxu1 %vm317_vm0, %v240_v15 }
  0x48   : > { %461 = vmatmul.mubr.f32.gmra.mrb[12].mxu0 %v244_v16 }
  0x49   : > { %1297 = vmatmul.mubr.msk.f32.gmra.mrb[12].mxu1 %vm317_vm0, %v243_v17  ;;  %465 = vmatprep.mubr.f32.mxu0 %v248_v18 }
  0x4a   : > { %1299 = vmatprep.mubr.msk.f32.mxu1 %vm317_vm0, %v246_v19 }
  0x4c   : > { %466 = vmatmul.mubr.f32.gmra.mrb[14].mxu0 %v247_v20 }
  0x4d   : > { %1300 = vmatmul.mubr.msk.f32.gmra.mrb[14].mxu1 %vm317_vm0, %v249_v21  ;;  %470 = vmatprep.mubr.f32.mxu0 %v251_v22 }
  0x4e   : > { %1302 = vmatprep.mubr.msk.f32.mxu1 %vm317_vm0, %v252_v23 }
  0x50   : > { %471 = vmatmul.mubr.f32.gmra.mrb[16].mxu0 %v250_v24 }
  0x51   : > { %1303 = vmatmul.mubr.msk.f32.gmra.mrb[16].mxu1 %vm317_vm0, %v255_v25  ;;  %475 = vmatprep.mubr.f32.mxu0 %v254_v26 }
  0x52   : > { %1305 = vmatprep.mubr.msk.f32.mxu1 %vm317_vm0, %v258_v27 }
  0x54   : > { %476 = vmatmul.mubr.f32.gmra.mrb[18].mxu0 %v253_v28 }
  0x55   : > { %1306 = vmatmul.mubr.msk.f32.gmra.mrb[18].mxu1 %vm317_vm0, %v261_v29  ;;  %480 = vmatprep.mubr.f32.mxu0 %v257_v30 }
  0x56   : > { %1308 = vmatprep.mubr.msk.f32.mxu1 %vm317_vm0, %v264_v31 }
  0x58   : > { %481 = vmatmul.mubr.f32.gmra.mrb[20].mxu0 %v256_v32 }
  0x59   : > { %1309 = vmatmul.mubr.msk.f32.gmra.mrb[20].mxu1 %vm317_vm0, %v267_v33  ;;  %485 = vmatprep.mubr.f32.mxu0 %v260_v34 }
  0x5a   : > { %1311 = vmatprep.mubr.msk.f32.mxu1 %vm317_vm0, %v270_v35 }
  0x5c   : > { %486 = vmatmul.mubr.f32.gmra.mrb[22].mxu0 %v259_v36 }
  0x5d   : > { %1312 = vmatmul.mubr.msk.f32.gmra.mrb[22].mxu1 %vm317_vm0, %v273_v37 }
 0x103   : > { %v1214_v38 = vpop.f32.mrb[0].mxu0 }
 0x104   : > { %v1250_v39 = vpop.f32.mrb[0].mxu1  ;;  %v1215_v40 = vpop.f32.mrb[1].mxu0 }
 0x105   : > { %v1251_v41 = vpop.f32.mrb[1].mxu1  ;;  %v1216_v42 = vadd.f32 %v1215_v40, %v1214_v38 }
 0x106   : > { %v1908_v43 = vadd.f32 %v1251_v41, %v1250_v39 }
 0x107   : > { %v1217_v44 = vpop.f32.mrb[2].mxu0  ;;  %v433_v2 = vadd.f32 %v1216_v42, %v1917_v60 }
 0x108   : > { %v1253_v45 = vpop.f32.mrb[2].mxu1  ;;  %v1218_v46 = vpop.f32.mrb[3].mxu0 }
 0x109   : > { %v1254_v47 = vpop.f32.mrb[3].mxu1  ;;  %v1219_v48 = vadd.f32 %v1218_v46, %v1217_v44 }
 0x10a   : > { %v1910_v49 = vadd.f32 %v1254_v47, %v1253_v45 }
 0x10b   : > { %v1220_v50 = vpop.f32.mrb[4].mxu0  ;;  %v438_v63 = vadd.f32 %v1219_v48, %v1917_v60 }
 0x10c   : > { %v1256_v51 = vpop.f32.mrb[4].mxu1  ;;  %v1221_v52 = vpop.f32.mrb[5].mxu0 }
 0x10d   : > { %v1257_v53 = vpop.f32.mrb[5].mxu1  ;;  %v1222_v54 = vadd.f32 %v1221_v52, %v1220_v50 }
 0x10e   : > { %v1912_v55 = vadd.f32 %v1257_v53, %v1256_v51 }
 0x10f   : > { %v1223_v56 = vpop.f32.mrb[6].mxu0  ;;  %v443_v13 = vadd.f32 %v1222_v54, %v1917_v60 }
 0x110   : > { %v1259_v57 = vpop.f32.mrb[6].mxu1  ;;  %v1224_v58 = vpop.f32.mrb[7].mxu0 }
 0x111   : > { %v1260_v59 = vpop.f32.mrb[7].mxu1  ;;  %v1225_v61 = vadd.f32 %v1224_v58, %v1223_v56 }
 0x112   : > { %v1919_v62 = vadd.f32 %v1260_v59, %v1259_v57 }
 0x113   : > { %v1226_v0 = vpop.f32.mrb[8].mxu0  ;;  %v448_v9 = vadd.f32 %v1225_v61, %v1917_v60 }
 0x114   : > { %v1292_v1 = vpop.f32.mrb[8].mxu1  ;;  %v1227_v4 = vpop.f32.mrb[9].mxu0 }
 0x115   : > { %v1923_v3 = vadd.f32 %v1292_v1, %v438_v63  ;;  %v577_v5 = vpop.f32.mrb[9].mxu1  ;;  %v1228_v6 = vadd.f32 %v1227_v4, %v1226_v0 }
 0x116   : > { %v1925_v7 = vadd.f32 %v577_v5, %v433_v2 }
 0x117   : > { %v673_v8 = vmin.f32 %v1923_v3, 0.0  ;;  %v1229_v11 = vpop.f32.mrb[10].mxu0  ;;  %v453_v26 = vadd.f32 %v1228_v6, %v1917_v60  ;;  %vm657_vm1 = vcmp.gt.f32.partialorder %v1923_v3, 0.0 }
 0x118   : > { %v672_v10 = vmin.f32 %v1925_v7, 0.0  ;;  %v1295_v12 = vpop.f32.mrb[10].mxu1  ;;  %v1230_v16 = vpop.f32.mrb[11].mxu0  ;;  %vm656_vm2 = vcmp.gt.f32.partialorder %v1925_v7, 0.0 }
 0x119   : > { %v690_v14 = vmul.f32 1.442695, %v673_v8  ;;  %v1931_v15 = vadd.f32 %v1295_v12, %v448_v9  ;;  %v587_v17 = vpop.f32.mrb[11].mxu1  ;;  %v1231_v19 = vadd.f32 %v1230_v16, %v1229_v11  ;;  %v498_v16 = vadd.f32 %v1910_v49, %v1917_v60 }
 0x11a   : > { %v688_v18 = vmul.f32 1.442695, %v672_v10  ;;  %v1933_v20 = vadd.f32 %v587_v17, %v443_v13  ;;  %v493_v17 = vadd.f32 %v1908_v43, %v1917_v60 }
 0x11b   : > { %1492 = vpow2.f32 %v690_v14  ;;  %v675_v21 = vmin.f32 %v1931_v15, 0.0  ;;  %v1232_v23 = vpop.f32.mrb[12].mxu0  ;;  %v458_v24 = vadd.f32 %v1231_v19, %v1917_v60  ;;  %vm659_vm3 = vcmp.gt.f32.partialorder %v1931_v15, 0.0 }
 0x11c   : > { %1494 = vpow2.f32 %v688_v18  ;;  %v674_v22 = vmin.f32 %v1933_v20, 0.0  ;;  %v1298_v25 = vpop.f32.mrb[12].mxu1  ;;  %v1233_v28 = vpop.f32.mrb[13].mxu0  ;;  %vm658_vm4 = vcmp.gt.f32.partialorder %v1933_v20, 0.0 }
 0x11d   : > { %v694_v27 = vmul.f32 1.442695, %v675_v21  ;;  %v597_v29 = vpop.f32.mrb[13].mxu1  ;;  %v1939_v31 = vadd.f32 %v1298_v25, %v458_v24  ;;  %v1234_v32 = vadd.f32 %v1233_v28, %v1232_v23  ;;  %v503_v28 = vadd.f32 %v1912_v55, %v1917_v60 }
 0x11e   : > { %v692_v30 = vmul.f32 1.442695, %v674_v22  ;;  %v1941_v33 = vadd.f32 %v597_v29, %v453_v26 }
 0x11f   : > { %1496 = vpow2.f32 %v694_v27  ;;  %v677_v34 = vmin.f32 %v1939_v31, 0.0  ;;  %v1235_v35 = vpop.f32.mrb[14].mxu0  ;;  %v463_v39 = vadd.f32 %v1234_v32, %v1917_v60  ;;  %vm661_vm5 = vcmp.gt.f32.partialorder %v1939_v31, 0.0 }
 0x120   : > { %1498 = vpow2.f32 %v692_v30  ;;  %v1301_v36 = vpop.f32.mrb[14].mxu1  ;;  %v676_v37 = vmin.f32 %v1941_v33, 0.0  ;;  %v1236_v38 = vpop.f32.mrb[15].mxu0  ;;  %vm660_vm6 = vcmp.gt.f32.partialorder %v1941_v33, 0.0 }
 0x121   : > { %v607_v40 = vpop.f32.mrb[15].mxu1  ;;  %v698_v41 = vmul.f32 1.442695, %v677_v34  ;;  %v1237_v42 = vadd.f32 %v1236_v38, %v1235_v35  ;;  %v508_v34 = vadd.f32 %v1919_v62, %v1917_v60 }
 0x122   : > { %v696_v44 = vmul.f32 1.442695, %v676_v37  ;;  %v1946_v45 = vadd.f32 %v607_v40, %v463_v39 }
 0x123   : > { %1500 = vpow2.f32 %v698_v41  ;;  %v468_v46 = vadd.f32 %v1237_v42, %v1917_v60  ;;  %v1238_v47 = vpop.f32.mrb[16].mxu0 }
 0x124   : > { %v1304_v48 = vpop.f32.mrb[16].mxu1  ;;  %1502 = vpow2.f32 %v696_v44  ;;  %v678_v51 = vmin.f32 %v1946_v45, 0.0  ;;  %v1239_v52 = vpop.f32.mrb[17].mxu0  ;;  %vm662_vm7 = vcmp.gt.f32.partialorder %v1946_v45, 0.0 }
 0x125   : > { %v1493_v50 = vpop.eup %1492  ;;  %v617_v53 = vpop.f32.mrb[17].mxu1  ;;  %v1950_v57 = vadd.f32 %v1301_v36, %v468_v46  ;;  %v1240_v58 = vadd.f32 %v1239_v52, %v1238_v47 }
 0x126   : > { %v1495_v54 = vpop.eup %1494  ;;  %v1145_v56 = vadd.f32 -1.0, %v1493_v50  ;;  %v700_v61 = vmul.f32 1.442695, %v678_v51 }
 0x127   : > { %v1144_v59 = vadd.f32 -1.0, %v1495_v54  ;;  %v679_v0 = vmin.f32 %v1950_v57, 0.0  ;;  %v1241_v1 = vpop.f32.mrb[18].mxu0  ;;  %v473_v2 = vadd.f32 %v1240_v58, %v1917_v60  ;;  %vm663_vm8 = vcmp.gt.f32.partialorder %v1950_v57, 0.0 }
 0x128   : > { %v1954_v63 = vsel %vm657_vm1, %v1923_v3, %v1145_v56  ;;  %v1959_v4 = vpop.f32.mrb[18].mxu1  ;;  %1504 = vpow2.f32 %v700_v61  ;;  %v1242_v8 = vpop.f32.mrb[19].mxu0 }
 0x129   : > { %v1497_v5 = vpop.eup %1496  ;;  %v1962_v6 = vsel %vm656_vm2, %v1925_v7, %v1144_v59  ;;  %v627_v9 = vpop.f32.mrb[19].mxu1  ;;  %v702_v3 = vmul.f32 1.442695, %v679_v0  ;;  %v1964_v12 = vadd.f32 %v617_v53, %v473_v2  ;;  %v1243_v13 = vadd.f32 %v1242_v8, %v1241_v1  ;;  %757 = vst.msk [vmem:[%s2037_s12 + $0x8] sm:$0xff] (!%p1160_p11), %vm317_vm0, %v1954_v63 }
 0x12a   : > { %v1499_v10 = vpop.eup %1498  ;;  %v1147_v11 = vadd.f32 -1.0, %v1497_v5  ;;  %756 = vst.msk [vmem:[%s2037_s12] sm:$0xff] (!%p1160_p11), %vm317_vm0, %v1962_v6 }
 0x12b   : > { %v1146_v14 = vadd.f32 -1.0, %v1499_v10  ;;  %1506 = vpow2.f32 %v702_v3  ;;  %v680_v18 = vmin.f32 %v1964_v12, 0.0  ;;  %v1244_v19 = vpop.f32.mrb[20].mxu0  ;;  %v478_v23 = vadd.f32 %v1243_v13, %v1917_v60 }
 0x12c   : > { %v1972_v7 = vsel %vm659_vm3, %v1931_v15, %v1147_v11  ;;  %v1310_v21 = vpop.f32.mrb[20].mxu1  ;;  %v1245_v49 = vpop.f32.mrb[21].mxu0  ;;  %vm664_vm9 = vcmp.gt.f32.partialorder %v1964_v12, 0.0 }
 0x12d   : > { %v1977_v22 = vsel %vm658_vm4, %v1933_v20, %v1146_v14  ;;  %v1980_v24 = vadd.f32 %v1310_v21, %v498_v16  ;;  %v637_v25 = vpop.f32.mrb[21].mxu1  ;;  %v1501_v43 = vpop.eup %1500  ;;  %v704_v26 = vmul.f32 1.442695, %v680_v18  ;;  %v1246_v15 = vadd.f32 %v1245_v49, %v1244_v19  ;;  %759 = vst.msk [vmem:[%s2037_s12 + $0x18] sm:$0xff] (!%p1160_p11), %vm317_vm0, %v1972_v7 }
 0x12e   : > { %v1982_v27 = vadd.f32 %v637_v25, %v493_v17  ;;  %v1503_v29 = vpop.eup %1502  ;;  %v1149_v30 = vadd.f32 -1.0, %v1501_v43  ;;  %v1986_v32 = vadd.f32 %v1304_v48, %v478_v23  ;;  %758 = vst.msk [vmem:[%s2037_s12 + $0x10] sm:$0xff] (!%p1160_p11), %vm317_vm0, %v1977_v22 }
 0x12f   : > { %v685_v20 = vmin.f32 %v1980_v24, 0.0  ;;  %v1148_v35 = vadd.f32 -1.0, %v1503_v29  ;;  %1508 = vpow2.f32 %v704_v26  ;;  %v483_v36 = vadd.f32 %v1246_v15, %v1917_v60  ;;  %v1247_v37 = vpop.f32.mrb[22].mxu0 }
 0x130   : > { %v1313_v38 = vpop.f32.mrb[22].mxu1  ;;  %v1994_v39 = vsel %vm661_vm5, %v1939_v31, %v1149_v30  ;;  %v681_v55 = vmin.f32 %v1986_v32, 0.0  ;;  %v1248_v41 = vpop.f32.mrb[23].mxu0  ;;  %v684_v46 = vmin.f32 %v1982_v27, 0.0  ;;  %vm669_vm10 = vcmp.gt.f32.partialorder %v1980_v24, 0.0 }
 0x131   : > { %v714_v40 = vmul.f32 1.442695, %v685_v20  ;;  %v647_v42 = vpop.f32.mrb[23].mxu1  ;;  %v1999_v62 = vsel %vm660_vm6, %v1941_v33, %v1148_v35  ;;  %v628_v44 = vadd.f32 %v627_v9, %v483_v36  ;;  %v653_v47 = vadd.f32 %v1313_v38, %v508_v34  ;;  %761 = vst.msk [vmem:[%s2037_s12 + $0x28] sm:$0xff] (!%p1160_p11), %vm317_vm0, %v1994_v39 }
 0x132   : > { %v1505_v48 = vpop.eup %1504  ;;  %v706_v50 = vmul.f32 1.442695, %v681_v55  ;;  %v1249_v51 = vadd.f32 %v1248_v41, %v1247_v37  ;;  %v648_v31 = vadd.f32 %v647_v42, %v503_v28  ;;  %v712_v54 = vmul.f32 1.442695, %v684_v46  ;;  %760 = vst.msk [vmem:[%s2037_s12 + $0x20] sm:$0xff] (!%p1160_p11), %vm317_vm0, %v1999_v62 }
 0x133   : > { %1510 = vpow2.f32 %v714_v40  ;;  %v1150_v52 = vadd.f32 -1.0, %v1505_v48  ;;  %v682_v53 = vmin.f32 %v628_v44, 0.0  ;;  %v687_v56 = vmin.f32 %v653_v47, 0.0 }
 0x134   : > { %1512 = vpow2.f32 %v706_v50  ;;  %v488_v58 = vadd.f32 %v1249_v51, %v1917_v60  ;;  %v686_v5 = vmin.f32 %v648_v31, 0.0  ;;  %vm665_vm11 = vcmp.gt.f32.partialorder %v1986_v32, 0.0 }
 0x135   : > { %v1507_v33 = vpop.eup %1506  ;;  %v2005_v59 = vsel %vm662_vm7, %v1946_v45, %v1150_v52  ;;  %v708_v61 = vmul.f32 1.442695, %v682_v53  ;;  %1514 = vpow2.f32 %v712_v54  ;;  %v718_v1 = vmul.f32 1.442695, %v687_v56 }
 0x136   : > { %v1151_v0 = vadd.f32 -1.0, %v1507_v33  ;;  %v633_v2 = vadd.f32 %v1959_v4, %v488_v58  ;;  %v716_v10 = vmul.f32 1.442695, %v686_v5  ;;  %vm668_vm12 = vcmp.gt.f32.partialorder %v1982_v27, 0.0  ;;  %762 = vst.msk [vmem:[%s2037_s12 + $0x30] sm:$0xff] (!%p1160_p11), %vm317_vm0, %v2005_v59 }
 0x137   : > { %1516 = vpow2.f32 %v708_v61  ;;  %vm666_vm13 = vcmp.gt.f32.partialorder %v628_v44, 0.0  ;;  %vm671_vm14 = vcmp.gt.f32.partialorder %v653_v47, 0.0  ;;  %vm670_vm15 = vcmp.gt.f32.partialorder %v648_v31, 0.0 }
 0x138   : > { %v2010_v8 = vsel %vm663_vm8, %v1950_v57, %v1151_v0  ;;  %1518 = vpow2.f32 %v718_v1  ;;  %v683_v9 = vmin.f32 %v633_v2, 0.0  ;;  %vm667_vm1 = vcmp.gt.f32.partialorder %v633_v2, 0.0 }
 0x139   : > { %v1509_v60 = vpop.eup %1508  ;;  %1520 = vpow2.f32 %v716_v10  ;;  %763 = vst.msk [vmem:[%s2037_s12 + $0x38] sm:$0xff] (!%p1160_p11), %vm317_vm0, %v2010_v8 }
 0x13a   : > { %v1152_v11 = vadd.f32 -1.0, %v1509_v60  ;;  %v710_v45 = vmul.f32 1.442695, %v683_v9 }
 0x13c   : > { %v2014_v13 = vsel %vm664_vm9, %v1964_v12, %v1152_v11  ;;  %1522 = vpow2.f32 %v710_v45 }
 0x13d   : > { %v1511_v3 = vpop.eup %1510  ;;  %764 = vst.msk [vmem:[%s2037_s12 + $0x40] sm:$0xff] (!%p1160_p11), %vm317_vm0, %v2014_v13 }
 0x13e   : > { %v1157_v4 = vadd.f32 -1.0, %v1511_v3  ;;  %v1513_v14 = vpop.eup %1512 }
 0x13f   : > { %v1515_v57 = vpop.eup %1514  ;;  %v1153_v16 = vadd.f32 -1.0, %v1513_v14 }
 0x140   : > { %v2018_v17 = vsel %vm669_vm10, %v1980_v24, %v1157_v4  ;;  %v1156_v18 = vadd.f32 -1.0, %v1515_v57 }
 0x141   : > { %v1517_v19 = vpop.eup %1516  ;;  %v2022_v21 = vsel %vm665_vm11, %v1986_v32, %v1153_v16  ;;  %769 = vst.msk [vmem:[%s2037_s12 + $0x68] sm:$0xff] (!%p1160_p11), %vm317_vm0, %v2018_v17 }
 0x142   : > { %v1519_v12 = vpop.eup %1518  ;;  %v1154_v23 = vadd.f32 -1.0, %v1517_v19  ;;  %v2026_v49 = vsel %vm668_vm12, %v1982_v27, %v1156_v18  ;;  %765 = vst.msk [vmem:[%s2037_s12 + $0x48] sm:$0xff] (!%p1160_p11), %vm317_vm0, %v2022_v21 }
 0x143   : > { %v1159_v25 = vadd.f32 -1.0, %v1519_v12  ;;  %v1521_v24 = vpop.eup %1520  ;;  %755 = sbr.rel (%p1160_p11) target bundleno = 331 (0x14b), region = 36  ;;  %768 = vst.msk [vmem:[%s2037_s12 + $0x60] sm:$0xff] (!%p1160_p11), %vm317_vm0, %v2026_v49 }
 0x144   : > { %v2028_v43 = vsel %vm666_vm13, %v628_v44, %v1154_v23  ;;  %v1158_v28 = vadd.f32 -1.0, %v1521_v24 }
 0x145   : > { %v2030_v26 = vsel %vm671_vm14, %v653_v47, %v1159_v25  ;;  %766 = vst.msk [vmem:[%s2037_s12 + $0x50] sm:$0xff] (!%p1160_p11), %vm317_vm0, %v2028_v43 }
 0x146   : > { %v1523_v15 = vpop.eup %1522  ;;  %v2032_v30 = vsel %vm670_vm15, %v648_v31, %v1158_v28  ;;  %771 = vst.msk [vmem:[%s2037_s12 + $0x78] sm:$0xff] (!%p1160_p11), %vm317_vm0, %v2030_v26 }
 0x147   : > { %v1155_v29 = vadd.f32 -1.0, %v1523_v15  ;;  %770 = vst.msk [vmem:[%s2037_s12 + $0x70] sm:$0xff] (!%p1160_p11), %vm317_vm0, %v2032_v30 }
 0x149   : > { %v2034_v32 = vsel %vm667_vm1, %v633_v2, %v1155_v29 }
 0x14a   : > { %767 = vst.msk [vmem:[%s2037_s12 + $0x58] sm:$0xff] %vm317_vm0, %v2034_v32 }
 0x14b PF: > { %p1161_p12 = scmp.le.s32.totalorder %s1594_s14, 0 }
 0x14c   : > { %v776_v27 = vld [vmem:[%s2037_s12] sm:$0xff] (!%p1161_p12)  ;;  %v777_v20 = vld [vmem:[%s2037_s12 + $0x8] sm:$0xff] (!%p1161_p12)  ;;  %v778_v34 = vld [vmem:[%s2037_s12 + $0x10] sm:$0xff] (!%p1161_p12) }
 0x14d   : > { %775 = sbr.rel (%p1161_p12) target bundleno = 343 (0x157), region = 40  ;;  %v792_v35 = vmax.f32 (!%p1161_p12), %v776_v27, %v1962_v6  ;;  %v793_v36 = vmax.f32 (!%p1161_p12), %v777_v20, %v1954_v63  ;;  %v794_v37 = vmax.f32 (!%p1161_p12), %v778_v34, %v1977_v22  ;;  %v779_v38 = vld [vmem:[%s2037_s12 + $0x18] sm:$0xff] (!%p1161_p12)  ;;  %v780_v55 = vld [vmem:[%s2037_s12 + $0x20] sm:$0xff] (!%p1161_p12)  ;;  %v781_v40 = vld [vmem:[%s2037_s12 + $0x28] sm:$0xff] (!%p1161_p12) }
 0x14e   : > { %v795_v41 = vmax.f32 (!%p1161_p12), %v779_v38, %v1972_v7  ;;  %v796_v42 = vmax.f32 (!%p1161_p12), %v780_v55, %v1999_v62  ;;  %v797_v44 = vmax.f32 (!%p1161_p12), %v781_v40, %v1994_v39  ;;  %v782_v6 = vld [vmem:[%s2037_s12 + $0x30] sm:$0xff] (!%p1161_p12)  ;;  %v783_v46 = vld [vmem:[%s2037_s12 + $0x38] sm:$0xff] (!%p1161_p12)  ;;  %v784_v63 = vld [vmem:[%s2037_s12 + $0x40] sm:$0xff] (!%p1161_p12) }
 0x14f   : > { %808 = vst.msk [vmem:[%s2037_s12] sm:$0xff] (!%p1161_p12), %vm317_vm0, %v792_v35  ;;  %809 = vst.msk [vmem:[%s2037_s12 + $0x8] sm:$0xff] (!%p1161_p12), %vm317_vm0, %v793_v36  ;;  %v798_v7 = vmax.f32 (!%p1161_p12), %v782_v6, %v2005_v59  ;;  %v799_v22 = vmax.f32 (!%p1161_p12), %v783_v46, %v2010_v8  ;;  %v800_v39 = vmax.f32 (!%p1161_p12), %v784_v63, %v2014_v13  ;;  %v785_v62 = vld [vmem:[%s2037_s12 + $0x48] sm:$0xff] (!%p1161_p12)  ;;  %v786_v47 = vld [vmem:[%s2037_s12 + $0x50] sm:$0xff] (!%p1161_p12) }
 0x150   : > { %810 = vst.msk [vmem:[%s2037_s12 + $0x10] sm:$0xff] (!%p1161_p12), %vm317_vm0, %v794_v37  ;;  %811 = vst.msk [vmem:[%s2037_s12 + $0x18] sm:$0xff] (!%p1161_p12), %vm317_vm0, %v795_v41  ;;  %v801_v50 = vmax.f32 (!%p1161_p12), %v785_v62, %v2022_v21  ;;  %v802_v51 = vmax.f32 (!%p1161_p12), %v786_v47, %v2028_v43  ;;  %v788_v52 = vld [vmem:[%s2037_s12 + $0x60] sm:$0xff] (!%p1161_p12)  ;;  %v789_v53 = vld [vmem:[%s2037_s12 + $0x68] sm:$0xff] (!%p1161_p12) }
 0x151   : > { %v787_v48 = vld [vmem:[%s2037_s12 + $0x58] sm:$0xff] (!%p1161_p12)  ;;  %812 = vst.msk [vmem:[%s2037_s12 + $0x20] sm:$0xff] (!%p1161_p12), %vm317_vm0, %v796_v42  ;;  %813 = vst.msk [vmem:[%s2037_s12 + $0x28] sm:$0xff] (!%p1161_p12), %vm317_vm0, %v797_v44  ;;  %v790_v54 = vld [vmem:[%s2037_s12 + $0x70] sm:$0xff] (!%p1161_p12)  ;;  %v804_v56 = vmax.f32 (!%p1161_p12), %v788_v52, %v2026_v49  ;;  %v805_v58 = vmax.f32 (!%p1161_p12), %v789_v53, %v2018_v17 }
 0x152   : > { %v803_v31 = vmax.f32 (!%p1161_p12), %v787_v48, %v2034_v32  ;;  %814 = vst.msk [vmem:[%s2037_s12 + $0x30] sm:$0xff] (!%p1161_p12), %vm317_vm0, %v798_v7  ;;  %815 = vst.msk [vmem:[%s2037_s12 + $0x38] sm:$0xff] (!%p1161_p12), %vm317_vm0, %v799_v22  ;;  %v806_v33 = vmax.f32 (!%p1161_p12), %v790_v54, %v2032_v30  ;;  %v791_v59 = vld [vmem:[%s2037_s12 + $0x78] sm:$0xff] (!%p1161_p12) }
 0x153   : > { %816 = vst.msk [vmem:[%s2037_s12 + $0x40] sm:$0xff] (!%p1161_p12), %vm317_vm0, %v800_v39  ;;  %817 = vst.msk [vmem:[%s2037_s12 + $0x48] sm:$0xff] (!%p1161_p12), %vm317_vm0, %v801_v50  ;;  %v807_v61 = vmax.f32 (!%p1161_p12), %v791_v59, %v2030_v26 }
 0x154   : > { %818 = vst.msk [vmem:[%s2037_s12 + $0x50] sm:$0xff] %vm317_vm0, %v802_v51  ;;  %819 = vst.msk [vmem:[%s2037_s12 + $0x58] sm:$0xff] %vm317_vm0, %v803_v31 }
 0x155   : > { %820 = vst.msk [vmem:[%s2037_s12 + $0x60] sm:$0xff] %vm317_vm0, %v804_v56  ;;  %821 = vst.msk [vmem:[%s2037_s12 + $0x68] sm:$0xff] %vm317_vm0, %v805_v58 }
 0x156   : > { %822 = vst.msk [vmem:[%s2037_s12 + $0x70] sm:$0xff] %vm317_vm0, %v806_v33  ;;  %823 = vst.msk [vmem:[%s2037_s12 + $0x78] sm:$0xff] %vm317_vm0, %v807_v61 }
 0x157 PF: > { %830 = sbr.rel (!%p1709_p6) target bundleno = 399 (0x18f), region = 44  ;;  %s832_s14 = ssub.s32 (%p1709_p6), 49, %s1732_s6 }
 0x158   : > { %s1179_s7 = sshll.u32 (%p1709_p6), %s1598_s15, 7  ;;  %p833_p13 = scmp.lt.s32.totalorder (%p1709_p6), %s832_s14, 16 }
 0x159   : > { %s2160_s21 = scalar_lea.vmem (%p1709_p6), %s2267_s3, %s1179_s7  }
 0x15e   : > { %s2285_s14 = smov (!%p833_p13, %s832_s14), 16 }
 0x15f   : > { %s1164_s24 = sshll.u32 %s2285_s14, 7 }
 0x160   : > { %p1167_p0 = scmp.eq.s32.totalorder %s1164_s24, 0 }
 0x161   : > { %s2166_s27 = sshrl.u32 (!%p1167_p0), %s2285_s14, 4 }
 0x162   : > { %841 = sbr.rel (%p1167_p0) target bundleno = 399 (0x18f), region = 48  ;;  %p1168_p1 = scmp.le.s32.totalorder (!%p1167_p0), %s2166_s27, 0 }
 0x169   : > { %1064 = sbr.rel (%p1168_p1) target bundleno = 378 (0x17a), region = 124  ;;  %s2269_s15 = smov (!%p1168_p1), %s2160_s21 }
 0x16a   : > { %s2270_s22 = smov (!%p1168_p1), %s2037_s12  ;;  %s2175_s6 = smov (!%p1168_p1), 0  }
 0x16b   : > { %s2177_s28 = smov (!%p1168_p1), 0  }
 0x170 LB: >> { %v933_v0 = vld [vmem:[%s1618_s22] sm:$0xff]  ;;  %v935_v1 = vld [vmem:[%s1618_s22 + $0x8] sm:$0xff]  ;;  %v937_v2 = vld [vmem:[%s1618_s22 + $0x10] sm:$0xff]  ;;  %s965_s29 = sadd.s32 1, %s1622_s6  ;;  %s927_s28 = sadd.s32 1, %s1626_s28   ;;  %s1626_s28 = sphi %s2177_s28, %s927_s28   ;;  %s1622_s6 = sphi %s2175_s6, %s2271_s6   ;;  %s1618_s22 = sphi %s2270_s22, %s970_s22   ;;  %s1614_s15 = sphi %s2269_s15, %s971_s15  }
 0x171   : >> { %934 = vst [vmem:[%s1614_s15] sm:$0xff] %v933_v0  ;;  %936 = vst [vmem:[%s1614_s15 + $0x8] sm:$0xff] %v935_v1  ;;  %v939_v5 = vld [vmem:[%s1618_s22 + $0x18] sm:$0xff]  ;;  %v941_v8 = vld [vmem:[%s1618_s22 + $0x20] sm:$0xff]  ;;  %p966_p2 = scmp.ge.s32.totalorder %s965_s29, %s2166_s27  ;;  %p926_p3 = scmp.ge.s32.totalorder %s927_s28, %s2166_s27 }
 0x172   : >> { %938 = vst [vmem:[%s1614_s15 + $0x10] sm:$0xff] %v937_v2  ;;  %v943_v9 = vld [vmem:[%s1618_s22 + $0x28] sm:$0xff]  ;;  %940 = vst [vmem:[%s1614_s15 + $0x18] sm:$0xff] %v939_v5  ;;  %v945_v60 = vld [vmem:[%s1618_s22 + $0x30] sm:$0xff] }
 0x173   : >> { %942 = vst [vmem:[%s1614_s15 + $0x20] sm:$0xff] %v941_v8  ;;  %944 = vst [vmem:[%s1614_s15 + $0x28] sm:$0xff] %v943_v9  ;;  %v947_v10 = vld [vmem:[%s1618_s22 + $0x38] sm:$0xff]  ;;  %v949_v11 = vld [vmem:[%s1618_s22 + $0x40] sm:$0xff]  ;;  %s2287_s29 = smov (%p966_p2, %s965_s29), 0  ;;  %929 = sbr.rel (!%p926_p3) target bundleno = 368 (0x170), region = 130 }
 0x174   : >> { %946 = vst [vmem:[%s1614_s15 + $0x30] sm:$0xff] %v945_v60  ;;  %948 = vst [vmem:[%s1614_s15 + $0x38] sm:$0xff] %v947_v10  ;;  %v951_v45 = vld [vmem:[%s1618_s22 + $0x48] sm:$0xff]  ;;  %v953_v3 = vld [vmem:[%s1618_s22 + $0x50] sm:$0xff]  ;;  %s1169_s30 = sshll.u32 %s2287_s29, 7  ;;  %s2271_s6 = smov %s2287_s29 }
 0x175   : >> { %950 = vst [vmem:[%s1614_s15 + $0x40] sm:$0xff] %v949_v11  ;;  %v955_v13 = vld [vmem:[%s1618_s22 + $0x58] sm:$0xff]  ;;  %952 = vst [vmem:[%s1614_s15 + $0x48] sm:$0xff] %v951_v45  ;;  %v957_v4 = vld [vmem:[%s1618_s22 + $0x60] sm:$0xff] }
 0x176   : >> { %954 = vst [vmem:[%s1614_s15 + $0x50] sm:$0xff] %v953_v3  ;;  %956 = vst [vmem:[%s1614_s15 + $0x58] sm:$0xff] %v955_v13  ;;  %v959_v14 = vld [vmem:[%s1618_s22 + $0x68] sm:$0xff]  ;;  %v961_v57 = vld [vmem:[%s1618_s22 + $0x70] sm:$0xff] }
 0x177   : >> { %958 = vst [vmem:[%s1614_s15 + $0x60] sm:$0xff] %v957_v4  ;;  %960 = vst [vmem:[%s1614_s15 + $0x68] sm:$0xff] %v959_v14  ;;  %v963_v16 = vld [vmem:[%s1618_s22 + $0x78] sm:$0xff]  ;;  %s970_s22 = scalar_lea.vmem %s2037_s12, %s1169_s30 [#allocation2]  }
 0x178   : >> { %962 = vst [vmem:[%s1614_s15 + $0x70] sm:$0xff] %v961_v57  ;;  %964 = vst [vmem:[%s1614_s15 + $0x78] sm:$0xff] %v963_v16  ;;  %s971_s15 = scalar_lea.vmem %s2160_s21, %s1169_s30  }
 0x17a PF: > { %s2235_s4 = sand.u32 15, %s2285_s14   ;;  %s1180_s5 = sshll.u32 %s2166_s27, 7 }
 0x17b   : > { %s976_s9 = scalar_lea.vmem %s2037_s12, %s1180_s5 [#allocation2]   ;;  %s978_s10 = scalar_lea.vmem %s2160_s21, %s1180_s5  }
 0x17c   : > { %p1174_p4 = scmp.le.s32.totalorder %s2235_s4, 0 }
 0x17d   : > { %s1628_s26 = smov (!%p1174_p4), %s978_s10   ;;  %s1632_s11 = smov (!%p1174_p4), %s976_s9  }
 0x17e   : > { %1078 = sbr.rel (%p1174_p4) target bundleno = 399 (0x18f), region = 135  ;;  %s1636_s7 = smov (!%p1174_p4), 0  }
 0x17f   : > { %s1640_s8 = smov (!%p1174_p4), 0  }
 0x185 LB: >> { %v988_v17 = vld [vmem:[%s1634_s11] sm:$0xff]  ;;  %s990_s14 = sadd.s32 1, %s1638_s7  ;;  %s982_s8 = sadd.s32 1, %s1642_s8   ;;  %s1642_s8 = sphi %s1640_s8, %s982_s8   ;;  %s1638_s7 = sphi %s1636_s7, %s1637_s7   ;;  %s1634_s11 = sphi %s1632_s11, %s995_s11   ;;  %s1630_s26 = sphi %s1628_s26, %s996_s26  }
 0x186   : >> { %989 = vst [vmem:[%s1630_s26] sm:$0xff] %v988_v17  ;;  %p991_p5 = scmp.ge.s32.totalorder %s990_s14, %s2235_s4  ;;  %p981_p6 = scmp.ge.s32.totalorder %s982_s8, %s2235_s4 }
 0x188   : >> { %s2289_s14 = smov (%p991_p5, %s990_s14), 0  ;;  %984 = sbr.rel (!%p981_p6) target bundleno = 389 (0x185), region = 141 }
 0x189   : >> { %s1175_s12 = sshll.u32 %s2289_s14, 3  ;;  %s1637_s7 = smov %s2289_s14  }
 0x18a   : >> { %s995_s11 = scalar_lea.vmem %s976_s9, %s1175_s12 [#allocation2]   ;;  %s996_s26 = scalar_lea.vmem %s978_s10, %s1175_s12  }
 0x18f PF: > { %s13_s18 = sadd.s32 1, %s1610_s18   ;;  %s2272_s12 = smov %s1590_s13 }
 0x190   : > { %p10_p7 = scmp.ge.s32.totalorder %s13_s18, 18   ;;  %s2273_s13 = smov %s1719_s25 }
 0x191   : > { %s2274_s14 = smov %s1602_s16  ;;  %s2275_s15 = smov %s1606_s17 }
 0x192   : > { %s2276_s16 = smov %s2279_s19  ;;  %s2277_s17 = smov %s2283_s20 }
 0x193   :  { %12 = sbr.rel (!%p10_p7) target bundleno = 4 (0x4), region = 152 }

// kernel: c20_forward.9
= control target key start
LH: loop header
LB: loop body
LE: loop exit
PB: predicated region body
PF: predicated region fallthrough
CT: control target
= control target key end

     0   :  { %s1628_s12 = smov 0   ;;  %s1630_s13 = smov 0   ;;  %s2099_s0 = inlined_call_operand.vmem [shape: f32[1,288,288], index: 0, kind: input, shape index: {}]   ;;  %s2100_s1 = inlined_call_operand.vmem [shape: f32[288,64], index: 1, kind: input, shape index: {}]   ;;  %s2101_s2 = inlined_call_operand.vmem [shape: f32[1,64], index: 2, kind: input, shape index: {}]   ;;  %s2102_s3 = inlined_call_operand.vmem [shape: f32[288,64], index: 3, kind: output, shape index: {}]  }
   0x1   :  { %s1632_s14 = smov 0   ;;  %s1634_s15 = smov 0  }
   0x2   :  { %s1636_s16 = smov 0  }
   0x3 LB: > { %s1118_s17 = sadd.s32 4294967295, %s1574_s16   ;;  %s25_s18 = sadd.s32 1, %s1570_s15  ;;  %s1574_s16 = sphi %s1636_s16, %s13_s16   ;;  %s1570_s15 = sphi %s1634_s15, %s2110_s15   ;;  %s1566_s14 = sphi %s1632_s14, %s2109_s14   ;;  %s1562_s13 = sphi %s1630_s13, %s2108_s13   ;;  %s1558_s12 = sphi %s1628_s12, %s2107_s12  }
   0x4   : > { %p27_p0 = scmp.ge.s32.totalorder %s25_s18, 3  ;;  %s102_s19 = sadd.s32 1, %s1562_s13 }
   0x5   : > { %p112_p1 = scmp.ne.s32.totalorder %s1562_s13, %s1558_s12  ;;  %p113_p2 = scmp.eq.s32.totalorder %s1118_s17, 2 }
   0x6   : > { %s2112_s18 = smov (%p27_p0, %s25_s18), 0  ;;  %p1122_p4 = scmp.ge.s32.totalorder %s1574_s16, 1 }
   0x7   : > { %p1660_p3 = por %p113_p2, %p112_p1  ;;  %s99_s21 = ssub.s32 %s1570_s15, %s2112_s18 }
   0x8   : > { %p167_p5 = scmp.lt.s32.totalorder %s1574_s16, 4  ;;  %p100_p6 = scmp.eq.s32.totalorder %s99_s21, 0 }
   0xa   : > { %p168_p7 = pnand %p1122_p4, %p167_p5 }
   0xb   : > { %s1669_s22 = scalar_select %p100_p6, %s1562_s13, %s102_s19  }
   0xc   : > { %171 = sbr.rel (%p168_p7) target bundleno = 378 (0x17a), region = 32  ;;  %v290_v0 = vld [vmem:[%s2100_s1 + $0x80] sm:$0xff] (!%p168_p7)  ;;  %v291_v1 = vld [vmem:[%s2100_s1 + $0x88] sm:$0xff] (!%p168_p7)  ;;  %s1681_s29 = sshll.u32 (!%p168_p7), %s1566_s14, 4  ;;  %v292_v5 = vld [vmem:[%s2100_s1 + $0x90] sm:$0xff] (!%p168_p7)  ;;  %vm317_vm0 = vcmask (!%p168_p7), 261120  }
   0xd   : > { %v274_v2 = vld [vmem:[%s2100_s1] sm:$0xff] (!%p168_p7)  ;;  %v1311_v3 = vpack.c.bf16 (!%p168_p7), %v291_v1, %v290_v0  ;;  %v275_v4 = vld [vmem:[%s2100_s1 + $0x8] sm:$0xff] (!%p168_p7)  ;;  %v293_v6 = vld [vmem:[%s2100_s1 + $0x98] sm:$0xff] (!%p168_p7)  ;;  %p208_p8 = scmp.lt.s32.totalorder (!%p168_p7), %s1681_s29, 35  ;;  %s197_s5 = sand.u32 (!%p168_p7), 1, %s1558_s12   ;;  %vm756_vm1 = vcmask (!%p168_p7), 523264  }
   0xe   : > { %v1313_v7 = vpack.c.bf16 (!%p168_p7), %v275_v4, %v274_v2  ;;  %v1315_v8 = vpack.c.bf16 (!%p168_p7), %v293_v6, %v292_v5  ;;  %v276_v9 = vld [vmem:[%s2100_s1 + $0x10] sm:$0xff] (!%p168_p7)  ;;  %v277_v10 = vld [vmem:[%s2100_s1 + $0x18] sm:$0xff] (!%p168_p7)  ;;  %v294_v11 = vld [vmem:[%s2100_s1 + $0xa0] sm:$0xff] (!%p168_p7)  ;;  %s1123_s6 = sshll.u32 (!%p168_p7), %s197_s5, 7 }
   0xf   : > { %1312 = vmatprep.subr.bf16.mxu0 (!%p168_p7), %v1311_v3  ;;  %1351 = vmatprep.subr.bf16.mxu1 (!%p168_p7), %v1311_v3  ;;  %v295_v12 = vld [vmem:[%s2100_s1 + $0xa8] sm:$0xff] (!%p168_p7)  ;;  %v1317_v13 = vpack.c.bf16 (!%p168_p7), %v277_v10, %v276_v9  ;;  %v278_v15 = vld [vmem:[%s2100_s1 + $0x20] sm:$0xff] (!%p168_p7)  ;;  %v296_v17 = vld [vmem:[%s2100_s1 + $0xb0] sm:$0xff] (!%p168_p7)  ;;  %s1905_s12 = scalar_lea.vmem (!%p168_p7), [#allocation2], %s1123_s6  }
  0x10   : > { %1314 = vmatpush3.bf16.msra.mxu0 (!%p168_p7), %v1313_v7  ;;  %1359 = vmatpush3.bf16.msra.mxu1 (!%p168_p7), %v1313_v7  ;;  %v1319_v14 = vpack.c.bf16 (!%p168_p7), %v295_v12, %v294_v11  ;;  %v279_v16 = vld [vmem:[%s2100_s1 + $0x28] sm:$0xff] (!%p168_p7)  ;;  %v297_v18 = vld [vmem:[%s2100_s1 + $0xb8] sm:$0xff] (!%p168_p7)  ;;  %v280_v21 = vld [vmem:[%s2100_s1 + $0x30] sm:$0xff] (!%p168_p7) }
  0x11   : > { %1316 = vmatprep.subr.bf16.mxu0 (!%p168_p7), %v1315_v8  ;;  %1352 = vmatprep.subr.bf16.mxu1 (!%p168_p7), %v1315_v8  ;;  %v1321_v19 = vpack.c.bf16 (!%p168_p7), %v279_v16, %v278_v15  ;;  %v1323_v20 = vpack.c.bf16 (!%p168_p7), %v297_v18, %v296_v17  ;;  %v281_v22 = vld [vmem:[%s2100_s1 + $0x38] sm:$0xff] (!%p168_p7)  ;;  %v298_v23 = vld [vmem:[%s2100_s1 + $0xc0] sm:$0xff] (!%p168_p7)  ;;  %v299_v24 = vld [vmem:[%s2100_s1 + $0xc8] sm:$0xff] (!%p168_p7) }
  0x12   : > { %v1325_v27 = vpack.c.bf16 (!%p168_p7), %v281_v22, %v280_v21  ;;  %v1327_v28 = vpack.c.bf16 (!%p168_p7), %v299_v24, %v298_v23  ;;  %v282_v29 = vld [vmem:[%s2100_s1 + $0x40] sm:$0xff] (!%p168_p7)  ;;  %v283_v30 = vld [vmem:[%s2100_s1 + $0x48] sm:$0xff] (!%p168_p7)  ;;  %v300_v31 = vld [vmem:[%s2100_s1 + $0xd0] sm:$0xff] (!%p168_p7) }
  0x13   : > { %s209_s25 = scalar_select %p208_p8, %s1681_s29, 35  ;;  %v301_v32 = vld [vmem:[%s2100_s1 + $0xd8] sm:$0xff]  ;;  %v1329_v33 = vpack.c.bf16 %v283_v30, %v282_v29  ;;  %v284_v35 = vld [vmem:[%s2100_s1 + $0x50] sm:$0xff]  ;;  %v302_v37 = vld [vmem:[%s2100_s1 + $0xe0] sm:$0xff] }
  0x14   : > { %1318 = vmatpush3.bf16.msra.mxu0 %v1317_v13  ;;  %1360 = vmatpush3.bf16.msra.mxu1 %v1317_v13  ;;  %v1331_v34 = vpack.c.bf16 %v301_v32, %v300_v31  ;;  %v285_v36 = vld [vmem:[%s2100_s1 + $0x58] sm:$0xff]  ;;  %v303_v38 = vld [vmem:[%s2100_s1 + $0xe8] sm:$0xff]  ;;  %v286_v41 = vld [vmem:[%s2100_s1 + $0x60] sm:$0xff]  ;;  %s834_s7 = ssub.s32 (%p1660_p3), 36, %s1681_s29  ;;  %s1176_s8 = sshll.u32 (%p1660_p3), %s1566_s14, 7 }
  0x15   : > { %s1367_s4 = smul.u32 24, %s209_s25  ;;  %1320 = vmatprep.subr.bf16.mxu0 %v1319_v14  ;;  %1353 = vmatprep.subr.bf16.mxu1 %v1319_v14  ;;  %v1333_v39 = vpack.c.bf16 %v285_v36, %v284_v35  ;;  %v1335_v40 = vpack.c.bf16 %v303_v38, %v302_v37  ;;  %v287_v42 = vld [vmem:[%s2100_s1 + $0x68] sm:$0xff]  ;;  %v304_v43 = vld [vmem:[%s2100_s1 + $0xf0] sm:$0xff]  ;;  %v305_v44 = vld [vmem:[%s2100_s1 + $0xf8] sm:$0xff]  ;;  %p835_p9 = scmp.lt.s32.totalorder (%p1660_p3), %s834_s7, 16 }
  0x16   : > { %v1337_v45 = vpack.c.bf16 %v287_v42, %v286_v41  ;;  %v1339_v46 = vpack.c.bf16 %v305_v44, %v304_v43  ;;  %v288_v47 = vld [vmem:[%s2100_s1 + $0x70] sm:$0xff]  ;;  %v289_v48 = vld [vmem:[%s2100_s1 + $0x78] sm:$0xff]  ;;  %v306_v49 = vld [vmem:[%s2100_s1 + $0x100] sm:$0xff]  ;;  %s2001_s17 = scalar_lea.vmem (%p1660_p3), %s2102_s3, %s1176_s8  }
  0x17   : > { %s1721_s11 = scalar_lea.vmem %s2099_s0, %s1367_s4  ;;  %v307_v50 = vld [vmem:[%s2100_s1 + $0x108] sm:$0xff]  ;;  %v1341_v51 = vpack.c.bf16 %v289_v48, %v288_v47  ;;  %v308_v53 = vld [vmem:[%s2100_s1 + $0x110] sm:$0xff]  ;;  %v309_v54 = vld [vmem:[%s2100_s1 + $0x118] sm:$0xff] }
  0x18   : > { %v227_v25 = vld [vmem:[%s1721_s11 + $0x8] sm:$0xff]  ;;  %1322 = vmatpush3.bf16.msra.mxu0 %v1321_v19  ;;  %1361 = vmatpush3.bf16.msra.mxu1 %v1321_v19  ;;  %v1343_v52 = vpack.c.bf16 %v307_v50, %v306_v49  ;;  %v226_v55 = vld [vmem:[%s1721_s11] sm:$0xff]  ;;  %v1347_v59 = vpack.c.bf16 %v309_v54, %v308_v53  ;;  %v229_v60 = vld [vmem:[%s1721_s11 + $0x18] sm:$0xff] }
  0x19   : > { %430 = vmatprep.mubr.f32.mxu0 %v227_v25  ;;  %v263_v26 = vld [vmem:[%s1721_s11 + $0x128] sm:$0xff]  ;;  %1324 = vmatprep.subr.bf16.mxu0 %v1323_v20  ;;  %v262_v56 = vld [vmem:[%s1721_s11 + $0x120] sm:$0xff]  ;;  %v265_v61 = vld [vmem:[%s1721_s11 + $0x138] sm:$0xff] }
  0x1a   : > { %1354 = vmatprep.subr.bf16.mxu1 %v1323_v20  ;;  %490 = vmatprep.mubr.f32.mxu1 %v263_v26  ;;  %v230_v57 = vld [vmem:[%s1721_s11 + $0x20] sm:$0xff]  ;;  %v233_v62 = vld [vmem:[%s1721_s11 + $0x38] sm:$0xff]  ;;  %v232_v0 = vld [vmem:[%s1721_s11 + $0x30] sm:$0xff] }
  0x1b   : > { %v266_v58 = vld [vmem:[%s1721_s11 + $0x140] sm:$0xff]  ;;  %v269_v63 = vld [vmem:[%s1721_s11 + $0x158] sm:$0xff]  ;;  %v268_v1 = vld [vmem:[%s1721_s11 + $0x150] sm:$0xff] }
  0x1c   : > { %1326 = vmatpush3.bf16.msra.mxu0 %v1325_v27  ;;  %1362 = vmatpush3.bf16.msra.mxu1 %v1325_v27  ;;  %v236_v2 = vld [vmem:[%s1721_s11 + $0x50] sm:$0xff]  ;;  %v235_v4 = vld [vmem:[%s1721_s11 + $0x48] sm:$0xff]  ;;  %v238_v8 = vld [vmem:[%s1721_s11 + $0x60] sm:$0xff] }
  0x1d   : > { %1328 = vmatprep.subr.bf16.mxu0 %v1327_v28  ;;  %1355 = vmatprep.subr.bf16.mxu1 %v1327_v28  ;;  %v272_v3 = vld [vmem:[%s1721_s11 + $0x170] sm:$0xff]  ;;  %v271_v5 = vld [vmem:[%s1721_s11 + $0x168] sm:$0xff]  ;;  %v242_v10 = vld [vmem:[%s1721_s11 + $0x80] sm:$0xff] }
  0x1e   : > { %v239_v6 = vld [vmem:[%s1721_s11 + $0x68] sm:$0xff]  ;;  %v228_v7 = vld [vmem:[%s1721_s11 + $0x10] sm:$0xff]  ;;  %v234_v11 = vld [vmem:[%s1721_s11 + $0x40] sm:$0xff] }
  0x1f   : > { %v231_v9 = vld [vmem:[%s1721_s11 + $0x28] sm:$0xff]  ;;  %v241_v12 = vld [vmem:[%s1721_s11 + $0x78] sm:$0xff]  ;;  %v240_v15 = vld [vmem:[%s1721_s11 + $0x70] sm:$0xff] }
  0x20   : > { %1330 = vmatpush3.bf16.msra.mxu0 %v1329_v33  ;;  %1363 = vmatpush3.bf16.msra.mxu1 %v1329_v33  ;;  %v237_v13 = vld [vmem:[%s1721_s11 + $0x58] sm:$0xff]  ;;  %v244_v16 = vld [vmem:[%s1721_s11 + $0x90] sm:$0xff]  ;;  %v243_v17 = vld [vmem:[%s1721_s11 + $0x88] sm:$0xff] }
  0x21   : > { %1332 = vmatprep.subr.bf16.mxu0 %v1331_v34  ;;  %1356 = vmatprep.subr.bf16.mxu1 %v1331_v34  ;;  %v245_v14 = vld [vmem:[%s1721_s11 + $0x98] sm:$0xff]  ;;  %v248_v18 = vld [vmem:[%s1721_s11 + $0xb0] sm:$0xff]  ;;  %v246_v19 = vld [vmem:[%s1721_s11 + $0xa0] sm:$0xff] }
  0x22   : > { %v247_v20 = vld [vmem:[%s1721_s11 + $0xa8] sm:$0xff]  ;;  %v249_v21 = vld [vmem:[%s1721_s11 + $0xb8] sm:$0xff]  ;;  %v252_v23 = vld [vmem:[%s1721_s11 + $0xd0] sm:$0xff] }
  0x23   : > { %v251_v22 = vld [vmem:[%s1721_s11 + $0xc8] sm:$0xff]  ;;  %v250_v24 = vld [vmem:[%s1721_s11 + $0xc0] sm:$0xff]  ;;  %v253_v28 = vld [vmem:[%s1721_s11 + $0xd8] sm:$0xff] }
  0x24   : > { %1334 = vmatpush3.bf16.msra.mxu0 %v1333_v39  ;;  %1364 = vmatpush3.bf16.msra.mxu1 %v1333_v39  ;;  %v255_v25 = vld [vmem:[%s1721_s11 + $0xe8] sm:$0xff]  ;;  %v254_v26 = vld [vmem:[%s1721_s11 + $0xe0] sm:$0xff]  ;;  %v261_v29 = vld [vmem:[%s1721_s11 + $0x118] sm:$0xff] }
  0x25   : > { %1336 = vmatprep.subr.bf16.mxu0 %v1335_v40  ;;  %1357 = vmatprep.subr.bf16.mxu1 %v1335_v40  ;;  %v258_v27 = vld [vmem:[%s1721_s11 + $0x100] sm:$0xff]  ;;  %v257_v30 = vld [vmem:[%s1721_s11 + $0xf8] sm:$0xff]  ;;  %v264_v31 = vld [vmem:[%s1721_s11 + $0x130] sm:$0xff] }
  0x26   : > { %v256_v32 = vld [vmem:[%s1721_s11 + $0xf0] sm:$0xff]  ;;  %v267_v33 = vld [vmem:[%s1721_s11 + $0x148] sm:$0xff]  ;;  %v270_v35 = vld [vmem:[%s1721_s11 + $0x160] sm:$0xff] }
  0x27   : > { %v260_v34 = vld [vmem:[%s1721_s11 + $0x110] sm:$0xff]  ;;  %v259_v36 = vld [vmem:[%s1721_s11 + $0x108] sm:$0xff]  ;;  %v273_v37 = vld [vmem:[%s1721_s11 + $0x178] sm:$0xff] }
  0x28   : > { %1338 = vmatpush3.bf16.msra.mxu0 %v1337_v45  ;;  %1365 = vmatpush3.bf16.msra.mxu1 %v1337_v45 }
  0x29   : > { %1340 = vmatprep.subr.bf16.mxu0 %v1339_v46  ;;  %1358 = vmatprep.subr.bf16.mxu1 %v1339_v46 }
  0x2c   : > { %1342 = vmatpush3.bf16.msra.mxu0 %v1341_v51  ;;  %1366 = vmatpush3.bf16.msra.mxu1 %v1341_v51 }
  0x2d   : > { %1344 = vmatprep.subr.bf16.mxu1 %v1343_v52 }
  0x2f   : > { %431 = vmatmul.mubr.f32.vlgmr.msra.gmra.mrb[0].mxu0 %v226_v55  ;;  %491 = vmatmul.mubr.f32.vlgmr.msra.gmra.mrb[0].mxu1 %v262_v56 }
  0x30   : > { %435 = vmatprep.mubr.f32.mxu0 %v230_v57  ;;  %495 = vmatprep.mubr.f32.mxu1 %v266_v58 }
  0x31   : > { %1346 = vmatpush3.bf16.msra.mxu1 %v1343_v52 }
  0x32   : > { %1348 = vmatprep.subr.bf16.mxu1 %v1347_v59 }
  0x33   : > { %436 = vmatmul.mubr.f32.gmra.mrb[2].mxu0 %v229_v60  ;;  %496 = vmatmul.mubr.f32.gmra.mrb[2].mxu1 %v265_v61  ;;  %v1862_v60 = vld [vmem:[%s2101_s2] ss:$0 sm:$0xff] }
  0x34   : > { %440 = vmatprep.mubr.f32.mxu0 %v233_v62  ;;  %500 = vmatprep.mubr.f32.mxu1 %v269_v63 }
  0x35   : > { %1350 = vmatpush3.bf16.msra.mxu1 %v1347_v59 }
  0x37   : > { %441 = vmatmul.mubr.f32.gmra.mrb[4].mxu0 %v232_v0  ;;  %501 = vmatmul.mubr.f32.gmra.mrb[4].mxu1 %v268_v1 }
  0x38   : > { %445 = vmatprep.mubr.f32.mxu0 %v236_v2  ;;  %505 = vmatprep.mubr.f32.mxu1 %v272_v3 }
  0x3b   : > { %446 = vmatmul.mubr.f32.gmra.mrb[6].mxu0 %v235_v4  ;;  %506 = vmatmul.mubr.f32.gmra.mrb[6].mxu1 %v271_v5 }
  0x3c   : > { %450 = vmatprep.mubr.f32.mxu0 %v239_v6  ;;  %1287 = vmatprep.mubr.msk.f32.mxu1 %vm317_vm0, %v228_v7 }
  0x3f   : > { %451 = vmatmul.mubr.f32.gmra.mrb[8].mxu0 %v238_v8  ;;  %1288 = vmatmul.mubr.msk.f32.vlgmr.msra.gmra.mrb[8].mxu1 %vm317_vm0, %v231_v9 }
  0x40   : > { %455 = vmatprep.mubr.f32.mxu0 %v242_v10  ;;  %1290 = vmatprep.mubr.msk.f32.mxu1 %vm317_vm0, %v234_v11 }
  0x43   : > { %456 = vmatmul.mubr.f32.gmra.mrb[10].mxu0 %v241_v12  ;;  %1291 = vmatmul.mubr.msk.f32.gmra.mrb[10].mxu1 %vm317_vm0, %v237_v13 }
  0x44   : > { %460 = vmatprep.mubr.f32.mxu0 %v245_v14  ;;  %1293 = vmatprep.mubr.msk.f32.mxu1 %vm317_vm0, %v240_v15 }
  0x47   : > { %461 = vmatmul.mubr.f32.gmra.mrb[12].mxu0 %v244_v16  ;;  %1294 = vmatmul.mubr.msk.f32.gmra.mrb[12].mxu1 %vm317_vm0, %v243_v17 }
  0x48   : > { %465 = vmatprep.mubr.f32.mxu0 %v248_v18  ;;  %1296 = vmatprep.mubr.msk.f32.mxu1 %vm317_vm0, %v246_v19 }
  0x4b   : > { %466 = vmatmul.mubr.f32.gmra.mrb[14].mxu0 %v247_v20  ;;  %1297 = vmatmul.mubr.msk.f32.gmra.mrb[14].mxu1 %vm317_vm0, %v249_v21 }
  0x4c   : > { %470 = vmatprep.mubr.f32.mxu0 %v251_v22  ;;  %1299 = vmatprep.mubr.msk.f32.mxu1 %vm317_vm0, %v252_v23 }
  0x4f   : > { %471 = vmatmul.mubr.f32.gmra.mrb[16].mxu0 %v250_v24  ;;  %1300 = vmatmul.mubr.msk.f32.gmra.mrb[16].mxu1 %vm317_vm0, %v255_v25 }
  0x50   : > { %475 = vmatprep.mubr.f32.mxu0 %v254_v26  ;;  %1302 = vmatprep.mubr.msk.f32.mxu1 %vm317_vm0, %v258_v27 }
  0x53   : > { %476 = vmatmul.mubr.f32.gmra.mrb[18].mxu0 %v253_v28  ;;  %1303 = vmatmul.mubr.msk.f32.gmra.mrb[18].mxu1 %vm317_vm0, %v261_v29 }
  0x54   : > { %480 = vmatprep.mubr.f32.mxu0 %v257_v30  ;;  %1305 = vmatprep.mubr.msk.f32.mxu1 %vm317_vm0, %v264_v31 }
  0x57   : > { %481 = vmatmul.mubr.f32.gmra.mrb[20].mxu0 %v256_v32  ;;  %1306 = vmatmul.mubr.msk.f32.gmra.mrb[20].mxu1 %vm317_vm0, %v267_v33 }
  0x58   : > { %485 = vmatprep.mubr.f32.mxu0 %v260_v34  ;;  %1308 = vmatprep.mubr.msk.f32.mxu1 %vm317_vm0, %v270_v35 }
  0x5b   : > { %486 = vmatmul.mubr.f32.gmra.mrb[22].mxu0 %v259_v36  ;;  %1309 = vmatmul.mubr.msk.f32.gmra.mrb[22].mxu1 %vm317_vm0, %v273_v37 }
 0x102   : > { %v1211_v38 = vpop.f32.mrb[0].mxu0  ;;  %v1247_v39 = vpop.f32.mrb[0].mxu1 }
 0x103   : > { %v1212_v40 = vpop.f32.mrb[1].mxu0  ;;  %v1248_v41 = vpop.f32.mrb[1].mxu1 }
 0x104   : > { %v1213_v42 = vadd.f32 %v1212_v40, %v1211_v38  ;;  %v1853_v43 = vadd.f32 %v1248_v41, %v1247_v39 }
 0x106   : > { %v1214_v44 = vpop.f32.mrb[2].mxu0  ;;  %v1250_v45 = vpop.f32.mrb[2].mxu1  ;;  %v433_v2 = vadd.f32 %v1213_v42, %v1862_v60 }
 0x107   : > { %v1215_v46 = vpop.f32.mrb[3].mxu0  ;;  %v1251_v47 = vpop.f32.mrb[3].mxu1 }
 0x108   : > { %v1216_v48 = vadd.f32 %v1215_v46, %v1214_v44  ;;  %v1855_v49 = vadd.f32 %v1251_v47, %v1250_v45 }
 0x10a   : > { %v1217_v50 = vpop.f32.mrb[4].mxu0  ;;  %v1253_v51 = vpop.f32.mrb[4].mxu1  ;;  %v438_v63 = vadd.f32 %v1216_v48, %v1862_v60 }
 0x10b   : > { %v1218_v52 = vpop.f32.mrb[5].mxu0  ;;  %v1254_v53 = vpop.f32.mrb[5].mxu1 }
 0x10c   : > { %v1219_v54 = vadd.f32 %v1218_v52, %v1217_v50  ;;  %v1857_v55 = vadd.f32 %v1254_v53, %v1253_v51 }
 0x10e   : > { %v1220_v56 = vpop.f32.mrb[6].mxu0  ;;  %v1256_v57 = vpop.f32.mrb[6].mxu1  ;;  %v443_v13 = vadd.f32 %v1219_v54, %v1862_v60 }
 0x10f   : > { %v1221_v58 = vpop.f32.mrb[7].mxu0  ;;  %v1257_v59 = vpop.f32.mrb[7].mxu1 }
 0x110   : > { %v1222_v61 = vadd.f32 %v1221_v58, %v1220_v56  ;;  %v1864_v62 = vadd.f32 %v1257_v59, %v1256_v57 }
 0x112   : > { %v1223_v0 = vpop.f32.mrb[8].mxu0  ;;  %v1289_v1 = vpop.f32.mrb[8].mxu1  ;;  %v448_v9 = vadd.f32 %v1222_v61, %v1862_v60 }
 0x113   : > { %v1868_v3 = vadd.f32 %v1289_v1, %v438_v63  ;;  %v1224_v4 = vpop.f32.mrb[9].mxu0  ;;  %v577_v5 = vpop.f32.mrb[9].mxu1 }
 0x114   : > { %v1225_v6 = vadd.f32 %v1224_v4, %v1223_v0  ;;  %v1870_v7 = vadd.f32 %v577_v5, %v433_v2 }
 0x115   : > { %v673_v8 = vmin.f32 %v1868_v3, 0.0  ;;  %vm657_vm2 = vcmp.gt.f32.partialorder %v1868_v3, 0.0 }
 0x116   : > { %v672_v10 = vmin.f32 %v1870_v7, 0.0  ;;  %v1226_v11 = vpop.f32.mrb[10].mxu0  ;;  %v1292_v12 = vpop.f32.mrb[10].mxu1  ;;  %v453_v26 = vadd.f32 %v1225_v6, %v1862_v60  ;;  %vm656_vm3 = vcmp.gt.f32.partialorder %v1870_v7, 0.0 }
 0x117   : > { %v690_v14 = vmul.f32 1.442695, %v673_v8  ;;  %v1876_v15 = vadd.f32 %v1292_v12, %v448_v9  ;;  %v1227_v16 = vpop.f32.mrb[11].mxu0  ;;  %v587_v17 = vpop.f32.mrb[11].mxu1 }
 0x118   : > { %v688_v18 = vmul.f32 1.442695, %v672_v10  ;;  %v1228_v19 = vadd.f32 %v1227_v16, %v1226_v11  ;;  %v1878_v20 = vadd.f32 %v587_v17, %v443_v13  ;;  %v498_v16 = vadd.f32 %v1855_v49, %v1862_v60 }
 0x119   : > { %1472 = vpow2.f32 %v690_v14  ;;  %v675_v21 = vmin.f32 %v1876_v15, 0.0  ;;  %vm659_vm4 = vcmp.gt.f32.partialorder %v1876_v15, 0.0 }
 0x11a   : > { %1474 = vpow2.f32 %v688_v18  ;;  %v674_v22 = vmin.f32 %v1878_v20, 0.0  ;;  %v1229_v23 = vpop.f32.mrb[12].mxu0  ;;  %v458_v24 = vadd.f32 %v1228_v19, %v1862_v60  ;;  %v1295_v25 = vpop.f32.mrb[12].mxu1  ;;  %vm658_vm5 = vcmp.gt.f32.partialorder %v1878_v20, 0.0 }
 0x11b   : > { %v694_v27 = vmul.f32 1.442695, %v675_v21  ;;  %v1230_v28 = vpop.f32.mrb[13].mxu0  ;;  %v597_v29 = vpop.f32.mrb[13].mxu1 }
 0x11c   : > { %v692_v30 = vmul.f32 1.442695, %v674_v22  ;;  %v1884_v31 = vadd.f32 %v1295_v25, %v458_v24  ;;  %v1231_v32 = vadd.f32 %v1230_v28, %v1229_v23  ;;  %v1886_v33 = vadd.f32 %v597_v29, %v453_v26 }
 0x11d   : > { %1476 = vpow2.f32 %v694_v27  ;;  %v503_v28 = vadd.f32 %v1857_v55, %v1862_v60 }
 0x11e   : > { %1478 = vpow2.f32 %v692_v30  ;;  %v677_v34 = vmin.f32 %v1884_v31, 0.0  ;;  %v1232_v35 = vpop.f32.mrb[14].mxu0  ;;  %v1298_v36 = vpop.f32.mrb[14].mxu1  ;;  %v676_v37 = vmin.f32 %v1886_v33, 0.0  ;;  %v463_v39 = vadd.f32 %v1231_v32, %v1862_v60 }
 0x11f   : > { %v1233_v38 = vpop.f32.mrb[15].mxu0  ;;  %v607_v40 = vpop.f32.mrb[15].mxu1  ;;  %vm661_vm6 = vcmp.gt.f32.partialorder %v1884_v31, 0.0  ;;  %vm660_vm7 = vcmp.gt.f32.partialorder %v1886_v33, 0.0 }
 0x120   : > { %v698_v41 = vmul.f32 1.442695, %v677_v34  ;;  %v1234_v42 = vadd.f32 %v1233_v38, %v1232_v35  ;;  %v696_v44 = vmul.f32 1.442695, %v676_v37  ;;  %v1892_v45 = vadd.f32 %v607_v40, %v463_v39 }
 0x121   : > { %v508_v34 = vadd.f32 %v1864_v62, %v1862_v60 }
 0x122   : > { %1480 = vpow2.f32 %v698_v41  ;;  %v468_v46 = vadd.f32 %v1234_v42, %v1862_v60  ;;  %v1235_v47 = vpop.f32.mrb[16].mxu0  ;;  %v1301_v48 = vpop.f32.mrb[16].mxu1  ;;  %v678_v51 = vmin.f32 %v1892_v45, 0.0  ;;  %vm662_vm8 = vcmp.gt.f32.partialorder %v1892_v45, 0.0 }
 0x123   : > { %v1473_v50 = vpop.eup %1472  ;;  %1482 = vpow2.f32 %v696_v44  ;;  %v1236_v52 = vpop.f32.mrb[17].mxu0 }
 0x124   : > { %v617_v53 = vpop.f32.mrb[17].mxu1  ;;  %v1475_v54 = vpop.eup %1474  ;;  %v1144_v56 = vadd.f32 -1.0, %v1473_v50  ;;  %v1896_v57 = vadd.f32 %v1298_v36, %v468_v46  ;;  %v1237_v58 = vadd.f32 %v1236_v52, %v1235_v47  ;;  %v700_v61 = vmul.f32 1.442695, %v678_v51 }
 0x125   : > { %v1143_v59 = vadd.f32 -1.0, %v1475_v54 }
 0x126   : > { %v737_v63 = vsel %vm657_vm2, %v1868_v3, %v1144_v56  ;;  %v679_v0 = vmin.f32 %v1896_v57, 0.0  ;;  %v1238_v1 = vpop.f32.mrb[18].mxu0  ;;  %v473_v2 = vadd.f32 %v1237_v58, %v1862_v60  ;;  %v1903_v4 = vpop.f32.mrb[18].mxu1  ;;  %1484 = vpow2.f32 %v700_v61 }
 0x127   : > { %v1477_v5 = vpop.eup %1476  ;;  %758 = vst.msk [vmem:[%s1905_s12 + $0x8] sm:$0xff] %vm756_vm1, %v737_v63  ;;  %v736_v6 = vsel %vm656_vm3, %v1870_v7, %v1143_v59  ;;  %v1239_v3 = vpop.f32.mrb[19].mxu0  ;;  %v493_v7 = vadd.f32 %v1853_v43, %v1862_v60  ;;  %vm663_vm9 = vcmp.gt.f32.partialorder %v1896_v57, 0.0 }
 0x128   : > { %v627_v8 = vpop.f32.mrb[19].mxu1  ;;  %v1479_v9 = vpop.eup %1478  ;;  %757 = vst.msk [vmem:[%s1905_s12] sm:$0xff] %vm756_vm1, %v736_v6  ;;  %v1146_v10 = vadd.f32 -1.0, %v1477_v5  ;;  %v702_v11 = vmul.f32 1.442695, %v679_v0  ;;  %v1912_v12 = vadd.f32 %v617_v53, %v473_v2  ;;  %v1240_v13 = vadd.f32 %v1239_v3, %v1238_v1 }
 0x129   : > { %v1145_v14 = vadd.f32 -1.0, %v1479_v9 }
 0x12a   : > { %v739_v17 = vsel %vm659_vm4, %v1876_v15, %v1146_v10  ;;  %1486 = vpow2.f32 %v702_v11  ;;  %v680_v18 = vmin.f32 %v1912_v12, 0.0  ;;  %v1241_v19 = vpop.f32.mrb[20].mxu0  ;;  %v1307_v21 = vpop.f32.mrb[20].mxu1  ;;  %v478_v23 = vadd.f32 %v1240_v13, %v1862_v60 }
 0x12b   : > { %760 = vst.msk [vmem:[%s1905_s12 + $0x18] sm:$0xff] %vm756_vm1, %v739_v17  ;;  %v738_v22 = vsel %vm658_vm5, %v1878_v20, %v1145_v14  ;;  %v1926_v24 = vadd.f32 %v1307_v21, %v498_v16  ;;  %v1242_v49 = vpop.f32.mrb[21].mxu0  ;;  %v637_v25 = vpop.f32.mrb[21].mxu1  ;;  %vm664_vm10 = vcmp.gt.f32.partialorder %v1912_v12, 0.0 }
 0x12c   : > { %v1481_v43 = vpop.eup %1480  ;;  %759 = vst.msk [vmem:[%s1905_s12 + $0x10] sm:$0xff] %vm756_vm1, %v738_v22  ;;  %v704_v15 = vmul.f32 1.442695, %v680_v18  ;;  %v1243_v26 = vadd.f32 %v1242_v49, %v1241_v19  ;;  %v1930_v27 = vadd.f32 %v637_v25, %v493_v7  ;;  %v1934_v20 = vadd.f32 %v1301_v48, %v478_v23 }
 0x12d   : > { %v1483_v29 = vpop.eup %1482  ;;  %v1148_v30 = vadd.f32 -1.0, %v1481_v43  ;;  %v685_v32 = vmin.f32 %v1926_v24, 0.0  ;;  %vm669_vm11 = vcmp.gt.f32.partialorder %v1926_v24, 0.0 }
 0x12e   : > { %v1147_v35 = vadd.f32 -1.0, %v1483_v29  ;;  %1488 = vpow2.f32 %v704_v15  ;;  %v483_v36 = vadd.f32 %v1243_v26, %v1862_v60  ;;  %v1244_v37 = vpop.f32.mrb[22].mxu0  ;;  %v1310_v38 = vpop.f32.mrb[22].mxu1  ;;  %v681_v39 = vmin.f32 %v1934_v20, 0.0 }
 0x12f   : > { %v741_v55 = vsel %vm661_vm6, %v1884_v31, %v1148_v30  ;;  %v714_v40 = vmul.f32 1.442695, %v685_v32  ;;  %v1245_v41 = vpop.f32.mrb[23].mxu0  ;;  %v647_v42 = vpop.f32.mrb[23].mxu1  ;;  %v684_v46 = vmin.f32 %v1930_v27, 0.0  ;;  %v1948_v47 = vadd.f32 %v1310_v38, %v508_v34 }
 0x130   : > { %762 = vst.msk [vmem:[%s1905_s12 + $0x28] sm:$0xff] %vm756_vm1, %v741_v55  ;;  %v740_v62 = vsel %vm660_vm7, %v1886_v33, %v1147_v35  ;;  %v628_v44 = vadd.f32 %v627_v8, %v483_v36  ;;  %v1485_v48 = vpop.eup %1484  ;;  %v706_v31 = vmul.f32 1.442695, %v681_v39  ;;  %v1246_v50 = vadd.f32 %v1245_v41, %v1244_v37 }
 0x131   : > { %761 = vst.msk [vmem:[%s1905_s12 + $0x20] sm:$0xff] %vm756_vm1, %v740_v62  ;;  %1490 = vpow2.f32 %v714_v40  ;;  %v1952_v51 = vadd.f32 %v647_v42, %v503_v28  ;;  %v1149_v52 = vadd.f32 -1.0, %v1485_v48  ;;  %v712_v54 = vmul.f32 1.442695, %v684_v46 }
 0x132   : > { %v682_v53 = vmin.f32 %v628_v44, 0.0  ;;  %1492 = vpow2.f32 %v706_v31  ;;  %v687_v33 = vmin.f32 %v1948_v47, 0.0  ;;  %v488_v56 = vadd.f32 %v1246_v50, %v1862_v60 }
 0x133   : > { %v742_v59 = vsel %vm662_vm8, %v1892_v45, %v1149_v52  ;;  %1494 = vpow2.f32 %v712_v54  ;;  %v686_v2 = vmin.f32 %v1952_v51, 0.0  ;;  %vm665_vm12 = vcmp.gt.f32.partialorder %v1934_v20, 0.0 }
 0x134   : > { %v1487_v58 = vpop.eup %1486  ;;  %v708_v61 = vmul.f32 1.442695, %v682_v53  ;;  %763 = vst.msk [vmem:[%s1905_s12 + $0x30] sm:$0xff] %vm756_vm1, %v742_v59  ;;  %v718_v0 = vmul.f32 1.442695, %v687_v33  ;;  %v633_v1 = vadd.f32 %v1903_v4, %v488_v56  ;;  %vm668_vm13 = vcmp.gt.f32.partialorder %v1930_v27, 0.0 }
 0x135   : > { %v1150_v63 = vadd.f32 -1.0, %v1487_v58  ;;  %v716_v45 = vmul.f32 1.442695, %v686_v2  ;;  %vm666_vm14 = vcmp.gt.f32.partialorder %v628_v44, 0.0  ;;  %vm671_vm15 = vcmp.gt.f32.partialorder %v1948_v47, 0.0 }
 0x136   : > { %1496 = vpow2.f32 %v708_v61  ;;  %v683_v5 = vmin.f32 %v633_v1, 0.0  ;;  %vm670_vm0 = vcmp.gt.f32.partialorder %v1952_v51, 0.0  ;;  %vm667_vm2 = vcmp.gt.f32.partialorder %v633_v1, 0.0 }
 0x137   : > { %v743_v60 = vsel %vm663_vm9, %v1896_v57, %v1150_v63  ;;  %1498 = vpow2.f32 %v718_v0 }
 0x138   : > { %v1489_v6 = vpop.eup %1488  ;;  %764 = vst.msk [vmem:[%s1905_s12 + $0x38] sm:$0xff] %vm756_vm1, %v743_v60  ;;  %v710_v8 = vmul.f32 1.442695, %v683_v5  ;;  %1500 = vpow2.f32 %v716_v45 }
 0x139   : > { %v1151_v3 = vadd.f32 -1.0, %v1489_v6 }
 0x13a   : > { %1502 = vpow2.f32 %v710_v8 }
 0x13b   : > { %v1491_v4 = vpop.eup %1490  ;;  %v744_v9 = vsel %vm664_vm10, %v1912_v12, %v1151_v3 }
 0x13c   : > { %765 = vst.msk [vmem:[%s1905_s12 + $0x40] sm:$0xff] %vm756_vm1, %v744_v9  ;;  %v1156_v57 = vadd.f32 -1.0, %v1491_v4  ;;  %v1493_v10 = vpop.eup %1492 }
 0x13d   : > { %v1495_v11 = vpop.eup %1494  ;;  %v1152_v13 = vadd.f32 -1.0, %v1493_v10 }
 0x13e   : > { %v749_v14 = vsel %vm669_vm11, %v1926_v24, %v1156_v57  ;;  %v1155_v16 = vadd.f32 -1.0, %v1495_v11 }
 0x13f   : > { %770 = vst.msk [vmem:[%s1905_s12 + $0x68] sm:$0xff] %vm756_vm1, %v749_v14  ;;  %v745_v7 = vsel %vm665_vm12, %v1934_v20, %v1152_v13 }
 0x140   : > { %v1497_v12 = vpop.eup %1496  ;;  %766 = vst.msk [vmem:[%s1905_s12 + $0x48] sm:$0xff] %vm756_vm1, %v745_v7  ;;  %v748_v19 = vsel %vm668_vm13, %v1930_v27, %v1155_v16 }
 0x141   : > { %v1499_v17 = vpop.eup %1498  ;;  %v1153_v18 = vadd.f32 -1.0, %v1497_v12  ;;  %769 = vst.msk [vmem:[%s1905_s12 + $0x60] sm:$0xff] %vm756_vm1, %v748_v19 }
 0x142   : > { %v1158_v21 = vadd.f32 -1.0, %v1499_v17  ;;  %v1501_v23 = vpop.eup %1500  ;;  %832 = sbr.rel (!%p1660_p3) target bundleno = 378 (0x17a), region = 44 }
 0x143   : > { %v746_v22 = vsel %vm666_vm14, %v628_v44, %v1153_v18  ;;  %v1157_v25 = vadd.f32 -1.0, %v1501_v23 }
 0x144   : > { %767 = vst.msk [vmem:[%s1905_s12 + $0x50] sm:$0xff] %vm756_vm1, %v746_v22  ;;  %v751_v24 = vsel %vm671_vm15, %v1948_v47, %v1158_v21  ;;  %v1503_v49 = vpop.eup %1502 }
 0x145   : > { %772 = vst.msk [vmem:[%s1905_s12 + $0x78] sm:$0xff] %vm756_vm1, %v751_v24  ;;  %v1154_v43 = vadd.f32 -1.0, %v1503_v49  ;;  %v750_v15 = vsel %vm670_vm0, %v1952_v51, %v1157_v25 }
 0x146   : > { %771 = vst.msk [vmem:[%s1905_s12 + $0x70] sm:$0xff] %vm756_vm1, %v750_v15 }
 0x147   : > { %v747_v26 = vsel %vm667_vm2, %v633_v1, %v1154_v43 }
 0x148   : > { %768 = vst.msk [vmem:[%s1905_s12 + $0x58] sm:$0xff] %vm756_vm1, %v747_v26 }
 0x149   : > { %s2114_s7 = smov (!%p835_p9, %s834_s7), 16 }
 0x14a   : > { %s1161_s19 = sshll.u32 %s2114_s7, 7 }
 0x14b   : > { %p1164_p10 = scmp.eq.s32.totalorder %s1161_s19, 0 }
 0x14c   : > { %s2007_s21 = sshrl.u32 (!%p1164_p10), %s2114_s7, 4 }
 0x14d   : > { %843 = sbr.rel (%p1164_p10) target bundleno = 378 (0x17a), region = 48  ;;  %p1165_p11 = scmp.le.s32.totalorder (!%p1164_p10), %s2007_s21, 0 }
 0x154   : > { %1066 = sbr.rel (%p1165_p11) target bundleno = 357 (0x165), region = 124  ;;  %s2104_s14 = smov (!%p1165_p11), %s2001_s17 }
 0x155   : > { %s2105_s20 = smov (!%p1165_p11), %s1905_s12  ;;  %s2016_s29 = smov (!%p1165_p11), 0  }
 0x156   : > { %s2018_s23 = smov (!%p1165_p11), 0  }
 0x15b LB: >> { %v935_v27 = vld [vmem:[%s1582_s20] sm:$0xff]  ;;  %v937_v28 = vld [vmem:[%s1582_s20 + $0x8] sm:$0xff]  ;;  %v939_v29 = vld [vmem:[%s1582_s20 + $0x10] sm:$0xff]  ;;  %s967_s24 = sadd.s32 1, %s1586_s29  ;;  %s929_s23 = sadd.s32 1, %s1590_s23   ;;  %s1590_s23 = sphi %s2018_s23, %s929_s23   ;;  %s1586_s29 = sphi %s2016_s29, %s2106_s29   ;;  %s1582_s20 = sphi %s2105_s20, %s972_s20   ;;  %s1578_s14 = sphi %s2104_s14, %s973_s14  }
 0x15c   : >> { %936 = vst [vmem:[%s1578_s14] sm:$0xff] %v935_v27  ;;  %938 = vst [vmem:[%s1578_s14 + $0x8] sm:$0xff] %v937_v28  ;;  %v941_v30 = vld [vmem:[%s1582_s20 + $0x18] sm:$0xff]  ;;  %v943_v20 = vld [vmem:[%s1582_s20 + $0x20] sm:$0xff]  ;;  %p968_p12 = scmp.ge.s32.totalorder %s967_s24, %s2007_s21  ;;  %p928_p13 = scmp.ge.s32.totalorder %s929_s23, %s2007_s21 }
 0x15d   : >> { %940 = vst [vmem:[%s1578_s14 + $0x10] sm:$0xff] %v939_v29  ;;  %v945_v32 = vld [vmem:[%s1582_s20 + $0x28] sm:$0xff]  ;;  %942 = vst [vmem:[%s1578_s14 + $0x18] sm:$0xff] %v941_v30  ;;  %v947_v34 = vld [vmem:[%s1582_s20 + $0x30] sm:$0xff] }
 0x15e   : >> { %944 = vst [vmem:[%s1578_s14 + $0x20] sm:$0xff] %v943_v20  ;;  %946 = vst [vmem:[%s1578_s14 + $0x28] sm:$0xff] %v945_v32  ;;  %v949_v35 = vld [vmem:[%s1582_s20 + $0x38] sm:$0xff]  ;;  %v951_v36 = vld [vmem:[%s1582_s20 + $0x40] sm:$0xff]  ;;  %s2116_s24 = smov (%p968_p12, %s967_s24), 0  ;;  %931 = sbr.rel (!%p928_p13) target bundleno = 347 (0x15b), region = 130 }
 0x15f   : >> { %948 = vst [vmem:[%s1578_s14 + $0x30] sm:$0xff] %v947_v34  ;;  %950 = vst [vmem:[%s1578_s14 + $0x38] sm:$0xff] %v949_v35  ;;  %v953_v37 = vld [vmem:[%s1582_s20 + $0x48] sm:$0xff]  ;;  %v955_v38 = vld [vmem:[%s1582_s20 + $0x50] sm:$0xff]  ;;  %s1166_s25 = sshll.u32 %s2116_s24, 7  ;;  %s2106_s29 = smov %s2116_s24 }
 0x160   : >> { %952 = vst [vmem:[%s1578_s14 + $0x40] sm:$0xff] %v951_v36  ;;  %v957_v55 = vld [vmem:[%s1582_s20 + $0x58] sm:$0xff]  ;;  %954 = vst [vmem:[%s1578_s14 + $0x48] sm:$0xff] %v953_v37  ;;  %v959_v39 = vld [vmem:[%s1582_s20 + $0x60] sm:$0xff] }
 0x161   : >> { %956 = vst [vmem:[%s1578_s14 + $0x50] sm:$0xff] %v955_v38  ;;  %958 = vst [vmem:[%s1578_s14 + $0x58] sm:$0xff] %v957_v55  ;;  %v961_v40 = vld [vmem:[%s1582_s20 + $0x68] sm:$0xff]  ;;  %v963_v41 = vld [vmem:[%s1582_s20 + $0x70] sm:$0xff] }
 0x162   : >> { %960 = vst [vmem:[%s1578_s14 + $0x60] sm:$0xff] %v959_v39  ;;  %962 = vst [vmem:[%s1578_s14 + $0x68] sm:$0xff] %v961_v40  ;;  %v965_v42 = vld [vmem:[%s1582_s20 + $0x78] sm:$0xff]  ;;  %s972_s20 = scalar_lea.vmem %s1905_s12, %s1166_s25 [#allocation2]  }
 0x163   : >> { %964 = vst [vmem:[%s1578_s14 + $0x70] sm:$0xff] %v963_v41  ;;  %966 = vst [vmem:[%s1578_s14 + $0x78] sm:$0xff] %v965_v42  ;;  %s973_s14 = scalar_lea.vmem %s2001_s17, %s1166_s25  }
 0x165 PF: > { %s2076_s26 = sand.u32 15, %s2114_s7   ;;  %s1177_s27 = sshll.u32 %s2007_s21, 7 }
 0x166   : > { %s978_s28 = scalar_lea.vmem %s1905_s12, %s1177_s27 [#allocation2]   ;;  %s980_s30 = scalar_lea.vmem %s2001_s17, %s1177_s27  }
 0x167   : > { %p1171_p0 = scmp.le.s32.totalorder %s2076_s26, 0 }
 0x168   : > { %s1592_s11 = smov (!%p1171_p0), %s980_s30   ;;  %s1596_s4 = smov (!%p1171_p0), %s978_s28  }
 0x169   : > { %1080 = sbr.rel (%p1171_p0) target bundleno = 378 (0x17a), region = 135  ;;  %s1600_s5 = smov (!%p1171_p0), 0  }
 0x16a   : > { %s1604_s6 = smov (!%p1171_p0), 0  }
 0x170 LB: >> { %v990_v62 = vld [vmem:[%s1598_s4] sm:$0xff]  ;;  %s992_s7 = sadd.s32 1, %s1602_s5  ;;  %s984_s6 = sadd.s32 1, %s1606_s6   ;;  %s1606_s6 = sphi %s1604_s6, %s984_s6   ;;  %s1602_s5 = sphi %s1600_s5, %s1601_s5   ;;  %s1598_s4 = sphi %s1596_s4, %s997_s4   ;;  %s1594_s11 = sphi %s1592_s11, %s998_s11  }
 0x171   : >> { %991 = vst [vmem:[%s1594_s11] sm:$0xff] %v990_v62  ;;  %p993_p1 = scmp.ge.s32.totalorder %s992_s7, %s2076_s26  ;;  %p983_p2 = scmp.ge.s32.totalorder %s984_s6, %s2076_s26 }
 0x173   : >> { %s2118_s7 = smov (%p993_p1, %s992_s7), 0  ;;  %986 = sbr.rel (!%p983_p2) target bundleno = 368 (0x170), region = 141 }
 0x174   : >> { %s1172_s12 = sshll.u32 %s2118_s7, 3  ;;  %s1601_s5 = smov %s2118_s7  }
 0x175   : >> { %s997_s4 = scalar_lea.vmem %s978_s28, %s1172_s12 [#allocation2]   ;;  %s998_s11 = scalar_lea.vmem %s980_s30, %s1172_s12  }
 0x17a PF: > { %s13_s16 = sadd.s32 1, %s1574_s16   ;;  %s2107_s12 = smov %s1562_s13 }
 0x17b   : > { %p10_p3 = scmp.ge.s32.totalorder %s13_s16, 5   ;;  %s2108_s13 = smov %s1669_s22 }
 0x17c   : > { %s2109_s14 = smov %s1570_s15  ;;  %s2110_s15 = smov %s2112_s18 }
 0x17d   :  { %12 = sbr.rel (!%p10_p3) target bundleno = 3 (0x3), region = 152 }

// kernel: c20_forward.10
= control target key start
LH: loop header
LB: loop body
LE: loop exit
PB: predicated region body
PF: predicated region fallthrough
CT: control target
= control target key end

     0   :  { %s1145_s12 = smov 0   ;;  %s1147_s13 = smov 0   ;;  %s1533_s0 = inlined_call_operand.vmem [shape: f32[4,50,576], index: 0, kind: input, shape index: {}]   ;;  %s1534_s1 = inlined_call_operand.vmem [shape: f32[576,64], index: 1, kind: input, shape index: {}]   ;;  %s1535_s2 = inlined_call_operand.vmem [shape: f32[1,64], index: 2, kind: input, shape index: {}]   ;;  %s1536_s3 = inlined_call_operand.vmem [shape: f32[50,64], index: 3, kind: output, shape index: {}]  }
   0x1   :  { %s1149_s14 = smov 0  }
   0x2 LB: > { %s22_s15 = sadd.s32 1, %s1116_s13  ;;  %p791_p0 = scmp.ge.s32.totalorder %s1120_s14, 1  ;;  %s1120_s14 = sphi %s1149_s14, %s13_s14   ;;  %s1116_s13 = sphi %s1147_s13, %s1538_s13   ;;  %s1112_s12 = sphi %s1145_s12, %s1537_s12  }
   0x3   : > { %p23_p1 = scmp.ge.s32.totalorder %s22_s15, 4  ;;  %p157_p2 = scmp.lt.s32.totalorder %s1120_s14, 5 }
   0x5   : > { %s1540_s15 = smov (%p23_p1, %s22_s15), 0  ;;  %p158_p3 = pnand %p791_p0, %p157_p2 }
   0x6   : > { %v254_v0 = vld [vmem:[%s1534_s1 + $0x80] sm:$0xff] (!%p158_p3)  ;;  %v255_v1 = vld [vmem:[%s1534_s1 + $0x88] sm:$0xff] (!%p158_p3)  ;;  %v256_v11 = vld [vmem:[%s1534_s1 + $0x90] sm:$0xff] (!%p158_p3)  ;;  %p187_p4 = scmp.lt.s32.totalorder (!%p158_p3), %s1112_s12, 3  ;;  %vm1123_vm0 = vmmov (!%p158_p3), 0   ;;  %vm317_vm1 = vcmask (!%p158_p3), 523264  }
   0x7   : > { %161 = sbr.rel (%p158_p3) target bundleno = 325 (0x145), region = 32  ;;  %v286_v2 = vld [vmem:[%s1534_s1 + $0x180] sm:$0xff] (!%p158_p3)  ;;  %v972_v3 = vpack.c.bf16 (!%p158_p3), %v255_v1, %v254_v0  ;;  %v287_v4 = vld [vmem:[%s1534_s1 + $0x188] sm:$0xff] (!%p158_p3)  ;;  %v257_v13 = vld [vmem:[%s1534_s1 + $0x98] sm:$0xff] (!%p158_p3)  ;;  %p808_p5 = scmp.ne.s32.totalorder (!%p158_p3), %s1112_s12, 0 }
   0x8   : > { %v238_v5 = vld [vmem:[%s1534_s1] sm:$0xff] (!%p158_p3)  ;;  %v239_v6 = vld [vmem:[%s1534_s1 + $0x8] sm:$0xff] (!%p158_p3)  ;;  %v1004_v7 = vpack.c.bf16 (!%p158_p3), %v287_v4, %v286_v2  ;;  %v288_v14 = vld [vmem:[%s1534_s1 + $0x190] sm:$0xff] (!%p158_p3)  ;;  %v976_v16 = vpack.c.bf16 (!%p158_p3), %v257_v13, %v256_v11 }
   0x9   : > { %v974_v8 = vpack.c.bf16 (!%p158_p3), %v239_v6, %v238_v5  ;;  %v270_v9 = vld [vmem:[%s1534_s1 + $0x100] sm:$0xff] (!%p158_p3)  ;;  %v271_v10 = vld [vmem:[%s1534_s1 + $0x108] sm:$0xff] (!%p158_p3)  ;;  %973 = vmatprep.subr.bf16.mxu0 (!%p158_p3), %v972_v3  ;;  %v289_v15 = vld [vmem:[%s1534_s1 + $0x198] sm:$0xff] (!%p158_p3) }
   0xa   : > { %v1006_v12 = vpack.c.bf16 (!%p158_p3), %v271_v10, %v270_v9  ;;  %1005 = vmatprep.subr.bf16.mxu1 (!%p158_p3), %v1004_v7  ;;  %v1008_v17 = vpack.c.bf16 (!%p158_p3), %v289_v15, %v288_v14  ;;  %v240_v18 = vld [vmem:[%s1534_s1 + $0x10] sm:$0xff] (!%p158_p3)  ;;  %v241_v19 = vld [vmem:[%s1534_s1 + $0x18] sm:$0xff] (!%p158_p3)  ;;  %v258_v23 = vld [vmem:[%s1534_s1 + $0xa0] sm:$0xff] (!%p158_p3) }
   0xb   : > { %975 = vmatpush3.bf16.msra.mxu0 (!%p158_p3), %v974_v8  ;;  %v272_v20 = vld [vmem:[%s1534_s1 + $0x110] sm:$0xff] (!%p158_p3)  ;;  %v978_v21 = vpack.c.bf16 (!%p158_p3), %v241_v19, %v240_v18  ;;  %v273_v22 = vld [vmem:[%s1534_s1 + $0x118] sm:$0xff] (!%p158_p3)  ;;  %v259_v24 = vld [vmem:[%s1534_s1 + $0xa8] sm:$0xff] (!%p158_p3) }
   0xc   : > { %1007 = vmatpush3.bf16.msra.mxu1 (!%p158_p3), %v1006_v12  ;;  %977 = vmatprep.subr.bf16.mxu0 (!%p158_p3), %v976_v16  ;;  %v1010_v25 = vpack.c.bf16 (!%p158_p3), %v273_v22, %v272_v20  ;;  %v980_v26 = vpack.c.bf16 (!%p158_p3), %v259_v24, %v258_v23  ;;  %v290_v27 = vld [vmem:[%s1534_s1 + $0x1a0] sm:$0xff] (!%p158_p3)  ;;  %v291_v28 = vld [vmem:[%s1534_s1 + $0x1a8] sm:$0xff] (!%p158_p3)  ;;  %v260_v35 = vld [vmem:[%s1534_s1 + $0xb0] sm:$0xff] (!%p158_p3) }
   0xd   : > { %1009 = vmatprep.subr.bf16.mxu1 (!%p158_p3), %v1008_v17  ;;  %v242_v29 = vld [vmem:[%s1534_s1 + $0x20] sm:$0xff] (!%p158_p3)  ;;  %v1012_v30 = vpack.c.bf16 (!%p158_p3), %v291_v28, %v290_v27  ;;  %v243_v31 = vld [vmem:[%s1534_s1 + $0x28] sm:$0xff] (!%p158_p3)  ;;  %v261_v36 = vld [vmem:[%s1534_s1 + $0xb8] sm:$0xff] (!%p158_p3) }
   0xe   : > { %v274_v32 = vld [vmem:[%s1534_s1 + $0x120] sm:$0xff]  ;;  %v275_v33 = vld [vmem:[%s1534_s1 + $0x128] sm:$0xff]  ;;  %v982_v34 = vpack.c.bf16 %v243_v31, %v242_v29  ;;  %v292_v37 = vld [vmem:[%s1534_s1 + $0x1b0] sm:$0xff]  ;;  %v984_v39 = vpack.c.bf16 %v261_v36, %v260_v35  ;;  %s1268_s9 = scalar_select %p187_p4, %s1112_s12, 3 }
   0xf   : > { %979 = vmatpush3.bf16.msra.mxu0 %v978_v21  ;;  %v1014_v38 = vpack.c.bf16 %v275_v33, %v274_v32  ;;  %v293_v40 = vld [vmem:[%s1534_s1 + $0x1b8] sm:$0xff]  ;;  %v244_v41 = vld [vmem:[%s1534_s1 + $0x30] sm:$0xff]  ;;  %v262_v46 = vld [vmem:[%s1534_s1 + $0xc0] sm:$0xff] }
  0x10   : > { %1011 = vmatpush3.bf16.msra.mxu1 %v1010_v25  ;;  %981 = vmatprep.subr.bf16.mxu0 %v980_v26  ;;  %v245_v42 = vld [vmem:[%s1534_s1 + $0x38] sm:$0xff]  ;;  %v1016_v43 = vpack.c.bf16 %v293_v40, %v292_v37  ;;  %v276_v44 = vld [vmem:[%s1534_s1 + $0x130] sm:$0xff]  ;;  %v263_v47 = vld [vmem:[%s1534_s1 + $0xc8] sm:$0xff]  ;;  %s1056_s5 = smul.u32 280, %s1268_s9 }
  0x11   : > { %1013 = vmatprep.subr.bf16.mxu1 %v1012_v30  ;;  %v277_v45 = vld [vmem:[%s1534_s1 + $0x138] sm:$0xff]  ;;  %v294_v48 = vld [vmem:[%s1534_s1 + $0x1c0] sm:$0xff]  ;;  %v295_v49 = vld [vmem:[%s1534_s1 + $0x1c8] sm:$0xff]  ;;  %v986_v50 = vpack.c.bf16 %v245_v42, %v244_v41  ;;  %v988_v52 = vpack.c.bf16 %v263_v47, %v262_v46 }
  0x12   : > { %v1018_v51 = vpack.c.bf16 %v277_v45, %v276_v44  ;;  %v246_v53 = vld [vmem:[%s1534_s1 + $0x40] sm:$0xff]  ;;  %v247_v54 = vld [vmem:[%s1534_s1 + $0x48] sm:$0xff]  ;;  %v1020_v56 = vpack.c.bf16 %v295_v49, %v294_v48  ;;  %v264_v58 = vld [vmem:[%s1534_s1 + $0xd0] sm:$0xff]  ;;  %s1325_s28 = scalar_lea.vmem %s1533_s0, %s1056_s5 }
  0x13   : > { %983 = vmatpush3.bf16.msra.mxu0 %v982_v34  ;;  %v278_v55 = vld [vmem:[%s1534_s1 + $0x140] sm:$0xff]  ;;  %v279_v57 = vld [vmem:[%s1534_s1 + $0x148] sm:$0xff]  ;;  %v265_v59 = vld [vmem:[%s1534_s1 + $0xd8] sm:$0xff]  ;;  %v990_v62 = vpack.c.bf16 %v247_v54, %v246_v53 }
  0x14   : > { %1015 = vmatpush3.bf16.msra.mxu1 %v1014_v38  ;;  %985 = vmatprep.subr.bf16.mxu0 %v984_v39  ;;  %v296_v60 = vld [vmem:[%s1534_s1 + $0x1d0] sm:$0xff]  ;;  %v297_v61 = vld [vmem:[%s1534_s1 + $0x1d8] sm:$0xff]  ;;  %v1022_v63 = vpack.c.bf16 %v279_v57, %v278_v55  ;;  %v992_v0 = vpack.c.bf16 %v265_v59, %v264_v58  ;;  %v266_v6 = vld [vmem:[%s1534_s1 + $0xe0] sm:$0xff]  ;;  %v1122_v39 = vmov 0.0|0.0  }
  0x15   : > { %1017 = vmatprep.subr.bf16.mxu1 %v1016_v43  ;;  %v248_v1 = vld [vmem:[%s1534_s1 + $0x50] sm:$0xff]  ;;  %v249_v2 = vld [vmem:[%s1534_s1 + $0x58] sm:$0xff]  ;;  %v1024_v4 = vpack.c.bf16 %v297_v61, %v296_v60  ;;  %v267_v7 = vld [vmem:[%s1534_s1 + $0xe8] sm:$0xff] }
  0x16   : > { %v280_v3 = vld [vmem:[%s1534_s1 + $0x150] sm:$0xff]  ;;  %v281_v5 = vld [vmem:[%s1534_s1 + $0x158] sm:$0xff]  ;;  %v298_v8 = vld [vmem:[%s1534_s1 + $0x1e0] sm:$0xff]  ;;  %v994_v10 = vpack.c.bf16 %v249_v2, %v248_v1  ;;  %v996_v14 = vpack.c.bf16 %v267_v7, %v266_v6 }
  0x17   : > { %987 = vmatpush3.bf16.msra.mxu0 %v986_v50  ;;  %v299_v9 = vld [vmem:[%s1534_s1 + $0x1e8] sm:$0xff]  ;;  %v250_v11 = vld [vmem:[%s1534_s1 + $0x60] sm:$0xff]  ;;  %v1026_v13 = vpack.c.bf16 %v281_v5, %v280_v3  ;;  %v206_v17 = vld [vmem:[%s1325_s28 + $0x18] sm:$0xff] }
  0x18   : > { %1019 = vmatpush3.bf16.msra.mxu1 %v1018_v51  ;;  %989 = vmatprep.subr.bf16.mxu0 %v988_v52  ;;  %v251_v12 = vld [vmem:[%s1534_s1 + $0x68] sm:$0xff]  ;;  %v282_v15 = vld [vmem:[%s1534_s1 + $0x160] sm:$0xff]  ;;  %v1028_v18 = vpack.c.bf16 %v299_v9, %v298_v8  ;;  %v268_v20 = vld [vmem:[%s1534_s1 + $0xf0] sm:$0xff]  ;;  %v1124_v9 = vmov 0.0  }
  0x19   : > { %1021 = vmatprep.subr.bf16.mxu1 %v1020_v56  ;;  %v204_v16 = vld [vmem:[%s1325_s28 + $0x8] sm:$0xff]  ;;  %v269_v21 = vld [vmem:[%s1534_s1 + $0xf8] sm:$0xff]  ;;  %v300_v22 = vld [vmem:[%s1534_s1 + $0x1f0] sm:$0xff]  ;;  %503 = vmatprep.mubr.f32.mxu1 %v206_v17  ;;  %v998_v24 = vpack.c.bf16 %v251_v12, %v250_v11 }
  0x1a   : > { %v283_v19 = vld [vmem:[%s1534_s1 + $0x168] sm:$0xff]  ;;  %403 = vmatprep.mubr.f32.mxu0 %v204_v16  ;;  %v301_v23 = vld [vmem:[%s1534_s1 + $0x1f8] sm:$0xff]  ;;  %v1000_v26 = vpack.c.bf16 %v269_v21, %v268_v20  ;;  %v252_v27 = vld [vmem:[%s1534_s1 + $0x70] sm:$0xff] }
  0x1b   : > { %991 = vmatpush3.bf16.msra.mxu0 %v990_v62  ;;  %v1030_v25 = vpack.c.bf16 %v283_v19, %v282_v15  ;;  %v253_v28 = vld [vmem:[%s1534_s1 + $0x78] sm:$0xff]  ;;  %v1032_v29 = vpack.c.bf16 %v301_v23, %v300_v22  ;;  %v284_v30 = vld [vmem:[%s1534_s1 + $0x170] sm:$0xff]  ;;  %v302_v34 = vld [vmem:[%s1534_s1 + $0x200] sm:$0xff] }
  0x1c   : > { %1023 = vmatpush3.bf16.msra.mxu1 %v1022_v63  ;;  %993 = vmatprep.subr.bf16.mxu0 %v992_v0  ;;  %v285_v31 = vld [vmem:[%s1534_s1 + $0x178] sm:$0xff]  ;;  %v1002_v32 = vpack.c.bf16 %v253_v28, %v252_v27  ;;  %v303_v35 = vld [vmem:[%s1534_s1 + $0x208] sm:$0xff]  ;;  %v203_v36 = vld [vmem:[%s1325_s28] sm:$0xff] }
  0x1d   : > { %1025 = vmatprep.subr.bf16.mxu1 %v1024_v4  ;;  %v1034_v33 = vpack.c.bf16 %v285_v31, %v284_v30  ;;  %v1037_v37 = vpack.c.bf16 %v303_v35, %v302_v34  ;;  %v205_v38 = vld [vmem:[%s1325_s28 + $0x10] sm:$0xff]  ;;  %v211_v41 = vld [vmem:[%s1325_s28 + $0x40] sm:$0xff]  ;;  %v305_v43 = vld [vmem:[%s1534_s1 + $0x218] sm:$0xff] }
  0x1e   : > { %v209_v40 = vld [vmem:[%s1325_s28 + $0x30] sm:$0xff]  ;;  %v208_v44 = vld [vmem:[%s1325_s28 + $0x28] sm:$0xff]  ;;  %v210_v45 = vld [vmem:[%s1325_s28 + $0x38] sm:$0xff] }
  0x1f   : > { %995 = vmatpush3.bf16.msra.mxu0 %v994_v10  ;;  %v304_v42 = vld [vmem:[%s1534_s1 + $0x210] sm:$0xff]  ;;  %v214_v46 = vld [vmem:[%s1325_s28 + $0x58] sm:$0xff]  ;;  %v216_v48 = vld [vmem:[%s1325_s28 + $0x68] sm:$0xff] }
  0x20   : > { %1027 = vmatpush3.bf16.msra.mxu1 %v1026_v13  ;;  %997 = vmatprep.subr.bf16.mxu0 %v996_v14  ;;  %v1040_v47 = vpack.c.bf16 %v305_v43, %v304_v42  ;;  %v306_v49 = vld [vmem:[%s1534_s1 + $0x220] sm:$0xff]  ;;  %v307_v50 = vld [vmem:[%s1534_s1 + $0x228] sm:$0xff]  ;;  %v213_v51 = vld [vmem:[%s1325_s28 + $0x50] sm:$0xff] }
  0x21   : > { %1029 = vmatprep.subr.bf16.mxu1 %v1028_v18  ;;  %v215_v52 = vld [vmem:[%s1325_s28 + $0x60] sm:$0xff]  ;;  %v1043_v54 = vpack.c.bf16 %v307_v50, %v306_v49  ;;  %v221_v55 = vld [vmem:[%s1325_s28 + $0x90] sm:$0xff]  ;;  %v309_v57 = vld [vmem:[%s1534_s1 + $0x238] sm:$0xff] }
  0x22   : > { %v219_v53 = vld [vmem:[%s1325_s28 + $0x80] sm:$0xff]  ;;  %v308_v56 = vld [vmem:[%s1534_s1 + $0x230] sm:$0xff]  ;;  %v218_v58 = vld [vmem:[%s1325_s28 + $0x78] sm:$0xff] }
  0x23   : > { %999 = vmatpush3.bf16.msra.mxu0 %v998_v24  ;;  %v220_v59 = vld [vmem:[%s1325_s28 + $0x88] sm:$0xff]  ;;  %v1046_v61 = vpack.c.bf16 %v309_v57, %v308_v56  ;;  %v226_v62 = vld [vmem:[%s1325_s28 + $0xb8] sm:$0xff]  ;;  %v223_v63 = vld [vmem:[%s1325_s28 + $0xa0] sm:$0xff] }
  0x24   : > { %1031 = vmatpush3.bf16.msra.mxu1 %v1030_v25  ;;  %1001 = vmatprep.subr.bf16.mxu0 %v1000_v26  ;;  %v224_v60 = vld [vmem:[%s1325_s28 + $0xa8] sm:$0xff]  ;;  %v225_v0 = vld [vmem:[%s1325_s28 + $0xb0] sm:$0xff]  ;;  %v231_v2 = vld [vmem:[%s1325_s28 + $0xe0] sm:$0xff] }
  0x25   : > { %1033 = vmatprep.subr.bf16.mxu1 %v1032_v29  ;;  %v229_v1 = vld [vmem:[%s1325_s28 + $0xd0] sm:$0xff]  ;;  %v228_v3 = vld [vmem:[%s1325_s28 + $0xc8] sm:$0xff]  ;;  %v230_v4 = vld [vmem:[%s1325_s28 + $0xd8] sm:$0xff] }
  0x26   : > { %v234_v5 = vld [vmem:[%s1325_s28 + $0xf8] sm:$0xff]  ;;  %v236_v6 = vld [vmem:[%s1325_s28 + $0x108] sm:$0xff]  ;;  %v233_v7 = vld [vmem:[%s1325_s28 + $0xf0] sm:$0xff] }
  0x27   : > { %1003 = vmatpush3.bf16.msra.mxu0 %v1002_v32  ;;  %v235_v8 = vld [vmem:[%s1325_s28 + $0x100] sm:$0xff]  ;;  %v212_v12 = vld [vmem:[%s1325_s28 + $0x48] sm:$0xff]  ;;  %v217_v14 = vld [vmem:[%s1325_s28 + $0x70] sm:$0xff] }
  0x28   : > { %1035 = vmatpush3.bf16.msra.mxu1 %v1034_v33  ;;  %1036 = vmatprep.subr.bf16.mxu0 %v1122_v39  ;;  %v207_v10 = vld [vmem:[%s1325_s28 + $0x20] sm:$0xff]  ;;  %v232_v13 = vld [vmem:[%s1325_s28 + $0xe8] sm:$0xff]  ;;  %v237_v15 = vld [vmem:[%s1325_s28 + $0x110] sm:$0xff] }
  0x29   : > { %1048 = vmatprep.subr.bf16.mxu1 %v1122_v39  ;;  %v227_v11 = vld [vmem:[%s1325_s28 + $0xc0] sm:$0xff]  ;;  %v222_v16 = vld [vmem:[%s1325_s28 + $0x98] sm:$0xff] }
  0x2a   : > { %404 = vmatmul.mubr.f32.vlgmr.msra.gmra.mrb[0].mxu0 %v203_v36  ;;  %v793_v18 = vld [vmem:[%s1535_s2] ss:$0 sm:$0xff] }
  0x2b   : > { %504 = vmatmul.mubr.f32.vlgmr.msra.gmra.mrb[0].mxu1 %v205_v38  ;;  %1038 = vmatpush3.bf16.msra.mxu0 %v1037_v37 }
  0x2c   : > { %408 = vmatprep.mubr.f32.mxu0 %v209_v40  ;;  %508 = vmatprep.mubr.f32.mxu1 %v211_v41 }
  0x2d   : > { %1052 = vmatpush3.bf16.msra.mxu1 %v1037_v37  ;;  %1039 = vmatprep.subr.bf16.mxu0 %v1122_v39 }
  0x2e   : > { %409 = vmatmul.mubr.f32.gmra.mrb[2].mxu0 %v208_v44  ;;  %1049 = vmatprep.subr.bf16.mxu1 %v1122_v39 }
  0x2f   : > { %509 = vmatmul.mubr.f32.gmra.mrb[2].mxu1 %v210_v45  ;;  %413 = vmatprep.mubr.f32.mxu0 %v214_v46 }
  0x30   : > { %513 = vmatprep.mubr.f32.mxu1 %v216_v48  ;;  %1041 = vmatpush3.bf16.msra.mxu0 %v1040_v47 }
  0x31   : > { %1053 = vmatpush3.bf16.msra.mxu1 %v1040_v47  ;;  %1042 = vmatprep.subr.bf16.mxu0 %v1122_v39 }
  0x32   : > { %414 = vmatmul.mubr.f32.gmra.mrb[4].mxu0 %v213_v51  ;;  %1050 = vmatprep.subr.bf16.mxu1 %v1122_v39 }
  0x33   : > { %514 = vmatmul.mubr.f32.gmra.mrb[4].mxu1 %v215_v52  ;;  %418 = vmatprep.mubr.f32.mxu0 %v219_v53 }
  0x34   : > { %518 = vmatprep.mubr.f32.mxu1 %v221_v55  ;;  %1044 = vmatpush3.bf16.msra.mxu0 %v1043_v54 }
  0x35   : > { %1054 = vmatpush3.bf16.msra.mxu1 %v1043_v54  ;;  %1045 = vmatprep.subr.bf16.mxu0 %v1122_v39 }
  0x36   : > { %419 = vmatmul.mubr.f32.gmra.mrb[6].mxu0 %v218_v58  ;;  %1051 = vmatprep.subr.bf16.mxu1 %v1122_v39 }
  0x37   : > { %519 = vmatmul.mubr.f32.gmra.mrb[6].mxu1 %v220_v59  ;;  %423 = vmatprep.mubr.f32.mxu0 %v224_v60 }
  0x38   : > { %523 = vmatprep.mubr.f32.mxu1 %v226_v62  ;;  %1047 = vmatpush3.bf16.msra.mxu0 %v1046_v61 }
  0x39   : > { %1055 = vmatpush3.bf16.msra.mxu1 %v1046_v61 }
  0x3a   : > { %424 = vmatmul.mubr.f32.gmra.mrb[8].mxu0 %v223_v63 }
  0x3b   : > { %524 = vmatmul.mubr.f32.gmra.mrb[8].mxu1 %v225_v0  ;;  %428 = vmatprep.mubr.f32.mxu0 %v229_v1 }
  0x3c   : > { %528 = vmatprep.mubr.f32.mxu1 %v231_v2 }
  0x3e   : > { %429 = vmatmul.mubr.f32.gmra.mrb[10].mxu0 %v228_v3 }
  0x3f   : > { %529 = vmatmul.mubr.f32.gmra.mrb[10].mxu1 %v230_v4  ;;  %433 = vmatprep.mubr.f32.mxu0 %v234_v5 }
  0x40   : > { %533 = vmatprep.mubr.f32.mxu1 %v236_v6 }
  0x42   : > { %434 = vmatmul.mubr.f32.gmra.mrb[12].mxu0 %v233_v7 }
  0x43   : > { %534 = vmatmul.mubr.f32.gmra.mrb[12].mxu1 %v235_v8  ;;  %951 = vmatprep.mubr.msk.f32.mxu0 %vm1123_vm0, %v1124_v9 }
  0x44   : > { %963 = vmatprep.mubr.msk.f32.mxu1 %vm1123_vm0, %v1124_v9 }
  0x46   : > { %952 = vmatmul.mubr.msk.f32.vlgmr.msra.gmra.mrb[14].mxu0 %vm317_vm1, %v207_v10 }
  0x47   : > { %964 = vmatmul.mubr.msk.f32.vlgmr.msra.gmra.mrb[14].mxu1 %vm317_vm1, %v227_v11  ;;  %954 = vmatprep.mubr.msk.f32.mxu0 %vm1123_vm0, %v1124_v9 }
  0x48   : > { %966 = vmatprep.mubr.msk.f32.mxu1 %vm1123_vm0, %v1124_v9 }
  0x4a   : > { %955 = vmatmul.mubr.msk.f32.gmra.mrb[16].mxu0 %vm317_vm1, %v212_v12 }
  0x4b   : > { %967 = vmatmul.mubr.msk.f32.gmra.mrb[16].mxu1 %vm317_vm1, %v232_v13  ;;  %957 = vmatprep.mubr.msk.f32.mxu0 %vm1123_vm0, %v1124_v9 }
  0x4c   : > { %969 = vmatprep.mubr.msk.f32.mxu1 %vm1123_vm0, %v1124_v9 }
  0x4e   : > { %958 = vmatmul.mubr.msk.f32.gmra.mrb[18].mxu0 %vm317_vm1, %v217_v14 }
  0x4f   : > { %970 = vmatmul.mubr.msk.f32.gmra.mrb[18].mxu1 %vm317_vm1, %v237_v15  ;;  %960 = vmatprep.mubr.msk.f32.mxu0 %vm1123_vm0, %v1124_v9 }
  0x52   : > { %961 = vmatmul.mubr.msk.f32.gmra.mrb[20].mxu0 %vm317_vm1, %v222_v16 }
  0xfd   : > { %v846_v17 = vpop.f32.mrb[0].mxu0 }
  0xfe   : > { %v847_v19 = vpop.f32.mrb[1].mxu0  ;;  %v899_v20 = vpop.f32.mrb[0].mxu1 }
  0xff   : > { %v848_v21 = vadd.f32 %v847_v19, %v846_v17  ;;  %v900_v22 = vpop.f32.mrb[1].mxu1 }
 0x100   : > { %v901_v23 = vadd.f32 %v900_v22, %v899_v20 }
 0x101   : > { %v406_v24 = vadd.f32 %v848_v21, %v793_v18  ;;  %v849_v25 = vpop.f32.mrb[2].mxu0 }
 0x102   : > { %v850_v26 = vpop.f32.mrb[3].mxu0  ;;  %v902_v27 = vpop.f32.mrb[2].mxu1 }
 0x103   : > { %v851_v28 = vadd.f32 %v850_v26, %v849_v25  ;;  %v903_v29 = vpop.f32.mrb[3].mxu1  ;;  %v506_v30 = vadd.f32 %v901_v23, %v406_v24 }
 0x104   : > { %v904_v31 = vadd.f32 %v903_v29, %v902_v27 }
 0x105   : > { %v411_v32 = vadd.f32 %v851_v28, %v793_v18  ;;  %v852_v33 = vpop.f32.mrb[4].mxu0 }
 0x106   : > { %v853_v34 = vpop.f32.mrb[5].mxu0  ;;  %v905_v35 = vpop.f32.mrb[4].mxu1 }
 0x107   : > { %v854_v36 = vadd.f32 %v853_v34, %v852_v33  ;;  %v906_v37 = vpop.f32.mrb[5].mxu1  ;;  %v511_v38 = vadd.f32 %v904_v31, %v411_v32 }
 0x108   : > { %v907_v39 = vadd.f32 %v906_v37, %v905_v35 }
 0x109   : > { %v416_v40 = vadd.f32 %v854_v36, %v793_v18  ;;  %v855_v41 = vpop.f32.mrb[6].mxu0 }
 0x10a   : > { %v856_v42 = vpop.f32.mrb[7].mxu0  ;;  %v908_v43 = vpop.f32.mrb[6].mxu1 }
 0x10b   : > { %v857_v44 = vadd.f32 %v856_v42, %v855_v41  ;;  %v909_v45 = vpop.f32.mrb[7].mxu1  ;;  %v516_v46 = vadd.f32 %v907_v39, %v416_v40 }
 0x10c   : > { %v910_v47 = vadd.f32 %v909_v45, %v908_v43 }
 0x10d   : > { %v421_v48 = vadd.f32 %v857_v44, %v793_v18  ;;  %v858_v49 = vpop.f32.mrb[8].mxu0 }
 0x10e   : > { %v859_v50 = vpop.f32.mrb[9].mxu0  ;;  %v911_v51 = vpop.f32.mrb[8].mxu1 }
 0x10f   : > { %v860_v52 = vadd.f32 %v859_v50, %v858_v49  ;;  %v912_v53 = vpop.f32.mrb[9].mxu1  ;;  %v521_v54 = vadd.f32 %v910_v47, %v421_v48 }
 0x110   : > { %v913_v55 = vadd.f32 %v912_v53, %v911_v51 }
 0x111   : > { %v426_v56 = vadd.f32 %v860_v52, %v793_v18  ;;  %v861_v57 = vpop.f32.mrb[10].mxu0 }
 0x112   : > { %v862_v58 = vpop.f32.mrb[11].mxu0  ;;  %v914_v59 = vpop.f32.mrb[10].mxu1 }
 0x113   : > { %v863_v60 = vadd.f32 %v862_v58, %v861_v57  ;;  %v915_v61 = vpop.f32.mrb[11].mxu1  ;;  %v526_v62 = vadd.f32 %v913_v55, %v426_v56 }
 0x114   : > { %v916_v63 = vadd.f32 %v915_v61, %v914_v59 }
 0x115   : > { %v431_v0 = vadd.f32 %v863_v60, %v793_v18  ;;  %v864_v1 = vpop.f32.mrb[12].mxu0 }
 0x116   : > { %v865_v2 = vpop.f32.mrb[13].mxu0  ;;  %v917_v3 = vpop.f32.mrb[12].mxu1 }
 0x117   : > { %v866_v4 = vadd.f32 %v865_v2, %v864_v1  ;;  %v918_v5 = vpop.f32.mrb[13].mxu1  ;;  %v531_v6 = vadd.f32 %v916_v63, %v431_v0 }
 0x118   : > { %v919_v7 = vadd.f32 %v918_v5, %v917_v3 }
 0x119   : > { %v436_v8 = vadd.f32 %v866_v4, %v793_v18  ;;  %v605_v9 = vpop.f32.mrb[14].mxu0 }
 0x11a   : > { %v606_v10 = vadd.f32 %v605_v9, %v506_v30  ;;  %v625_v11 = vpop.f32.mrb[14].mxu1  ;;  %v953_v12 = vpop.f32.mrb[15].mxu0 }
 0x11b   : > { %v626_v13 = vadd.f32 %v625_v11, %v526_v62  ;;  %v965_v14 = vpop.f32.mrb[15].mxu1  ;;  %v536_v15 = vadd.f32 %v919_v7, %v436_v8 }
 0x11c   : > { %v646_v16 = vmin.f32 %v606_v10, 0.0  ;;  %vm639_vm2 = vcmp.gt.f32.partialorder %v606_v10, 0.0 }
 0x11d   : > { %v650_v17 = vmin.f32 %v626_v13, 0.0  ;;  %v610_v19 = vpop.f32.mrb[16].mxu0  ;;  %vm643_vm3 = vcmp.gt.f32.partialorder %v626_v13, 0.0 }
 0x11e   : > { %v653_v20 = vmul.f32 1.442695, %v646_v16  ;;  %v611_v21 = vadd.f32 %v610_v19, %v511_v38  ;;  %v630_v22 = vpop.f32.mrb[16].mxu1  ;;  %v956_v23 = vpop.f32.mrb[17].mxu0 }
 0x11f   : > { %v661_v24 = vmul.f32 1.442695, %v650_v17  ;;  %v631_v25 = vadd.f32 %v630_v22, %v531_v6  ;;  %v968_v26 = vpop.f32.mrb[17].mxu1 }
 0x120   : > { %1084 = vpow2.f32 %v653_v20  ;;  %v647_v27 = vmin.f32 %v611_v21, 0.0  ;;  %vm640_vm4 = vcmp.gt.f32.partialorder %v611_v21, 0.0 }
 0x121   : > { %1086 = vpow2.f32 %v661_v24  ;;  %v651_v18 = vmin.f32 %v631_v25, 0.0  ;;  %v615_v28 = vpop.f32.mrb[18].mxu0  ;;  %vm644_vm5 = vcmp.gt.f32.partialorder %v631_v25, 0.0 }
 0x122   : > { %v655_v29 = vmul.f32 1.442695, %v647_v27  ;;  %v616_v30 = vadd.f32 %v615_v28, %v516_v46  ;;  %v635_v31 = vpop.f32.mrb[18].mxu1  ;;  %v959_v32 = vpop.f32.mrb[19].mxu0 }
 0x123   : > { %v663_v33 = vmul.f32 1.442695, %v651_v18  ;;  %v636_v34 = vadd.f32 %v635_v31, %v536_v15  ;;  %v971_v35 = vpop.f32.mrb[19].mxu1 }
 0x124   : > { %1088 = vpow2.f32 %v655_v29  ;;  %v648_v36 = vmin.f32 %v616_v30, 0.0  ;;  %vm641_vm6 = vcmp.gt.f32.partialorder %v616_v30, 0.0 }
 0x125   : > { %1090 = vpow2.f32 %v663_v33  ;;  %v652_v37 = vmin.f32 %v636_v34, 0.0  ;;  %v620_v38 = vpop.f32.mrb[20].mxu0  ;;  %vm645_vm7 = vcmp.gt.f32.partialorder %v636_v34, 0.0 }
 0x126   : > { %v657_v39 = vmul.f32 1.442695, %v648_v36  ;;  %v621_v40 = vadd.f32 %v620_v38, %v521_v54  ;;  %v962_v41 = vpop.f32.mrb[21].mxu0 }
 0x127   : > { %v665_v42 = vmul.f32 1.442695, %v652_v37 }
 0x128   : > { %1092 = vpow2.f32 %v657_v39  ;;  %v649_v43 = vmin.f32 %v621_v40, 0.0  ;;  %vm642_vm8 = vcmp.gt.f32.partialorder %v621_v40, 0.0 }
 0x129   : > { %1094 = vpow2.f32 %v665_v42 }
 0x12a   : > { %v1085_v44 = vpop.eup %1084  ;;  %v659_v45 = vmul.f32 1.442695, %v649_v43 }
 0x12b   : > { %v1087_v46 = vpop.eup %1086  ;;  %v801_v47 = vadd.f32 -1.0, %v1085_v44 }
 0x12c   : > { %v805_v48 = vadd.f32 -1.0, %v1087_v46  ;;  %1096 = vpow2.f32 %v659_v45 }
 0x12d   : > { %v674_v49 = vsel %vm639_vm2, %v606_v10, %v801_v47 }
 0x12e   : > { %v1089_v50 = vpop.eup %1088  ;;  %v678_v51 = vsel %vm643_vm3, %v626_v13, %v805_v48  ;;  %685 = vst.msk [vmem:[%s1536_s3] sm:$0xff] (!%p808_p5), %vm317_vm1, %v674_v49 }
 0x12f   : > { %v1091_v52 = vpop.eup %1090  ;;  %v802_v53 = vadd.f32 -1.0, %v1089_v50  ;;  %689 = vst.msk [vmem:[%s1536_s3 + $0x20] sm:$0xff] (!%p808_p5), %vm317_vm1, %v678_v51 }
 0x130   : > { %v806_v54 = vadd.f32 -1.0, %v1091_v52 }
 0x131   : > { %v675_v55 = vsel %vm640_vm4, %v611_v21, %v802_v53 }
 0x132   : > { %v1093_v56 = vpop.eup %1092  ;;  %v679_v57 = vsel %vm644_vm5, %v631_v25, %v806_v54  ;;  %686 = vst.msk [vmem:[%s1536_s3 + $0x8] sm:$0xff] (!%p808_p5), %vm317_vm1, %v675_v55 }
 0x133   : > { %v1095_v58 = vpop.eup %1094  ;;  %v803_v59 = vadd.f32 -1.0, %v1093_v56  ;;  %684 = sbr.rel (%p808_p5) target bundleno = 315 (0x13b), region = 36  ;;  %690 = vst.msk [vmem:[%s1536_s3 + $0x28] sm:$0xff] (!%p808_p5), %vm317_vm1, %v679_v57 }
 0x134   : > { %v807_v60 = vadd.f32 -1.0, %v1095_v58 }
 0x135   : > { %v676_v61 = vsel %vm641_vm6, %v616_v30, %v803_v59 }
 0x136   : > { %v1097_v62 = vpop.eup %1096  ;;  %v680_v63 = vsel %vm645_vm7, %v636_v34, %v807_v60  ;;  %687 = vst.msk [vmem:[%s1536_s3 + $0x10] sm:$0xff] (!%p808_p5), %vm317_vm1, %v676_v61 }
 0x137   : > { %v804_v0 = vadd.f32 -1.0, %v1097_v62  ;;  %691 = vst.msk [vmem:[%s1536_s3 + $0x30] sm:$0xff] (!%p808_p5), %vm317_vm1, %v680_v63 }
 0x139   : > { %v677_v1 = vsel %vm642_vm8, %v621_v40, %v804_v0 }
 0x13a   : > { %688 = vst.msk [vmem:[%s1536_s3 + $0x18] sm:$0xff] %vm317_vm1, %v677_v1 }
 0x13b PF: > { %p809_p6 = scmp.le.s32.totalorder %s1112_s12, 0 }
 0x13c   : > { %v696_v2 = vld [vmem:[%s1536_s3] sm:$0xff] (!%p809_p6)  ;;  %v697_v3 = vld [vmem:[%s1536_s3 + $0x8] sm:$0xff] (!%p809_p6) }
 0x13d   : > { %695 = sbr.rel (%p809_p6) target bundleno = 325 (0x145), region = 40  ;;  %v703_v5 = vmax.f32 (!%p809_p6), %v696_v2, %v674_v49  ;;  %v704_v6 = vmax.f32 (!%p809_p6), %v697_v3, %v675_v55  ;;  %v700_v9 = vld [vmem:[%s1536_s3 + $0x20] sm:$0xff] (!%p809_p6)  ;;  %v701_v10 = vld [vmem:[%s1536_s3 + $0x28] sm:$0xff] (!%p809_p6) }
 0x13e   : > { %v698_v4 = vld [vmem:[%s1536_s3 + $0x10] sm:$0xff] (!%p809_p6)  ;;  %v707_v12 = vmax.f32 (!%p809_p6), %v700_v9, %v678_v51  ;;  %v708_v13 = vmax.f32 (!%p809_p6), %v701_v10, %v679_v57 }
 0x13f   : > { %v705_v7 = vmax.f32 (!%p809_p6), %v698_v4, %v676_v61  ;;  %v702_v14 = vld [vmem:[%s1536_s3 + $0x30] sm:$0xff] (!%p809_p6)  ;;  %710 = vst.msk [vmem:[%s1536_s3] sm:$0xff] (!%p809_p6), %vm317_vm1, %v703_v5  ;;  %711 = vst.msk [vmem:[%s1536_s3 + $0x8] sm:$0xff] (!%p809_p6), %vm317_vm1, %v704_v6 }
 0x140   : > { %v709_v15 = vmax.f32 (!%p809_p6), %v702_v14, %v680_v63  ;;  %714 = vst.msk [vmem:[%s1536_s3 + $0x20] sm:$0xff] (!%p809_p6), %vm317_vm1, %v707_v12  ;;  %715 = vst.msk [vmem:[%s1536_s3 + $0x28] sm:$0xff] (!%p809_p6), %vm317_vm1, %v708_v13 }
 0x141   : > { %v699_v8 = vld [vmem:[%s1536_s3 + $0x18] sm:$0xff] (!%p809_p6)  ;;  %712 = vst.msk [vmem:[%s1536_s3 + $0x10] sm:$0xff] (!%p809_p6), %vm317_vm1, %v705_v7 }
 0x142   : > { %v706_v11 = vmax.f32 (!%p809_p6), %v699_v8, %v677_v1  ;;  %716 = vst.msk [vmem:[%s1536_s3 + $0x30] sm:$0xff] (!%p809_p6), %vm317_vm1, %v709_v15 }
 0x144   : > { %713 = vst.msk [vmem:[%s1536_s3 + $0x18] sm:$0xff] %vm317_vm1, %v706_v11 }
 0x145 PF: > { %s13_s14 = sadd.s32 1, %s1120_s14   ;;  %s1537_s12 = smov %s1116_s13 }
 0x146   : > { %p10_p7 = scmp.ge.s32.totalorder %s13_s14, 6   ;;  %s1538_s13 = smov %s1540_s15 }
 0x148   :  { %12 = sbr.rel (!%p10_p7) target bundleno = 2 (0x2), region = 70 }

// kernel: c20_forward.11
= control target key start
LH: loop header
LB: loop body
LE: loop exit
PB: predicated region body
PF: predicated region fallthrough
CT: control target
= control target key end

     0   :  { %10 = vsyncpa [#allocation3], 0  ;;  %vm1012_vm0 = vcmask 523264   ;;  %vm2244_vm5 = vcmask 80896   ;;  %s6048_s0 = inlined_call_operand.vmem [shape: f32[2,1600], index: 0, kind: input, shape index: {}]   ;;  %s6049_s1 = inlined_call_operand.vmem [shape: f32[1600,512], index: 1, kind: input, shape index: {}]   ;;  %s6050_s2 = inlined_call_operand.vmem [shape: f32[1,512], index: 2, kind: input, shape index: {}]   ;;  %s6051_s3 = inlined_call_operand.vmem [shape: f32[512,10], index: 3, kind: input, shape index: {}]   ;;  %s6052_s4 = inlined_call_operand.vmem [shape: f32[1,10], index: 4, kind: input, shape index: {}]   ;;  %s6053_s5 = inlined_call_operand.hbm [shape: f32[2,10], index: 5, kind: output, shape index: {}]  }
   0x1   :  { %v38_v0 = vld [vmem:[%s6049_s1 + $0x8] sm:$0xff]  ;;  %v40_v3 = vld [vmem:[%s6049_s1 + $0x18] sm:$0xff]  ;;  %v37_v5 = vld [vmem:[%s6049_s1] sm:$0xff] }
   0x2   :  { %v42_v1 = vld [vmem:[%s6049_s1 + $0x28] sm:$0xff]  ;;  %v44_v4 = vld [vmem:[%s6049_s1 + $0x38] sm:$0xff]  ;;  %v41_v7 = vld [vmem:[%s6049_s1 + $0x20] sm:$0xff] }
   0x3   :  { %v2339_v2 = vpack.c.bf16 %v42_v1, %v38_v0  ;;  %v2739_v6 = vpack.c.bf16 %v44_v4, %v40_v3  ;;  %v39_v8 = vld [vmem:[%s6049_s1 + $0x10] sm:$0xff]  ;;  %v2341_v10 = vpack.c.bf16 %v41_v7, %v37_v5  ;;  %v46_v12 = vld [vmem:[%s6049_s1 + $0x48] sm:$0xff]  ;;  %v48_v14 = vld [vmem:[%s6049_s1 + $0x58] sm:$0xff] }
   0x4   :  { %v43_v9 = vld [vmem:[%s6049_s1 + $0x30] sm:$0xff]  ;;  %v50_v13 = vld [vmem:[%s6049_s1 + $0x68] sm:$0xff]  ;;  %v52_v16 = vld [vmem:[%s6049_s1 + $0x78] sm:$0xff] }
   0x5   :  { %2340 = vmatprep.subr.bf16.mxu0 %v2339_v2  ;;  %v2741_v11 = vpack.c.bf16 %v43_v9, %v39_v8  ;;  %2740 = vmatprep.subr.bf16.mxu1 %v2739_v6  ;;  %v2343_v15 = vpack.c.bf16 %v50_v13, %v46_v12  ;;  %v45_v17 = vld [vmem:[%s6049_s1 + $0x40] sm:$0xff]  ;;  %v2743_v19 = vpack.c.bf16 %v52_v16, %v48_v14  ;;  %v47_v21 = vld [vmem:[%s6049_s1 + $0x50] sm:$0xff]  ;;  %v54_v23 = vld [vmem:[%s6049_s1 + $0x88] sm:$0xff] }
   0x6   :  { %v49_v18 = vld [vmem:[%s6049_s1 + $0x60] sm:$0xff]  ;;  %2342 = vmatpush1.bf16.msra.mxu0 %v2341_v10  ;;  %v51_v22 = vld [vmem:[%s6049_s1 + $0x70] sm:$0xff]  ;;  %v58_v25 = vld [vmem:[%s6049_s1 + $0xa8] sm:$0xff] }
   0x7   :  { %2742 = vmatpush1.bf16.msra.mxu1 %v2741_v11  ;;  %v2345_v20 = vpack.c.bf16 %v49_v18, %v45_v17  ;;  %2344 = vmatprep.subr.bf16.mxu0 %v2343_v15  ;;  %v2745_v24 = vpack.c.bf16 %v51_v22, %v47_v21  ;;  %v56_v26 = vld [vmem:[%s6049_s1 + $0x98] sm:$0xff]  ;;  %v2347_v28 = vpack.c.bf16 %v58_v25, %v54_v23  ;;  %v53_v30 = vld [vmem:[%s6049_s1 + $0x80] sm:$0xff]  ;;  %v55_v32 = vld [vmem:[%s6049_s1 + $0x90] sm:$0xff] }
   0x8   :  { %v60_v27 = vld [vmem:[%s6049_s1 + $0xb8] sm:$0xff]  ;;  %2744 = vmatprep.subr.bf16.mxu1 %v2743_v19  ;;  %v57_v31 = vld [vmem:[%s6049_s1 + $0xa0] sm:$0xff]  ;;  %v59_v33 = vld [vmem:[%s6049_s1 + $0xb0] sm:$0xff] }
   0x9   :  { %v2747_v29 = vpack.c.bf16 %v60_v27, %v56_v26  ;;  %v62_v34 = vld [vmem:[%s6049_s1 + $0xc8] sm:$0xff]  ;;  %v2349_v36 = vpack.c.bf16 %v57_v31, %v53_v30  ;;  %v2749_v37 = vpack.c.bf16 %v59_v33, %v55_v32  ;;  %v64_v38 = vld [vmem:[%s6049_s1 + $0xd8] sm:$0xff]  ;;  %v61_v40 = vld [vmem:[%s6049_s1 + $0xc0] sm:$0xff] }
   0xa   :  { %v66_v35 = vld [vmem:[%s6049_s1 + $0xe8] sm:$0xff]  ;;  %2346 = vmatpush1.bf16.msra.mxu0 %v2345_v20  ;;  %v68_v39 = vld [vmem:[%s6049_s1 + $0xf8] sm:$0xff]  ;;  %v65_v43 = vld [vmem:[%s6049_s1 + $0xe0] sm:$0xff] }
   0xb   :  { %2746 = vmatpush1.bf16.msra.mxu1 %v2745_v24  ;;  %2348 = vmatprep.subr.bf16.mxu0 %v2347_v28  ;;  %v2351_v41 = vpack.c.bf16 %v66_v35, %v62_v34  ;;  %v2751_v42 = vpack.c.bf16 %v68_v39, %v64_v38  ;;  %v63_v44 = vld [vmem:[%s6049_s1 + $0xd0] sm:$0xff]  ;;  %v70_v46 = vld [vmem:[%s6049_s1 + $0x108] sm:$0xff]  ;;  %v72_v48 = vld [vmem:[%s6049_s1 + $0x118] sm:$0xff]  ;;  %v2353_v50 = vpack.c.bf16 %v65_v43, %v61_v40 }
   0xc   :  { %2748 = vmatprep.subr.bf16.mxu1 %v2747_v29  ;;  %v67_v45 = vld [vmem:[%s6049_s1 + $0xf0] sm:$0xff]  ;;  %v74_v47 = vld [vmem:[%s6049_s1 + $0x128] sm:$0xff]  ;;  %v76_v49 = vld [vmem:[%s6049_s1 + $0x138] sm:$0xff] }
   0xd   :  { %v2753_v51 = vpack.c.bf16 %v67_v45, %v63_v44  ;;  %v69_v52 = vld [vmem:[%s6049_s1 + $0x100] sm:$0xff]  ;;  %v2355_v54 = vpack.c.bf16 %v74_v47, %v70_v46  ;;  %v2755_v55 = vpack.c.bf16 %v76_v49, %v72_v48  ;;  %v71_v56 = vld [vmem:[%s6049_s1 + $0x110] sm:$0xff]  ;;  %v78_v58 = vld [vmem:[%s6049_s1 + $0x148] sm:$0xff] }
   0xe   :  { %2350 = vmatpush1.bf16.msra.mxu0 %v2349_v36  ;;  %v73_v53 = vld [vmem:[%s6049_s1 + $0x120] sm:$0xff]  ;;  %v75_v57 = vld [vmem:[%s6049_s1 + $0x130] sm:$0xff]  ;;  %v82_v59 = vld [vmem:[%s6049_s1 + $0x168] sm:$0xff] }
   0xf   :  { %2750 = vmatpush1.bf16.msra.mxu1 %v2749_v37  ;;  %2352 = vmatprep.subr.bf16.mxu0 %v2351_v41  ;;  %v80_v60 = vld [vmem:[%s6049_s1 + $0x158] sm:$0xff]  ;;  %v2357_v62 = vpack.c.bf16 %v73_v53, %v69_v52  ;;  %v2757_v63 = vpack.c.bf16 %v75_v57, %v71_v56  ;;  %v77_v0 = vld [vmem:[%s6049_s1 + $0x140] sm:$0xff]  ;;  %v2359_v2 = vpack.c.bf16 %v82_v59, %v78_v58  ;;  %v79_v4 = vld [vmem:[%s6049_s1 + $0x150] sm:$0xff]  ;;  %v3288_v56 = vmov 1983009808  }
  0x10   :  { %2752 = vmatprep.subr.bf16.mxu1 %v2751_v42  ;;  %v84_v61 = vld [vmem:[%s6049_s1 + $0x178] sm:$0xff]  ;;  %v81_v1 = vld [vmem:[%s6049_s1 + $0x160] sm:$0xff]  ;;  %v83_v5 = vld [vmem:[%s6049_s1 + $0x170] sm:$0xff]  ;;  %v880_v57 = vunpack.c.l.s4 %v3288_v56 }
  0x11   :  { %v2759_v3 = vpack.c.bf16 %v84_v61, %v80_v60  ;;  %v86_v6 = vld [vmem:[%s6049_s1 + $0x188] sm:$0xff]  ;;  %v88_v8 = vld [vmem:[%s6049_s1 + $0x198] sm:$0xff]  ;;  %v2361_v10 = vpack.c.bf16 %v81_v1, %v77_v0  ;;  %v2761_v11 = vpack.c.bf16 %v83_v5, %v79_v4  ;;  %v85_v12 = vld [vmem:[%s6049_s1 + $0x180] sm:$0xff] }
  0x12   :  { %2354 = vmatpush1.bf16.msra.mxu0 %v2353_v50  ;;  %v90_v7 = vld [vmem:[%s6049_s1 + $0x1a8] sm:$0xff]  ;;  %v92_v9 = vld [vmem:[%s6049_s1 + $0x1b8] sm:$0xff]  ;;  %v89_v13 = vld [vmem:[%s6049_s1 + $0x1a0] sm:$0xff] }
  0x13   :  { %2754 = vmatpush1.bf16.msra.mxu1 %v2753_v51  ;;  %2356 = vmatprep.subr.bf16.mxu0 %v2355_v54  ;;  %v2363_v14 = vpack.c.bf16 %v90_v7, %v86_v6  ;;  %v2763_v15 = vpack.c.bf16 %v92_v9, %v88_v8  ;;  %v87_v16 = vld [vmem:[%s6049_s1 + $0x190] sm:$0xff]  ;;  %v94_v18 = vld [vmem:[%s6049_s1 + $0x1c8] sm:$0xff]  ;;  %v96_v20 = vld [vmem:[%s6049_s1 + $0x1d8] sm:$0xff]  ;;  %v2365_v22 = vpack.c.bf16 %v89_v13, %v85_v12  ;;  %v881_v7 = vunpack.c.0.s8 %v880_v57 }
  0x14   :  { %2756 = vmatprep.subr.bf16.mxu1 %v2755_v55  ;;  %v91_v17 = vld [vmem:[%s6049_s1 + $0x1b0] sm:$0xff]  ;;  %v98_v19 = vld [vmem:[%s6049_s1 + $0x1e8] sm:$0xff]  ;;  %v100_v21 = vld [vmem:[%s6049_s1 + $0x1f8] sm:$0xff]  ;;  %v839_v55 = vlaneseq }
  0x15   :  { %v2765_v23 = vpack.c.bf16 %v91_v17, %v87_v16  ;;  %v93_v24 = vld [vmem:[%s6049_s1 + $0x1c0] sm:$0xff]  ;;  %v2367_v26 = vpack.c.bf16 %v98_v19, %v94_v18  ;;  %v2767_v27 = vpack.c.bf16 %v100_v21, %v96_v20  ;;  %v95_v28 = vld [vmem:[%s6049_s1 + $0x1d0] sm:$0xff]  ;;  %v102_v30 = vld [vmem:[%s6049_s1 + $0x208] sm:$0xff] }
  0x16   :  { %2358 = vmatpush1.bf16.msra.mxu0 %v2357_v62  ;;  %v97_v25 = vld [vmem:[%s6049_s1 + $0x1e0] sm:$0xff]  ;;  %v99_v29 = vld [vmem:[%s6049_s1 + $0x1f0] sm:$0xff]  ;;  %v106_v31 = vld [vmem:[%s6049_s1 + $0x228] sm:$0xff]  ;;  %v3590_v6 = vshrl.u32 %v839_v55, 7 }
  0x17   :  { %2758 = vmatpush1.bf16.msra.mxu1 %v2757_v63  ;;  %2360 = vmatprep.subr.bf16.mxu0 %v2359_v2  ;;  %v104_v32 = vld [vmem:[%s6049_s1 + $0x218] sm:$0xff]  ;;  %v2369_v34 = vpack.c.bf16 %v97_v25, %v93_v24  ;;  %v2769_v35 = vpack.c.bf16 %v99_v29, %v95_v28  ;;  %v101_v36 = vld [vmem:[%s6049_s1 + $0x200] sm:$0xff]  ;;  %v2371_v38 = vpack.c.bf16 %v106_v31, %v102_v30  ;;  %v103_v40 = vld [vmem:[%s6049_s1 + $0x210] sm:$0xff] }
  0x18   :  { %2760 = vmatprep.subr.bf16.mxu1 %v2759_v3  ;;  %v108_v33 = vld [vmem:[%s6049_s1 + $0x238] sm:$0xff]  ;;  %v105_v37 = vld [vmem:[%s6049_s1 + $0x220] sm:$0xff]  ;;  %v107_v41 = vld [vmem:[%s6049_s1 + $0x230] sm:$0xff] }
  0x19   :  { %v2771_v39 = vpack.c.bf16 %v108_v33, %v104_v32  ;;  %v110_v42 = vld [vmem:[%s6049_s1 + $0x248] sm:$0xff]  ;;  %v112_v44 = vld [vmem:[%s6049_s1 + $0x258] sm:$0xff]  ;;  %v2373_v46 = vpack.c.bf16 %v105_v37, %v101_v36  ;;  %v2773_v47 = vpack.c.bf16 %v107_v41, %v103_v40  ;;  %v109_v48 = vld [vmem:[%s6049_s1 + $0x240] sm:$0xff] }
  0x1a   :  { %2362 = vmatpush1.bf16.msra.mxu0 %v2361_v10  ;;  %v114_v43 = vld [vmem:[%s6049_s1 + $0x268] sm:$0xff]  ;;  %v116_v45 = vld [vmem:[%s6049_s1 + $0x278] sm:$0xff]  ;;  %v113_v49 = vld [vmem:[%s6049_s1 + $0x260] sm:$0xff] }
  0x1b   :  { %2762 = vmatpush1.bf16.msra.mxu1 %v2761_v11  ;;  %2364 = vmatprep.subr.bf16.mxu0 %v2363_v14  ;;  %v2375_v50 = vpack.c.bf16 %v114_v43, %v110_v42  ;;  %v2775_v51 = vpack.c.bf16 %v116_v45, %v112_v44  ;;  %v111_v52 = vld [vmem:[%s6049_s1 + $0x250] sm:$0xff]  ;;  %v118_v54 = vld [vmem:[%s6049_s1 + $0x288] sm:$0xff]  ;;  %v120_v59 = vld [vmem:[%s6049_s1 + $0x298] sm:$0xff]  ;;  %v2377_v61 = vpack.c.bf16 %v113_v49, %v109_v48 }
  0x1c   :  { %2764 = vmatprep.subr.bf16.mxu1 %v2763_v15  ;;  %v115_v53 = vld [vmem:[%s6049_s1 + $0x270] sm:$0xff]  ;;  %v122_v58 = vld [vmem:[%s6049_s1 + $0x2a8] sm:$0xff]  ;;  %v124_v60 = vld [vmem:[%s6049_s1 + $0x2b8] sm:$0xff] }
  0x1d   :  { %v2777_v62 = vpack.c.bf16 %v115_v53, %v111_v52  ;;  %v117_v63 = vld [vmem:[%s6049_s1 + $0x280] sm:$0xff]  ;;  %v2379_v1 = vpack.c.bf16 %v122_v58, %v118_v54  ;;  %v2779_v2 = vpack.c.bf16 %v124_v60, %v120_v59  ;;  %v119_v3 = vld [vmem:[%s6049_s1 + $0x290] sm:$0xff]  ;;  %v126_v5 = vld [vmem:[%s6049_s1 + $0x2c8] sm:$0xff] }
  0x1e   :  { %2366 = vmatpush1.bf16.msra.mxu0 %v2365_v22  ;;  %v121_v0 = vld [vmem:[%s6049_s1 + $0x2a0] sm:$0xff]  ;;  %v123_v4 = vld [vmem:[%s6049_s1 + $0x2b0] sm:$0xff]  ;;  %v130_v8 = vld [vmem:[%s6049_s1 + $0x2e8] sm:$0xff] }
  0x1f   :  { %2766 = vmatpush1.bf16.msra.mxu1 %v2765_v23  ;;  %2368 = vmatprep.subr.bf16.mxu0 %v2367_v26  ;;  %v128_v9 = vld [vmem:[%s6049_s1 + $0x2d8] sm:$0xff]  ;;  %v125_v11 = vld [vmem:[%s6049_s1 + $0x2c0] sm:$0xff]  ;;  %v2381_v13 = vpack.c.bf16 %v121_v0, %v117_v63  ;;  %v2781_v14 = vpack.c.bf16 %v123_v4, %v119_v3  ;;  %v127_v15 = vld [vmem:[%s6049_s1 + $0x2d0] sm:$0xff]  ;;  %v2383_v18 = vpack.c.bf16 %v130_v8, %v126_v5 }
  0x20   :  { %2768 = vmatprep.subr.bf16.mxu1 %v2767_v27  ;;  %v132_v10 = vld [vmem:[%s6049_s1 + $0x2f8] sm:$0xff]  ;;  %v129_v12 = vld [vmem:[%s6049_s1 + $0x2e0] sm:$0xff]  ;;  %v131_v16 = vld [vmem:[%s6049_s1 + $0x2f0] sm:$0xff]  ;;  %v3626_v23 = vsub.s32 %v881_v7, %v3590_v6 }
  0x21   :  { %v134_v17 = vld [vmem:[%s6049_s1 + $0x308] sm:$0xff]  ;;  %v2783_v19 = vpack.c.bf16 %v132_v10, %v128_v9  ;;  %v136_v21 = vld [vmem:[%s6049_s1 + $0x318] sm:$0xff]  ;;  %v2385_v25 = vpack.c.bf16 %v129_v12, %v125_v11  ;;  %v2785_v26 = vpack.c.bf16 %v131_v16, %v127_v15  ;;  %v133_v27 = vld [vmem:[%s6049_s1 + $0x300] sm:$0xff] }
  0x22   :  { %2370 = vmatpush1.bf16.msra.mxu0 %v2369_v34  ;;  %v138_v20 = vld [vmem:[%s6049_s1 + $0x328] sm:$0xff]  ;;  %v140_v22 = vld [vmem:[%s6049_s1 + $0x338] sm:$0xff]  ;;  %v137_v28 = vld [vmem:[%s6049_s1 + $0x320] sm:$0xff] }
  0x23   :  { %2770 = vmatpush1.bf16.msra.mxu1 %v2769_v35  ;;  %2372 = vmatprep.subr.bf16.mxu0 %v2371_v38  ;;  %v3236_v24 = vld [vmem:[%s6048_s0] ss:$26 sps:$4 sm:$0xff]   ;;  %v3239_v29 = vld [vmem:[%s6048_s0 + $0x34] ss:$26 sps:$4 sm:$0xff]   ;;  %v2387_v30 = vpack.c.bf16 %v138_v20, %v134_v17  ;;  %v2787_v31 = vpack.c.bf16 %v140_v22, %v136_v21  ;;  %v2389_v40 = vpack.c.bf16 %v137_v28, %v133_v27 }
  0x24   :  { %2772 = vmatprep.subr.bf16.mxu1 %v2771_v39  ;;  %v135_v32 = vld [vmem:[%s6049_s1 + $0x310] sm:$0xff]  ;;  %v142_v34 = vld [vmem:[%s6049_s1 + $0x348] sm:$0xff]  ;;  %v3650_v35 = vrot.slane %v3236_v24, %v3626_v23  ;;  %v144_v37 = vld [vmem:[%s6049_s1 + $0x358] sm:$0xff]  ;;  %v3662_v39 = vrot.slane %v3239_v29, %v3626_v23 }
  0x25   :  { %v139_v33 = vld [vmem:[%s6049_s1 + $0x330] sm:$0xff]  ;;  %v146_v36 = vld [vmem:[%s6049_s1 + $0x368] sm:$0xff]  ;;  %v148_v38 = vld [vmem:[%s6049_s1 + $0x378] sm:$0xff] }
  0x26   :  { %2374 = vmatpush1.bf16.msra.mxu0 %v2373_v46  ;;  %v2789_v41 = vpack.c.bf16 %v139_v33, %v135_v32  ;;  %v141_v42 = vld [vmem:[%s6049_s1 + $0x340] sm:$0xff]  ;;  %v908_v44 = vcombine.high %v3650_v35, %v3662_v39  ;;  %v2391_v45 = vpack.c.bf16 %v146_v36, %v142_v34  ;;  %v2791_v46 = vpack.c.bf16 %v148_v38, %v144_v37  ;;  %v147_v48 = vld [vmem:[%s6049_s1 + $0x370] sm:$0xff]  ;;  %v150_v49 = vld [vmem:[%s6049_s1 + $0x388] sm:$0xff] }
  0x27   :  { %2774 = vmatpush1.bf16.msra.mxu1 %v2773_v47  ;;  %2376 = vmatprep.subr.bf16.mxu0 %v2375_v50  ;;  %v145_v43 = vld [vmem:[%s6049_s1 + $0x360] sm:$0xff]  ;;  %v143_v47 = vld [vmem:[%s6049_s1 + $0x350] sm:$0xff]  ;;  %v154_v50 = vld [vmem:[%s6049_s1 + $0x3a8] sm:$0xff] }
  0x28   :  { %2776 = vmatprep.subr.bf16.mxu1 %v2775_v51  ;;  %v152_v51 = vld [vmem:[%s6049_s1 + $0x398] sm:$0xff]  ;;  %1079 = vmatprep.mubr.f32.mxu0 %v908_v44  ;;  %v2393_v53 = vpack.c.bf16 %v145_v43, %v141_v42  ;;  %v2793_v54 = vpack.c.bf16 %v147_v48, %v143_v47  ;;  %v149_v55 = vld [vmem:[%s6049_s1 + $0x380] sm:$0xff]  ;;  %v2395_v57 = vpack.c.bf16 %v154_v50, %v150_v49  ;;  %v151_v59 = vld [vmem:[%s6049_s1 + $0x390] sm:$0xff] }
  0x29   :  { %v156_v52 = vld [vmem:[%s6049_s1 + $0x3b8] sm:$0xff]  ;;  %1576 = vmatprep.mubr.f32.mxu1 %v908_v44  ;;  %v153_v56 = vld [vmem:[%s6049_s1 + $0x3a0] sm:$0xff]  ;;  %v155_v60 = vld [vmem:[%s6049_s1 + $0x3b0] sm:$0xff] }
  0x2a   :  { %2378 = vmatpush1.bf16.msra.mxu0 %v2377_v61  ;;  %v2795_v58 = vpack.c.bf16 %v156_v52, %v152_v51  ;;  %v158_v61 = vld [vmem:[%s6049_s1 + $0x3c8] sm:$0xff]  ;;  %v160_v63 = vld [vmem:[%s6049_s1 + $0x3d8] sm:$0xff]  ;;  %v2797_v3 = vpack.c.bf16 %v155_v60, %v151_v59  ;;  %v161_v4 = vld [vmem:[%s6049_s1 + $0x3e0] sm:$0xff] }
  0x2b   :  { %2778 = vmatpush1.bf16.msra.mxu1 %v2777_v62  ;;  %2380 = vmatprep.subr.bf16.mxu0 %v2379_v1  ;;  %v162_v62 = vld [vmem:[%s6049_s1 + $0x3e8] sm:$0xff]  ;;  %v164_v0 = vld [vmem:[%s6049_s1 + $0x3f8] sm:$0xff]  ;;  %v157_v1 = vld [vmem:[%s6049_s1 + $0x3c0] sm:$0xff] }
  0x2c   :  { %2780 = vmatprep.subr.bf16.mxu1 %v2779_v2  ;;  %v2397_v2 = vpack.c.bf16 %v153_v56, %v149_v55  ;;  %v159_v5 = vld [vmem:[%s6049_s1 + $0x3d0] sm:$0xff]  ;;  %v2399_v8 = vpack.c.bf16 %v162_v62, %v158_v61  ;;  %v2799_v9 = vpack.c.bf16 %v164_v0, %v160_v63  ;;  %v3238_v10 = vld [vmem:[%s6048_s0 + $0x4] ss:$26 sps:$4 sm:$0xff]   ;;  %v166_v12 = vld [vmem:[%s6049_s1 + $0x408] sm:$0xff]  ;;  %v2401_v16 = vpack.c.bf16 %v161_v4, %v157_v1 }
  0x2d   :  { %v163_v7 = vld [vmem:[%s6049_s1 + $0x3f0] sm:$0xff]  ;;  %v172_v15 = vld [vmem:[%s6049_s1 + $0x438] sm:$0xff]  ;;  %v3769_v29 = vrot.slane %v3238_v10, %v3626_v23  ;;  %v173_v34 = vld [vmem:[%s6049_s1 + $0x440] sm:$0xff] }
  0x2e   :  { %2382 = vmatpush1.bf16.msra.mxu0 %v2381_v13  ;;  %v3241_v11 = vld [vmem:[%s6048_s0 + $0x38] ss:$26 sps:$4 sm:$0xff]   ;;  %v170_v13 = vld [vmem:[%s6049_s1 + $0x428] sm:$0xff]  ;;  %v2801_v17 = vpack.c.bf16 %v163_v7, %v159_v5  ;;  %v177_v36 = vld [vmem:[%s6049_s1 + $0x460] sm:$0xff] }
  0x2f   :  { %2782 = vmatpush1.bf16.msra.mxu1 %v2781_v14  ;;  %2384 = vmatprep.subr.bf16.mxu0 %v2383_v18  ;;  %v168_v14 = vld [vmem:[%s6049_s1 + $0x418] sm:$0xff]  ;;  %v165_v18 = vld [vmem:[%s6049_s1 + $0x400] sm:$0xff]  ;;  %v2403_v20 = vpack.c.bf16 %v170_v13, %v166_v12  ;;  %v167_v22 = vld [vmem:[%s6049_s1 + $0x410] sm:$0xff] }
  0x30   :  { %2784 = vmatprep.subr.bf16.mxu1 %v2783_v19  ;;  %v169_v19 = vld [vmem:[%s6049_s1 + $0x420] sm:$0xff]  ;;  %v2803_v21 = vpack.c.bf16 %v172_v15, %v168_v14  ;;  %v171_v24 = vld [vmem:[%s6049_s1 + $0x430] sm:$0xff]  ;;  %v176_v27 = vld [vmem:[%s6049_s1 + $0x458] sm:$0xff] }
  0x31   :  { %v180_v28 = vld [vmem:[%s6049_s1 + $0x478] sm:$0xff]  ;;  %v2405_v32 = vpack.c.bf16 %v169_v19, %v165_v18  ;;  %v2805_v33 = vpack.c.bf16 %v171_v24, %v167_v22  ;;  %v181_v47 = vld [vmem:[%s6049_s1 + $0x480] sm:$0xff]  ;;  %v183_v51 = vld [vmem:[%s6049_s1 + $0x490] sm:$0xff] }
  0x32   :  { %2386 = vmatpush1.bf16.msra.mxu0 %v2385_v25  ;;  %v174_v25 = vld [vmem:[%s6049_s1 + $0x448] sm:$0xff]  ;;  %v2807_v38 = vpack.c.bf16 %v180_v28, %v176_v27  ;;  %v184_v42 = vld [vmem:[%s6049_s1 + $0x498] sm:$0xff]  ;;  %v185_v48 = vld [vmem:[%s6049_s1 + $0x4a0] sm:$0xff] }
  0x33   :  { %2786 = vmatpush1.bf16.msra.mxu1 %v2785_v26  ;;  %2388 = vmatprep.subr.bf16.mxu0 %v2387_v30  ;;  %v178_v26 = vld [vmem:[%s6049_s1 + $0x468] sm:$0xff]  ;;  %v3772_v30 = vrot.slane %v3241_v11, %v3626_v23  ;;  %v188_v43 = vld [vmem:[%s6049_s1 + $0x4b8] sm:$0xff]  ;;  %v187_v52 = vld [vmem:[%s6049_s1 + $0x4b0] sm:$0xff] }
  0x34   :  { %2788 = vmatprep.subr.bf16.mxu1 %v2787_v31  ;;  %v907_v31 = vcombine.low %v3650_v35, %v3662_v39  ;;  %v2407_v37 = vpack.c.bf16 %v178_v26, %v174_v25  ;;  %v175_v35 = vld [vmem:[%s6049_s1 + $0x450] sm:$0xff]  ;;  %v2811_v50 = vpack.c.bf16 %v188_v43, %v184_v42  ;;  %v192_v55 = vld [vmem:[%s6049_s1 + $0x4d8] sm:$0xff]  ;;  %v189_v59 = vld [vmem:[%s6049_s1 + $0x4c0] sm:$0xff] }
  0x35   :  { %v179_v39 = vld [vmem:[%s6049_s1 + $0x470] sm:$0xff]  ;;  %v910_v44 = vcombine.high %v3769_v29, %v3772_v30  ;;  %v196_v56 = vld [vmem:[%s6049_s1 + $0x4f8] sm:$0xff]  ;;  %v193_v60 = vld [vmem:[%s6049_s1 + $0x4e0] sm:$0xff] }
  0x36   :  { %2390 = vmatpush1.bf16.msra.mxu0 %v2389_v40  ;;  %v182_v40 = vld [vmem:[%s6049_s1 + $0x488] sm:$0xff]  ;;  %v2815_v62 = vpack.c.bf16 %v196_v56, %v192_v55  ;;  %v191_v63 = vld [vmem:[%s6049_s1 + $0x4d0] sm:$0xff]  ;;  %v204_v4 = vld [vmem:[%s6049_s1 + $0x538] sm:$0xff]  ;;  %v2417_v5 = vpack.c.bf16 %v193_v60, %v189_v59 }
  0x37   :  { %2790 = vmatpush1.bf16.msra.mxu1 %v2789_v41  ;;  %2392 = vmatprep.subr.bf16.mxu0 %v2391_v45  ;;  %v186_v41 = vld [vmem:[%s6049_s1 + $0x4a8] sm:$0xff]  ;;  %v2409_v45 = vpack.c.bf16 %v177_v36, %v173_v34  ;;  %v195_v0 = vld [vmem:[%s6049_s1 + $0x4f0] sm:$0xff]  ;;  %v213_v36 = vld [vmem:[%s6049_s1 + $0x580] sm:$0xff] }
  0x38   :  { %2792 = vmatprep.subr.bf16.mxu1 %v2791_v46  ;;  %v2809_v46 = vpack.c.bf16 %v179_v39, %v175_v35  ;;  %v2411_v49 = vpack.c.bf16 %v186_v41, %v182_v40  ;;  %v198_v1 = vld [vmem:[%s6049_s1 + $0x508] sm:$0xff]  ;;  %v2817_v7 = vpack.c.bf16 %v195_v0, %v191_v63  ;;  %v199_v12 = vld [vmem:[%s6049_s1 + $0x510] sm:$0xff]  ;;  %v224_v43 = vld [vmem:[%s6049_s1 + $0x5d8] sm:$0xff] }
  0x39   :  { %v203_v13 = vld [vmem:[%s6049_s1 + $0x530] sm:$0xff]  ;;  %v206_v14 = vld [vmem:[%s6049_s1 + $0x548] sm:$0xff]  ;;  %v232_v55 = vld [vmem:[%s6049_s1 + $0x618] sm:$0xff] }
  0x3a   :  { %2394 = vmatpush1.bf16.msra.mxu0 %v2393_v53  ;;  %v190_v53 = vld [vmem:[%s6049_s1 + $0x4c8] sm:$0xff]  ;;  %v2821_v19 = vpack.c.bf16 %v203_v13, %v199_v12  ;;  %v207_v25 = vld [vmem:[%s6049_s1 + $0x550] sm:$0xff]  ;;  %v236_v56 = vld [vmem:[%s6049_s1 + $0x638] sm:$0xff] }
  0x3b   :  { %2794 = vmatpush1.bf16.msra.mxu1 %v2793_v54  ;;  %2396 = vmatprep.subr.bf16.mxu0 %v2395_v57  ;;  %v194_v54 = vld [vmem:[%s6049_s1 + $0x4e8] sm:$0xff]  ;;  %v2413_v57 = vpack.c.bf16 %v185_v48, %v181_v47  ;;  %v211_v26 = vld [vmem:[%s6049_s1 + $0x570] sm:$0xff]  ;;  %v221_v47 = vld [vmem:[%s6049_s1 + $0x5c0] sm:$0xff] }
  0x3c   :  { %2796 = vmatprep.subr.bf16.mxu1 %v2795_v58  ;;  %v2813_v58 = vpack.c.bf16 %v187_v52, %v183_v51  ;;  %v2415_v61 = vpack.c.bf16 %v194_v54, %v190_v53  ;;  %v210_v15 = vld [vmem:[%s6049_s1 + $0x568] sm:$0xff]  ;;  %v2825_v34 = vpack.c.bf16 %v211_v26, %v207_v25  ;;  %v215_v39 = vld [vmem:[%s6049_s1 + $0x590] sm:$0xff]  ;;  %v225_v48 = vld [vmem:[%s6049_s1 + $0x5e0] sm:$0xff] }
  0x3d   :  { %v2423_v22 = vpack.c.bf16 %v210_v15, %v206_v14  ;;  %v214_v27 = vld [vmem:[%s6049_s1 + $0x588] sm:$0xff]  ;;  %v219_v40 = vld [vmem:[%s6049_s1 + $0x5b0] sm:$0xff]  ;;  %v229_v59 = vld [vmem:[%s6049_s1 + $0x600] sm:$0xff] }
  0x3e   :  { %2398 = vmatpush1.bf16.msra.mxu0 %v2397_v2  ;;  %v202_v2 = vld [vmem:[%s6049_s1 + $0x528] sm:$0xff]  ;;  %v223_v51 = vld [vmem:[%s6049_s1 + $0x5d0] sm:$0xff]  ;;  %v233_v60 = vld [vmem:[%s6049_s1 + $0x620] sm:$0xff] }
  0x3f   :  { %2798 = vmatpush1.bf16.msra.mxu1 %v2797_v3  ;;  %2400 = vmatprep.subr.bf16.mxu0 %v2399_v8  ;;  %v200_v3 = vld [vmem:[%s6049_s1 + $0x518] sm:$0xff]  ;;  %v197_v8 = vld [vmem:[%s6049_s1 + $0x500] sm:$0xff]  ;;  %v2419_v10 = vpack.c.bf16 %v202_v2, %v198_v1  ;;  %v218_v28 = vld [vmem:[%s6049_s1 + $0x5a8] sm:$0xff] }
  0x40   :  { %2800 = vmatprep.subr.bf16.mxu1 %v2799_v9  ;;  %v201_v9 = vld [vmem:[%s6049_s1 + $0x520] sm:$0xff]  ;;  %v2819_v11 = vpack.c.bf16 %v204_v4, %v200_v3  ;;  %v222_v41 = vld [vmem:[%s6049_s1 + $0x5c8] sm:$0xff]  ;;  %v227_v52 = vld [vmem:[%s6049_s1 + $0x5f0] sm:$0xff] }
  0x41   :  { %v2421_v18 = vpack.c.bf16 %v201_v9, %v197_v8  ;;  %v226_v42 = vld [vmem:[%s6049_s1 + $0x5e8] sm:$0xff]  ;;  %v231_v63 = vld [vmem:[%s6049_s1 + $0x610] sm:$0xff]  ;;  %v240_v3 = vld [vmem:[%s6049_s1 + $0x658] sm:$0xff] }
  0x42   :  { %2402 = vmatpush1.bf16.msra.mxu0 %v2401_v16  ;;  %v208_v16 = vld [vmem:[%s6049_s1 + $0x558] sm:$0xff]  ;;  %v230_v53 = vld [vmem:[%s6049_s1 + $0x608] sm:$0xff]  ;;  %v235_v0 = vld [vmem:[%s6049_s1 + $0x630] sm:$0xff] }
  0x43   :  { %2802 = vmatpush1.bf16.msra.mxu1 %v2801_v17  ;;  %2404 = vmatprep.subr.bf16.mxu0 %v2403_v20  ;;  %v212_v17 = vld [vmem:[%s6049_s1 + $0x578] sm:$0xff]  ;;  %v205_v20 = vld [vmem:[%s6049_s1 + $0x540] sm:$0xff]  ;;  %v234_v54 = vld [vmem:[%s6049_s1 + $0x628] sm:$0xff] }
  0x44   :  { %2804 = vmatprep.subr.bf16.mxu1 %v2803_v21  ;;  %v209_v21 = vld [vmem:[%s6049_s1 + $0x560] sm:$0xff]  ;;  %v2823_v24 = vpack.c.bf16 %v212_v17, %v208_v16  ;;  %v238_v1 = vld [vmem:[%s6049_s1 + $0x648] sm:$0xff]  ;;  %v244_v4 = vld [vmem:[%s6049_s1 + $0x678] sm:$0xff] }
  0x45   :  { %1080 = vmatmul.mubr.f32.vlgmr.msra.gmra.mrb[0].mxu0 %v907_v31  ;;  %v242_v2 = vld [vmem:[%s6049_s1 + $0x668] sm:$0xff]  ;;  %v237_v8 = vld [vmem:[%s6049_s1 + $0x640] sm:$0xff]  ;;  %v239_v12 = vld [vmem:[%s6049_s1 + $0x650] sm:$0xff] }
  0x46   :  { %1577 = vmatmul.mubr.f32.vlgmr.msra.gmra.mrb[0].mxu1 %v907_v31  ;;  %2406 = vmatpush1.bf16.msra.mxu0 %v2405_v32  ;;  %v216_v31 = vld [vmem:[%s6049_s1 + $0x598] sm:$0xff]  ;;  %v241_v9 = vld [vmem:[%s6049_s1 + $0x660] sm:$0xff]  ;;  %v243_v13 = vld [vmem:[%s6049_s1 + $0x670] sm:$0xff] }
  0x47   :  { %2806 = vmatpush1.bf16.msra.mxu1 %v2805_v33  ;;  %2408 = vmatprep.subr.bf16.mxu0 %v2407_v37  ;;  %v220_v32 = vld [vmem:[%s6049_s1 + $0x5b8] sm:$0xff]  ;;  %v2425_v33 = vpack.c.bf16 %v209_v21, %v205_v20  ;;  %v217_v37 = vld [vmem:[%s6049_s1 + $0x5a0] sm:$0xff]  ;;  %v246_v14 = vld [vmem:[%s6049_s1 + $0x688] sm:$0xff] }
  0x48   :  { %2808 = vmatprep.subr.bf16.mxu1 %v2807_v38  ;;  %1150 = vmatprep.mubr.f32.mxu0 %v910_v44  ;;  %v2427_v38 = vpack.c.bf16 %v218_v28, %v214_v27  ;;  %v2827_v35 = vpack.c.bf16 %v220_v32, %v216_v31  ;;  %v250_v15 = vld [vmem:[%s6049_s1 + $0x6a8] sm:$0xff]  ;;  %v248_v16 = vld [vmem:[%s6049_s1 + $0x698] sm:$0xff]  ;;  %v245_v20 = vld [vmem:[%s6049_s1 + $0x680] sm:$0xff] }
  0x49   :  { %1647 = vmatprep.mubr.f32.mxu1 %v910_v44  ;;  %v228_v44 = vld [vmem:[%s6049_s1 + $0x5f8] sm:$0xff]  ;;  %v249_v21 = vld [vmem:[%s6049_s1 + $0x6a0] sm:$0xff]  ;;  %v247_v25 = vld [vmem:[%s6049_s1 + $0x690] sm:$0xff] }
  0x4a   :  { %2410 = vmatpush1.bf16.msra.mxu0 %v2409_v45  ;;  %v2429_v45 = vpack.c.bf16 %v217_v37, %v213_v36  ;;  %v252_v17 = vld [vmem:[%s6049_s1 + $0x6b8] sm:$0xff]  ;;  %v251_v26 = vld [vmem:[%s6049_s1 + $0x6b0] sm:$0xff]  ;;  %v254_v27 = vld [vmem:[%s6049_s1 + $0x6c8] sm:$0xff] }
  0x4b   :  { %2810 = vmatpush1.bf16.msra.mxu1 %v2809_v46  ;;  %2412 = vmatprep.subr.bf16.mxu0 %v2411_v49  ;;  %v2829_v46 = vpack.c.bf16 %v219_v40, %v215_v39  ;;  %v2431_v49 = vpack.c.bf16 %v226_v42, %v222_v41  ;;  %v258_v28 = vld [vmem:[%s6049_s1 + $0x6e8] sm:$0xff]  ;;  %v256_v31 = vld [vmem:[%s6049_s1 + $0x6d8] sm:$0xff]  ;;  %v253_v36 = vld [vmem:[%s6049_s1 + $0x6c0] sm:$0xff] }
  0x4c   :  { %2812 = vmatprep.subr.bf16.mxu1 %v2811_v50  ;;  %v2831_v50 = vpack.c.bf16 %v228_v44, %v224_v43  ;;  %v260_v32 = vld [vmem:[%s6049_s1 + $0x6f8] sm:$0xff]  ;;  %v257_v37 = vld [vmem:[%s6049_s1 + $0x6e0] sm:$0xff]  ;;  %v255_v39 = vld [vmem:[%s6049_s1 + $0x6d0] sm:$0xff] }
  0x4d   :  { %v259_v40 = vld [vmem:[%s6049_s1 + $0x6f0] sm:$0xff]  ;;  %v262_v41 = vld [vmem:[%s6049_s1 + $0x708] sm:$0xff]  ;;  %v264_v43 = vld [vmem:[%s6049_s1 + $0x718] sm:$0xff] }
  0x4e   :  { %2414 = vmatpush1.bf16.msra.mxu0 %v2413_v57  ;;  %v2433_v57 = vpack.c.bf16 %v225_v48, %v221_v47  ;;  %v266_v42 = vld [vmem:[%s6049_s1 + $0x728] sm:$0xff]  ;;  %v268_v44 = vld [vmem:[%s6049_s1 + $0x738] sm:$0xff]  ;;  %v261_v47 = vld [vmem:[%s6049_s1 + $0x700] sm:$0xff] }
  0x4f   :  { %2814 = vmatpush1.bf16.msra.mxu1 %v2813_v58  ;;  %2416 = vmatprep.subr.bf16.mxu0 %v2415_v61  ;;  %v2833_v58 = vpack.c.bf16 %v227_v52, %v223_v51  ;;  %v2435_v61 = vpack.c.bf16 %v234_v54, %v230_v53  ;;  %v265_v48 = vld [vmem:[%s6049_s1 + $0x720] sm:$0xff]  ;;  %v263_v51 = vld [vmem:[%s6049_s1 + $0x710] sm:$0xff]  ;;  %v270_v53 = vld [vmem:[%s6049_s1 + $0x748] sm:$0xff] }
  0x50   :  { %2816 = vmatprep.subr.bf16.mxu1 %v2815_v62  ;;  %v2835_v62 = vpack.c.bf16 %v236_v56, %v232_v55  ;;  %v267_v52 = vld [vmem:[%s6049_s1 + $0x730] sm:$0xff]  ;;  %v274_v54 = vld [vmem:[%s6049_s1 + $0x768] sm:$0xff]  ;;  %v272_v55 = vld [vmem:[%s6049_s1 + $0x758] sm:$0xff] }
  0x51   :  { %v276_v56 = vld [vmem:[%s6049_s1 + $0x778] sm:$0xff] }
  0x52   :  { %2418 = vmatpush1.bf16.msra.mxu0 %v2417_v5  ;;  %v2437_v5 = vpack.c.bf16 %v233_v60, %v229_v59  ;;  %v269_v59 = vld [vmem:[%s6049_s1 + $0x740] sm:$0xff] }
  0x53   :  { %2818 = vmatpush1.bf16.msra.mxu1 %v2817_v7  ;;  %2420 = vmatprep.subr.bf16.mxu0 %v2419_v10  ;;  %v2837_v7 = vpack.c.bf16 %v235_v0, %v231_v63  ;;  %v2439_v10 = vpack.c.bf16 %v242_v2, %v238_v1  ;;  %v273_v60 = vld [vmem:[%s6049_s1 + $0x760] sm:$0xff]  ;;  %v271_v63 = vld [vmem:[%s6049_s1 + $0x750] sm:$0xff]  ;;  %v278_v1 = vld [vmem:[%s6049_s1 + $0x788] sm:$0xff] }
  0x54   :  { %2820 = vmatprep.subr.bf16.mxu1 %v2819_v11  ;;  %v2839_v11 = vpack.c.bf16 %v244_v4, %v240_v3  ;;  %v275_v0 = vld [vmem:[%s6049_s1 + $0x770] sm:$0xff]  ;;  %v282_v2 = vld [vmem:[%s6049_s1 + $0x7a8] sm:$0xff]  ;;  %v280_v3 = vld [vmem:[%s6049_s1 + $0x798] sm:$0xff] }
  0x55   :  { %v284_v4 = vld [vmem:[%s6049_s1 + $0x7b8] sm:$0xff] }
  0x56   :  { %2422 = vmatpush1.bf16.msra.mxu0 %v2421_v18  ;;  %v2441_v18 = vpack.c.bf16 %v241_v9, %v237_v8  ;;  %v277_v8 = vld [vmem:[%s6049_s1 + $0x780] sm:$0xff] }
  0x57   :  { %2822 = vmatpush1.bf16.msra.mxu1 %v2821_v19  ;;  %2424 = vmatprep.subr.bf16.mxu0 %v2423_v22  ;;  %v2841_v19 = vpack.c.bf16 %v243_v13, %v239_v12  ;;  %v2443_v22 = vpack.c.bf16 %v250_v15, %v246_v14  ;;  %v281_v9 = vld [vmem:[%s6049_s1 + $0x7a0] sm:$0xff]  ;;  %v279_v12 = vld [vmem:[%s6049_s1 + $0x790] sm:$0xff]  ;;  %v286_v14 = vld [vmem:[%s6049_s1 + $0x7c8] sm:$0xff] }
  0x58   :  { %2824 = vmatprep.subr.bf16.mxu1 %v2823_v24  ;;  %v2843_v24 = vpack.c.bf16 %v252_v17, %v248_v16  ;;  %v283_v13 = vld [vmem:[%s6049_s1 + $0x7b0] sm:$0xff]  ;;  %v290_v15 = vld [vmem:[%s6049_s1 + $0x7e8] sm:$0xff]  ;;  %v288_v16 = vld [vmem:[%s6049_s1 + $0x7d8] sm:$0xff] }
  0x59   :  { %v292_v17 = vld [vmem:[%s6049_s1 + $0x7f8] sm:$0xff] }
  0x5a   :  { %2426 = vmatpush1.bf16.msra.mxu0 %v2425_v33  ;;  %v2445_v33 = vpack.c.bf16 %v249_v21, %v245_v20  ;;  %v285_v20 = vld [vmem:[%s6049_s1 + $0x7c0] sm:$0xff] }
  0x5b   :  { %2826 = vmatpush1.bf16.msra.mxu1 %v2825_v34  ;;  %2428 = vmatprep.subr.bf16.mxu0 %v2427_v38  ;;  %v2845_v34 = vpack.c.bf16 %v251_v26, %v247_v25  ;;  %v2447_v38 = vpack.c.bf16 %v258_v28, %v254_v27  ;;  %v289_v21 = vld [vmem:[%s6049_s1 + $0x7e0] sm:$0xff]  ;;  %v287_v25 = vld [vmem:[%s6049_s1 + $0x7d0] sm:$0xff]  ;;  %v294_v27 = vld [vmem:[%s6049_s1 + $0x808] sm:$0xff] }
  0x5c   :  { %2828 = vmatprep.subr.bf16.mxu1 %v2827_v35  ;;  %v2847_v35 = vpack.c.bf16 %v260_v32, %v256_v31  ;;  %v291_v26 = vld [vmem:[%s6049_s1 + $0x7f0] sm:$0xff]  ;;  %v298_v28 = vld [vmem:[%s6049_s1 + $0x828] sm:$0xff]  ;;  %v296_v31 = vld [vmem:[%s6049_s1 + $0x818] sm:$0xff] }
  0x5d   :  { %v300_v32 = vld [vmem:[%s6049_s1 + $0x838] sm:$0xff] }
  0x5e   :  { %2430 = vmatpush1.bf16.msra.mxu0 %v2429_v45  ;;  %v2449_v45 = vpack.c.bf16 %v257_v37, %v253_v36  ;;  %v293_v36 = vld [vmem:[%s6049_s1 + $0x800] sm:$0xff] }
  0x5f   :  { %2830 = vmatpush1.bf16.msra.mxu1 %v2829_v46  ;;  %2432 = vmatprep.subr.bf16.mxu0 %v2431_v49  ;;  %v2849_v46 = vpack.c.bf16 %v259_v40, %v255_v39  ;;  %v2451_v49 = vpack.c.bf16 %v266_v42, %v262_v41  ;;  %v297_v37 = vld [vmem:[%s6049_s1 + $0x820] sm:$0xff]  ;;  %v295_v39 = vld [vmem:[%s6049_s1 + $0x810] sm:$0xff]  ;;  %v302_v41 = vld [vmem:[%s6049_s1 + $0x848] sm:$0xff] }
  0x60   :  { %2832 = vmatprep.subr.bf16.mxu1 %v2831_v50  ;;  %v2851_v50 = vpack.c.bf16 %v268_v44, %v264_v43  ;;  %v299_v40 = vld [vmem:[%s6049_s1 + $0x830] sm:$0xff]  ;;  %v306_v42 = vld [vmem:[%s6049_s1 + $0x868] sm:$0xff]  ;;  %v304_v43 = vld [vmem:[%s6049_s1 + $0x858] sm:$0xff] }
  0x61   :  { %v308_v44 = vld [vmem:[%s6049_s1 + $0x878] sm:$0xff] }
  0x62   :  { %2434 = vmatpush1.bf16.msra.mxu0 %v2433_v57  ;;  %v2453_v57 = vpack.c.bf16 %v265_v48, %v261_v47  ;;  %v305_v47 = vld [vmem:[%s6049_s1 + $0x860] sm:$0xff]  ;;  %v2469_v48 = vpack.c.bf16 %v297_v37, %v293_v36  ;;  %v336_v36 = vld [vmem:[%s6049_s1 + $0x958] sm:$0xff] }
  0x63   :  { %2834 = vmatpush1.bf16.msra.mxu1 %v2833_v58  ;;  %2436 = vmatprep.subr.bf16.mxu0 %v2435_v61  ;;  %v2853_v58 = vpack.c.bf16 %v267_v52, %v263_v51  ;;  %v2455_v61 = vpack.c.bf16 %v274_v54, %v270_v53  ;;  %v2471_v51 = vpack.c.bf16 %v306_v42, %v302_v41  ;;  %v314_v53 = vld [vmem:[%s6049_s1 + $0x8a8] sm:$0xff]  ;;  %v312_v54 = vld [vmem:[%s6049_s1 + $0x898] sm:$0xff] }
  0x64   :  { %2836 = vmatprep.subr.bf16.mxu1 %v2835_v62  ;;  %v2855_v62 = vpack.c.bf16 %v276_v56, %v272_v55  ;;  %v2871_v52 = vpack.c.bf16 %v308_v44, %v304_v43  ;;  %v316_v55 = vld [vmem:[%s6049_s1 + $0x8b8] sm:$0xff]  ;;  %v3242_v56 = vld [vmem:[%s6048_s0 + $0x8] ss:$26 sps:$4 sm:$0xff]   ;;  %v335_v43 = vld [vmem:[%s6049_s1 + $0x950] sm:$0xff] }
  0x65   :  { %v340_v37 = vld [vmem:[%s6049_s1 + $0x978] sm:$0xff]  ;;  %v339_v44 = vld [vmem:[%s6049_s1 + $0x970] sm:$0xff] }
  0x66   :  { %2438 = vmatpush1.bf16.msra.mxu0 %v2437_v5  ;;  %v2457_v5 = vpack.c.bf16 %v273_v60, %v269_v59  ;;  %v2887_v42 = vpack.c.bf16 %v340_v37, %v336_v36  ;;  %v376_v36 = vld [vmem:[%s6049_s1 + $0xa98] sm:$0xff] }
  0x67   :  { %2838 = vmatpush1.bf16.msra.mxu1 %v2837_v7  ;;  %2440 = vmatprep.subr.bf16.mxu0 %v2439_v10  ;;  %v2857_v7 = vpack.c.bf16 %v275_v0, %v271_v63  ;;  %v2459_v10 = vpack.c.bf16 %v282_v2, %v278_v1  ;;  %v2875_v63 = vpack.c.bf16 %v316_v55, %v312_v54  ;;  %v311_v0 = vld [vmem:[%s6049_s1 + $0x890] sm:$0xff]  ;;  %v318_v2 = vld [vmem:[%s6049_s1 + $0x8c8] sm:$0xff]  ;;  %v380_v37 = vld [vmem:[%s6049_s1 + $0xab8] sm:$0xff] }
  0x68   :  { %2840 = vmatprep.subr.bf16.mxu1 %v2839_v11  ;;  %v2859_v11 = vpack.c.bf16 %v284_v4, %v280_v3  ;;  %v315_v1 = vld [vmem:[%s6049_s1 + $0x8b0] sm:$0xff]  ;;  %v4210_v3 = vrot.slane %v3242_v56, %v3626_v23  ;;  %v350_v55 = vld [vmem:[%s6049_s1 + $0x9c8] sm:$0xff] }
  0x69   :  { %v347_v54 = vld [vmem:[%s6049_s1 + $0x9b0] sm:$0xff]  ;;  %v354_v56 = vld [vmem:[%s6049_s1 + $0x9e8] sm:$0xff] }
  0x6a   :  { %2442 = vmatpush1.bf16.msra.mxu0 %v2441_v18  ;;  %v2461_v18 = vpack.c.bf16 %v281_v9, %v277_v8  ;;  %v324_v8 = vld [vmem:[%s6049_s1 + $0x8f8] sm:$0xff] }
  0x6b   :  { %2842 = vmatpush1.bf16.msra.mxu1 %v2841_v19  ;;  %2444 = vmatprep.subr.bf16.mxu0 %v2443_v22  ;;  %v2861_v19 = vpack.c.bf16 %v283_v13, %v279_v12  ;;  %v2463_v22 = vpack.c.bf16 %v290_v15, %v286_v14  ;;  %v317_v12 = vld [vmem:[%s6049_s1 + $0x8c0] sm:$0xff] }
  0x6c   :  { %2844 = vmatprep.subr.bf16.mxu1 %v2843_v24  ;;  %v2863_v24 = vpack.c.bf16 %v292_v17, %v288_v16  ;;  %v321_v13 = vld [vmem:[%s6049_s1 + $0x8e0] sm:$0xff]  ;;  %v319_v16 = vld [vmem:[%s6049_s1 + $0x8d0] sm:$0xff] }
  0x6d   :  { %v323_v17 = vld [vmem:[%s6049_s1 + $0x8f0] sm:$0xff] }
  0x6e   :  { %2446 = vmatpush1.bf16.msra.mxu0 %v2445_v33  ;;  %v2465_v33 = vpack.c.bf16 %v289_v21, %v285_v20  ;;  %v328_v20 = vld [vmem:[%s6049_s1 + $0x918] sm:$0xff] }
  0x6f   :  { %2846 = vmatpush1.bf16.msra.mxu1 %v2845_v34  ;;  %2448 = vmatprep.subr.bf16.mxu0 %v2447_v38  ;;  %v2865_v34 = vpack.c.bf16 %v291_v26, %v287_v25  ;;  %v2467_v38 = vpack.c.bf16 %v298_v28, %v294_v27  ;;  %v332_v21 = vld [vmem:[%s6049_s1 + $0x938] sm:$0xff]  ;;  %v325_v25 = vld [vmem:[%s6049_s1 + $0x900] sm:$0xff] }
  0x70   :  { %2848 = vmatprep.subr.bf16.mxu1 %v2847_v35  ;;  %v2867_v35 = vpack.c.bf16 %v300_v32, %v296_v31  ;;  %v329_v26 = vld [vmem:[%s6049_s1 + $0x920] sm:$0xff]  ;;  %v2883_v28 = vpack.c.bf16 %v332_v21, %v328_v20  ;;  %v327_v31 = vld [vmem:[%s6049_s1 + $0x910] sm:$0xff]  ;;  %v368_v20 = vld [vmem:[%s6049_s1 + $0xa58] sm:$0xff] }
  0x71   :  { %v331_v32 = vld [vmem:[%s6049_s1 + $0x930] sm:$0xff]  ;;  %v372_v21 = vld [vmem:[%s6049_s1 + $0xa78] sm:$0xff] }
  0x72   :  { %2450 = vmatpush1.bf16.msra.mxu0 %v2449_v45  ;;  %v909_v45 = vcombine.low %v3769_v29, %v3772_v30  ;;  %v307_v29 = vld [vmem:[%s6049_s1 + $0x870] sm:$0xff]  ;;  %v310_v30 = vld [vmem:[%s6049_s1 + $0x888] sm:$0xff] }
  0x73   :  { %2850 = vmatpush1.bf16.msra.mxu1 %v2849_v46  ;;  %2452 = vmatprep.subr.bf16.mxu0 %v2451_v49  ;;  %v301_v46 = vld [vmem:[%s6049_s1 + $0x840] sm:$0xff]  ;;  %v2869_v49 = vpack.c.bf16 %v299_v40, %v295_v39  ;;  %v2475_v60 = vpack.c.bf16 %v314_v53, %v310_v30  ;;  %v343_v53 = vld [vmem:[%s6049_s1 + $0x990] sm:$0xff] }
  0x74   :  { %2852 = vmatprep.subr.bf16.mxu1 %v2851_v50  ;;  %v303_v50 = vld [vmem:[%s6049_s1 + $0x850] sm:$0xff]  ;;  %v333_v39 = vld [vmem:[%s6049_s1 + $0x940] sm:$0xff] }
  0x75   :  { %v2873_v59 = vpack.c.bf16 %v307_v29, %v303_v50  ;;  %v337_v40 = vld [vmem:[%s6049_s1 + $0x960] sm:$0xff]  ;;  %v2889_v50 = vpack.c.bf16 %v339_v44, %v335_v43  ;;  %v375_v43 = vld [vmem:[%s6049_s1 + $0xa90] sm:$0xff] }
  0x76   :  { %2454 = vmatpush1.bf16.msra.mxu0 %v2453_v57  ;;  %v3244_v57 = vld [vmem:[%s6048_s0 + $0x3c] ss:$26 sps:$4 sm:$0xff]   ;;  %v341_v29 = vld [vmem:[%s6049_s1 + $0x980] sm:$0xff] }
  0x77   :  { %2854 = vmatpush1.bf16.msra.mxu1 %v2853_v58  ;;  %2456 = vmatprep.subr.bf16.mxu0 %v2455_v61  ;;  %v2473_v58 = vpack.c.bf16 %v305_v47, %v301_v46  ;;  %v309_v61 = vld [vmem:[%s6049_s1 + $0x880] sm:$0xff]  ;;  %v4213_v4 = vrot.slane %v3244_v57, %v3626_v23  ;;  %v346_v46 = vld [vmem:[%s6049_s1 + $0x9a8] sm:$0xff]  ;;  %v344_v47 = vld [vmem:[%s6049_s1 + $0x998] sm:$0xff] }
  0x78   :  { %2856 = vmatprep.subr.bf16.mxu1 %v2855_v62  ;;  %v313_v62 = vld [vmem:[%s6049_s1 + $0x8a0] sm:$0xff]  ;;  %v352_v57 = vld [vmem:[%s6049_s1 + $0x9d8] sm:$0xff]  ;;  %v379_v44 = vld [vmem:[%s6049_s1 + $0xab0] sm:$0xff] }
  0x79   :  { %v944_v9 = vcombine.high %v4210_v3, %v4213_v4  ;;  %v345_v30 = vld [vmem:[%s6049_s1 + $0x9a0] sm:$0xff] }
  0x7a   :  { %2458 = vmatpush1.bf16.msra.mxu0 %v2457_v5  ;;  %v322_v5 = vld [vmem:[%s6049_s1 + $0x8e8] sm:$0xff] }
  0x7b   :  { %2858 = vmatpush1.bf16.msra.mxu1 %v2857_v7  ;;  %2460 = vmatprep.subr.bf16.mxu0 %v2459_v10  ;;  %v320_v7 = vld [vmem:[%s6049_s1 + $0x8d8] sm:$0xff]  ;;  %v2477_v10 = vpack.c.bf16 %v313_v62, %v309_v61  ;;  %v2479_v14 = vpack.c.bf16 %v322_v5, %v318_v2  ;;  %v349_v61 = vld [vmem:[%s6049_s1 + $0x9c0] sm:$0xff]  ;;  %v355_v2 = vld [vmem:[%s6049_s1 + $0x9f0] sm:$0xff] }
  0x7c   :  { %2860 = vmatprep.subr.bf16.mxu1 %v2859_v11  ;;  %v2877_v11 = vpack.c.bf16 %v315_v1, %v311_v0  ;;  %v2879_v15 = vpack.c.bf16 %v324_v8, %v320_v7  ;;  %v353_v62 = vld [vmem:[%s6049_s1 + $0x9e0] sm:$0xff]  ;;  %v351_v1 = vld [vmem:[%s6049_s1 + $0x9d0] sm:$0xff]  ;;  %v358_v5 = vld [vmem:[%s6049_s1 + $0xa08] sm:$0xff] }
  0x7d   :  { %v362_v7 = vld [vmem:[%s6049_s1 + $0xa28] sm:$0xff]  ;;  %v360_v8 = vld [vmem:[%s6049_s1 + $0xa18] sm:$0xff] }
  0x7e   :  { %2462 = vmatpush1.bf16.msra.mxu0 %v2461_v18  ;;  %v326_v18 = vld [vmem:[%s6049_s1 + $0x908] sm:$0xff] }
  0x7f   :  { %2862 = vmatpush1.bf16.msra.mxu1 %v2861_v19  ;;  %2464 = vmatprep.subr.bf16.mxu0 %v2463_v22  ;;  %v330_v19 = vld [vmem:[%s6049_s1 + $0x928] sm:$0xff]  ;;  %v2481_v22 = vpack.c.bf16 %v321_v13, %v317_v12  ;;  %v357_v12 = vld [vmem:[%s6049_s1 + $0xa00] sm:$0xff] }
  0x80   :  { %2864 = vmatprep.subr.bf16.mxu1 %v2863_v24  ;;  %v2881_v24 = vpack.c.bf16 %v323_v17, %v319_v16  ;;  %v2483_v27 = vpack.c.bf16 %v330_v19, %v326_v18  ;;  %v361_v13 = vld [vmem:[%s6049_s1 + $0xa20] sm:$0xff]  ;;  %v359_v16 = vld [vmem:[%s6049_s1 + $0xa10] sm:$0xff]  ;;  %v366_v18 = vld [vmem:[%s6049_s1 + $0xa48] sm:$0xff] }
  0x81   :  { %v363_v17 = vld [vmem:[%s6049_s1 + $0xa30] sm:$0xff]  ;;  %v370_v19 = vld [vmem:[%s6049_s1 + $0xa68] sm:$0xff] }
  0x82   :  { %2466 = vmatpush1.bf16.msra.mxu0 %v2465_v33  ;;  %v334_v33 = vld [vmem:[%s6049_s1 + $0x948] sm:$0xff] }
  0x83   :  { %2866 = vmatpush1.bf16.msra.mxu1 %v2865_v34  ;;  %2468 = vmatprep.subr.bf16.mxu0 %v2467_v38  ;;  %v338_v34 = vld [vmem:[%s6049_s1 + $0x968] sm:$0xff]  ;;  %v2485_v38 = vpack.c.bf16 %v329_v26, %v325_v25  ;;  %v365_v25 = vld [vmem:[%s6049_s1 + $0xa40] sm:$0xff] }
  0x84   :  { %2868 = vmatprep.subr.bf16.mxu1 %v2867_v35  ;;  %v2885_v35 = vpack.c.bf16 %v331_v32, %v327_v31  ;;  %v2487_v41 = vpack.c.bf16 %v338_v34, %v334_v33  ;;  %v369_v26 = vld [vmem:[%s6049_s1 + $0xa60] sm:$0xff]  ;;  %v367_v31 = vld [vmem:[%s6049_s1 + $0xa50] sm:$0xff]  ;;  %v374_v33 = vld [vmem:[%s6049_s1 + $0xa88] sm:$0xff] }
  0x85   :  { %1151 = vmatmul.mubr.f32.vlgmr.msra.gmra.mrb[0].mxu0 %v909_v45  ;;  %v371_v32 = vld [vmem:[%s6049_s1 + $0xa70] sm:$0xff]  ;;  %v378_v34 = vld [vmem:[%s6049_s1 + $0xaa8] sm:$0xff] }
  0x86   :  { %1648 = vmatmul.mubr.f32.vlgmr.msra.gmra.mrb[0].mxu1 %v909_v45  ;;  %2470 = vmatpush1.bf16.msra.mxu0 %v2469_v48  ;;  %v342_v45 = vld [vmem:[%s6049_s1 + $0x988] sm:$0xff]  ;;  %v348_v48 = vld [vmem:[%s6049_s1 + $0x9b8] sm:$0xff] }
  0x87   :  { %2870 = vmatpush1.bf16.msra.mxu1 %v2869_v49  ;;  %2472 = vmatprep.subr.bf16.mxu0 %v2471_v51  ;;  %v2489_v49 = vpack.c.bf16 %v337_v40, %v333_v39  ;;  %v2491_v51 = vpack.c.bf16 %v346_v46, %v342_v45  ;;  %v373_v39 = vld [vmem:[%s6049_s1 + $0xa80] sm:$0xff]  ;;  %v382_v45 = vld [vmem:[%s6049_s1 + $0xac8] sm:$0xff] }
  0x88   :  { %2872 = vmatprep.subr.bf16.mxu1 %v2871_v52  ;;  %1221 = vmatprep.mubr.f32.mxu0 %v944_v9  ;;  %v2891_v52 = vpack.c.bf16 %v348_v48, %v344_v47  ;;  %v377_v40 = vld [vmem:[%s6049_s1 + $0xaa0] sm:$0xff]  ;;  %v386_v46 = vld [vmem:[%s6049_s1 + $0xae8] sm:$0xff]  ;;  %v384_v47 = vld [vmem:[%s6049_s1 + $0xad8] sm:$0xff] }
  0x89   :  { %1718 = vmatprep.mubr.f32.mxu1 %v944_v9  ;;  %v364_v9 = vld [vmem:[%s6049_s1 + $0xa38] sm:$0xff] }
  0x8a   :  { %2474 = vmatpush1.bf16.msra.mxu0 %v2473_v58  ;;  %v356_v58 = vld [vmem:[%s6049_s1 + $0x9f8] sm:$0xff] }
  0x8b   :  { %2874 = vmatpush1.bf16.msra.mxu1 %v2873_v59  ;;  %2476 = vmatprep.subr.bf16.mxu0 %v2475_v60  ;;  %v2493_v59 = vpack.c.bf16 %v345_v30, %v341_v29  ;;  %v2893_v60 = vpack.c.bf16 %v347_v54, %v343_v53  ;;  %v2895_v0 = vpack.c.bf16 %v356_v58, %v352_v57  ;;  %v388_v48 = vld [vmem:[%s6049_s1 + $0xaf8] sm:$0xff]  ;;  %v381_v29 = vld [vmem:[%s6049_s1 + $0xac0] sm:$0xff]  ;;  %v383_v53 = vld [vmem:[%s6049_s1 + $0xad0] sm:$0xff] }
  0x8c   :  { %2876 = vmatprep.subr.bf16.mxu1 %v2875_v63  ;;  %v2495_v63 = vpack.c.bf16 %v354_v56, %v350_v55  ;;  %v385_v30 = vld [vmem:[%s6049_s1 + $0xae0] sm:$0xff]  ;;  %v387_v54 = vld [vmem:[%s6049_s1 + $0xaf0] sm:$0xff]  ;;  %v390_v55 = vld [vmem:[%s6049_s1 + $0xb08] sm:$0xff] }
  0x8d   :  { %v394_v56 = vld [vmem:[%s6049_s1 + $0xb28] sm:$0xff]  ;;  %v392_v57 = vld [vmem:[%s6049_s1 + $0xb18] sm:$0xff] }
  0x8e   :  { %2478 = vmatpush1.bf16.msra.mxu0 %v2477_v10  ;;  %v2497_v10 = vpack.c.bf16 %v353_v62, %v349_v61  ;;  %v396_v58 = vld [vmem:[%s6049_s1 + $0xb38] sm:$0xff]  ;;  %v389_v61 = vld [vmem:[%s6049_s1 + $0xb00] sm:$0xff] }
  0x8f   :  { %2878 = vmatpush1.bf16.msra.mxu1 %v2877_v11  ;;  %2480 = vmatprep.subr.bf16.mxu0 %v2479_v14  ;;  %v2897_v11 = vpack.c.bf16 %v355_v2, %v351_v1  ;;  %v2499_v14 = vpack.c.bf16 %v362_v7, %v358_v5  ;;  %v393_v62 = vld [vmem:[%s6049_s1 + $0xb20] sm:$0xff]  ;;  %v391_v1 = vld [vmem:[%s6049_s1 + $0xb10] sm:$0xff]  ;;  %v398_v5 = vld [vmem:[%s6049_s1 + $0xb48] sm:$0xff] }
  0x90   :  { %2880 = vmatprep.subr.bf16.mxu1 %v2879_v15  ;;  %v2899_v15 = vpack.c.bf16 %v364_v9, %v360_v8  ;;  %v395_v2 = vld [vmem:[%s6049_s1 + $0xb30] sm:$0xff]  ;;  %v402_v7 = vld [vmem:[%s6049_s1 + $0xb68] sm:$0xff]  ;;  %v400_v8 = vld [vmem:[%s6049_s1 + $0xb58] sm:$0xff] }
  0x91   :  { %v404_v9 = vld [vmem:[%s6049_s1 + $0xb78] sm:$0xff] }
  0x92   :  { %2482 = vmatpush1.bf16.msra.mxu0 %v2481_v22  ;;  %v2501_v22 = vpack.c.bf16 %v361_v13, %v357_v12  ;;  %v397_v12 = vld [vmem:[%s6049_s1 + $0xb40] sm:$0xff] }
  0x93   :  { %2882 = vmatpush1.bf16.msra.mxu1 %v2881_v24  ;;  %2484 = vmatprep.subr.bf16.mxu0 %v2483_v27  ;;  %v2901_v24 = vpack.c.bf16 %v363_v17, %v359_v16  ;;  %v2503_v27 = vpack.c.bf16 %v370_v19, %v366_v18  ;;  %v401_v13 = vld [vmem:[%s6049_s1 + $0xb60] sm:$0xff]  ;;  %v399_v16 = vld [vmem:[%s6049_s1 + $0xb50] sm:$0xff]  ;;  %v406_v18 = vld [vmem:[%s6049_s1 + $0xb88] sm:$0xff] }
  0x94   :  { %2884 = vmatprep.subr.bf16.mxu1 %v2883_v28  ;;  %v2903_v28 = vpack.c.bf16 %v372_v21, %v368_v20  ;;  %v403_v17 = vld [vmem:[%s6049_s1 + $0xb70] sm:$0xff]  ;;  %v410_v19 = vld [vmem:[%s6049_s1 + $0xba8] sm:$0xff]  ;;  %v408_v20 = vld [vmem:[%s6049_s1 + $0xb98] sm:$0xff] }
  0x95   :  { %v412_v21 = vld [vmem:[%s6049_s1 + $0xbb8] sm:$0xff] }
  0x96   :  { %2486 = vmatpush1.bf16.msra.mxu0 %v2485_v38  ;;  %v2505_v38 = vpack.c.bf16 %v369_v26, %v365_v25  ;;  %v405_v25 = vld [vmem:[%s6049_s1 + $0xb80] sm:$0xff] }
  0x97   :  { %2886 = vmatpush1.bf16.msra.mxu1 %v2885_v35  ;;  %2488 = vmatprep.subr.bf16.mxu0 %v2487_v41  ;;  %v2905_v35 = vpack.c.bf16 %v371_v32, %v367_v31  ;;  %v2507_v41 = vpack.c.bf16 %v378_v34, %v374_v33  ;;  %v409_v26 = vld [vmem:[%s6049_s1 + $0xba0] sm:$0xff]  ;;  %v407_v31 = vld [vmem:[%s6049_s1 + $0xb90] sm:$0xff]  ;;  %v414_v33 = vld [vmem:[%s6049_s1 + $0xbc8] sm:$0xff] }
  0x98   :  { %2888 = vmatprep.subr.bf16.mxu1 %v2887_v42  ;;  %v2907_v42 = vpack.c.bf16 %v380_v37, %v376_v36  ;;  %v411_v32 = vld [vmem:[%s6049_s1 + $0xbb0] sm:$0xff]  ;;  %v418_v34 = vld [vmem:[%s6049_s1 + $0xbe8] sm:$0xff]  ;;  %v416_v36 = vld [vmem:[%s6049_s1 + $0xbd8] sm:$0xff] }
  0x99   :  { %v420_v37 = vld [vmem:[%s6049_s1 + $0xbf8] sm:$0xff] }
  0x9a   :  { %2490 = vmatpush1.bf16.msra.mxu0 %v2489_v49  ;;  %v2509_v49 = vpack.c.bf16 %v377_v40, %v373_v39  ;;  %v2925_v39 = vpack.c.bf16 %v411_v32, %v407_v31  ;;  %v417_v40 = vld [vmem:[%s6049_s1 + $0xbe0] sm:$0xff] }
  0x9b   :  { %2890 = vmatpush1.bf16.msra.mxu1 %v2889_v50  ;;  %2492 = vmatprep.subr.bf16.mxu0 %v2491_v51  ;;  %v2909_v50 = vpack.c.bf16 %v379_v44, %v375_v43  ;;  %v2511_v51 = vpack.c.bf16 %v386_v46, %v382_v45  ;;  %v2527_v43 = vpack.c.bf16 %v418_v34, %v414_v33  ;;  %v422_v45 = vld [vmem:[%s6049_s1 + $0xc08] sm:$0xff]  ;;  %v445_v31 = vld [vmem:[%s6049_s1 + $0xcc0] sm:$0xff] }
  0x9c   :  { %2892 = vmatprep.subr.bf16.mxu1 %v2891_v52  ;;  %v2911_v52 = vpack.c.bf16 %v388_v48, %v384_v47  ;;  %v2927_v44 = vpack.c.bf16 %v420_v37, %v416_v36  ;;  %v426_v46 = vld [vmem:[%s6049_s1 + $0xc28] sm:$0xff]  ;;  %v424_v47 = vld [vmem:[%s6049_s1 + $0xc18] sm:$0xff]  ;;  %v449_v32 = vld [vmem:[%s6049_s1 + $0xce0] sm:$0xff] }
  0x9d   :  { %v428_v48 = vld [vmem:[%s6049_s1 + $0xc38] sm:$0xff]  ;;  %v447_v36 = vld [vmem:[%s6049_s1 + $0xcd0] sm:$0xff] }
  0x9e   :  { %2494 = vmatpush1.bf16.msra.mxu0 %v2493_v59  ;;  %v2513_v59 = vpack.c.bf16 %v385_v30, %v381_v29  ;;  %v451_v37 = vld [vmem:[%s6049_s1 + $0xcf0] sm:$0xff] }
  0x9f   :  { %2894 = vmatpush1.bf16.msra.mxu1 %v2893_v60  ;;  %2496 = vmatprep.subr.bf16.mxu0 %v2495_v63  ;;  %v2913_v60 = vpack.c.bf16 %v387_v54, %v383_v53  ;;  %v2515_v63 = vpack.c.bf16 %v394_v56, %v390_v55  ;;  %v2531_v53 = vpack.c.bf16 %v426_v46, %v422_v45  ;;  %v423_v55 = vld [vmem:[%s6049_s1 + $0xc10] sm:$0xff] }
  0xa0   :  { %2896 = vmatprep.subr.bf16.mxu1 %v2895_v0  ;;  %v2915_v0 = vpack.c.bf16 %v396_v58, %v392_v57  ;;  %v2931_v54 = vpack.c.bf16 %v428_v48, %v424_v47  ;;  %v427_v56 = vld [vmem:[%s6049_s1 + $0xc30] sm:$0xff]  ;;  %v430_v57 = vld [vmem:[%s6049_s1 + $0xc48] sm:$0xff] }
  0xa1   :  { %v434_v58 = vld [vmem:[%s6049_s1 + $0xc68] sm:$0xff]  ;;  %v455_v47 = vld [vmem:[%s6049_s1 + $0xd10] sm:$0xff] }
  0xa2   :  { %2498 = vmatpush1.bf16.msra.mxu0 %v2497_v10  ;;  %v2517_v10 = vpack.c.bf16 %v393_v62, %v389_v61  ;;  %v459_v48 = vld [vmem:[%s6049_s1 + $0xd30] sm:$0xff] }
  0xa3   :  { %2898 = vmatpush1.bf16.msra.mxu1 %v2897_v11  ;;  %2500 = vmatprep.subr.bf16.mxu0 %v2499_v14  ;;  %v2917_v11 = vpack.c.bf16 %v395_v2, %v391_v1  ;;  %v2519_v14 = vpack.c.bf16 %v402_v7, %v398_v5  ;;  %v2933_v1 = vpack.c.bf16 %v427_v56, %v423_v55  ;;  %v429_v2 = vld [vmem:[%s6049_s1 + $0xc40] sm:$0xff] }
  0xa4   :  { %2900 = vmatprep.subr.bf16.mxu1 %v2899_v15  ;;  %v2919_v15 = vpack.c.bf16 %v404_v9, %v400_v8  ;;  %v433_v5 = vld [vmem:[%s6049_s1 + $0xc60] sm:$0xff]  ;;  %v2535_v7 = vpack.c.bf16 %v434_v58, %v430_v57  ;;  %v438_v9 = vld [vmem:[%s6049_s1 + $0xc88] sm:$0xff]  ;;  %v463_v57 = vld [vmem:[%s6049_s1 + $0xd50] sm:$0xff] }
  0xa5   :  { %v467_v58 = vld [vmem:[%s6049_s1 + $0xd70] sm:$0xff] }
  0xa6   :  { %2502 = vmatpush1.bf16.msra.mxu0 %v2501_v22  ;;  %v2521_v22 = vpack.c.bf16 %v401_v13, %v397_v12  ;;  %v444_v12 = vld [vmem:[%s6049_s1 + $0xcb8] sm:$0xff] }
  0xa7   :  { %2902 = vmatpush1.bf16.msra.mxu1 %v2901_v24  ;;  %2504 = vmatprep.subr.bf16.mxu0 %v2503_v27  ;;  %v2921_v24 = vpack.c.bf16 %v403_v17, %v399_v16  ;;  %v2523_v27 = vpack.c.bf16 %v410_v19, %v406_v18  ;;  %v437_v16 = vld [vmem:[%s6049_s1 + $0xc80] sm:$0xff] }
  0xa8   :  { %2904 = vmatprep.subr.bf16.mxu1 %v2903_v28  ;;  %v2923_v28 = vpack.c.bf16 %v412_v21, %v408_v20  ;;  %v441_v17 = vld [vmem:[%s6049_s1 + $0xca0] sm:$0xff]  ;;  %v439_v20 = vld [vmem:[%s6049_s1 + $0xc90] sm:$0xff] }
  0xa9   :  { %v443_v21 = vld [vmem:[%s6049_s1 + $0xcb0] sm:$0xff] }
  0xaa   :  { %2506 = vmatpush1.bf16.msra.mxu0 %v2505_v38  ;;  %v413_v38 = vld [vmem:[%s6049_s1 + $0xbc0] sm:$0xff] }
  0xab   :  { %2906 = vmatpush1.bf16.msra.mxu1 %v2905_v35  ;;  %2508 = vmatprep.subr.bf16.mxu0 %v2507_v41  ;;  %v2525_v35 = vpack.c.bf16 %v409_v26, %v405_v25  ;;  %v415_v41 = vld [vmem:[%s6049_s1 + $0xbd0] sm:$0xff]  ;;  %v2529_v29 = vpack.c.bf16 %v417_v40, %v413_v38  ;;  %v448_v25 = vld [vmem:[%s6049_s1 + $0xcd8] sm:$0xff]  ;;  %v454_v38 = vld [vmem:[%s6049_s1 + $0xd08] sm:$0xff] }
  0xac   :  { %2908 = vmatprep.subr.bf16.mxu1 %v2907_v42  ;;  %v419_v42 = vld [vmem:[%s6049_s1 + $0xbf0] sm:$0xff]  ;;  %v452_v26 = vld [vmem:[%s6049_s1 + $0xcf8] sm:$0xff] }
  0xad   :  { %v2929_v30 = vpack.c.bf16 %v419_v42, %v415_v41  ;;  %v2943_v34 = vpack.c.bf16 %v452_v26, %v448_v25  ;;  %v460_v40 = vld [vmem:[%s6049_s1 + $0xd38] sm:$0xff]  ;;  %v2545_v41 = vpack.c.bf16 %v449_v32, %v445_v31  ;;  %v2945_v42 = vpack.c.bf16 %v451_v37, %v447_v36  ;;  %v485_v31 = vld [vmem:[%s6049_s1 + $0xe00] sm:$0xff]  ;;  %v487_v36 = vld [vmem:[%s6049_s1 + $0xe10] sm:$0xff] }
  0xae   :  { %2510 = vmatpush1.bf16.msra.mxu0 %v2509_v49  ;;  %v3246_v49 = vld [vmem:[%s6048_s0 + $0xc] ss:$26 sps:$4 sm:$0xff]   ;;  %v488_v25 = vld [vmem:[%s6049_s1 + $0xe18] sm:$0xff]  ;;  %v491_v37 = vld [vmem:[%s6049_s1 + $0xe30] sm:$0xff] }
  0xaf   :  { %2910 = vmatpush1.bf16.msra.mxu1 %v2909_v50  ;;  %2512 = vmatprep.subr.bf16.mxu0 %v2511_v51  ;;  %v3247_v50 = vld [vmem:[%s6048_s0 + $0x40] ss:$26 sps:$4 sm:$0xff]   ;;  %v4569_v61 = vrot.slane %v3246_v49, %v3626_v23  ;;  %v462_v49 = vld [vmem:[%s6049_s1 + $0xd48] sm:$0xff] }
  0xb0   :  { %2912 = vmatprep.subr.bf16.mxu1 %v2911_v52  ;;  %v421_v51 = vld [vmem:[%s6049_s1 + $0xc00] sm:$0xff]  ;;  %v4572_v62 = vrot.slane %v3247_v50, %v3626_v23  ;;  %v466_v50 = vld [vmem:[%s6049_s1 + $0xd68] sm:$0xff]  ;;  %v492_v26 = vld [vmem:[%s6049_s1 + $0xe38] sm:$0xff] }
  0xb1   :  { %v425_v52 = vld [vmem:[%s6049_s1 + $0xc20] sm:$0xff]  ;;  %v2551_v55 = vpack.c.bf16 %v466_v50, %v462_v49  ;;  %v502_v49 = vld [vmem:[%s6049_s1 + $0xe88] sm:$0xff] }
  0xb2   :  { %2514 = vmatpush1.bf16.msra.mxu0 %v2513_v59  ;;  %v432_v59 = vld [vmem:[%s6049_s1 + $0xc58] sm:$0xff]  ;;  %v946_v13 = vcombine.high %v4569_v61, %v4572_v62  ;;  %v489_v32 = vld [vmem:[%s6049_s1 + $0xe20] sm:$0xff]  ;;  %v506_v50 = vld [vmem:[%s6049_s1 + $0xea8] sm:$0xff] }
  0xb3   :  { %2914 = vmatpush1.bf16.msra.mxu1 %v2913_v60  ;;  %2516 = vmatprep.subr.bf16.mxu0 %v2515_v63  ;;  %v436_v60 = vld [vmem:[%s6049_s1 + $0xc78] sm:$0xff]  ;;  %v943_v63 = vcombine.low %v4210_v3, %v4213_v4  ;;  %v431_v3 = vld [vmem:[%s6049_s1 + $0xc50] sm:$0xff] }
  0xb4   :  { %2916 = vmatprep.subr.bf16.mxu1 %v2915_v0  ;;  %v2533_v0 = vpack.c.bf16 %v425_v52, %v421_v51  ;;  %v2935_v8 = vpack.c.bf16 %v436_v60, %v432_v59  ;;  %v435_v4 = vld [vmem:[%s6049_s1 + $0xc70] sm:$0xff]  ;;  %v2949_v52 = vpack.c.bf16 %v459_v48, %v455_v47  ;;  %v470_v59 = vld [vmem:[%s6049_s1 + $0xd88] sm:$0xff] }
  0xb5   :  { %v474_v60 = vld [vmem:[%s6049_s1 + $0xda8] sm:$0xff]  ;;  %v495_v47 = vld [vmem:[%s6049_s1 + $0xe50] sm:$0xff] }
  0xb6   :  { %2518 = vmatpush1.bf16.msra.mxu0 %v2517_v10  ;;  %v442_v10 = vld [vmem:[%s6049_s1 + $0xca8] sm:$0xff]  ;;  %v499_v48 = vld [vmem:[%s6049_s1 + $0xe70] sm:$0xff] }
  0xb7   :  { %2918 = vmatpush1.bf16.msra.mxu1 %v2917_v11  ;;  %2520 = vmatprep.subr.bf16.mxu0 %v2519_v14  ;;  %v440_v11 = vld [vmem:[%s6049_s1 + $0xc98] sm:$0xff]  ;;  %v2537_v14 = vpack.c.bf16 %v433_v5, %v429_v2  ;;  %v2539_v18 = vpack.c.bf16 %v442_v10, %v438_v9  ;;  %v2953_v2 = vpack.c.bf16 %v467_v58, %v463_v57  ;;  %v469_v5 = vld [vmem:[%s6049_s1 + $0xd80] sm:$0xff]  ;;  %v475_v9 = vld [vmem:[%s6049_s1 + $0xdb0] sm:$0xff] }
  0xb8   :  { %2920 = vmatprep.subr.bf16.mxu1 %v2919_v15  ;;  %v2937_v15 = vpack.c.bf16 %v435_v4, %v431_v3  ;;  %v2939_v19 = vpack.c.bf16 %v444_v12, %v440_v11  ;;  %v471_v4 = vld [vmem:[%s6049_s1 + $0xd90] sm:$0xff]  ;;  %v478_v10 = vld [vmem:[%s6049_s1 + $0xdc8] sm:$0xff]  ;;  %v480_v12 = vld [vmem:[%s6049_s1 + $0xdd8] sm:$0xff] }
  0xb9   :  { %v482_v11 = vld [vmem:[%s6049_s1 + $0xde8] sm:$0xff]  ;;  %v503_v57 = vld [vmem:[%s6049_s1 + $0xe90] sm:$0xff] }
  0xba   :  { %2522 = vmatpush1.bf16.msra.mxu0 %v2521_v22  ;;  %v446_v22 = vld [vmem:[%s6049_s1 + $0xcc8] sm:$0xff]  ;;  %v507_v58 = vld [vmem:[%s6049_s1 + $0xeb0] sm:$0xff] }
  0xbb   :  { %2922 = vmatpush1.bf16.msra.mxu1 %v2921_v24  ;;  %2524 = vmatprep.subr.bf16.mxu0 %v2523_v27  ;;  %v450_v24 = vld [vmem:[%s6049_s1 + $0xce8] sm:$0xff]  ;;  %v2541_v27 = vpack.c.bf16 %v441_v17, %v437_v16  ;;  %v2957_v17 = vpack.c.bf16 %v475_v9, %v471_v4  ;;  %v511_v4 = vld [vmem:[%s6049_s1 + $0xed0] sm:$0xff] }
  0xbc   :  { %2924 = vmatprep.subr.bf16.mxu1 %v2923_v28  ;;  %v2941_v28 = vpack.c.bf16 %v443_v21, %v439_v20  ;;  %v2543_v33 = vpack.c.bf16 %v450_v24, %v446_v22  ;;  %v486_v20 = vld [vmem:[%s6049_s1 + $0xe08] sm:$0xff]  ;;  %v2559_v21 = vpack.c.bf16 %v482_v11, %v478_v10  ;;  %v515_v9 = vld [vmem:[%s6049_s1 + $0xef0] sm:$0xff] }
  0xbd   :  { %v490_v24 = vld [vmem:[%s6049_s1 + $0xe28] sm:$0xff] }
  0xbe   :  { %2526 = vmatpush1.bf16.msra.mxu0 %v2525_v35  ;;  %v458_v35 = vld [vmem:[%s6049_s1 + $0xd28] sm:$0xff] }
  0xbf   :  { %2926 = vmatpush1.bf16.msra.mxu1 %v2925_v39  ;;  %2528 = vmatprep.subr.bf16.mxu0 %v2527_v43  ;;  %v456_v39 = vld [vmem:[%s6049_s1 + $0xd18] sm:$0xff]  ;;  %v453_v43 = vld [vmem:[%s6049_s1 + $0xd00] sm:$0xff]  ;;  %v2547_v45 = vpack.c.bf16 %v458_v35, %v454_v38  ;;  %v494_v38 = vld [vmem:[%s6049_s1 + $0xe48] sm:$0xff] }
  0xc0   :  { %2928 = vmatprep.subr.bf16.mxu1 %v2927_v44  ;;  %v457_v44 = vld [vmem:[%s6049_s1 + $0xd20] sm:$0xff]  ;;  %v2947_v46 = vpack.c.bf16 %v460_v40, %v456_v39  ;;  %v498_v35 = vld [vmem:[%s6049_s1 + $0xe68] sm:$0xff]  ;;  %v496_v39 = vld [vmem:[%s6049_s1 + $0xe58] sm:$0xff] }
  0xc1   :  { %v2549_v51 = vpack.c.bf16 %v457_v44, %v453_v43  ;;  %v500_v40 = vld [vmem:[%s6049_s1 + $0xe78] sm:$0xff]  ;;  %v493_v43 = vld [vmem:[%s6049_s1 + $0xe40] sm:$0xff]  ;;  %v518_v10 = vld [vmem:[%s6049_s1 + $0xf08] sm:$0xff] }
  0xc2   :  { %2530 = vmatpush1.bf16.msra.mxu0 %v2529_v29  ;;  %v464_v29 = vld [vmem:[%s6049_s1 + $0xd58] sm:$0xff]  ;;  %v497_v44 = vld [vmem:[%s6049_s1 + $0xe60] sm:$0xff]  ;;  %v522_v11 = vld [vmem:[%s6049_s1 + $0xf28] sm:$0xff] }
  0xc3   :  { %2930 = vmatpush1.bf16.msra.mxu1 %v2929_v30  ;;  %2532 = vmatprep.subr.bf16.mxu0 %v2531_v53  ;;  %v468_v30 = vld [vmem:[%s6049_s1 + $0xd78] sm:$0xff]  ;;  %v461_v53 = vld [vmem:[%s6049_s1 + $0xd40] sm:$0xff] }
  0xc4   :  { %2932 = vmatprep.subr.bf16.mxu1 %v2931_v54  ;;  %v465_v54 = vld [vmem:[%s6049_s1 + $0xd60] sm:$0xff]  ;;  %v2951_v56 = vpack.c.bf16 %v468_v30, %v464_v29  ;;  %v504_v29 = vld [vmem:[%s6049_s1 + $0xe98] sm:$0xff] }
  0xc5   :  { %1222 = vmatmul.mubr.f32.vlgmr.msra.gmra.mrb[0].mxu0 %v943_v63  ;;  %v508_v30 = vld [vmem:[%s6049_s1 + $0xeb8] sm:$0xff] }
  0xc6   :  { %1719 = vmatmul.mubr.f32.vlgmr.msra.gmra.mrb[0].mxu1 %v943_v63  ;;  %2534 = vmatpush1.bf16.msra.mxu0 %v2533_v0  ;;  %v472_v63 = vld [vmem:[%s6049_s1 + $0xd98] sm:$0xff] }
  0xc7   :  { %2934 = vmatpush1.bf16.msra.mxu1 %v2933_v1  ;;  %2536 = vmatprep.subr.bf16.mxu0 %v2535_v7  ;;  %v476_v0 = vld [vmem:[%s6049_s1 + $0xdb8] sm:$0xff]  ;;  %v2553_v1 = vpack.c.bf16 %v465_v54, %v461_v53  ;;  %v473_v7 = vld [vmem:[%s6049_s1 + $0xda0] sm:$0xff] }
  0xc8   :  { %2936 = vmatprep.subr.bf16.mxu1 %v2935_v8  ;;  %1292 = vmatprep.mubr.f32.mxu0 %v946_v13  ;;  %v2555_v8 = vpack.c.bf16 %v474_v60, %v470_v59  ;;  %v2955_v3 = vpack.c.bf16 %v476_v0, %v472_v63  ;;  %v2557_v16 = vpack.c.bf16 %v473_v7, %v469_v5  ;;  %v501_v53 = vld [vmem:[%s6049_s1 + $0xe80] sm:$0xff]  ;;  %v510_v59 = vld [vmem:[%s6049_s1 + $0xec8] sm:$0xff]  ;;  %v512_v63 = vld [vmem:[%s6049_s1 + $0xed8] sm:$0xff] }
  0xc9   :  { %1789 = vmatprep.mubr.f32.mxu1 %v946_v13  ;;  %v484_v13 = vld [vmem:[%s6049_s1 + $0xdf8] sm:$0xff]  ;;  %v505_v54 = vld [vmem:[%s6049_s1 + $0xea0] sm:$0xff]  ;;  %v514_v60 = vld [vmem:[%s6049_s1 + $0xee8] sm:$0xff] }
  0xca   :  { %2538 = vmatpush1.bf16.msra.mxu0 %v2537_v14  ;;  %v477_v14 = vld [vmem:[%s6049_s1 + $0xdc0] sm:$0xff]  ;;  %v2959_v22 = vpack.c.bf16 %v484_v13, %v480_v12  ;;  %v516_v0 = vld [vmem:[%s6049_s1 + $0xef8] sm:$0xff] }
  0xcb   :  { %2938 = vmatpush1.bf16.msra.mxu1 %v2937_v15  ;;  %2540 = vmatprep.subr.bf16.mxu0 %v2539_v18  ;;  %v481_v15 = vld [vmem:[%s6049_s1 + $0xde0] sm:$0xff]  ;;  %v479_v18 = vld [vmem:[%s6049_s1 + $0xdd0] sm:$0xff]  ;;  %v520_v12 = vld [vmem:[%s6049_s1 + $0xf18] sm:$0xff] }
  0xcc   :  { %2940 = vmatprep.subr.bf16.mxu1 %v2939_v19  ;;  %v483_v19 = vld [vmem:[%s6049_s1 + $0xdf0] sm:$0xff]  ;;  %v509_v5 = vld [vmem:[%s6049_s1 + $0xec0] sm:$0xff]  ;;  %v524_v13 = vld [vmem:[%s6049_s1 + $0xf38] sm:$0xff] }
  0xcd   :  { %v513_v7 = vld [vmem:[%s6049_s1 + $0xee0] sm:$0xff] }
  0xce   :  { %2542 = vmatpush1.bf16.msra.mxu0 %v2541_v27  ;;  %v2561_v27 = vpack.c.bf16 %v481_v15, %v477_v14  ;;  %v2577_v14 = vpack.c.bf16 %v513_v7, %v509_v5  ;;  %v2977_v15 = vpack.c.bf16 %v515_v9, %v511_v4 }
  0xcf   :  { %2942 = vmatpush1.bf16.msra.mxu1 %v2941_v28  ;;  %2544 = vmatprep.subr.bf16.mxu0 %v2543_v33  ;;  %v2961_v28 = vpack.c.bf16 %v483_v19, %v479_v18  ;;  %v2563_v33 = vpack.c.bf16 %v490_v24, %v486_v20  ;;  %v2579_v18 = vpack.c.bf16 %v522_v11, %v518_v10  ;;  %v519_v20 = vld [vmem:[%s6049_s1 + $0xf10] sm:$0xff]  ;;  %v530_v24 = vld [vmem:[%s6049_s1 + $0xf68] sm:$0xff] }
  0xd0   :  { %2944 = vmatprep.subr.bf16.mxu1 %v2943_v34  ;;  %v2963_v34 = vpack.c.bf16 %v492_v26, %v488_v25  ;;  %v2979_v19 = vpack.c.bf16 %v524_v13, %v520_v12  ;;  %v528_v25 = vld [vmem:[%s6049_s1 + $0xf58] sm:$0xff]  ;;  %v551_v10 = vld [vmem:[%s6049_s1 + $0x1010] sm:$0xff]  ;;  %v558_v12 = vld [vmem:[%s6049_s1 + $0x1048] sm:$0xff] }
  0xd1   :  { %v532_v26 = vld [vmem:[%s6049_s1 + $0xf78] sm:$0xff]  ;;  %v555_v11 = vld [vmem:[%s6049_s1 + $0x1030] sm:$0xff]  ;;  %v562_v13 = vld [vmem:[%s6049_s1 + $0x1068] sm:$0xff] }
  0xd2   :  { %2546 = vmatpush1.bf16.msra.mxu0 %v2545_v41  ;;  %v2565_v41 = vpack.c.bf16 %v489_v32, %v485_v31  ;;  %v525_v31 = vld [vmem:[%s6049_s1 + $0xf40] sm:$0xff] }
  0xd3   :  { %2946 = vmatpush1.bf16.msra.mxu1 %v2945_v42  ;;  %2548 = vmatprep.subr.bf16.mxu0 %v2547_v45  ;;  %v2965_v42 = vpack.c.bf16 %v491_v37, %v487_v36  ;;  %v2567_v45 = vpack.c.bf16 %v498_v35, %v494_v38  ;;  %v529_v32 = vld [vmem:[%s6049_s1 + $0xf60] sm:$0xff]  ;;  %v527_v36 = vld [vmem:[%s6049_s1 + $0xf50] sm:$0xff]  ;;  %v534_v38 = vld [vmem:[%s6049_s1 + $0xf88] sm:$0xff] }
  0xd4   :  { %2948 = vmatprep.subr.bf16.mxu1 %v2947_v46  ;;  %v2967_v46 = vpack.c.bf16 %v500_v40, %v496_v39  ;;  %v531_v37 = vld [vmem:[%s6049_s1 + $0xf70] sm:$0xff]  ;;  %v538_v35 = vld [vmem:[%s6049_s1 + $0xfa8] sm:$0xff]  ;;  %v536_v39 = vld [vmem:[%s6049_s1 + $0xf98] sm:$0xff] }
  0xd5   :  { %v540_v40 = vld [vmem:[%s6049_s1 + $0xfb8] sm:$0xff] }
  0xd6   :  { %2550 = vmatpush1.bf16.msra.mxu0 %v2549_v51  ;;  %v2569_v51 = vpack.c.bf16 %v497_v44, %v493_v43  ;;  %v533_v43 = vld [vmem:[%s6049_s1 + $0xf80] sm:$0xff] }
  0xd7   :  { %2950 = vmatpush1.bf16.msra.mxu1 %v2949_v52  ;;  %2552 = vmatprep.subr.bf16.mxu0 %v2551_v55  ;;  %v2969_v52 = vpack.c.bf16 %v499_v48, %v495_v47  ;;  %v2571_v55 = vpack.c.bf16 %v506_v50, %v502_v49  ;;  %v537_v44 = vld [vmem:[%s6049_s1 + $0xfa0] sm:$0xff]  ;;  %v535_v47 = vld [vmem:[%s6049_s1 + $0xf90] sm:$0xff]  ;;  %v542_v49 = vld [vmem:[%s6049_s1 + $0xfc8] sm:$0xff] }
  0xd8   :  { %2952 = vmatprep.subr.bf16.mxu1 %v2951_v56  ;;  %v2971_v56 = vpack.c.bf16 %v508_v30, %v504_v29  ;;  %v539_v48 = vld [vmem:[%s6049_s1 + $0xfb0] sm:$0xff]  ;;  %v546_v50 = vld [vmem:[%s6049_s1 + $0xfe8] sm:$0xff]  ;;  %v544_v29 = vld [vmem:[%s6049_s1 + $0xfd8] sm:$0xff] }
  0xd9   :  { %v548_v30 = vld [vmem:[%s6049_s1 + $0xff8] sm:$0xff] }
  0xda   :  { %2554 = vmatpush1.bf16.msra.mxu0 %v2553_v1  ;;  %v2573_v1 = vpack.c.bf16 %v505_v54, %v501_v53  ;;  %v2989_v53 = vpack.c.bf16 %v539_v48, %v535_v47  ;;  %v545_v54 = vld [vmem:[%s6049_s1 + $0xfe0] sm:$0xff] }
  0xdb   :  { %2954 = vmatpush1.bf16.msra.mxu1 %v2953_v2  ;;  %2556 = vmatprep.subr.bf16.mxu0 %v2555_v8  ;;  %v2973_v2 = vpack.c.bf16 %v507_v58, %v503_v57  ;;  %v2575_v8 = vpack.c.bf16 %v514_v60, %v510_v59  ;;  %v2591_v57 = vpack.c.bf16 %v546_v50, %v542_v49  ;;  %v550_v59 = vld [vmem:[%s6049_s1 + $0x1008] sm:$0xff]  ;;  %v573_v47 = vld [vmem:[%s6049_s1 + $0x10c0] sm:$0xff] }
  0xdc   :  { %2956 = vmatprep.subr.bf16.mxu1 %v2955_v3  ;;  %v2975_v3 = vpack.c.bf16 %v516_v0, %v512_v63  ;;  %v2991_v58 = vpack.c.bf16 %v548_v30, %v544_v29  ;;  %v554_v60 = vld [vmem:[%s6049_s1 + $0x1028] sm:$0xff]  ;;  %v552_v63 = vld [vmem:[%s6049_s1 + $0x1018] sm:$0xff]  ;;  %v577_v48 = vld [vmem:[%s6049_s1 + $0x10e0] sm:$0xff] }
  0xdd   :  { %v556_v0 = vld [vmem:[%s6049_s1 + $0x1038] sm:$0xff]  ;;  %v2595_v4 = vpack.c.bf16 %v554_v60, %v550_v59  ;;  %v575_v29 = vld [vmem:[%s6049_s1 + $0x10d0] sm:$0xff] }
  0xde   :  { %2558 = vmatpush1.bf16.msra.mxu0 %v2557_v16  ;;  %v517_v16 = vld [vmem:[%s6049_s1 + $0xf00] sm:$0xff]  ;;  %v2995_v9 = vpack.c.bf16 %v556_v0, %v552_v63  ;;  %v579_v30 = vld [vmem:[%s6049_s1 + $0x10f0] sm:$0xff] }
  0xdf   :  { %2958 = vmatpush1.bf16.msra.mxu1 %v2957_v17  ;;  %2560 = vmatprep.subr.bf16.mxu0 %v2559_v21  ;;  %v521_v17 = vld [vmem:[%s6049_s1 + $0xf20] sm:$0xff]  ;;  %v523_v21 = vld [vmem:[%s6049_s1 + $0xf30] sm:$0xff] }
  0xe0   :  { %2960 = vmatprep.subr.bf16.mxu1 %v2959_v22  ;;  %v526_v22 = vld [vmem:[%s6049_s1 + $0xf48] sm:$0xff]  ;;  %v583_v63 = vld [vmem:[%s6049_s1 + $0x1110] sm:$0xff] }
  0xe1   :  { %v587_v0 = vld [vmem:[%s6049_s1 + $0x1130] sm:$0xff] }
  0xe2   :  { %2562 = vmatpush1.bf16.msra.mxu0 %v2561_v27  ;;  %v2581_v27 = vpack.c.bf16 %v521_v17, %v517_v16 }
  0xe3   :  { %2962 = vmatpush1.bf16.msra.mxu1 %v2961_v28  ;;  %2564 = vmatprep.subr.bf16.mxu0 %v2563_v33  ;;  %v2981_v28 = vpack.c.bf16 %v523_v21, %v519_v20  ;;  %v2583_v33 = vpack.c.bf16 %v530_v24, %v526_v22  ;;  %v2997_v20 = vpack.c.bf16 %v555_v11, %v551_v10  ;;  %v557_v21 = vld [vmem:[%s6049_s1 + $0x1040] sm:$0xff]  ;;  %v591_v10 = vld [vmem:[%s6049_s1 + $0x1150] sm:$0xff] }
  0xe4   :  { %2964 = vmatprep.subr.bf16.mxu1 %v2963_v34  ;;  %v2983_v34 = vpack.c.bf16 %v532_v26, %v528_v25  ;;  %v561_v22 = vld [vmem:[%s6049_s1 + $0x1060] sm:$0xff]  ;;  %v2599_v24 = vpack.c.bf16 %v562_v13, %v558_v12  ;;  %v566_v26 = vld [vmem:[%s6049_s1 + $0x1088] sm:$0xff]  ;;  %v595_v11 = vld [vmem:[%s6049_s1 + $0x1170] sm:$0xff] }
  0xe5   :  { %v598_v12 = vld [vmem:[%s6049_s1 + $0x1188] sm:$0xff] }
  0xe6   :  { %2566 = vmatpush1.bf16.msra.mxu0 %v2565_v41  ;;  %v2585_v41 = vpack.c.bf16 %v529_v32, %v525_v31  ;;  %v572_v31 = vld [vmem:[%s6049_s1 + $0x10b8] sm:$0xff] }
  0xe7   :  { %2966 = vmatpush1.bf16.msra.mxu1 %v2965_v42  ;;  %2568 = vmatprep.subr.bf16.mxu0 %v2567_v45  ;;  %v2985_v42 = vpack.c.bf16 %v531_v37, %v527_v36  ;;  %v2587_v45 = vpack.c.bf16 %v538_v35, %v534_v38  ;;  %v565_v36 = vld [vmem:[%s6049_s1 + $0x1080] sm:$0xff] }
  0xe8   :  { %2968 = vmatprep.subr.bf16.mxu1 %v2967_v46  ;;  %v2987_v46 = vpack.c.bf16 %v540_v40, %v536_v39  ;;  %v569_v37 = vld [vmem:[%s6049_s1 + $0x10a0] sm:$0xff]  ;;  %v567_v39 = vld [vmem:[%s6049_s1 + $0x1090] sm:$0xff] }
  0xe9   :  { %v571_v40 = vld [vmem:[%s6049_s1 + $0x10b0] sm:$0xff] }
  0xea   :  { %2570 = vmatpush1.bf16.msra.mxu0 %v2569_v51  ;;  %v541_v51 = vld [vmem:[%s6049_s1 + $0xfc0] sm:$0xff] }
  0xeb   :  { %2970 = vmatpush1.bf16.msra.mxu1 %v2969_v52  ;;  %2572 = vmatprep.subr.bf16.mxu0 %v2571_v55  ;;  %v2589_v52 = vpack.c.bf16 %v537_v44, %v533_v43  ;;  %v543_v55 = vld [vmem:[%s6049_s1 + $0xfd0] sm:$0xff]  ;;  %v2593_v5 = vpack.c.bf16 %v545_v54, %v541_v51  ;;  %v576_v43 = vld [vmem:[%s6049_s1 + $0x10d8] sm:$0xff]  ;;  %v582_v51 = vld [vmem:[%s6049_s1 + $0x1108] sm:$0xff] }
  0xec   :  { %2972 = vmatprep.subr.bf16.mxu1 %v2971_v56  ;;  %v547_v56 = vld [vmem:[%s6049_s1 + $0xff0] sm:$0xff]  ;;  %v580_v44 = vld [vmem:[%s6049_s1 + $0x10f8] sm:$0xff] }
  0xed   :  { %v2993_v7 = vpack.c.bf16 %v547_v56, %v543_v55  ;;  %v3007_v50 = vpack.c.bf16 %v580_v44, %v576_v43  ;;  %v588_v54 = vld [vmem:[%s6049_s1 + $0x1138] sm:$0xff]  ;;  %v2609_v55 = vpack.c.bf16 %v577_v48, %v573_v47  ;;  %v3009_v56 = vpack.c.bf16 %v579_v30, %v575_v29  ;;  %v613_v47 = vld [vmem:[%s6049_s1 + $0x1200] sm:$0xff]  ;;  %v615_v29 = vld [vmem:[%s6049_s1 + $0x1210] sm:$0xff] }
  0xee   :  { %2574 = vmatpush1.bf16.msra.mxu0 %v2573_v1  ;;  %v3248_v1 = vld [vmem:[%s6048_s0 + $0x10] ss:$26 sps:$4 sm:$0xff]   ;;  %v616_v43 = vld [vmem:[%s6049_s1 + $0x1218] sm:$0xff]  ;;  %v617_v48 = vld [vmem:[%s6049_s1 + $0x1220] sm:$0xff] }
  0xef   :  { %2974 = vmatpush1.bf16.msra.mxu1 %v2973_v2  ;;  %2576 = vmatprep.subr.bf16.mxu0 %v2575_v8  ;;  %v3250_v2 = vld [vmem:[%s6048_s0 + $0x44] ss:$26 sps:$4 sm:$0xff]   ;;  %v4969_v16 = vrot.slane %v3248_v1, %v3626_v23  ;;  %v590_v1 = vld [vmem:[%s6049_s1 + $0x1148] sm:$0xff]  ;;  %v619_v30 = vld [vmem:[%s6049_s1 + $0x1230] sm:$0xff] }
  0xf0   :  { %2976 = vmatprep.subr.bf16.mxu1 %v2975_v3  ;;  %v549_v8 = vld [vmem:[%s6049_s1 + $0x1000] sm:$0xff]  ;;  %v4972_v17 = vrot.slane %v3250_v2, %v3626_v23  ;;  %v594_v2 = vld [vmem:[%s6049_s1 + $0x1168] sm:$0xff]  ;;  %v620_v44 = vld [vmem:[%s6049_s1 + $0x1238] sm:$0xff] }
  0xf1   :  { %v553_v3 = vld [vmem:[%s6049_s1 + $0x1020] sm:$0xff]  ;;  %v2615_v13 = vpack.c.bf16 %v594_v2, %v590_v1  ;;  %v630_v1 = vld [vmem:[%s6049_s1 + $0x1288] sm:$0xff] }
  0xf2   :  { %2578 = vmatpush1.bf16.msra.mxu0 %v2577_v14  ;;  %v560_v14 = vld [vmem:[%s6049_s1 + $0x1058] sm:$0xff]  ;;  %v980_v32 = vcombine.high %v4969_v16, %v4972_v17  ;;  %v634_v2 = vld [vmem:[%s6049_s1 + $0x12a8] sm:$0xff] }
  0xf3   :  { %2978 = vmatpush1.bf16.msra.mxu1 %v2977_v15  ;;  %2580 = vmatprep.subr.bf16.mxu0 %v2579_v18  ;;  %v564_v15 = vld [vmem:[%s6049_s1 + $0x1078] sm:$0xff]  ;;  %v945_v18 = vcombine.low %v4569_v61, %v4572_v62  ;;  %v559_v61 = vld [vmem:[%s6049_s1 + $0x1050] sm:$0xff] }
  0xf4   :  { %2980 = vmatprep.subr.bf16.mxu1 %v2979_v19  ;;  %v2597_v19 = vpack.c.bf16 %v553_v3, %v549_v8  ;;  %v2999_v25 = vpack.c.bf16 %v564_v15, %v560_v14  ;;  %v563_v62 = vld [vmem:[%s6049_s1 + $0x1070] sm:$0xff]  ;;  %v589_v8 = vld [vmem:[%s6049_s1 + $0x1140] sm:$0xff]  ;;  %v602_v15 = vld [vmem:[%s6049_s1 + $0x11a8] sm:$0xff] }
  0xf5   :  { %v593_v3 = vld [vmem:[%s6049_s1 + $0x1160] sm:$0xff] }
  0xf6   :  { %2582 = vmatpush1.bf16.msra.mxu0 %v2581_v27  ;;  %v570_v27 = vld [vmem:[%s6049_s1 + $0x10a8] sm:$0xff] }
  0xf7   :  { %2982 = vmatpush1.bf16.msra.mxu1 %v2981_v28  ;;  %2584 = vmatprep.subr.bf16.mxu0 %v2583_v33  ;;  %v568_v28 = vld [vmem:[%s6049_s1 + $0x1098] sm:$0xff]  ;;  %v2601_v33 = vpack.c.bf16 %v561_v22, %v557_v21  ;;  %v2603_v38 = vpack.c.bf16 %v570_v27, %v566_v26  ;;  %v3017_v21 = vpack.c.bf16 %v595_v11, %v591_v10  ;;  %v597_v22 = vld [vmem:[%s6049_s1 + $0x1180] sm:$0xff]  ;;  %v603_v26 = vld [vmem:[%s6049_s1 + $0x11b0] sm:$0xff] }
  0xf8   :  { %2984 = vmatprep.subr.bf16.mxu1 %v2983_v34  ;;  %v3001_v34 = vpack.c.bf16 %v563_v62, %v559_v61  ;;  %v3003_v35 = vpack.c.bf16 %v572_v31, %v568_v28  ;;  %v599_v62 = vld [vmem:[%s6049_s1 + $0x1190] sm:$0xff]  ;;  %v606_v27 = vld [vmem:[%s6049_s1 + $0x11c8] sm:$0xff]  ;;  %v608_v31 = vld [vmem:[%s6049_s1 + $0x11d8] sm:$0xff]  ;;  %v2635_v10 = vpack.c.bf16 %v634_v2, %v630_v1 }
  0xf9   :  { %v610_v28 = vld [vmem:[%s6049_s1 + $0x11e8] sm:$0xff] }
  0xfa   :  { %2586 = vmatpush1.bf16.msra.mxu0 %v2585_v41  ;;  %v574_v41 = vld [vmem:[%s6049_s1 + $0x10c8] sm:$0xff] }
  0xfb   :  { %2986 = vmatpush1.bf16.msra.mxu1 %v2985_v42  ;;  %2588 = vmatprep.subr.bf16.mxu0 %v2587_v45  ;;  %v578_v42 = vld [vmem:[%s6049_s1 + $0x10e8] sm:$0xff]  ;;  %v2605_v45 = vpack.c.bf16 %v569_v37, %v565_v36  ;;  %v605_v36 = vld [vmem:[%s6049_s1 + $0x11c0] sm:$0xff] }
  0xfc   :  { %2988 = vmatprep.subr.bf16.mxu1 %v2987_v46  ;;  %v3005_v46 = vpack.c.bf16 %v571_v40, %v567_v39  ;;  %v2607_v49 = vpack.c.bf16 %v578_v42, %v574_v41  ;;  %v609_v37 = vld [vmem:[%s6049_s1 + $0x11e0] sm:$0xff]  ;;  %v607_v39 = vld [vmem:[%s6049_s1 + $0x11d0] sm:$0xff]  ;;  %v614_v41 = vld [vmem:[%s6049_s1 + $0x1208] sm:$0xff] }
  0xfd   :  { %v611_v40 = vld [vmem:[%s6049_s1 + $0x11f0] sm:$0xff]  ;;  %v618_v42 = vld [vmem:[%s6049_s1 + $0x1228] sm:$0xff] }
  0xfe   :  { %2590 = vmatpush1.bf16.msra.mxu0 %v2589_v52  ;;  %v586_v52 = vld [vmem:[%s6049_s1 + $0x1128] sm:$0xff] }
  0xff   :  { %2990 = vmatpush1.bf16.msra.mxu1 %v2989_v53  ;;  %2592 = vmatprep.subr.bf16.mxu0 %v2591_v57  ;;  %v584_v53 = vld [vmem:[%s6049_s1 + $0x1118] sm:$0xff]  ;;  %v581_v57 = vld [vmem:[%s6049_s1 + $0x1100] sm:$0xff]  ;;  %v2611_v59 = vpack.c.bf16 %v586_v52, %v582_v51  ;;  %v622_v51 = vld [vmem:[%s6049_s1 + $0x1248] sm:$0xff] }
 0x100   :  { %2992 = vmatprep.subr.bf16.mxu1 %v2991_v58  ;;  %v585_v58 = vld [vmem:[%s6049_s1 + $0x1120] sm:$0xff]  ;;  %v3011_v60 = vpack.c.bf16 %v588_v54, %v584_v53  ;;  %v626_v52 = vld [vmem:[%s6049_s1 + $0x1268] sm:$0xff]  ;;  %v624_v53 = vld [vmem:[%s6049_s1 + $0x1258] sm:$0xff] }
 0x101   :  { %v628_v54 = vld [vmem:[%s6049_s1 + $0x1278] sm:$0xff]  ;;  %v670_v1 = vld [vmem:[%s6049_s1 + $0x13c8] sm:$0xff] }
 0x102   :  { %2594 = vmatpush1.bf16.msra.mxu0 %v2593_v5  ;;  %v592_v5 = vld [vmem:[%s6049_s1 + $0x1158] sm:$0xff]  ;;  %v674_v2 = vld [vmem:[%s6049_s1 + $0x13e8] sm:$0xff] }
 0x103   :  { %2994 = vmatpush1.bf16.msra.mxu1 %v2993_v7  ;;  %2596 = vmatprep.subr.bf16.mxu0 %v2595_v4  ;;  %v596_v7 = vld [vmem:[%s6049_s1 + $0x1178] sm:$0xff]  ;;  %v2613_v4 = vpack.c.bf16 %v585_v58, %v581_v57  ;;  %v621_v57 = vld [vmem:[%s6049_s1 + $0x1240] sm:$0xff] }
 0x104   :  { %2996 = vmatprep.subr.bf16.mxu1 %v2995_v9  ;;  %v3013_v9 = vpack.c.bf16 %v587_v0, %v583_v63  ;;  %v3015_v14 = vpack.c.bf16 %v596_v7, %v592_v5  ;;  %v625_v58 = vld [vmem:[%s6049_s1 + $0x1260] sm:$0xff]  ;;  %v623_v63 = vld [vmem:[%s6049_s1 + $0x1250] sm:$0xff]  ;;  %v632_v5 = vld [vmem:[%s6049_s1 + $0x1298] sm:$0xff] }
 0x105   :  { %1293 = vmatmul.mubr.f32.vlgmr.msra.gmra.mrb[0].mxu0 %v945_v18  ;;  %v627_v0 = vld [vmem:[%s6049_s1 + $0x1270] sm:$0xff]  ;;  %v636_v7 = vld [vmem:[%s6049_s1 + $0x12b8] sm:$0xff] }
 0x106   :  { %1790 = vmatmul.mubr.f32.vlgmr.msra.gmra.mrb[0].mxu1 %v945_v18  ;;  %2598 = vmatpush1.bf16.msra.mxu0 %v2597_v19  ;;  %v600_v18 = vld [vmem:[%s6049_s1 + $0x1198] sm:$0xff]  ;;  %v3035_v11 = vpack.c.bf16 %v636_v7, %v632_v5 }
 0x107   :  { %2998 = vmatpush1.bf16.msra.mxu1 %v2997_v20  ;;  %2600 = vmatprep.subr.bf16.mxu0 %v2599_v24  ;;  %v604_v19 = vld [vmem:[%s6049_s1 + $0x11b8] sm:$0xff]  ;;  %v2617_v20 = vpack.c.bf16 %v593_v3, %v589_v8  ;;  %v601_v24 = vld [vmem:[%s6049_s1 + $0x11a0] sm:$0xff]  ;;  %v2633_v8 = vpack.c.bf16 %v625_v58, %v621_v57  ;;  %v3033_v3 = vpack.c.bf16 %v627_v0, %v623_v63  ;;  %v663_v63 = vld [vmem:[%s6049_s1 + $0x1390] sm:$0xff] }
 0x108   :  { %3000 = vmatprep.subr.bf16.mxu1 %v2999_v25  ;;  %1363 = vmatprep.mubr.f32.mxu0 %v980_v32  ;;  %v2619_v25 = vpack.c.bf16 %v602_v15, %v598_v12  ;;  %v3019_v61 = vpack.c.bf16 %v604_v19, %v600_v18  ;;  %v631_v12 = vld [vmem:[%s6049_s1 + $0x1290] sm:$0xff]  ;;  %v642_v15 = vld [vmem:[%s6049_s1 + $0x12e8] sm:$0xff]  ;;  %v640_v18 = vld [vmem:[%s6049_s1 + $0x12d8] sm:$0xff] }
 0x109   :  { %1860 = vmatprep.mubr.f32.mxu1 %v980_v32  ;;  %v612_v32 = vld [vmem:[%s6049_s1 + $0x11f8] sm:$0xff]  ;;  %v661_v57 = vld [vmem:[%s6049_s1 + $0x1380] sm:$0xff]  ;;  %v667_v0 = vld [vmem:[%s6049_s1 + $0x13b0] sm:$0xff] }
 0x10a   :  { %2602 = vmatpush1.bf16.msra.mxu0 %v2601_v33  ;;  %v2621_v33 = vpack.c.bf16 %v601_v24, %v597_v22  ;;  %v644_v19 = vld [vmem:[%s6049_s1 + $0x12f8] sm:$0xff]  ;;  %v637_v22 = vld [vmem:[%s6049_s1 + $0x12c0] sm:$0xff] }
 0x10b   :  { %3002 = vmatpush1.bf16.msra.mxu1 %v3001_v34  ;;  %2604 = vmatprep.subr.bf16.mxu0 %v2603_v38  ;;  %v3021_v34 = vpack.c.bf16 %v603_v26, %v599_v62  ;;  %v2623_v38 = vpack.c.bf16 %v610_v28, %v606_v27  ;;  %v641_v24 = vld [vmem:[%s6049_s1 + $0x12e0] sm:$0xff]  ;;  %v639_v62 = vld [vmem:[%s6049_s1 + $0x12d0] sm:$0xff]  ;;  %v646_v27 = vld [vmem:[%s6049_s1 + $0x1308] sm:$0xff] }
 0x10c   :  { %3004 = vmatprep.subr.bf16.mxu1 %v3003_v35  ;;  %v3023_v35 = vpack.c.bf16 %v612_v32, %v608_v31  ;;  %v643_v26 = vld [vmem:[%s6049_s1 + $0x12f0] sm:$0xff]  ;;  %v650_v28 = vld [vmem:[%s6049_s1 + $0x1328] sm:$0xff]  ;;  %v648_v31 = vld [vmem:[%s6049_s1 + $0x1318] sm:$0xff] }
 0x10d   :  { %v652_v32 = vld [vmem:[%s6049_s1 + $0x1338] sm:$0xff]  ;;  %v665_v58 = vld [vmem:[%s6049_s1 + $0x13a0] sm:$0xff] }
 0x10e   :  { %2606 = vmatpush1.bf16.msra.mxu0 %v2605_v45  ;;  %v2625_v45 = vpack.c.bf16 %v609_v37, %v605_v36  ;;  %v645_v36 = vld [vmem:[%s6049_s1 + $0x1300] sm:$0xff]  ;;  %v672_v5 = vld [vmem:[%s6049_s1 + $0x13d8] sm:$0xff] }
 0x10f   :  { %3006 = vmatpush1.bf16.msra.mxu1 %v3005_v46  ;;  %2608 = vmatprep.subr.bf16.mxu0 %v2607_v49  ;;  %v3025_v46 = vpack.c.bf16 %v611_v40, %v607_v39  ;;  %v2627_v49 = vpack.c.bf16 %v618_v42, %v614_v41  ;;  %v649_v37 = vld [vmem:[%s6049_s1 + $0x1320] sm:$0xff]  ;;  %v647_v39 = vld [vmem:[%s6049_s1 + $0x1310] sm:$0xff]  ;;  %v654_v41 = vld [vmem:[%s6049_s1 + $0x1348] sm:$0xff] }
 0x110   :  { %3008 = vmatprep.subr.bf16.mxu1 %v3007_v50  ;;  %v3027_v50 = vpack.c.bf16 %v620_v44, %v616_v43  ;;  %v651_v40 = vld [vmem:[%s6049_s1 + $0x1330] sm:$0xff]  ;;  %v658_v42 = vld [vmem:[%s6049_s1 + $0x1368] sm:$0xff]  ;;  %v656_v43 = vld [vmem:[%s6049_s1 + $0x1358] sm:$0xff] }
 0x111   :  { %v660_v44 = vld [vmem:[%s6049_s1 + $0x1378] sm:$0xff] }
 0x112   :  { %2610 = vmatpush1.bf16.msra.mxu0 %v2609_v55  ;;  %v2629_v55 = vpack.c.bf16 %v617_v48, %v613_v47  ;;  %v653_v47 = vld [vmem:[%s6049_s1 + $0x1340] sm:$0xff]  ;;  %v676_v7 = vld [vmem:[%s6049_s1 + $0x13f8] sm:$0xff] }
 0x113   :  { %3010 = vmatpush1.bf16.msra.mxu1 %v3009_v56  ;;  %2612 = vmatprep.subr.bf16.mxu0 %v2611_v59  ;;  %v3029_v56 = vpack.c.bf16 %v619_v30, %v615_v29  ;;  %v2631_v59 = vpack.c.bf16 %v626_v52, %v622_v51  ;;  %v657_v48 = vld [vmem:[%s6049_s1 + $0x1360] sm:$0xff]  ;;  %v655_v29 = vld [vmem:[%s6049_s1 + $0x1350] sm:$0xff]  ;;  %v662_v51 = vld [vmem:[%s6049_s1 + $0x1388] sm:$0xff] }
 0x114   :  { %3012 = vmatprep.subr.bf16.mxu1 %v3011_v60  ;;  %v3031_v60 = vpack.c.bf16 %v628_v54, %v624_v53  ;;  %v659_v30 = vld [vmem:[%s6049_s1 + $0x1370] sm:$0xff]  ;;  %v666_v52 = vld [vmem:[%s6049_s1 + $0x13a8] sm:$0xff]  ;;  %v664_v53 = vld [vmem:[%s6049_s1 + $0x1398] sm:$0xff] }
 0x115   :  { %v668_v54 = vld [vmem:[%s6049_s1 + $0x13b8] sm:$0xff] }
 0x116   :  { %2614 = vmatpush1.bf16.msra.mxu0 %v2613_v4  ;;  %v629_v4 = vld [vmem:[%s6049_s1 + $0x1280] sm:$0xff] }
 0x117   :  { %3014 = vmatpush1.bf16.msra.mxu1 %v3013_v9  ;;  %2616 = vmatprep.subr.bf16.mxu0 %v2615_v13  ;;  %v633_v9 = vld [vmem:[%s6049_s1 + $0x12a0] sm:$0xff]  ;;  %v635_v13 = vld [vmem:[%s6049_s1 + $0x12b0] sm:$0xff] }
 0x118   :  { %3016 = vmatprep.subr.bf16.mxu1 %v3015_v14  ;;  %v638_v14 = vld [vmem:[%s6049_s1 + $0x12c8] sm:$0xff] }
 0x11a   :  { %2618 = vmatpush1.bf16.msra.mxu0 %v2617_v20  ;;  %v2637_v20 = vpack.c.bf16 %v633_v9, %v629_v4  ;;  %v3053_v4 = vpack.c.bf16 %v667_v0, %v663_v63  ;;  %v673_v9 = vld [vmem:[%s6049_s1 + $0x13e0] sm:$0xff] }
 0x11b   :  { %3018 = vmatpush1.bf16.msra.mxu1 %v3017_v21  ;;  %2620 = vmatprep.subr.bf16.mxu0 %v2619_v25  ;;  %v3037_v21 = vpack.c.bf16 %v635_v13, %v631_v12  ;;  %v2639_v25 = vpack.c.bf16 %v642_v15, %v638_v14  ;;  %v2655_v12 = vpack.c.bf16 %v674_v2, %v670_v1  ;;  %v678_v14 = vld [vmem:[%s6049_s1 + $0x1408] sm:$0xff]  ;;  %v701_v63 = vld [vmem:[%s6049_s1 + $0x14c0] sm:$0xff] }
 0x11c   :  { %3020 = vmatprep.subr.bf16.mxu1 %v3019_v61  ;;  %v3039_v61 = vpack.c.bf16 %v644_v19, %v640_v18  ;;  %v3055_v13 = vpack.c.bf16 %v676_v7, %v672_v5  ;;  %v682_v15 = vld [vmem:[%s6049_s1 + $0x1428] sm:$0xff]  ;;  %v680_v18 = vld [vmem:[%s6049_s1 + $0x1418] sm:$0xff]  ;;  %v705_v0 = vld [vmem:[%s6049_s1 + $0x14e0] sm:$0xff] }
 0x11d   :  { %v684_v19 = vld [vmem:[%s6049_s1 + $0x1438] sm:$0xff]  ;;  %v703_v5 = vld [vmem:[%s6049_s1 + $0x14d0] sm:$0xff] }
 0x11e   :  { %2622 = vmatpush1.bf16.msra.mxu0 %v2621_v33  ;;  %v2641_v33 = vpack.c.bf16 %v641_v24, %v637_v22  ;;  %v707_v7 = vld [vmem:[%s6049_s1 + $0x14f0] sm:$0xff] }
 0x11f   :  { %3022 = vmatpush1.bf16.msra.mxu1 %v3021_v34  ;;  %2624 = vmatprep.subr.bf16.mxu0 %v2623_v38  ;;  %v3041_v34 = vpack.c.bf16 %v643_v26, %v639_v62  ;;  %v2643_v38 = vpack.c.bf16 %v650_v28, %v646_v27  ;;  %v2659_v62 = vpack.c.bf16 %v682_v15, %v678_v14  ;;  %v679_v27 = vld [vmem:[%s6049_s1 + $0x1410] sm:$0xff] }
 0x120   :  { %3024 = vmatprep.subr.bf16.mxu1 %v3023_v35  ;;  %v3043_v35 = vpack.c.bf16 %v652_v32, %v648_v31  ;;  %v3059_v26 = vpack.c.bf16 %v684_v19, %v680_v18  ;;  %v683_v28 = vld [vmem:[%s6049_s1 + $0x1430] sm:$0xff]  ;;  %v686_v31 = vld [vmem:[%s6049_s1 + $0x1448] sm:$0xff] }
 0x121   :  { %v690_v32 = vld [vmem:[%s6049_s1 + $0x1468] sm:$0xff]  ;;  %v711_v18 = vld [vmem:[%s6049_s1 + $0x1510] sm:$0xff] }
 0x122   :  { %2626 = vmatpush1.bf16.msra.mxu0 %v2625_v45  ;;  %v2645_v45 = vpack.c.bf16 %v649_v37, %v645_v36  ;;  %v715_v19 = vld [vmem:[%s6049_s1 + $0x1530] sm:$0xff] }
 0x123   :  { %3026 = vmatpush1.bf16.msra.mxu1 %v3025_v46  ;;  %2628 = vmatprep.subr.bf16.mxu0 %v2627_v49  ;;  %v3045_v46 = vpack.c.bf16 %v651_v40, %v647_v39  ;;  %v2647_v49 = vpack.c.bf16 %v658_v42, %v654_v41  ;;  %v3061_v39 = vpack.c.bf16 %v683_v28, %v679_v27  ;;  %v685_v40 = vld [vmem:[%s6049_s1 + $0x1440] sm:$0xff] }
 0x124   :  { %3028 = vmatprep.subr.bf16.mxu1 %v3027_v50  ;;  %v3047_v50 = vpack.c.bf16 %v660_v44, %v656_v43  ;;  %v689_v41 = vld [vmem:[%s6049_s1 + $0x1460] sm:$0xff]  ;;  %v2663_v42 = vpack.c.bf16 %v690_v32, %v686_v31  ;;  %v694_v44 = vld [vmem:[%s6049_s1 + $0x1488] sm:$0xff]  ;;  %v719_v31 = vld [vmem:[%s6049_s1 + $0x1550] sm:$0xff] }
 0x125   :  { %v723_v32 = vld [vmem:[%s6049_s1 + $0x1570] sm:$0xff] }
 0x126   :  { %2630 = vmatpush1.bf16.msra.mxu0 %v2629_v55  ;;  %v2649_v55 = vpack.c.bf16 %v657_v48, %v653_v47  ;;  %v700_v47 = vld [vmem:[%s6049_s1 + $0x14b8] sm:$0xff] }
 0x127   :  { %3030 = vmatpush1.bf16.msra.mxu1 %v3029_v56  ;;  %2632 = vmatprep.subr.bf16.mxu0 %v2631_v59  ;;  %v3049_v56 = vpack.c.bf16 %v659_v30, %v655_v29  ;;  %v2651_v59 = vpack.c.bf16 %v666_v52, %v662_v51  ;;  %v693_v29 = vld [vmem:[%s6049_s1 + $0x1480] sm:$0xff] }
 0x128   :  { %3032 = vmatprep.subr.bf16.mxu1 %v3031_v60  ;;  %v3051_v60 = vpack.c.bf16 %v668_v54, %v664_v53  ;;  %v697_v30 = vld [vmem:[%s6049_s1 + $0x14a0] sm:$0xff]  ;;  %v695_v53 = vld [vmem:[%s6049_s1 + $0x1490] sm:$0xff] }
 0x129   :  { %v699_v54 = vld [vmem:[%s6049_s1 + $0x14b0] sm:$0xff] }
 0x12a   :  { %2634 = vmatpush1.bf16.msra.mxu0 %v2633_v8  ;;  %v669_v8 = vld [vmem:[%s6049_s1 + $0x13c0] sm:$0xff] }
 0x12b   :  { %3034 = vmatpush1.bf16.msra.mxu1 %v3033_v3  ;;  %2636 = vmatprep.subr.bf16.mxu0 %v2635_v10  ;;  %v2653_v3 = vpack.c.bf16 %v665_v58, %v661_v57  ;;  %v671_v10 = vld [vmem:[%s6049_s1 + $0x13d0] sm:$0xff]  ;;  %v2657_v22 = vpack.c.bf16 %v673_v9, %v669_v8  ;;  %v704_v57 = vld [vmem:[%s6049_s1 + $0x14d8] sm:$0xff]  ;;  %v710_v8 = vld [vmem:[%s6049_s1 + $0x1508] sm:$0xff] }
 0x12c   :  { %3036 = vmatprep.subr.bf16.mxu1 %v3035_v11  ;;  %v675_v11 = vld [vmem:[%s6049_s1 + $0x13f0] sm:$0xff]  ;;  %v708_v58 = vld [vmem:[%s6049_s1 + $0x14f8] sm:$0xff] }
 0x12d   :  { %v3057_v24 = vpack.c.bf16 %v675_v11, %v671_v10  ;;  %v3071_v2 = vpack.c.bf16 %v708_v58, %v704_v57  ;;  %v716_v9 = vld [vmem:[%s6049_s1 + $0x1538] sm:$0xff]  ;;  %v2673_v10 = vpack.c.bf16 %v705_v0, %v701_v63  ;;  %v3073_v11 = vpack.c.bf16 %v707_v7, %v703_v5  ;;  %v741_v63 = vld [vmem:[%s6049_s1 + $0x1600] sm:$0xff]  ;;  %v743_v5 = vld [vmem:[%s6049_s1 + $0x1610] sm:$0xff] }
 0x12e   :  { %2638 = vmatpush1.bf16.msra.mxu0 %v2637_v20  ;;  %v3252_v20 = vld [vmem:[%s6048_s0 + $0x14] ss:$26 sps:$4 sm:$0xff]   ;;  %v744_v57 = vld [vmem:[%s6049_s1 + $0x1618] sm:$0xff]  ;;  %v745_v0 = vld [vmem:[%s6049_s1 + $0x1620] sm:$0xff] }
 0x12f   :  { %3038 = vmatpush1.bf16.msra.mxu1 %v3037_v21  ;;  %2640 = vmatprep.subr.bf16.mxu0 %v2639_v25  ;;  %v3253_v21 = vld [vmem:[%s6048_s0 + $0x48] ss:$26 sps:$4 sm:$0xff]   ;;  %v5369_v36 = vrot.slane %v3252_v20, %v3626_v23  ;;  %v748_v58 = vld [vmem:[%s6049_s1 + $0x1638] sm:$0xff]  ;;  %v747_v7 = vld [vmem:[%s6049_s1 + $0x1630] sm:$0xff] }
 0x130   :  { %3040 = vmatprep.subr.bf16.mxu1 %v3039_v61  ;;  %v677_v25 = vld [vmem:[%s6049_s1 + $0x1400] sm:$0xff]  ;;  %v5372_v37 = vrot.slane %v3253_v21, %v3626_v23  ;;  %v718_v20 = vld [vmem:[%s6049_s1 + $0x1548] sm:$0xff] }
 0x131   :  { %v681_v61 = vld [vmem:[%s6049_s1 + $0x1420] sm:$0xff]  ;;  %v722_v21 = vld [vmem:[%s6049_s1 + $0x1568] sm:$0xff] }
 0x132   :  { %2642 = vmatpush1.bf16.msra.mxu0 %v2641_v33  ;;  %v688_v33 = vld [vmem:[%s6049_s1 + $0x1458] sm:$0xff]  ;;  %v982_v48 = vcombine.high %v5369_v36, %v5372_v37  ;;  %v2679_v27 = vpack.c.bf16 %v722_v21, %v718_v20  ;;  %v758_v20 = vld [vmem:[%s6049_s1 + $0x1688] sm:$0xff] }
 0x133   :  { %3042 = vmatpush1.bf16.msra.mxu1 %v3041_v34  ;;  %2644 = vmatprep.subr.bf16.mxu0 %v2643_v38  ;;  %v692_v34 = vld [vmem:[%s6049_s1 + $0x1478] sm:$0xff]  ;;  %v979_v38 = vcombine.low %v4969_v16, %v4972_v17  ;;  %v687_v16 = vld [vmem:[%s6049_s1 + $0x1450] sm:$0xff]  ;;  %v762_v21 = vld [vmem:[%s6049_s1 + $0x16a8] sm:$0xff] }
 0x134   :  { %3044 = vmatprep.subr.bf16.mxu1 %v3043_v35  ;;  %v2661_v35 = vpack.c.bf16 %v681_v61, %v677_v25  ;;  %v3063_v43 = vpack.c.bf16 %v692_v34, %v688_v33  ;;  %v691_v17 = vld [vmem:[%s6049_s1 + $0x1470] sm:$0xff]  ;;  %v3077_v61 = vpack.c.bf16 %v715_v19, %v711_v18  ;;  %v726_v33 = vld [vmem:[%s6049_s1 + $0x1588] sm:$0xff] }
 0x135   :  { %v730_v34 = vld [vmem:[%s6049_s1 + $0x15a8] sm:$0xff]  ;;  %v751_v18 = vld [vmem:[%s6049_s1 + $0x1650] sm:$0xff] }
 0x136   :  { %2646 = vmatpush1.bf16.msra.mxu0 %v2645_v45  ;;  %v698_v45 = vld [vmem:[%s6049_s1 + $0x14a8] sm:$0xff]  ;;  %v755_v19 = vld [vmem:[%s6049_s1 + $0x1670] sm:$0xff] }
 0x137   :  { %3046 = vmatpush1.bf16.msra.mxu1 %v3045_v46  ;;  %2648 = vmatprep.subr.bf16.mxu0 %v2647_v49  ;;  %v696_v46 = vld [vmem:[%s6049_s1 + $0x1498] sm:$0xff]  ;;  %v2665_v49 = vpack.c.bf16 %v689_v41, %v685_v40  ;;  %v2667_v51 = vpack.c.bf16 %v698_v45, %v694_v44  ;;  %v3081_v40 = vpack.c.bf16 %v723_v32, %v719_v31  ;;  %v725_v41 = vld [vmem:[%s6049_s1 + $0x1580] sm:$0xff]  ;;  %v731_v44 = vld [vmem:[%s6049_s1 + $0x15b0] sm:$0xff] }
 0x138   :  { %3048 = vmatprep.subr.bf16.mxu1 %v3047_v50  ;;  %v3065_v50 = vpack.c.bf16 %v691_v17, %v687_v16  ;;  %v3067_v52 = vpack.c.bf16 %v700_v47, %v696_v46  ;;  %v727_v17 = vld [vmem:[%s6049_s1 + $0x1590] sm:$0xff]  ;;  %v734_v45 = vld [vmem:[%s6049_s1 + $0x15c8] sm:$0xff]  ;;  %v736_v47 = vld [vmem:[%s6049_s1 + $0x15d8] sm:$0xff] }
 0x139   :  { %v738_v46 = vld [vmem:[%s6049_s1 + $0x15e8] sm:$0xff]  ;;  %v759_v31 = vld [vmem:[%s6049_s1 + $0x1690] sm:$0xff] }
 0x13a   :  { %2650 = vmatpush1.bf16.msra.mxu0 %v2649_v55  ;;  %v702_v55 = vld [vmem:[%s6049_s1 + $0x14c8] sm:$0xff]  ;;  %v763_v32 = vld [vmem:[%s6049_s1 + $0x16b0] sm:$0xff] }
 0x13b   :  { %3050 = vmatpush1.bf16.msra.mxu1 %v3049_v56  ;;  %2652 = vmatprep.subr.bf16.mxu0 %v2651_v59  ;;  %v706_v56 = vld [vmem:[%s6049_s1 + $0x14e8] sm:$0xff]  ;;  %v2669_v59 = vpack.c.bf16 %v697_v30, %v693_v29  ;;  %v733_v29 = vld [vmem:[%s6049_s1 + $0x15c0] sm:$0xff] }
 0x13c   :  { %3052 = vmatprep.subr.bf16.mxu1 %v3051_v60  ;;  %v3069_v60 = vpack.c.bf16 %v699_v54, %v695_v53  ;;  %v2671_v1 = vpack.c.bf16 %v706_v56, %v702_v55  ;;  %v737_v30 = vld [vmem:[%s6049_s1 + $0x15e0] sm:$0xff]  ;;  %v735_v53 = vld [vmem:[%s6049_s1 + $0x15d0] sm:$0xff]  ;;  %v742_v55 = vld [vmem:[%s6049_s1 + $0x1608] sm:$0xff] }
 0x13d   :  { %v739_v54 = vld [vmem:[%s6049_s1 + $0x15f0] sm:$0xff]  ;;  %v746_v56 = vld [vmem:[%s6049_s1 + $0x1628] sm:$0xff] }
 0x13e   :  { %2654 = vmatpush1.bf16.msra.mxu0 %v2653_v3  ;;  %v714_v3 = vld [vmem:[%s6049_s1 + $0x1528] sm:$0xff] }
 0x13f   :  { %3054 = vmatpush1.bf16.msra.mxu1 %v3053_v4  ;;  %2656 = vmatprep.subr.bf16.mxu0 %v2655_v12  ;;  %v712_v4 = vld [vmem:[%s6049_s1 + $0x1518] sm:$0xff]  ;;  %v709_v12 = vld [vmem:[%s6049_s1 + $0x1500] sm:$0xff]  ;;  %v2675_v14 = vpack.c.bf16 %v714_v3, %v710_v8  ;;  %v750_v8 = vld [vmem:[%s6049_s1 + $0x1648] sm:$0xff] }
 0x140   :  { %3056 = vmatprep.subr.bf16.mxu1 %v3055_v13  ;;  %v713_v13 = vld [vmem:[%s6049_s1 + $0x1520] sm:$0xff]  ;;  %v3075_v15 = vpack.c.bf16 %v716_v9, %v712_v4  ;;  %v754_v3 = vld [vmem:[%s6049_s1 + $0x1668] sm:$0xff]  ;;  %v752_v4 = vld [vmem:[%s6049_s1 + $0x1658] sm:$0xff] }
 0x141   :  { %v2677_v25 = vpack.c.bf16 %v713_v13, %v709_v12  ;;  %v756_v9 = vld [vmem:[%s6049_s1 + $0x1678] sm:$0xff]  ;;  %v749_v12 = vld [vmem:[%s6049_s1 + $0x1640] sm:$0xff] }
 0x142   :  { %2658 = vmatpush1.bf16.msra.mxu0 %v2657_v22  ;;  %v720_v22 = vld [vmem:[%s6049_s1 + $0x1558] sm:$0xff]  ;;  %v753_v13 = vld [vmem:[%s6049_s1 + $0x1660] sm:$0xff] }
 0x143   :  { %3058 = vmatpush1.bf16.msra.mxu1 %v3057_v24  ;;  %2660 = vmatprep.subr.bf16.mxu0 %v2659_v62  ;;  %v724_v24 = vld [vmem:[%s6049_s1 + $0x1578] sm:$0xff]  ;;  %v717_v62 = vld [vmem:[%s6049_s1 + $0x1540] sm:$0xff] }
 0x144   :  { %3060 = vmatprep.subr.bf16.mxu1 %v3059_v26  ;;  %v721_v26 = vld [vmem:[%s6049_s1 + $0x1560] sm:$0xff]  ;;  %v3079_v28 = vpack.c.bf16 %v724_v24, %v720_v22  ;;  %v760_v22 = vld [vmem:[%s6049_s1 + $0x1698] sm:$0xff] }
 0x145   :  { %1364 = vmatmul.mubr.f32.vlgmr.msra.gmra.mrb[0].mxu0 %v979_v38  ;;  %v764_v24 = vld [vmem:[%s6049_s1 + $0x16b8] sm:$0xff] }
 0x146   :  { %1861 = vmatmul.mubr.f32.vlgmr.msra.gmra.mrb[0].mxu1 %v979_v38  ;;  %2662 = vmatpush1.bf16.msra.mxu0 %v2661_v35  ;;  %v728_v38 = vld [vmem:[%s6049_s1 + $0x1598] sm:$0xff] }
 0x147   :  { %3062 = vmatpush1.bf16.msra.mxu1 %v3061_v39  ;;  %2664 = vmatprep.subr.bf16.mxu0 %v2663_v42  ;;  %v732_v35 = vld [vmem:[%s6049_s1 + $0x15b8] sm:$0xff]  ;;  %v2681_v39 = vpack.c.bf16 %v721_v26, %v717_v62  ;;  %v729_v42 = vld [vmem:[%s6049_s1 + $0x15a0] sm:$0xff] }
 0x148   :  { %3064 = vmatprep.subr.bf16.mxu1 %v3063_v43  ;;  %1434 = vmatprep.mubr.f32.mxu0 %v982_v48  ;;  %v2683_v43 = vpack.c.bf16 %v730_v34, %v726_v33  ;;  %v3083_v16 = vpack.c.bf16 %v732_v35, %v728_v38  ;;  %v757_v62 = vld [vmem:[%s6049_s1 + $0x1680] sm:$0xff]  ;;  %v766_v33 = vld [vmem:[%s6049_s1 + $0x16c8] sm:$0xff]  ;;  %v768_v38 = vld [vmem:[%s6049_s1 + $0x16d8] sm:$0xff] }
 0x149   :  { %1931 = vmatprep.mubr.f32.mxu1 %v982_v48  ;;  %v740_v48 = vld [vmem:[%s6049_s1 + $0x15f8] sm:$0xff]  ;;  %v761_v26 = vld [vmem:[%s6049_s1 + $0x16a0] sm:$0xff]  ;;  %v770_v34 = vld [vmem:[%s6049_s1 + $0x16e8] sm:$0xff] }
 0x14a   :  { %2666 = vmatpush1.bf16.msra.mxu0 %v2665_v49  ;;  %v2685_v49 = vpack.c.bf16 %v729_v42, %v725_v41  ;;  %v772_v35 = vld [vmem:[%s6049_s1 + $0x16f8] sm:$0xff]  ;;  %v765_v41 = vld [vmem:[%s6049_s1 + $0x16c0] sm:$0xff] }
 0x14b   :  { %3066 = vmatpush1.bf16.msra.mxu1 %v3065_v50  ;;  %2668 = vmatprep.subr.bf16.mxu0 %v2667_v51  ;;  %v3085_v50 = vpack.c.bf16 %v731_v44, %v727_v17  ;;  %v2687_v51 = vpack.c.bf16 %v738_v46, %v734_v45  ;;  %v769_v42 = vld [vmem:[%s6049_s1 + $0x16e0] sm:$0xff]  ;;  %v767_v17 = vld [vmem:[%s6049_s1 + $0x16d0] sm:$0xff]  ;;  %v774_v45 = vld [vmem:[%s6049_s1 + $0x1708] sm:$0xff] }
 0x14c   :  { %3068 = vmatprep.subr.bf16.mxu1 %v3067_v52  ;;  %v3087_v52 = vpack.c.bf16 %v740_v48, %v736_v47  ;;  %v771_v44 = vld [vmem:[%s6049_s1 + $0x16f0] sm:$0xff]  ;;  %v778_v46 = vld [vmem:[%s6049_s1 + $0x1728] sm:$0xff]  ;;  %v776_v47 = vld [vmem:[%s6049_s1 + $0x1718] sm:$0xff] }
 0x14d   :  { %v780_v48 = vld [vmem:[%s6049_s1 + $0x1738] sm:$0xff] }
 0x14e   :  { %2670 = vmatpush1.bf16.msra.mxu0 %v2669_v59  ;;  %v2689_v59 = vpack.c.bf16 %v737_v30, %v733_v29  ;;  %v773_v29 = vld [vmem:[%s6049_s1 + $0x1700] sm:$0xff] }
 0x14f   :  { %3070 = vmatpush1.bf16.msra.mxu1 %v3069_v60  ;;  %2672 = vmatprep.subr.bf16.mxu0 %v2671_v1  ;;  %v3089_v60 = vpack.c.bf16 %v739_v54, %v735_v53  ;;  %v2691_v1 = vpack.c.bf16 %v746_v56, %v742_v55  ;;  %v777_v30 = vld [vmem:[%s6049_s1 + $0x1720] sm:$0xff]  ;;  %v775_v53 = vld [vmem:[%s6049_s1 + $0x1710] sm:$0xff]  ;;  %v782_v55 = vld [vmem:[%s6049_s1 + $0x1748] sm:$0xff] }
 0x150   :  { %3072 = vmatprep.subr.bf16.mxu1 %v3071_v2  ;;  %v3091_v2 = vpack.c.bf16 %v748_v58, %v744_v57  ;;  %v779_v54 = vld [vmem:[%s6049_s1 + $0x1730] sm:$0xff]  ;;  %v786_v56 = vld [vmem:[%s6049_s1 + $0x1768] sm:$0xff]  ;;  %v784_v57 = vld [vmem:[%s6049_s1 + $0x1758] sm:$0xff] }
 0x151   :  { %v788_v58 = vld [vmem:[%s6049_s1 + $0x1778] sm:$0xff] }
 0x152   :  { %2674 = vmatpush1.bf16.msra.mxu0 %v2673_v10  ;;  %v2693_v10 = vpack.c.bf16 %v745_v0, %v741_v63  ;;  %v781_v63 = vld [vmem:[%s6049_s1 + $0x1740] sm:$0xff] }
 0x153   :  { %3074 = vmatpush1.bf16.msra.mxu1 %v3073_v11  ;;  %2676 = vmatprep.subr.bf16.mxu0 %v2675_v14  ;;  %v3093_v11 = vpack.c.bf16 %v747_v7, %v743_v5  ;;  %v2695_v14 = vpack.c.bf16 %v754_v3, %v750_v8  ;;  %v785_v0 = vld [vmem:[%s6049_s1 + $0x1760] sm:$0xff]  ;;  %v783_v5 = vld [vmem:[%s6049_s1 + $0x1750] sm:$0xff]  ;;  %v790_v8 = vld [vmem:[%s6049_s1 + $0x1788] sm:$0xff] }
 0x154   :  { %3076 = vmatprep.subr.bf16.mxu1 %v3075_v15  ;;  %v3095_v15 = vpack.c.bf16 %v756_v9, %v752_v4  ;;  %v787_v7 = vld [vmem:[%s6049_s1 + $0x1770] sm:$0xff]  ;;  %v794_v3 = vld [vmem:[%s6049_s1 + $0x17a8] sm:$0xff]  ;;  %v792_v4 = vld [vmem:[%s6049_s1 + $0x1798] sm:$0xff] }
 0x155   :  { %v796_v9 = vld [vmem:[%s6049_s1 + $0x17b8] sm:$0xff] }
 0x156   :  { %2678 = vmatpush1.bf16.msra.mxu0 %v2677_v25  ;;  %v2697_v25 = vpack.c.bf16 %v753_v13, %v749_v12  ;;  %v789_v12 = vld [vmem:[%s6049_s1 + $0x1780] sm:$0xff] }
 0x157   :  { %3078 = vmatpush1.bf16.msra.mxu1 %v3077_v61  ;;  %2680 = vmatprep.subr.bf16.mxu0 %v2679_v27  ;;  %v3097_v61 = vpack.c.bf16 %v755_v19, %v751_v18  ;;  %v2699_v27 = vpack.c.bf16 %v762_v21, %v758_v20  ;;  %v793_v13 = vld [vmem:[%s6049_s1 + $0x17a0] sm:$0xff]  ;;  %v791_v18 = vld [vmem:[%s6049_s1 + $0x1790] sm:$0xff]  ;;  %v798_v20 = vld [vmem:[%s6049_s1 + $0x17c8] sm:$0xff] }
 0x158   :  { %3080 = vmatprep.subr.bf16.mxu1 %v3079_v28  ;;  %v3099_v28 = vpack.c.bf16 %v764_v24, %v760_v22  ;;  %v795_v19 = vld [vmem:[%s6049_s1 + $0x17b0] sm:$0xff]  ;;  %v802_v21 = vld [vmem:[%s6049_s1 + $0x17e8] sm:$0xff]  ;;  %v800_v22 = vld [vmem:[%s6049_s1 + $0x17d8] sm:$0xff] }
 0x159   :  { %v804_v24 = vld [vmem:[%s6049_s1 + $0x17f8] sm:$0xff] }
 0x15a   :  { %2682 = vmatpush1.bf16.msra.mxu0 %v2681_v39  ;;  %v2701_v39 = vpack.c.bf16 %v761_v26, %v757_v62  ;;  %v797_v62 = vld [vmem:[%s6049_s1 + $0x17c0] sm:$0xff] }
 0x15b   :  { %3082 = vmatpush1.bf16.msra.mxu1 %v3081_v40  ;;  %2684 = vmatprep.subr.bf16.mxu0 %v2683_v43  ;;  %v3101_v40 = vpack.c.bf16 %v763_v32, %v759_v31  ;;  %v2703_v43 = vpack.c.bf16 %v770_v34, %v766_v33  ;;  %v801_v26 = vld [vmem:[%s6049_s1 + $0x17e0] sm:$0xff]  ;;  %v799_v31 = vld [vmem:[%s6049_s1 + $0x17d0] sm:$0xff]  ;;  %v806_v33 = vld [vmem:[%s6049_s1 + $0x1808] sm:$0xff] }
 0x15c   :  { %3084 = vmatprep.subr.bf16.mxu1 %v3083_v16  ;;  %v3103_v16 = vpack.c.bf16 %v772_v35, %v768_v38  ;;  %v803_v32 = vld [vmem:[%s6049_s1 + $0x17f0] sm:$0xff]  ;;  %v810_v34 = vld [vmem:[%s6049_s1 + $0x1828] sm:$0xff]  ;;  %v808_v38 = vld [vmem:[%s6049_s1 + $0x1818] sm:$0xff] }
 0x15d   :  { %v812_v35 = vld [vmem:[%s6049_s1 + $0x1838] sm:$0xff] }
 0x15e   :  { %2686 = vmatpush1.bf16.msra.mxu0 %v2685_v49  ;;  %v2705_v49 = vpack.c.bf16 %v769_v42, %v765_v41  ;;  %v805_v41 = vld [vmem:[%s6049_s1 + $0x1800] sm:$0xff] }
 0x15f   :  { %3086 = vmatpush1.bf16.msra.mxu1 %v3085_v50  ;;  %2688 = vmatprep.subr.bf16.mxu0 %v2687_v51  ;;  %v3105_v50 = vpack.c.bf16 %v771_v44, %v767_v17  ;;  %v2707_v51 = vpack.c.bf16 %v778_v46, %v774_v45  ;;  %v809_v42 = vld [vmem:[%s6049_s1 + $0x1820] sm:$0xff]  ;;  %v807_v17 = vld [vmem:[%s6049_s1 + $0x1810] sm:$0xff]  ;;  %v814_v45 = vld [vmem:[%s6049_s1 + $0x1848] sm:$0xff] }
 0x160   :  { %3088 = vmatprep.subr.bf16.mxu1 %v3087_v52  ;;  %v3107_v52 = vpack.c.bf16 %v780_v48, %v776_v47  ;;  %v811_v44 = vld [vmem:[%s6049_s1 + $0x1830] sm:$0xff]  ;;  %v818_v46 = vld [vmem:[%s6049_s1 + $0x1868] sm:$0xff]  ;;  %v816_v47 = vld [vmem:[%s6049_s1 + $0x1858] sm:$0xff] }
 0x161   :  { %v820_v48 = vld [vmem:[%s6049_s1 + $0x1878] sm:$0xff] }
 0x162   :  { %2690 = vmatpush1.bf16.msra.mxu0 %v2689_v59  ;;  %v2709_v59 = vpack.c.bf16 %v777_v30, %v773_v29  ;;  %v3125_v29 = vpack.c.bf16 %v811_v44, %v807_v17  ;;  %v813_v30 = vld [vmem:[%s6049_s1 + $0x1840] sm:$0xff]  ;;  %v2035_v17 = vld [vmem:[%s6051_s3 + $0x10] sm:$0xff]  ;;  %v2036_v44 = vld [vmem:[%s6051_s3 + $0x18] sm:$0xff] }
 0x163   :  { %3090 = vmatpush1.bf16.msra.mxu1 %v3089_v60  ;;  %2692 = vmatprep.subr.bf16.mxu0 %v2691_v1  ;;  %v3109_v60 = vpack.c.bf16 %v779_v54, %v775_v53  ;;  %v2711_v1 = vpack.c.bf16 %v786_v56, %v782_v55  ;;  %v3127_v53 = vpack.c.bf16 %v820_v48, %v816_v47  ;;  %v822_v54 = vld [vmem:[%s6049_s1 + $0x1888] sm:$0xff]  ;;  %v824_v56 = vld [vmem:[%s6049_s1 + $0x1898] sm:$0xff]  ;;  %v2067_v47 = vld [vmem:[%s6051_s3 + $0x110] sm:$0xff] }
 0x164   :  { %3092 = vmatprep.subr.bf16.mxu1 %v3091_v2  ;;  %v3111_v2 = vpack.c.bf16 %v788_v58, %v784_v57  ;;  %v826_v55 = vld [vmem:[%s6049_s1 + $0x18a8] sm:$0xff]  ;;  %v828_v57 = vld [vmem:[%s6049_s1 + $0x18b8] sm:$0xff] }
 0x165   :  { %v2068_v48 = vld [vmem:[%s6051_s3 + $0x118] sm:$0xff] }
 0x166   :  { %2694 = vmatpush1.bf16.msra.mxu0 %v2693_v10  ;;  %v2713_v10 = vpack.c.bf16 %v785_v0, %v781_v63  ;;  %v825_v63 = vld [vmem:[%s6049_s1 + $0x18a0] sm:$0xff]  ;;  %v2731_v0 = vpack.c.bf16 %v826_v55, %v822_v54  ;;  %v2038_v54 = vld [vmem:[%s6051_s3 + $0x28] sm:$0xff] }
 0x167   :  { %3094 = vmatpush1.bf16.msra.mxu1 %v3093_v11  ;;  %2696 = vmatprep.subr.bf16.mxu0 %v2695_v14  ;;  %v3113_v11 = vpack.c.bf16 %v787_v7, %v783_v5  ;;  %v2715_v14 = vpack.c.bf16 %v794_v3, %v790_v8  ;;  %v827_v5 = vld [vmem:[%s6049_s1 + $0x18b0] sm:$0xff]  ;;  %v830_v7 = vld [vmem:[%s6049_s1 + $0x18c8] sm:$0xff]  ;;  %v832_v3 = vld [vmem:[%s6049_s1 + $0x18d8] sm:$0xff] }
 0x168   :  { %3096 = vmatprep.subr.bf16.mxu1 %v3095_v15  ;;  %v3115_v15 = vpack.c.bf16 %v796_v9, %v792_v4  ;;  %v834_v8 = vld [vmem:[%s6049_s1 + $0x18e8] sm:$0xff]  ;;  %v836_v4 = vld [vmem:[%s6049_s1 + $0x18f8] sm:$0xff]  ;;  %v3289_v9 = vmov 0.0   ;;  %v2069_v55 = vld [vmem:[%s6051_s3 + $0x120] sm:$0xff] }
 0x16a   :  { %2698 = vmatpush1.bf16.msra.mxu0 %v2697_v25  ;;  %v2717_v25 = vpack.c.bf16 %v793_v13, %v789_v12 }
 0x16b   :  { %3098 = vmatpush1.bf16.msra.mxu1 %v3097_v61  ;;  %2700 = vmatprep.subr.bf16.mxu0 %v2699_v27  ;;  %v3117_v61 = vpack.c.bf16 %v795_v19, %v791_v18  ;;  %v2719_v27 = vpack.c.bf16 %v802_v21, %v798_v20  ;;  %v2735_v18 = vpack.c.bf16 %v834_v8, %v830_v7  ;;  %v831_v20 = vld [vmem:[%s6049_s1 + $0x18d0] sm:$0xff] }
 0x16c   :  { %3100 = vmatprep.subr.bf16.mxu1 %v3099_v28  ;;  %v3119_v28 = vpack.c.bf16 %v804_v24, %v800_v22  ;;  %v3135_v19 = vpack.c.bf16 %v836_v4, %v832_v3  ;;  %v835_v21 = vld [vmem:[%s6049_s1 + $0x18f0] sm:$0xff]  ;;  %v2049_v22 = vld [vmem:[%s6051_s3 + $0x80] sm:$0xff]  ;;  %v2050_v24 = vld [vmem:[%s6051_s3 + $0x88] sm:$0xff] }
 0x16d   :  { %v2071_v3 = vld [vmem:[%s6051_s3 + $0x130] sm:$0xff]  ;;  %v2072_v4 = vld [vmem:[%s6051_s3 + $0x138] sm:$0xff] }
 0x16e   :  { %2702 = vmatpush1.bf16.msra.mxu0 %v2701_v39  ;;  %v2721_v39 = vpack.c.bf16 %v801_v26, %v797_v62 }
 0x16f   :  { %3102 = vmatpush1.bf16.msra.mxu1 %v3101_v40  ;;  %2704 = vmatprep.subr.bf16.mxu0 %v2703_v43  ;;  %v3121_v40 = vpack.c.bf16 %v803_v32, %v799_v31  ;;  %v2723_v43 = vpack.c.bf16 %v810_v34, %v806_v33  ;;  %v2033_v31 = vld [vmem:[%s6051_s3] sm:$0xff]  ;;  %v2034_v32 = vld [vmem:[%s6051_s3 + $0x8] sm:$0xff]  ;;  %v3139_v33 = vpack.c.bf16 %v2050_v24, %v2049_v22 }
 0x170   :  { %3104 = vmatprep.subr.bf16.mxu1 %v3103_v16  ;;  %v3123_v16 = vpack.c.bf16 %v812_v35, %v808_v38  ;;  %v2066_v38 = vld [vmem:[%s6051_s3 + $0x108] sm:$0xff]  ;;  %v2051_v35 = vld [vmem:[%s6051_s3 + $0x90] sm:$0xff] }
 0x171   :  { %v2074_v22 = vld [vmem:[%s6051_s3 + $0x148] sm:$0xff] }
 0x172   :  { %2706 = vmatpush1.bf16.msra.mxu0 %v2705_v49  ;;  %v981_v49 = vcombine.low %v5369_v36, %v5372_v37  ;;  %v815_v36 = vld [vmem:[%s6049_s1 + $0x1850] sm:$0xff] }
 0x173   :  { %3106 = vmatpush1.bf16.msra.mxu1 %v3105_v50  ;;  %2708 = vmatprep.subr.bf16.mxu0 %v2707_v51  ;;  %v2725_v50 = vpack.c.bf16 %v809_v42, %v805_v41  ;;  %v817_v51 = vld [vmem:[%s6049_s1 + $0x1860] sm:$0xff]  ;;  %v819_v37 = vld [vmem:[%s6049_s1 + $0x1870] sm:$0xff]  ;;  %v2084_v41 = vld [vmem:[%s6051_s3 + $0x198] sm:$0xff] }
 0x174   :  { %3108 = vmatprep.subr.bf16.mxu1 %v3107_v52  ;;  %v2727_v52 = vpack.c.bf16 %v818_v46, %v814_v45  ;;  %v2729_v58 = vpack.c.bf16 %v817_v51, %v813_v30  ;;  %v2086_v30 = vld [vmem:[%s6051_s3 + $0x1a8] sm:$0xff]  ;;  %v3145_v51 = vpack.c.bf16 %v2036_v44, %v2035_v17  ;;  %v2077_v44 = vld [vmem:[%s6051_s3 + $0x160] sm:$0xff] }
 0x175   :  { %v2046_v17 = vld [vmem:[%s6051_s3 + $0x68] sm:$0xff] }
 0x176   :  { %2710 = vmatpush1.bf16.msra.mxu0 %v2709_v59  ;;  %v3129_v59 = vpack.c.bf16 %v819_v37, %v815_v36  ;;  %v2037_v37 = vld [vmem:[%s6051_s3 + $0x20] sm:$0xff] }
 0x177   :  { %3110 = vmatpush1.bf16.msra.mxu1 %v3109_v60  ;;  %2712 = vmatprep.subr.bf16.mxu0 %v2711_v1  ;;  %v821_v60 = vld [vmem:[%s6049_s1 + $0x1880] sm:$0xff]  ;;  %v3131_v1 = vpack.c.bf16 %v828_v57, %v824_v56  ;;  %v3149_v56 = vpack.c.bf16 %v2038_v54, %v2037_v37  ;;  %v2070_v57 = vld [vmem:[%s6051_s3 + $0x128] sm:$0xff]  ;;  %v2080_v37 = vld [vmem:[%s6051_s3 + $0x178] sm:$0xff] }
 0x178   :  { %3112 = vmatprep.subr.bf16.mxu1 %v3111_v2  ;;  %v823_v2 = vld [vmem:[%s6049_s1 + $0x1890] sm:$0xff]  ;;  %v2733_v12 = vpack.c.bf16 %v825_v63, %v821_v60  ;;  %v2056_v60 = vld [vmem:[%s6051_s3 + $0xb8] sm:$0xff] }
 0x179   :  { %v3133_v13 = vpack.c.bf16 %v827_v5, %v823_v2  ;;  %v2087_v63 = vld [vmem:[%s6051_s3 + $0x1b0] sm:$0xff]  ;;  %v2040_v5 = vld [vmem:[%s6051_s3 + $0x38] sm:$0xff] }
 0x17a   :  { %2714 = vmatpush1.bf16.msra.mxu0 %v2713_v10  ;;  %v3254_v10 = vld [vmem:[%s6048_s0 + $0x18] ss:$26 sps:$4 sm:$0x33]  }
 0x17b   :  { %3114 = vmatpush1.bf16.msra.mxu1 %v3113_v11  ;;  %2716 = vmatprep.subr.bf16.mxu0 %v2715_v14  ;;  %v3255_v11 = vld [vmem:[%s6048_s0 + $0x4c] ss:$26 sps:$4 sm:$0x33]   ;;  %v991_v62 = vrot.slane %v3254_v10, %v3626_v23  ;;  %v2039_v2 = vld [vmem:[%s6051_s3 + $0x30] sm:$0xff] }
 0x17c   :  { %3116 = vmatprep.subr.bf16.mxu1 %v3115_v15  ;;  %v829_v14 = vld [vmem:[%s6049_s1 + $0x18c0] sm:$0xff]  ;;  %v998_v26 = vrot.slane %v3255_v11, %v3626_v23  ;;  %v3153_v8 = vpack.c.bf16 %v2040_v5, %v2039_v2  ;;  %v2058_v11 = vld [vmem:[%s6051_s3 + $0xc8] sm:$0xff] }
 0x17d   :  { %v833_v15 = vld [vmem:[%s6049_s1 + $0x18e0] sm:$0xff] }
 0x17e   :  { %2718 = vmatpush1.bf16.msra.mxu0 %v2717_v25  ;;  %v2081_v25 = vld [vmem:[%s6051_s3 + $0x180] sm:$0xff]  ;;  %v999_v42 = vcombine.low %v991_v62, %v998_v26  ;;  %v2091_v62 = vld [vmem:[%s6051_s3 + $0x1d0] sm:$0xff] }
 0x17f   :  { %3118 = vmatpush1.bf16.msra.mxu1 %v3117_v61  ;;  %2720 = vmatprep.subr.bf16.mxu0 %v2719_v27  ;;  %v2082_v61 = vld [vmem:[%s6051_s3 + $0x188] sm:$0xff]  ;;  %v2737_v27 = vpack.c.bf16 %v833_v15, %v829_v14  ;;  %v2065_v23 = vld [vmem:[%s6051_s3 + $0x100] sm:$0xff] }
 0x180   :  { %3120 = vmatprep.subr.bf16.mxu1 %v3119_v28  ;;  %v3137_v28 = vpack.c.bf16 %v835_v21, %v831_v20  ;;  %v3171_v34 = vpack.c.bf16 %v2082_v61, %v2081_v25  ;;  %v2057_v10 = vld [vmem:[%s6051_s3 + $0xc0] sm:$0xff]  ;;  %v2090_v14 = vld [vmem:[%s6051_s3 + $0x1c8] sm:$0xff]  ;;  %v2059_v25 = vld [vmem:[%s6051_s3 + $0xd0] sm:$0xff] }
 0x181   :  { %v2041_v15 = vld [vmem:[%s6051_s3 + $0x40] sm:$0xff]  ;;  %v2060_v61 = vld [vmem:[%s6051_s3 + $0xd8] sm:$0xff] }
 0x182   :  { %2722 = vmatpush1.bf16.msra.mxu0 %v2721_v39  ;;  %v2052_v39 = vld [vmem:[%s6051_s3 + $0x98] sm:$0xff]  ;;  %v2073_v21 = vld [vmem:[%s6051_s3 + $0x140] sm:$0xff]  ;;  %v3159_v26 = vpack.c.bf16 %v2060_v61, %v2059_v25 }
 0x183   :  { %3122 = vmatpush1.bf16.msra.mxu1 %v3121_v40  ;;  %2724 = vmatprep.subr.bf16.mxu0 %v2723_v43  ;;  %v2083_v40 = vld [vmem:[%s6051_s3 + $0x190] sm:$0xff]  ;;  %v3141_v43 = vpack.c.bf16 %v2034_v32, %v2033_v31  ;;  %v3143_v45 = vpack.c.bf16 %v2052_v39, %v2051_v35  ;;  %v3189_v24 = vpack.c.bf16 %v2074_v22, %v2073_v21  ;;  %v2044_v31 = vld [vmem:[%s6051_s3 + $0x58] sm:$0xff]  ;;  %v2062_v39 = vld [vmem:[%s6051_s3 + $0xe8] sm:$0xff] }
 0x184   :  { %3124 = vmatprep.subr.bf16.mxu1 %v3123_v16  ;;  %v3173_v16 = vpack.c.bf16 %v2066_v38, %v2065_v23  ;;  %v3175_v46 = vpack.c.bf16 %v2084_v41, %v2083_v40  ;;  %v2076_v23 = vld [vmem:[%s6051_s3 + $0x158] sm:$0xff]  ;;  %v2061_v38 = vld [vmem:[%s6051_s3 + $0xe0] sm:$0xff]  ;;  %v2094_v41 = vld [vmem:[%s6051_s3 + $0x1e8] sm:$0xff] }
 0x185   :  { %1435 = vmatmul.mubr.f32.vlgmr.msra.gmra.mrb[0].mxu0 %v981_v49  ;;  %v2093_v40 = vld [vmem:[%s6051_s3 + $0x1e0] sm:$0xff] }
 0x186   :  { %1932 = vmatmul.mubr.f32.vlgmr.msra.gmra.mrb[0].mxu1 %v981_v49  ;;  %2726 = vmatpush1.bf16.msra.mxu0 %v2725_v50  ;;  %v2053_v49 = vld [vmem:[%s6051_s3 + $0xa0] sm:$0xff]  ;;  %v2054_v50 = vld [vmem:[%s6051_s3 + $0xa8] sm:$0xff] }
 0x187   :  { %3126 = vmatpush1.bf16.msra.mxu1 %v3125_v29  ;;  %2728 = vmatprep.subr.bf16.mxu0 %v2727_v52  ;;  %v2085_v29 = vld [vmem:[%s6051_s3 + $0x1a0] sm:$0xff]  ;;  %v3177_v52 = vpack.c.bf16 %v2068_v48, %v2067_v47  ;;  %v2063_v47 = vld [vmem:[%s6051_s3 + $0xf0] sm:$0xff]  ;;  %v2064_v48 = vld [vmem:[%s6051_s3 + $0xf8] sm:$0xff] }
 0x188   :  { %3128 = vmatprep.subr.bf16.mxu1 %v3127_v53  ;;  %1505 = vmatprep.mubr.f32.mxu0 %v3289_v9  ;;  %v3147_v53 = vpack.c.bf16 %v2054_v50, %v2053_v49  ;;  %v3179_v36 = vpack.c.bf16 %v2086_v30, %v2085_v29  ;;  %v3167_v50 = vpack.c.bf16 %v2064_v48, %v2063_v47  ;;  %v2095_v29 = vld [vmem:[%s6051_s3 + $0x1f0] sm:$0xff]  ;;  %v2096_v30 = vld [vmem:[%s6051_s3 + $0x1f8] sm:$0xff] }
 0x189   :  { %2002 = vmatprep.mubr.f32.mxu1 %v3289_v9  ;;  %v3185_v9 = vpack.c.bf16 %v2072_v4, %v2071_v3 }
 0x18a   :  { %2730 = vmatpush1.bf16.msra.mxu0 %v2729_v58  ;;  %v3181_v58 = vpack.c.bf16 %v2070_v57, %v2069_v55  ;;  %v849_v57 = vsub.s32 2, %v3590_v6 }
 0x18b   :  { %3130 = vmatpush1.bf16.msra.mxu1 %v3129_v59  ;;  %2732 = vmatprep.subr.bf16.mxu0 %v2731_v0  ;;  %v2055_v59 = vld [vmem:[%s6051_s3 + $0xb0] sm:$0xff] }
 0x18c   :  { %3132 = vmatprep.subr.bf16.mxu1 %v3131_v1  ;;  %v3151_v0 = vpack.c.bf16 %v2056_v60, %v2055_v59  ;;  %v2088_v1 = vld [vmem:[%s6051_s3 + $0x1b8] sm:$0xff]  ;;  %v845_v59 = vsub.s32 1, %v3590_v6  ;;  %v853_v60 = vsub.s32 3, %v3590_v6 }
 0x18d   :  { %v3183_v7 = vpack.c.bf16 %v2088_v1, %v2087_v63 }
 0x18e   :  { %2734 = vmatpush1.bf16.msra.mxu0 %v2733_v12  ;;  %v2089_v12 = vld [vmem:[%s6051_s3 + $0x1c0] sm:$0xff] }
 0x18f   :  { %3134 = vmatpush1.bf16.msra.mxu1 %v3133_v13  ;;  %2736 = vmatprep.subr.bf16.mxu0 %v2735_v18  ;;  %v3155_v13 = vpack.c.bf16 %v2058_v11, %v2057_v10  ;;  %v2042_v18 = vld [vmem:[%s6051_s3 + $0x48] sm:$0xff] }
 0x190   :  { %3136 = vmatprep.subr.bf16.mxu1 %v3135_v19  ;;  %v3187_v19 = vpack.c.bf16 %v2090_v14, %v2089_v12  ;;  %v3157_v20 = vpack.c.bf16 %v2042_v18, %v2041_v15 }
 0x192   :  { %2738 = vmatpush1.bf16.msra.mxu0 %v2737_v27  ;;  %v2092_v27 = vld [vmem:[%s6051_s3 + $0x1d8] sm:$0xff] }
 0x193   :  { %3138 = vmatpush1.bf16.msra.mxu1 %v3137_v28  ;;  %3140 = vmatprep.subr.bf16.mxu0 %v3139_v33  ;;  %v2043_v28 = vld [vmem:[%s6051_s3 + $0x50] sm:$0xff]  ;;  %v3191_v32 = vpack.c.bf16 %v2092_v27, %v2091_v62 }
 0x194   :  { %3172 = vmatprep.subr.bf16.mxu1 %v3171_v34  ;;  %v3161_v33 = vpack.c.bf16 %v2044_v31, %v2043_v28  ;;  %v2075_v34 = vld [vmem:[%s6051_s3 + $0x150] sm:$0xff] }
 0x195   :  { %2262 = vmatmul.mubr.msk.f32.vlgmr.msra.gmra.mrb[0].mxu0 %vm1012_vm0, %v999_v42  ;;  %v3193_v35 = vpack.c.bf16 %v2076_v23, %v2075_v34 }
 0x196   :  { %2263 = vmatmul.mubr.msk.f32.vlgmr.msra.gmra.mrb[0].mxu1 %vm1012_vm0, %v999_v42  ;;  %3142 = vmatpush3.bf16.msra.mxu0 %v3141_v43  ;;  %v3163_v42 = vpack.c.bf16 %v2062_v39, %v2061_v38  ;;  %v3195_v43 = vpack.c.bf16 %v2094_v41, %v2093_v40  ;;  %v2268_v38 = vld [vmem:[%s6052_s4] ss:$0 sm:$0xff] }
 0x197   :  { %3174 = vmatpush3.bf16.msra.mxu1 %v3173_v16  ;;  %3144 = vmatprep.subr.bf16.mxu0 %v3143_v45  ;;  %v2045_v16 = vld [vmem:[%s6051_s3 + $0x60] sm:$0xff] }
 0x198   :  { %3176 = vmatprep.subr.bf16.mxu1 %v3175_v46  ;;  %v3165_v45 = vpack.c.bf16 %v2046_v17, %v2045_v16  ;;  %v2078_v46 = vld [vmem:[%s6051_s3 + $0x168] sm:$0xff] }
 0x199   :  { %v3197_v49 = vpack.c.bf16 %v2078_v46, %v2077_v44 }
 0x19a   :  { %3146 = vmatpush3.bf16.msra.mxu0 %v3145_v51  ;;  %v2047_v51 = vld [vmem:[%s6051_s3 + $0x70] sm:$0xff] }
 0x19b   :  { %3178 = vmatpush3.bf16.msra.mxu1 %v3177_v52  ;;  %3148 = vmatprep.subr.bf16.mxu0 %v3147_v53  ;;  %v3199_v52 = vpack.c.bf16 %v2096_v30, %v2095_v29  ;;  %v2048_v53 = vld [vmem:[%s6051_s3 + $0x78] sm:$0xff] }
 0x19c   :  { %3180 = vmatprep.subr.bf16.mxu1 %v3179_v36  ;;  %v2079_v36 = vld [vmem:[%s6051_s3 + $0x170] sm:$0xff]  ;;  %v3169_v54 = vpack.c.bf16 %v2048_v53, %v2047_v51 }
 0x19d   :  { %v3201_v55 = vpack.c.bf16 %v2080_v37, %v2079_v36 }
 0x19e   :  { %3150 = vmatpush3.bf16.msra.mxu0 %v3149_v56  ;;  %v841_v56 = vsub.s32 0, %v3590_v6 }
 0x19f   :  { %3182 = vmatpush3.bf16.msra.mxu1 %v3181_v58  ;;  %3152 = vmatprep.subr.bf16.mxu0 %v3151_v0  ;;  %v837_v58 = vld [vmem:[%s6050_s2] sm:$0xf] }
 0x1a0   :  { %3184 = vmatprep.subr.bf16.mxu1 %v3183_v7  ;;  %v842_v63 = vrot.slane %v837_v58, %v841_v56  ;;  %v850_v0 = vrot.slane %v837_v58, %v849_v57  ;;  %v846_v1 = vrot.slane %v837_v58, %v845_v59  ;;  %v854_v2 = vrot.slane %v837_v58, %v853_v60 }
 0x1a2   :  { %3154 = vmatpush3.bf16.msra.mxu0 %v3153_v8 }
 0x1a3   :  { %3186 = vmatpush3.bf16.msra.mxu1 %v3185_v9  ;;  %3156 = vmatprep.subr.bf16.mxu0 %v3155_v13 }
 0x1a4   :  { %3188 = vmatprep.subr.bf16.mxu1 %v3187_v19 }
 0x1a6   :  { %3158 = vmatpush3.bf16.msra.mxu0 %v3157_v20 }
 0x1a7   :  { %3190 = vmatpush3.bf16.msra.mxu1 %v3189_v24  ;;  %3160 = vmatprep.subr.bf16.mxu0 %v3159_v26 }
 0x1a8   :  { %3192 = vmatprep.subr.bf16.mxu1 %v3191_v32 }
 0x1aa   :  { %3162 = vmatpush3.bf16.msra.mxu0 %v3161_v33 }
 0x1ab   :  { %3194 = vmatpush3.bf16.msra.mxu1 %v3193_v35  ;;  %3164 = vmatprep.subr.bf16.mxu0 %v3163_v42 }
 0x1ac   :  { %3196 = vmatprep.subr.bf16.mxu1 %v3195_v43 }
 0x1ae   :  { %3166 = vmatpush3.bf16.msra.mxu0 %v3165_v45 }
 0x1af   :  { %3198 = vmatpush3.bf16.msra.mxu1 %v3197_v49  ;;  %3168 = vmatprep.subr.bf16.mxu0 %v3167_v50 }
 0x1b0   :  { %3200 = vmatprep.subr.bf16.mxu1 %v3199_v52 }
 0x1b2   :  { %3170 = vmatpush3.bf16.msra.mxu0 %v3169_v54 }
 0x1b3   :  { %3202 = vmatpush3.bf16.msra.mxu1 %v3201_v55 }
 0x268   :  { %v1507_v5 = vpop.f32.mrb[0].mxu0 }
 0x269   :  { %v2004_v7 = vpop.f32.mrb[0].mxu1  ;;  %v3203_v8 = vadd.f32 %v1507_v5, %v842_v63  ;;  %v1509_v4 = vpop.f32.mrb[1].mxu0 }
 0x26a   :  { %v3205_v3 = vadd.f32 %v2004_v7, %v850_v0  ;;  %v2006_v9 = vpop.f32.mrb[1].mxu1  ;;  %v3204_v10 = vadd.f32 %v1509_v4, %v846_v1 }
 0x26b   :  { %v3206_v11 = vadd.f32 %v2006_v9, %v854_v2  ;;  %v2013_v12 = vmin.f32 %v3203_v8, 0.0  ;;  %vm2009_vm2 = vcmp.gt.f32.partialorder %v3203_v8, 0.0 }
 0x26c   :  { %v2015_v13 = vmin.f32 %v3205_v3, 0.0  ;;  %v2014_v14 = vmin.f32 %v3204_v10, 0.0  ;;  %vm2010_vm1 = vcmp.gt.f32.partialorder %v3204_v10, 0.0  ;;  %vm2011_vm4 = vcmp.gt.f32.partialorder %v3205_v3, 0.0 }
 0x26d   :  { %v2016_v15 = vmin.f32 %v3206_v11, 0.0  ;;  %v2017_v18 = vmul.f32 1.442695, %v2013_v12  ;;  %vm2012_vm3 = vcmp.gt.f32.partialorder %v3206_v11, 0.0 }
 0x26e   :  { %v2021_v19 = vmul.f32 1.442695, %v2015_v13  ;;  %v2019_v20 = vmul.f32 1.442695, %v2014_v14 }
 0x26f   :  { %v2023_v6 = vmul.f32 1.442695, %v2016_v15  ;;  %3256 = vpow2.f32 %v2017_v18 }
 0x270   :  { %3258 = vpow2.f32 %v2021_v19 }
 0x271   :  { %3260 = vpow2.f32 %v2019_v20 }
 0x272   :  { %3262 = vpow2.f32 %v2023_v6 }
 0x279   :  { %v3257_v21 = vpop.eup %3256 }
 0x27a   :  { %v3259_v22 = vpop.eup %3258  ;;  %v2264_v25 = vadd.f32 -1.0, %v3257_v21 }
 0x27b   :  { %v3261_v24 = vpop.eup %3260  ;;  %v2266_v26 = vadd.f32 -1.0, %v3259_v22 }
 0x27c   :  { %v3263_v61 = vpop.eup %3262  ;;  %v2265_v62 = vadd.f32 -1.0, %v3261_v24  ;;  %v2029_v32 = vsel %vm2009_vm2, %v3203_v8, %v2264_v25 }
 0x27d   :  { %v2267_v27 = vadd.f32 -1.0, %v3263_v61  ;;  %v2031_v33 = vsel %vm2011_vm4, %v3205_v3, %v2266_v26 }
 0x27e   :  { %v2030_v28 = vsel %vm2010_vm1, %v3204_v10, %v2265_v62 }
 0x27f   :  { %2168 = vmatprep.mubr.f32.mxu0 %v2030_v28  ;;  %v2032_v31 = vsel %vm2012_vm3, %v3206_v11, %v2267_v27 }
 0x280   :  { %2238 = vmatprep.mubr.f32.mxu1 %v2032_v31  ;;  %2169 = vmatmul.mubr.f32.vlgmr.msra.gmra.mrb[2].mxu0 %v2029_v32 }
 0x281   :  { %2239 = vmatmul.mubr.f32.vlgmr.msra.gmra.mrb[2].mxu1 %v2031_v33 }
 0x353   :  { %v2301_v34 = vpop.f32.mrb[2].mxu0 }
 0x354   :  { %v2336_v23 = vpop.f32.mrb[2].mxu1  ;;  %v2302_v35 = vpop.f32.mrb[3].mxu0 }
 0x355   :  { %v2303_v39 = vadd.f32 %v2302_v35, %v2301_v34  ;;  %v2337_v40 = vpop.f32.mrb[3].mxu1 }
 0x356   :  { %v2338_v41 = vadd.f32 %v2337_v40, %v2336_v23 }
 0x357   :  { %v2171_v42 = vadd.f32 %v2303_v39, %v2268_v38 }
 0x359   :  { %v2241_v43 = vadd.f32 %v2338_v41, %v2171_v42 }
 0x35b   :  { %2245 = vst.msk [vmem:[#allocation2] sm:$0xff] %vm2244_vm5, %v2241_v43 }
 0x35c   :  { %2250 = vsyncadd [#allocation3], 96  ;;  %s3290_s16 = smov [#allocation2]  }
 0x35d   :  { %s2251_s17 = sshll.u32 %s3290_s16, 4  ;;  %s2252_s17 = int_to_ptr.vmem [resolvable:$true] %s2251_s17 }
 0x35e   :  { %s3264_s18 = scalar_lea.vmem %s2252_s17, 32  ;;  %s3268_s0 = scalar_lea.vmem %s2252_s17, 128 }
 0x35f   :  { %p3265_p0 = scmp.ne.s32.totalorder %s2252_s17, %s3264_s18  ;;  %p3269_p1 = scmp.lt.s32.totalorder %s2252_s17, %s2252_s17 }
 0x360   :  { %p3270_p2 = scmp.lt.s32.totalorder %s3268_s0, %s3264_s18 }
 0x362   :  { %p3271_p3 = por %p3270_p2, %p3269_p1 }
 0x364   :  { %p3272_p4 = pnand %p3271_p3, %p3265_p0 }
 0x366   :  { %3275 = shalt.err (!%p3272_p4)
}
 0x367   :  { %s3276_s20 = scalar_lea.hbm %s6053_s5, 32 }
 0x368   :  { %p3277_p5 = scmp.ne.s32.totalorder %s6053_s5, %s3276_s20  ;;  %p3280_p6 = scmp.lt.u32.totalorder %s3276_s20, %s6053_s5 }
 0x36a   :  { %p3282_p7 = pnand %p3280_p6, %p3277_p5 }
 0x36c   :  { %3285 = shalt.err (!%p3282_p7)
}
 0x36d   :  { %s3291_s25 = smov 32   ;;  %s3292_s26 = smov 2  }
 0x36e   :  { %2257 = dma.vmem_to_hbm [thread:$0]  %s2252_s17, 32, %s6053_s5, [#allocation3], %s3291_s25, %s3291_s25, %s3292_s26  }
 0x36f   :  { %3286 = dma.done.wait [#allocation3], 128  }
 0x370   :  { %3287 = vsyncadd [#allocation3], 4294967168 }
 0x371   :  { %2261 = vsyncpa [#allocation3], 1 }

</bundles_post_ra>
